<compile_context>
chip_gen: v7x
topology: tpu7x:2x2x1
jax: 0.10.0
libtpu: 0.0.40
codegen_flags: <defaults>
</compile_context>

<pallas_src>
import functools

import jax
import jax.numpy as jnp
from jax import lax
from jax.experimental import pallas as pl
from jax.experimental.pallas import tpu as pltpu


# ---------------------------------------------------------------------------
# Kernel bodies
# ---------------------------------------------------------------------------

def _conv_taps_bn_relu(src, w_ref, sb_ref, o_ref, acc_ref, h, w):
    """3x3 'same' conv on a padded VMEM-resident source `src` (Ref, (h+2, w+2, Cin)).

    Nine statically-unrolled (HW, Cin) @ (Cin, Cout) MXU matmuls accumulated in an
    f32 VMEM scratch, then folded BatchNorm (scale/shift) + ReLU in f32.
    """
    cin = src.shape[-1]
    acc_ref[...] = jnp.zeros_like(acc_ref)
    for t in range(9):                       # static unroll: no per-tap grid steps / DMAs
        dy, dx = divmod(t, 3)
        tap = src[dy:dy + h, dx:dx + w, :].reshape(h * w, cin)   # bf16 tile
        acc_ref[...] += jnp.dot(tap, w_ref[t],
                                preferred_element_type=jnp.float32)
    sb = sb_ref[...]                                             # (2, Cout): [scale; shift]
    y = acc_ref[...] * sb[0:1, :] + sb[1:2, :]                   # folded BN (eval mode), f32
    o_ref[...] = jnp.maximum(y, 0.0).astype(o_ref.dtype)         # ReLU


def _merge_conv_kernel(f_ref, g_ref, w_ref, sb_ref, o_ref, cat_ref, acc_ref, *, h, w):
    """Fused merge + first conv: cat = [g*f + g, f] is built directly in a VMEM
    scratch (2C channels) from the padded fuse/gauss tiles, then convolved."""
    c = f_ref.shape[-1]
    f = f_ref[...]                                    # (h+2, w+2, c)   bf16
    g = g_ref[...].astype(jnp.float32)                # (h+2, w+2, 1)
    m = g * f.astype(jnp.float32) + g                 # merge in f32 on the VPU
    cat_ref[:, :, :c] = m.astype(cat_ref.dtype)
    cat_ref[:, :, c:] = f
    _conv_taps_bn_relu(cat_ref, w_ref, sb_ref, o_ref, acc_ref, h, w)


def _conv3x3_kernel(x_ref, w_ref, sb_ref, o_ref, acc_ref, *, h, w):
    _conv_taps_bn_relu(x_ref, w_ref, sb_ref, o_ref, acc_ref, h, w)


# ---------------------------------------------------------------------------
# Wrappers
# ---------------------------------------------------------------------------

_VMEM_LIMIT = 48 * 1024 * 1024   # within v7x's 64 MiB physical VMEM


def merge_conv3x3_bn_relu(fuse, g_up, w_hwio, bn_scale, bn_shift,
                          out_dtype=jnp.bfloat16):
    """Fused: ReLU(BN(Conv3x3(cat([g*fuse + g, fuse], channel)))).

    fuse: (N, H, W, C), g_up: (N, H, W, 1), w_hwio: (3, 3, 2C, Cout).
    Zero-padding fuse/g separately and merging in-kernel equals padding the cat.
    """
    n, h, w, c = fuse.shape
    cout = w_hwio.shape[-1]
    fp = jnp.pad(fuse.astype(jnp.bfloat16), ((0, 0), (1, 1), (1, 1), (0, 0)))
    gp = jnp.pad(g_up.astype(jnp.bfloat16), ((0, 0), (1, 1), (1, 1), (0, 0)))
    w9 = w_hwio.reshape(9, 2 * c, cout).astype(jnp.bfloat16)
    sb = jnp.stack([bn_scale, bn_shift], axis=0).astype(jnp.float32)   # (2, Cout)

    kernel = functools.partial(_merge_conv_kernel, h=h, w=w)
    out = pl.pallas_call(
        kernel,
        out_shape=jax.ShapeDtypeStruct((n, h * w, cout), out_dtype),
        grid_spec=pltpu.PrefetchScalarGridSpec(
            num_scalar_prefetch=0,
            grid=(n,),
            in_specs=[
                pl.BlockSpec((None, h + 2, w + 2, c), lambda i: (i, 0, 0, 0)),
                pl.BlockSpec((None, h + 2, w + 2, 1), lambda i: (i, 0, 0, 0)),
                pl.BlockSpec((9, 2 * c, cout), lambda i: (0, 0, 0)),   # resident weights
                pl.BlockSpec((2, cout), lambda i: (0, 0)),
            ],
            out_specs=pl.BlockSpec((None, h * w, cout), lambda i: (i, 0, 0)),
            scratch_shapes=[pltpu.VMEM((h + 2, w + 2, 2 * c), jnp.bfloat16),  # cat tile
                            pltpu.VMEM((h * w, cout), jnp.float32)]),         # f32 acc
        compiler_params=pltpu.CompilerParams(
            dimension_semantics=("parallel",),
            vmem_limit_bytes=_VMEM_LIMIT),
    )(fp, gp, w9, sb)
    return out.reshape(n, h, w, cout)        # contiguous -> free view


def conv3x3_bn_relu(x, w_hwio, bn_scale, bn_shift, out_dtype=jnp.float32):
    """ReLU(BN(Conv3x3(x))) with 'same' padding, NHWC activations, HWIO weights."""
    n, h, w, cin = x.shape
    cout = w_hwio.shape[-1]
    xp = jnp.pad(x.astype(jnp.bfloat16), ((0, 0), (1, 1), (1, 1), (0, 0)))
    w9 = w_hwio.reshape(9, cin, cout).astype(jnp.bfloat16)
    sb = jnp.stack([bn_scale, bn_shift], axis=0).astype(jnp.float32)

    kernel = functools.partial(_conv3x3_kernel, h=h, w=w)
    out = pl.pallas_call(
        kernel,
        out_shape=jax.ShapeDtypeStruct((n, h * w, cout), out_dtype),
        grid_spec=pltpu.PrefetchScalarGridSpec(
            num_scalar_prefetch=0,
            grid=(n,),
            in_specs=[
                pl.BlockSpec((None, h + 2, w + 2, cin), lambda i: (i, 0, 0, 0)),
                pl.BlockSpec((9, cin, cout), lambda i: (0, 0, 0)),
                pl.BlockSpec((2, cout), lambda i: (0, 0)),
            ],
            out_specs=pl.BlockSpec((None, h * w, cout), lambda i: (i, 0, 0)),
            scratch_shapes=[pltpu.VMEM((h * w, cout), jnp.float32)]),
        compiler_params=pltpu.CompilerParams(
            dimension_semantics=("parallel",),
            vmem_limit_bytes=_VMEM_LIMIT),
    )(xp, w9, sb)
    return out.reshape(n, h, w, cout)


def upsample4x(g, up_w, up_b):
    """ConvTranspose2d(1, 1, kernel=4, stride=4): non-overlapping 4x4 blocks,
    out[n, 4i+a, 4j+b] = g[n, i, j] * up_w[a, b] + up_b."""
    # TODO(synk): single-channel 4x upsample kept as tiny JAX glue; fusing it into the
    # conv kernel would need an in-kernel block-broadcast relayout for negligible gain.
    n, h, w = g.shape
    out = g[:, :, None, :, None] * up_w[None, None, :, None, :]  # (N, h, 4, w, 4)
    return out.reshape(n, 4 * h, 4 * w) + up_b


def merge_cat_forward(fuse, gauss_map, params):
    """fuse: (N, H, W, C) f32; gauss_map: (N, h, w, 1) with H = 4h, W = 4w."""
    gauss_map = gauss_map.astype(jnp.float32)            # gauss_map.float()
    g_up = upsample4x(gauss_map[..., 0], params["up_w"], params["up_b"])[..., None]
    # TODO(synk): for very large H*W on v7x (64 MiB VMEM) add an H row-block grid axis
    # with halo rows; whole-image blocks are used here (fine at these sizes).
    y = merge_conv3x3_bn_relu(fuse, g_up, params["w1"],
                              params["scale1"], params["shift1"],
                              out_dtype=jnp.bfloat16)     # bf16 intermediate -> half HBM
    y = conv3x3_bn_relu(y, params["w2"], params["scale2"], params["shift2"],
                        out_dtype=jnp.float32)
    return y


# ---------------------------------------------------------------------------
# Deterministic parameter init (shapes from merge_cat.__init__)
# ---------------------------------------------------------------------------

def init_params(key, c):
    ks = jax.random.split(key, 8)
    eps = 1e-5
    up_w = 0.25 * jax.random.normal(ks[0], (4, 4), jnp.float32)          # ConvT (1,1,4,4)
    up_b = 0.1 * jax.random.normal(ks[1], (), jnp.float32)               # ConvT bias
    w1 = 0.05 * jax.random.normal(ks[2], (3, 3, 2 * c, c), jnp.float32)  # HWIO
    w2 = 0.05 * jax.random.normal(ks[3], (3, 3, c, c), jnp.float32)      # HWIO
    # BatchNorm2d, eval mode: running_mean=0, running_var=1 (PyTorch defaults).
    g1 = 1.0 + 0.1 * jax.random.normal(ks[4], (c,), jnp.float32)
    b1 = 0.1 * jax.random.normal(ks[5], (c,), jnp.float32)
    g2 = 1.0 + 0.1 * jax.random.normal(ks[6], (c,), jnp.float32)
    b2 = 0.1 * jax.random.normal(ks[7], (c,), jnp.float32)
    rm, rv = jnp.zeros((c,), jnp.float32), jnp.ones((c,), jnp.float32)
    scale1 = g1 / jnp.sqrt(rv + eps)
    shift1 = b1 - rm * scale1
    scale2 = g2 / jnp.sqrt(rv + eps)
    shift2 = b2 - rm * scale2
    return dict(up_w=up_w, up_b=up_b, w1=w1, w2=w2,
                scale1=scale1, shift1=shift1, scale2=scale2, shift2=shift2)


def reference_forward(fuse, gauss_map, params):
    """Pure-JAX f32 reference (lax conv) for the correctness check."""
    g_up = upsample4x(gauss_map[..., 0].astype(jnp.float32),
                      params["up_w"], params["up_b"])[..., None]
    cat = jnp.concatenate([g_up * fuse + g_up, fuse], axis=-1)
    dn = ("NHWC", "HWIO", "NHWC")
    y = lax.conv_general_dilated(cat, params["w1"], (1, 1), "SAME",
                                 dimension_numbers=dn)
    y = jnp.maximum(y * params["scale1"] + params["shift1"], 0.0)
    y = lax.conv_general_dilated(y, params["w2"], (1, 1), "SAME",
                                 dimension_numbers=dn)
    y = jnp.maximum(y * params["scale2"] + params["shift2"], 0.0)
    return y


if __name__ == "__main__":
    # Small but lane-aligned shapes (module default in_channels=256; 128 here).
    C, N, H, W = 128, 2, 16, 16
    key = jax.random.PRNGKey(0)
    kf, kg, kp = jax.random.split(key, 3)
    fuse = jax.random.normal(kf, (N, H, W, C), jnp.float32)
    gauss = jax.random.uniform(kg, (N, H // 4, W // 4, 1), jnp.float32)
    params = init_params(kp, C)

    out = jax.jit(merge_cat_forward)(fuse, gauss, params)
    out = jax.block_until_ready(out)
    assert out.shape == (N, H, W, C), out.shape

    ref = reference_forward(fuse, gauss, params)
    err = float(jnp.max(jnp.abs(out - ref)))
    # Tolerance reflects bf16 MXU operands + bf16 intermediate activation (f32 reference).
    if not jnp.allclose(out, ref, rtol=5e-2, atol=5e-2):
        raise AssertionError(f"Pallas output does not match reference (max abs err={err})")
    print("KERNEL_OK")
</pallas_src>

<mosaic_0001>
module attributes {stable_mosaic.version = 11 : i64} {
  func.func @_merge_conv_kernel(%arg0: i32, %arg1: memref<1x18x18x128xbf16, #tpu.memory_space<vmem>>, %arg2: memref<1x18x18x1xbf16, #tpu.memory_space<vmem>>, %arg3: memref<9x256x128xbf16, #tpu.memory_space<vmem>>, %arg4: memref<2x128xf32, #tpu.memory_space<vmem>>, %arg5: memref<1x256x128xbf16, #tpu.memory_space<vmem>>, %arg6: memref<18x18x256xbf16, #tpu.memory_space<vmem>>, %arg7: memref<256x128xf32, #tpu.memory_space<vmem>>) attributes {dimension_semantics = [#tpu.dimension_semantics<parallel>], iteration_bounds = array<i64: 2>, scalar_prefetch = 0 : i64, scratch_operands = 2 : i64, tpu.core_type = #tpu.core_type<tc>, window_params = [{transform_indices = @transform_0, window_bounds = array<i64: 1, 18, 18, 128>}, {transform_indices = @transform_1, window_bounds = array<i64: 1, 18, 18, 1>}, {pipeline_mode = #tpu.pipeline_mode<synchronous>, transform_indices = @transform_2, window_bounds = array<i64: 9, 256, 128>}, {pipeline_mode = #tpu.pipeline_mode<synchronous>, transform_indices = @transform_3, window_bounds = array<i64: 2, 128>}, {transform_indices = @transform_4, window_bounds = array<i64: 1, 256, 128>}]} {
    %c0 = arith.constant 0 : index
    %c0_0 = arith.constant 0 : index
    %c0_1 = arith.constant 0 : index
    %c0_2 = arith.constant 0 : index
    %0 = vector.load %arg1[%c0, %c0_0, %c0_1, %c0_2] : memref<1x18x18x128xbf16, #tpu.memory_space<vmem>>, vector<1x18x18x128xbf16>
    %1 = vector.shape_cast %0 : vector<1x18x18x128xbf16> to vector<18x18x128xbf16>
    %c0_3 = arith.constant 0 : index
    %c0_4 = arith.constant 0 : index
    %c0_5 = arith.constant 0 : index
    %c0_6 = arith.constant 0 : index
    %2 = vector.load %arg2[%c0_3, %c0_4, %c0_5, %c0_6] : memref<1x18x18x1xbf16, #tpu.memory_space<vmem>>, vector<1x18x18x1xbf16>
    %3 = vector.shape_cast %2 : vector<1x18x18x1xbf16> to vector<18x18x1xbf16>
    %4 = arith.extf %3 : vector<18x18x1xbf16> to vector<18x18x1xf32>
    %5 = arith.extf %1 : vector<18x18x128xbf16> to vector<18x18x128xf32>
    %6 = vector.broadcast %4 : vector<18x18x1xf32> to vector<18x18x128xf32>
    %7 = arith.mulf %6, %5 : vector<18x18x128xf32>
    %8 = vector.broadcast %4 : vector<18x18x1xf32> to vector<18x18x128xf32>
    %9 = arith.addf %7, %8 : vector<18x18x128xf32>
    %10 = arith.truncf %9 : vector<18x18x128xf32> to vector<18x18x128xbf16>
    %c0_7 = arith.constant 0 : index
    %c0_8 = arith.constant 0 : index
    %c0_9 = arith.constant 0 : index
    %11 = vector.load %arg6[%c0_7, %c0_8, %c0_9] : memref<18x18x256xbf16, #tpu.memory_space<vmem>>, vector<18x18x128xbf16>
    tpu.vector_store %arg6[%c0_7, %c0_8, %c0_9], %10 {strides = array<i32>} : memref<18x18x256xbf16, #tpu.memory_space<vmem>>, vector<18x18x128xbf16>,
    %c0_10 = arith.constant 0 : index
    %c0_11 = arith.constant 0 : index
    %c128 = arith.constant 128 : index
    %12 = vector.load %arg6[%c0_10, %c0_11, %c128] : memref<18x18x256xbf16, #tpu.memory_space<vmem>>, vector<18x18x128xbf16>
    tpu.vector_store %arg6[%c0_10, %c0_11, %c128], %1 {strides = array<i32>} : memref<18x18x256xbf16, #tpu.memory_space<vmem>>, vector<18x18x128xbf16>,
    %cst = arith.constant 0.000000e+00 : f32
    %13 = vector.broadcast %cst : f32 to vector<256x128xf32>
    %c0_12 = arith.constant 0 : index
    %c0_13 = arith.constant 0 : index
    %14 = vector.load %arg7[%c0_12, %c0_13] : memref<256x128xf32, #tpu.memory_space<vmem>>, vector<256x128xf32>
    tpu.vector_store %arg7[%c0_12, %c0_13], %13 {strides = array<i32>} : memref<256x128xf32, #tpu.memory_space<vmem>>, vector<256x128xf32>,
    %c0_14 = arith.constant 0 : index
    %c0_15 = arith.constant 0 : index
    %c0_16 = arith.constant 0 : index
    %15 = vector.load %arg6[%c0_14, %c0_15, %c0_16] : memref<18x18x256xbf16, #tpu.memory_space<vmem>>, vector<16x16x256xbf16>
    %16 = vector.shape_cast %15 : vector<16x16x256xbf16> to vector<256x256xbf16>
    %c0_17 = arith.constant 0 : index
    %c0_18 = arith.constant 0 : index
    %17 = vector.load %arg7[%c0_17, %c0_18] : memref<256x128xf32, #tpu.memory_space<vmem>>, vector<256x128xf32>
    %c0_19 = arith.constant 0 : index
    %c0_20 = arith.constant 0 : index
    %c0_21 = arith.constant 0 : index
    %18 = vector.load %arg3[%c0_19, %c0_20, %c0_21] : memref<9x256x128xbf16, #tpu.memory_space<vmem>>, vector<1x256x128xbf16>
    %19 = vector.shape_cast %18 : vector<1x256x128xbf16> to vector<256x128xbf16>
    %cst_22 = arith.constant dense<0.000000e+00> : vector<256x128xf32>
    %20 = tpu.matmul %16, %19, %cst_22 {dimension_numbers = #tpu.dot_dimension_numbers<[1], [0], [0], [1], [0, 0, 1, 1], [], []>} : vector<256x256xbf16>, vector<256x128xbf16>, vector<256x128xf32> -> vector<256x128xf32>
    %21 = arith.addf %17, %20 : vector<256x128xf32>
    %c0_23 = arith.constant 0 : index
    %c0_24 = arith.constant 0 : index
    %22 = vector.load %arg7[%c0_23, %c0_24] : memref<256x128xf32, #tpu.memory_space<vmem>>, vector<256x128xf32>
    tpu.vector_store %arg7[%c0_23, %c0_24], %21 {strides = array<i32>} : memref<256x128xf32, #tpu.memory_space<vmem>>, vector<256x128xf32>,
    %c0_25 = arith.constant 0 : index
    %c1 = arith.constant 1 : index
    %c0_26 = arith.constant 0 : index
    %23 = vector.load %arg6[%c0_25, %c1, %c0_26] : memref<18x18x256xbf16, #tpu.memory_space<vmem>>, vector<16x16x256xbf16>
    %24 = vector.shape_cast %23 : vector<16x16x256xbf16> to vector<256x256xbf16>
    %c0_27 = arith.constant 0 : index
    %c0_28 = arith.constant 0 : index
    %25 = vector.load %arg7[%c0_27, %c0_28] : memref<256x128xf32, #tpu.memory_space<vmem>>, vector<256x128xf32>
    %c1_29 = arith.constant 1 : index
    %c0_30 = arith.constant 0 : index
    %c0_31 = arith.constant 0 : index
    %26 = vector.load %arg3[%c1_29, %c0_30, %c0_31] : memref<9x256x128xbf16, #tpu.memory_space<vmem>>, vector<1x256x128xbf16>
    %27 = vector.shape_cast %26 : vector<1x256x128xbf16> to vector<256x128xbf16>
    %cst_32 = arith.constant dense<0.000000e+00> : vector<256x128xf32>
    %28 = tpu.matmul %24, %27, %cst_32 {dimension_numbers = #tpu.dot_dimension_numbers<[1], [0], [0], [1], [0, 0, 1, 1], [], []>} : vector<256x256xbf16>, vector<256x128xbf16>, vector<256x128xf32> -> vector<256x128xf32>
    %29 = arith.addf %25, %28 : vector<256x128xf32>
    %c0_33 = arith.constant 0 : index
    %c0_34 = arith.constant 0 : index
    %30 = vector.load %arg7[%c0_33, %c0_34] : memref<256x128xf32, #tpu.memory_space<vmem>>, vector<256x128xf32>
    tpu.vector_store %arg7[%c0_33, %c0_34], %29 {strides = array<i32>} : memref<256x128xf32, #tpu.memory_space<vmem>>, vector<256x128xf32>,
    %c0_35 = arith.constant 0 : index
    %c2 = arith.constant 2 : index
    %c0_36 = arith.constant 0 : index
    %31 = vector.load %arg6[%c0_35, %c2, %c0_36] : memref<18x18x256xbf16, #tpu.memory_space<vmem>>, vector<16x16x256xbf16>
    %32 = vector.shape_cast %31 : vector<16x16x256xbf16> to vector<256x256xbf16>
    %c0_37 = arith.constant 0 : index
    %c0_38 = arith.constant 0 : index
    %33 = vector.load %arg7[%c0_37, %c0_38] : memref<256x128xf32, #tpu.memory_space<vmem>>, vector<256x128xf32>
    %c2_39 = arith.constant 2 : index
    %c0_40 = arith.constant 0 : index
    %c0_41 = arith.constant 0 : index
    %34 = vector.load %arg3[%c2_39, %c0_40, %c0_41] : memref<9x256x128xbf16, #tpu.memory_space<vmem>>, vector<1x256x128xbf16>
    %35 = vector.shape_cast %34 : vector<1x256x128xbf16> to vector<256x128xbf16>
    %cst_42 = arith.constant dense<0.000000e+00> : vector<256x128xf32>
    %36 = tpu.matmul %32, %35, %cst_42 {dimension_numbers = #tpu.dot_dimension_numbers<[1], [0], [0], [1], [0, 0, 1, 1], [], []>} : vector<256x256xbf16>, vector<256x128xbf16>, vector<256x128xf32> -> vector<256x128xf32>
    %37 = arith.addf %33, %36 : vector<256x128xf32>
    %c0_43 = arith.constant 0 : index
    %c0_44 = arith.constant 0 : index
    %38 = vector.load %arg7[%c0_43, %c0_44] : memref<256x128xf32, #tpu.memory_space<vmem>>, vector<256x128xf32>
    tpu.vector_store %arg7[%c0_43, %c0_44], %37 {strides = array<i32>} : memref<256x128xf32, #tpu.memory_space<vmem>>, vector<256x128xf32>,
    %c1_45 = arith.constant 1 : index
    %c0_46 = arith.constant 0 : index
    %c0_47 = arith.constant 0 : index
    %39 = vector.load %arg6[%c1_45, %c0_46, %c0_47] : memref<18x18x256xbf16, #tpu.memory_space<vmem>>, vector<16x16x256xbf16>
    %40 = vector.shape_cast %39 : vector<16x16x256xbf16> to vector<256x256xbf16>
    %c0_48 = arith.constant 0 : index
    %c0_49 = arith.constant 0 : index
    %41 = vector.load %arg7[%c0_48, %c0_49] : memref<256x128xf32, #tpu.memory_space<vmem>>, vector<256x128xf32>
    %c3 = arith.constant 3 : index
    %c0_50 = arith.constant 0 : index
    %c0_51 = arith.constant 0 : index
    %42 = vector.load %arg3[%c3, %c0_50, %c0_51] : memref<9x256x128xbf16, #tpu.memory_space<vmem>>, vector<1x256x128xbf16>
    %43 = vector.shape_cast %42 : vector<1x256x128xbf16> to vector<256x128xbf16>
    %cst_52 = arith.constant dense<0.000000e+00> : vector<256x128xf32>
    %44 = tpu.matmul %40, %43, %cst_52 {dimension_numbers = #tpu.dot_dimension_numbers<[1], [0], [0], [1], [0, 0, 1, 1], [], []>} : vector<256x256xbf16>, vector<256x128xbf16>, vector<256x128xf32> -> vector<256x128xf32>
    %45 = arith.addf %41, %44 : vector<256x128xf32>
    %c0_53 = arith.constant 0 : index
    %c0_54 = arith.constant 0 : index
    %46 = vector.load %arg7[%c0_53, %c0_54] : memref<256x128xf32, #tpu.memory_space<vmem>>, vector<256x128xf32>
    tpu.vector_store %arg7[%c0_53, %c0_54], %45 {strides = array<i32>} : memref<256x128xf32, #tpu.memory_space<vmem>>, vector<256x128xf32>,
    %c1_55 = arith.constant 1 : index
    %c1_56 = arith.constant 1 : index
    %c0_57 = arith.constant 0 : index
    %47 = vector.load %arg6[%c1_55, %c1_56, %c0_57] : memref<18x18x256xbf16, #tpu.memory_space<vmem>>, vector<16x16x256xbf16>
    %48 = vector.shape_cast %47 : vector<16x16x256xbf16> to vector<256x256xbf16>
    %c0_58 = arith.constant 0 : index
    %c0_59 = arith.constant 0 : index
    %49 = vector.load %arg7[%c0_58, %c0_59] : memref<256x128xf32, #tpu.memory_space<vmem>>, vector<256x128xf32>
    %c4 = arith.constant 4 : index
    %c0_60 = arith.constant 0 : index
    %c0_61 = arith.constant 0 : index
    %50 = vector.load %arg3[%c4, %c0_60, %c0_61] : memref<9x256x128xbf16, #tpu.memory_space<vmem>>, vector<1x256x128xbf16>
    %51 = vector.shape_cast %50 : vector<1x256x128xbf16> to vector<256x128xbf16>
    %cst_62 = arith.constant dense<0.000000e+00> : vector<256x128xf32>
    %52 = tpu.matmul %48, %51, %cst_62 {dimension_numbers = #tpu.dot_dimension_numbers<[1], [0], [0], [1], [0, 0, 1, 1], [], []>} : vector<256x256xbf16>, vector<256x128xbf16>, vector<256x128xf32> -> vector<256x128xf32>
    %53 = arith.addf %49, %52 : vector<256x128xf32>
    %c0_63 = arith.constant 0 : index
    %c0_64 = arith.constant 0 : index
    %54 = vector.load %arg7[%c0_63, %c0_64] : memref<256x128xf32, #tpu.memory_space<vmem>>, vector<256x128xf32>
    tpu.vector_store %arg7[%c0_63, %c0_64], %53 {strides = array<i32>} : memref<256x128xf32, #tpu.memory_space<vmem>>, vector<256x128xf32>,
    %c1_65 = arith.constant 1 : index
    %c2_66 = arith.constant 2 : index
    %c0_67 = arith.constant 0 : index
    %55 = vector.load %arg6[%c1_65, %c2_66, %c0_67] : memref<18x18x256xbf16, #tpu.memory_space<vmem>>, vector<16x16x256xbf16>
    %56 = vector.shape_cast %55 : vector<16x16x256xbf16> to vector<256x256xbf16>
    %c0_68 = arith.constant 0 : index
    %c0_69 = arith.constant 0 : index
    %57 = vector.load %arg7[%c0_68, %c0_69] : memref<256x128xf32, #tpu.memory_space<vmem>>, vector<256x128xf32>
    %c5 = arith.constant 5 : index
    %c0_70 = arith.constant 0 : index
    %c0_71 = arith.constant 0 : index
    %58 = vector.load %arg3[%c5, %c0_70, %c0_71] : memref<9x256x128xbf16, #tpu.memory_space<vmem>>, vector<1x256x128xbf16>
    %59 = vector.shape_cast %58 : vector<1x256x128xbf16> to vector<256x128xbf16>
    %cst_72 = arith.constant dense<0.000000e+00> : vector<256x128xf32>
    %60 = tpu.matmul %56, %59, %cst_72 {dimension_numbers = #tpu.dot_dimension_numbers<[1], [0], [0], [1], [0, 0, 1, 1], [], []>} : vector<256x256xbf16>, vector<256x128xbf16>, vector<256x128xf32> -> vector<256x128xf32>
    %61 = arith.addf %57, %60 : vector<256x128xf32>
    %c0_73 = arith.constant 0 : index
    %c0_74 = arith.constant 0 : index
    %62 = vector.load %arg7[%c0_73, %c0_74] : memref<256x128xf32, #tpu.memory_space<vmem>>, vector<256x128xf32>
    tpu.vector_store %arg7[%c0_73, %c0_74], %61 {strides = array<i32>} : memref<256x128xf32, #tpu.memory_space<vmem>>, vector<256x128xf32>,
    %c2_75 = arith.constant 2 : index
    %c0_76 = arith.constant 0 : index
    %c0_77 = arith.constant 0 : index
    %63 = vector.load %arg6[%c2_75, %c0_76, %c0_77] : memref<18x18x256xbf16, #tpu.memory_space<vmem>>, vector<16x16x256xbf16>
    %64 = vector.shape_cast %63 : vector<16x16x256xbf16> to vector<256x256xbf16>
    %c0_78 = arith.constant 0 : index
    %c0_79 = arith.constant 0 : index
    %65 = vector.load %arg7[%c0_78, %c0_79] : memref<256x128xf32, #tpu.memory_space<vmem>>, vector<256x128xf32>
    %c6 = arith.constant 6 : index
    %c0_80 = arith.constant 0 : index
    %c0_81 = arith.constant 0 : index
    %66 = vector.load %arg3[%c6, %c0_80, %c0_81] : memref<9x256x128xbf16, #tpu.memory_space<vmem>>, vector<1x256x128xbf16>
    %67 = vector.shape_cast %66 : vector<1x256x128xbf16> to vector<256x128xbf16>
    %cst_82 = arith.constant dense<0.000000e+00> : vector<256x128xf32>
    %68 = tpu.matmul %64, %67, %cst_82 {dimension_numbers = #tpu.dot_dimension_numbers<[1], [0], [0], [1], [0, 0, 1, 1], [], []>} : vector<256x256xbf16>, vector<256x128xbf16>, vector<256x128xf32> -> vector<256x128xf32>
    %69 = arith.addf %65, %68 : vector<256x128xf32>
    %c0_83 = arith.constant 0 : index
    %c0_84 = arith.constant 0 : index
    %70 = vector.load %arg7[%c0_83, %c0_84] : memref<256x128xf32, #tpu.memory_space<vmem>>, vector<256x128xf32>
    tpu.vector_store %arg7[%c0_83, %c0_84], %69 {strides = array<i32>} : memref<256x128xf32, #tpu.memory_space<vmem>>, vector<256x128xf32>,
    %c2_85 = arith.constant 2 : index
    %c1_86 = arith.constant 1 : index
    %c0_87 = arith.constant 0 : index
    %71 = vector.load %arg6[%c2_85, %c1_86, %c0_87] : memref<18x18x256xbf16, #tpu.memory_space<vmem>>, vector<16x16x256xbf16>
    %72 = vector.shape_cast %71 : vector<16x16x256xbf16> to vector<256x256xbf16>
    %c0_88 = arith.constant 0 : index
    %c0_89 = arith.constant 0 : index
    %73 = vector.load %arg7[%c0_88, %c0_89] : memref<256x128xf32, #tpu.memory_space<vmem>>, vector<256x128xf32>
    %c7 = arith.constant 7 : index
    %c0_90 = arith.constant 0 : index
    %c0_91 = arith.constant 0 : index
    %74 = vector.load %arg3[%c7, %c0_90, %c0_91] : memref<9x256x128xbf16, #tpu.memory_space<vmem>>, vector<1x256x128xbf16>
    %75 = vector.shape_cast %74 : vector<1x256x128xbf16> to vector<256x128xbf16>
    %cst_92 = arith.constant dense<0.000000e+00> : vector<256x128xf32>
    %76 = tpu.matmul %72, %75, %cst_92 {dimension_numbers = #tpu.dot_dimension_numbers<[1], [0], [0], [1], [0, 0, 1, 1], [], []>} : vector<256x256xbf16>, vector<256x128xbf16>, vector<256x128xf32> -> vector<256x128xf32>
    %77 = arith.addf %73, %76 : vector<256x128xf32>
    %c0_93 = arith.constant 0 : index
    %c0_94 = arith.constant 0 : index
    %78 = vector.load %arg7[%c0_93, %c0_94] : memref<256x128xf32, #tpu.memory_space<vmem>>, vector<256x128xf32>
    tpu.vector_store %arg7[%c0_93, %c0_94], %77 {strides = array<i32>} : memref<256x128xf32, #tpu.memory_space<vmem>>, vector<256x128xf32>,
    %c2_95 = arith.constant 2 : index
    %c2_96 = arith.constant 2 : index
    %c0_97 = arith.constant 0 : index
    %79 = vector.load %arg6[%c2_95, %c2_96, %c0_97] : memref<18x18x256xbf16, #tpu.memory_space<vmem>>, vector<16x16x256xbf16>
    %80 = vector.shape_cast %79 : vector<16x16x256xbf16> to vector<256x256xbf16>
    %c0_98 = arith.constant 0 : index
    %c0_99 = arith.constant 0 : index
    %81 = vector.load %arg7[%c0_98, %c0_99] : memref<256x128xf32, #tpu.memory_space<vmem>>, vector<256x128xf32>
    %c8 = arith.constant 8 : index
    %c0_100 = arith.constant 0 : index
    %c0_101 = arith.constant 0 : index
    %82 = vector.load %arg3[%c8, %c0_100, %c0_101] : memref<9x256x128xbf16, #tpu.memory_space<vmem>>, vector<1x256x128xbf16>
    %83 = vector.shape_cast %82 : vector<1x256x128xbf16> to vector<256x128xbf16>
    %cst_102 = arith.constant dense<0.000000e+00> : vector<256x128xf32>
    %84 = tpu.matmul %80, %83, %cst_102 {dimension_numbers = #tpu.dot_dimension_numbers<[1], [0], [0], [1], [0, 0, 1, 1], [], []>} : vector<256x256xbf16>, vector<256x128xbf16>, vector<256x128xf32> -> vector<256x128xf32>
    %85 = arith.addf %81, %84 : vector<256x128xf32>
    %c0_103 = arith.constant 0 : index
    %c0_104 = arith.constant 0 : index
    %86 = vector.load %arg7[%c0_103, %c0_104] : memref<256x128xf32, #tpu.memory_space<vmem>>, vector<256x128xf32>
    tpu.vector_store %arg7[%c0_103, %c0_104], %85 {strides = array<i32>} : memref<256x128xf32, #tpu.memory_space<vmem>>, vector<256x128xf32>,
    %c0_105 = arith.constant 0 : index
    %c0_106 = arith.constant 0 : index
    %87 = vector.load %arg4[%c0_105, %c0_106] : memref<2x128xf32, #tpu.memory_space<vmem>>, vector<2x128xf32>
    %c0_107 = arith.constant 0 : index
    %c0_108 = arith.constant 0 : index
    %88 = vector.load %arg7[%c0_107, %c0_108] : memref<256x128xf32, #tpu.memory_space<vmem>>, vector<256x128xf32>
    %89 = vector.extract_strided_slice %87 {offsets = [0, 0], sizes = [1, 128], strides = [1, 1]} : vector<2x128xf32> to vector<1x128xf32>
    %90 = vector.broadcast %89 : vector<1x128xf32> to vector<256x128xf32>
    %91 = arith.mulf %88, %90 : vector<256x128xf32>
    %92 = vector.extract_strided_slice %87 {offsets = [1, 0], sizes = [1, 128], strides = [1, 1]} : vector<2x128xf32> to vector<1x128xf32>
    %93 = vector.broadcast %92 : vector<1x128xf32> to vector<256x128xf32>
    %94 = arith.addf %91, %93 : vector<256x128xf32>
    %cst_109 = arith.constant 0.000000e+00 : f32
    %95 = vector.broadcast %cst_109 : f32 to vector<256x128xf32>
    %96 = arith.maximumf %94, %95 : vector<256x128xf32>
    %97 = arith.truncf %96 : vector<256x128xf32> to vector<256x128xbf16>
    %c0_110 = arith.constant 0 : index
    %c0_111 = arith.constant 0 : index
    %c0_112 = arith.constant 0 : index
    %98 = vector.load %arg5[%c0_110, %c0_111, %c0_112] : memref<1x256x128xbf16, #tpu.memory_space<vmem>>, vector<1x256x128xbf16>
    %99 = vector.shape_cast %98 : vector<1x256x128xbf16> to vector<256x128xbf16>
    %100 = vector.shape_cast %97 : vector<256x128xbf16> to vector<1x256x128xbf16>
    tpu.vector_store %arg5[%c0_110, %c0_111, %c0_112], %100 {strides = array<i32>} : memref<1x256x128xbf16, #tpu.memory_space<vmem>>, vector<1x256x128xbf16>,
    return
  }
  func.func @transform_0(%arg0: i32) -> (i32, i32, i32, i32) {
    %c0_i32 = arith.constant 0 : i32
    %c0_i32_0 = arith.constant 0 : i32
    %c0_i32_1 = arith.constant 0 : i32
    %c0_i32_2 = arith.constant 0 : i32
    return %arg0, %c0_i32, %c0_i32_0, %c0_i32_1 : i32, i32, i32, i32
  }
  func.func @transform_1(%arg0: i32) -> (i32, i32, i32, i32) {
    %c0_i32 = arith.constant 0 : i32
    %c0_i32_0 = arith.constant 0 : i32
    %c0_i32_1 = arith.constant 0 : i32
    %c0_i32_2 = arith.constant 0 : i32
    return %arg0, %c0_i32, %c0_i32_0, %c0_i32_1 : i32, i32, i32, i32
  }
  func.func @transform_2(%arg0: i32) -> (i32, i32, i32) {
    %c0_i32 = arith.constant 0 : i32
    %c0_i32_0 = arith.constant 0 : i32
    %c0_i32_1 = arith.constant 0 : i32
    %c0_i32_2 = arith.constant 0 : i32
    return %c0_i32, %c0_i32_0, %c0_i32_1 : i32, i32, i32
  }
  func.func @transform_3(%arg0: i32) -> (i32, i32) {
    %c0_i32 = arith.constant 0 : i32
    %c0_i32_0 = arith.constant 0 : i32
    %c0_i32_1 = arith.constant 0 : i32
    return %c0_i32, %c0_i32_0 : i32, i32
  }
  func.func @transform_4(%arg0: i32) -> (i32, i32, i32) {
    %c0_i32 = arith.constant 0 : i32
    %c0_i32_0 = arith.constant 0 : i32
    %c0_i32_1 = arith.constant 0 : i32
    return %arg0, %c0_i32, %c0_i32_0 : i32, i32, i32
  }
}

module attributes {stable_mosaic.version = 11 : i64} {
  func.func @_conv3x3_kernel(%arg0: i32, %arg1: memref<1x18x18x128xbf16, #tpu.memory_space<vmem>>, %arg2: memref<9x128x128xbf16, #tpu.memory_space<vmem>>, %arg3: memref<2x128xf32, #tpu.memory_space<vmem>>, %arg4: memref<1x256x128xf32, #tpu.memory_space<vmem>>, %arg5: memref<256x128xf32, #tpu.memory_space<vmem>>) attributes {dimension_semantics = [#tpu.dimension_semantics<parallel>], iteration_bounds = array<i64: 2>, scalar_prefetch = 0 : i64, scratch_operands = 1 : i64, tpu.core_type = #tpu.core_type<tc>, window_params = [{transform_indices = @transform_0, window_bounds = array<i64: 1, 18, 18, 128>}, {pipeline_mode = #tpu.pipeline_mode<synchronous>, transform_indices = @transform_1, window_bounds = array<i64: 9, 128, 128>}, {pipeline_mode = #tpu.pipeline_mode<synchronous>, transform_indices = @transform_2, window_bounds = array<i64: 2, 128>}, {transform_indices = @transform_3, window_bounds = array<i64: 1, 256, 128>}]} {
    %cst = arith.constant 0.000000e+00 : f32
    %0 = vector.broadcast %cst : f32 to vector<256x128xf32>
    %c0 = arith.constant 0 : index
    %c0_0 = arith.constant 0 : index
    %1 = vector.load %arg5[%c0, %c0_0] : memref<256x128xf32, #tpu.memory_space<vmem>>, vector<256x128xf32>
    tpu.vector_store %arg5[%c0, %c0_0], %0 {strides = array<i32>} : memref<256x128xf32, #tpu.memory_space<vmem>>, vector<256x128xf32>,
    %c0_1 = arith.constant 0 : index
    %c0_2 = arith.constant 0 : index
    %c0_3 = arith.constant 0 : index
    %c0_4 = arith.constant 0 : index
    %2 = vector.load %arg1[%c0_1, %c0_2, %c0_3, %c0_4] : memref<1x18x18x128xbf16, #tpu.memory_space<vmem>>, vector<1x16x16x128xbf16>
    %3 = vector.shape_cast %2 : vector<1x16x16x128xbf16> to vector<16x16x128xbf16>
    %4 = vector.shape_cast %3 : vector<16x16x128xbf16> to vector<256x128xbf16>
    %c0_5 = arith.constant 0 : index
    %c0_6 = arith.constant 0 : index
    %5 = vector.load %arg5[%c0_5, %c0_6] : memref<256x128xf32, #tpu.memory_space<vmem>>, vector<256x128xf32>
    %c0_7 = arith.constant 0 : index
    %c0_8 = arith.constant 0 : index
    %c0_9 = arith.constant 0 : index
    %6 = vector.load %arg2[%c0_7, %c0_8, %c0_9] : memref<9x128x128xbf16, #tpu.memory_space<vmem>>, vector<1x128x128xbf16>
    %7 = vector.shape_cast %6 : vector<1x128x128xbf16> to vector<128x128xbf16>
    %cst_10 = arith.constant dense<0.000000e+00> : vector<256x128xf32>
    %8 = tpu.matmul %4, %7, %cst_10 {dimension_numbers = #tpu.dot_dimension_numbers<[1], [0], [0], [1], [0, 0, 1, 1], [], []>} : vector<256x128xbf16>, vector<128x128xbf16>, vector<256x128xf32> -> vector<256x128xf32>
    %9 = arith.addf %5, %8 : vector<256x128xf32>
    %c0_11 = arith.constant 0 : index
    %c0_12 = arith.constant 0 : index
    %10 = vector.load %arg5[%c0_11, %c0_12] : memref<256x128xf32, #tpu.memory_space<vmem>>, vector<256x128xf32>
    tpu.vector_store %arg5[%c0_11, %c0_12], %9 {strides = array<i32>} : memref<256x128xf32, #tpu.memory_space<vmem>>, vector<256x128xf32>,
    %c0_13 = arith.constant 0 : index
    %c0_14 = arith.constant 0 : index
    %c1 = arith.constant 1 : index
    %c0_15 = arith.constant 0 : index
    %11 = vector.load %arg1[%c0_13, %c0_14, %c1, %c0_15] : memref<1x18x18x128xbf16, #tpu.memory_space<vmem>>, vector<1x16x16x128xbf16>
    %12 = vector.shape_cast %11 : vector<1x16x16x128xbf16> to vector<16x16x128xbf16>
    %13 = vector.shape_cast %12 : vector<16x16x128xbf16> to vector<256x128xbf16>
    %c0_16 = arith.constant 0 : index
    %c0_17 = arith.constant 0 : index
    %14 = vector.load %arg5[%c0_16, %c0_17] : memref<256x128xf32, #tpu.memory_space<vmem>>, vector<256x128xf32>
    %c1_18 = arith.constant 1 : index
    %c0_19 = arith.constant 0 : index
    %c0_20 = arith.constant 0 : index
    %15 = vector.load %arg2[%c1_18, %c0_19, %c0_20] : memref<9x128x128xbf16, #tpu.memory_space<vmem>>, vector<1x128x128xbf16>
    %16 = vector.shape_cast %15 : vector<1x128x128xbf16> to vector<128x128xbf16>
    %cst_21 = arith.constant dense<0.000000e+00> : vector<256x128xf32>
    %17 = tpu.matmul %13, %16, %cst_21 {dimension_numbers = #tpu.dot_dimension_numbers<[1], [0], [0], [1], [0, 0, 1, 1], [], []>} : vector<256x128xbf16>, vector<128x128xbf16>, vector<256x128xf32> -> vector<256x128xf32>
    %18 = arith.addf %14, %17 : vector<256x128xf32>
    %c0_22 = arith.constant 0 : index
    %c0_23 = arith.constant 0 : index
    %19 = vector.load %arg5[%c0_22, %c0_23] : memref<256x128xf32, #tpu.memory_space<vmem>>, vector<256x128xf32>
    tpu.vector_store %arg5[%c0_22, %c0_23], %18 {strides = array<i32>} : memref<256x128xf32, #tpu.memory_space<vmem>>, vector<256x128xf32>,
    %c0_24 = arith.constant 0 : index
    %c0_25 = arith.constant 0 : index
    %c2 = arith.constant 2 : index
    %c0_26 = arith.constant 0 : index
    %20 = vector.load %arg1[%c0_24, %c0_25, %c2, %c0_26] : memref<1x18x18x128xbf16, #tpu.memory_space<vmem>>, vector<1x16x16x128xbf16>
    %21 = vector.shape_cast %20 : vector<1x16x16x128xbf16> to vector<16x16x128xbf16>
    %22 = vector.shape_cast %21 : vector<16x16x128xbf16> to vector<256x128xbf16>
    %c0_27 = arith.constant 0 : index
    %c0_28 = arith.constant 0 : index
    %23 = vector.load %arg5[%c0_27, %c0_28] : memref<256x128xf32, #tpu.memory_space<vmem>>, vector<256x128xf32>
    %c2_29 = arith.constant 2 : index
    %c0_30 = arith.constant 0 : index
    %c0_31 = arith.constant 0 : index
    %24 = vector.load %arg2[%c2_29, %c0_30, %c0_31] : memref<9x128x128xbf16, #tpu.memory_space<vmem>>, vector<1x128x128xbf16>
    %25 = vector.shape_cast %24 : vector<1x128x128xbf16> to vector<128x128xbf16>
    %cst_32 = arith.constant dense<0.000000e+00> : vector<256x128xf32>
    %26 = tpu.matmul %22, %25, %cst_32 {dimension_numbers = #tpu.dot_dimension_numbers<[1], [0], [0], [1], [0, 0, 1, 1], [], []>} : vector<256x128xbf16>, vector<128x128xbf16>, vector<256x128xf32> -> vector<256x128xf32>
    %27 = arith.addf %23, %26 : vector<256x128xf32>
    %c0_33 = arith.constant 0 : index
    %c0_34 = arith.constant 0 : index
    %28 = vector.load %arg5[%c0_33, %c0_34] : memref<256x128xf32, #tpu.memory_space<vmem>>, vector<256x128xf32>
    tpu.vector_store %arg5[%c0_33, %c0_34], %27 {strides = array<i32>} : memref<256x128xf32, #tpu.memory_space<vmem>>, vector<256x128xf32>,
    %c0_35 = arith.constant 0 : index
    %c1_36 = arith.constant 1 : index
    %c0_37 = arith.constant 0 : index
    %c0_38 = arith.constant 0 : index
    %29 = vector.load %arg1[%c0_35, %c1_36, %c0_37, %c0_38] : memref<1x18x18x128xbf16, #tpu.memory_space<vmem>>, vector<1x16x16x128xbf16>
    %30 = vector.shape_cast %29 : vector<1x16x16x128xbf16> to vector<16x16x128xbf16>
    %31 = vector.shape_cast %30 : vector<16x16x128xbf16> to vector<256x128xbf16>
    %c0_39 = arith.constant 0 : index
    %c0_40 = arith.constant 0 : index
    %32 = vector.load %arg5[%c0_39, %c0_40] : memref<256x128xf32, #tpu.memory_space<vmem>>, vector<256x128xf32>
    %c3 = arith.constant 3 : index
    %c0_41 = arith.constant 0 : index
    %c0_42 = arith.constant 0 : index
    %33 = vector.load %arg2[%c3, %c0_41, %c0_42] : memref<9x128x128xbf16, #tpu.memory_space<vmem>>, vector<1x128x128xbf16>
    %34 = vector.shape_cast %33 : vector<1x128x128xbf16> to vector<128x128xbf16>
    %cst_43 = arith.constant dense<0.000000e+00> : vector<256x128xf32>
    %35 = tpu.matmul %31, %34, %cst_43 {dimension_numbers = #tpu.dot_dimension_numbers<[1], [0], [0], [1], [0, 0, 1, 1], [], []>} : vector<256x128xbf16>, vector<128x128xbf16>, vector<256x128xf32> -> vector<256x128xf32>
    %36 = arith.addf %32, %35 : vector<256x128xf32>
    %c0_44 = arith.constant 0 : index
    %c0_45 = arith.constant 0 : index
    %37 = vector.load %arg5[%c0_44, %c0_45] : memref<256x128xf32, #tpu.memory_space<vmem>>, vector<256x128xf32>
    tpu.vector_store %arg5[%c0_44, %c0_45], %36 {strides = array<i32>} : memref<256x128xf32, #tpu.memory_space<vmem>>, vector<256x128xf32>,
    %c0_46 = arith.constant 0 : index
    %c1_47 = arith.constant 1 : index
    %c1_48 = arith.constant 1 : index
    %c0_49 = arith.constant 0 : index
    %38 = vector.load %arg1[%c0_46, %c1_47, %c1_48, %c0_49] : memref<1x18x18x128xbf16, #tpu.memory_space<vmem>>, vector<1x16x16x128xbf16>
    %39 = vector.shape_cast %38 : vector<1x16x16x128xbf16> to vector<16x16x128xbf16>
    %40 = vector.shape_cast %39 : vector<16x16x128xbf16> to vector<256x128xbf16>
    %c0_50 = arith.constant 0 : index
    %c0_51 = arith.constant 0 : index
    %41 = vector.load %arg5[%c0_50, %c0_51] : memref<256x128xf32, #tpu.memory_space<vmem>>, vector<256x128xf32>
    %c4 = arith.constant 4 : index
    %c0_52 = arith.constant 0 : index
    %c0_53 = arith.constant 0 : index
    %42 = vector.load %arg2[%c4, %c0_52, %c0_53] : memref<9x128x128xbf16, #tpu.memory_space<vmem>>, vector<1x128x128xbf16>
    %43 = vector.shape_cast %42 : vector<1x128x128xbf16> to vector<128x128xbf16>
    %cst_54 = arith.constant dense<0.000000e+00> : vector<256x128xf32>
    %44 = tpu.matmul %40, %43, %cst_54 {dimension_numbers = #tpu.dot_dimension_numbers<[1], [0], [0], [1], [0, 0, 1, 1], [], []>} : vector<256x128xbf16>, vector<128x128xbf16>, vector<256x128xf32> -> vector<256x128xf32>
    %45 = arith.addf %41, %44 : vector<256x128xf32>
    %c0_55 = arith.constant 0 : index
    %c0_56 = arith.constant 0 : index
    %46 = vector.load %arg5[%c0_55, %c0_56] : memref<256x128xf32, #tpu.memory_space<vmem>>, vector<256x128xf32>
    tpu.vector_store %arg5[%c0_55, %c0_56], %45 {strides = array<i32>} : memref<256x128xf32, #tpu.memory_space<vmem>>, vector<256x128xf32>,
    %c0_57 = arith.constant 0 : index
    %c1_58 = arith.constant 1 : index
    %c2_59 = arith.constant 2 : index
    %c0_60 = arith.constant 0 : index
    %47 = vector.load %arg1[%c0_57, %c1_58, %c2_59, %c0_60] : memref<1x18x18x128xbf16, #tpu.memory_space<vmem>>, vector<1x16x16x128xbf16>
    %48 = vector.shape_cast %47 : vector<1x16x16x128xbf16> to vector<16x16x128xbf16>
    %49 = vector.shape_cast %48 : vector<16x16x128xbf16> to vector<256x128xbf16>
    %c0_61 = arith.constant 0 : index
    %c0_62 = arith.constant 0 : index
    %50 = vector.load %arg5[%c0_61, %c0_62] : memref<256x128xf32, #tpu.memory_space<vmem>>, vector<256x128xf32>
    %c5 = arith.constant 5 : index
    %c0_63 = arith.constant 0 : index
    %c0_64 = arith.constant 0 : index
    %51 = vector.load %arg2[%c5, %c0_63, %c0_64] : memref<9x128x128xbf16, #tpu.memory_space<vmem>>, vector<1x128x128xbf16>
    %52 = vector.shape_cast %51 : vector<1x128x128xbf16> to vector<128x128xbf16>
    %cst_65 = arith.constant dense<0.000000e+00> : vector<256x128xf32>
    %53 = tpu.matmul %49, %52, %cst_65 {dimension_numbers = #tpu.dot_dimension_numbers<[1], [0], [0], [1], [0, 0, 1, 1], [], []>} : vector<256x128xbf16>, vector<128x128xbf16>, vector<256x128xf32> -> vector<256x128xf32>
    %54 = arith.addf %50, %53 : vector<256x128xf32>
    %c0_66 = arith.constant 0 : index
    %c0_67 = arith.constant 0 : index
    %55 = vector.load %arg5[%c0_66, %c0_67] : memref<256x128xf32, #tpu.memory_space<vmem>>, vector<256x128xf32>
    tpu.vector_store %arg5[%c0_66, %c0_67], %54 {strides = array<i32>} : memref<256x128xf32, #tpu.memory_space<vmem>>, vector<256x128xf32>,
    %c0_68 = arith.constant 0 : index
    %c2_69 = arith.constant 2 : index
    %c0_70 = arith.constant 0 : index
    %c0_71 = arith.constant 0 : index
    %56 = vector.load %arg1[%c0_68, %c2_69, %c0_70, %c0_71] : memref<1x18x18x128xbf16, #tpu.memory_space<vmem>>, vector<1x16x16x128xbf16>
    %57 = vector.shape_cast %56 : vector<1x16x16x128xbf16> to vector<16x16x128xbf16>
    %58 = vector.shape_cast %57 : vector<16x16x128xbf16> to vector<256x128xbf16>
    %c0_72 = arith.constant 0 : index
    %c0_73 = arith.constant 0 : index
    %59 = vector.load %arg5[%c0_72, %c0_73] : memref<256x128xf32, #tpu.memory_space<vmem>>, vector<256x128xf32>
    %c6 = arith.constant 6 : index
    %c0_74 = arith.constant 0 : index
    %c0_75 = arith.constant 0 : index
    %60 = vector.load %arg2[%c6, %c0_74, %c0_75] : memref<9x128x128xbf16, #tpu.memory_space<vmem>>, vector<1x128x128xbf16>
    %61 = vector.shape_cast %60 : vector<1x128x128xbf16> to vector<128x128xbf16>
    %cst_76 = arith.constant dense<0.000000e+00> : vector<256x128xf32>
    %62 = tpu.matmul %58, %61, %cst_76 {dimension_numbers = #tpu.dot_dimension_numbers<[1], [0], [0], [1], [0, 0, 1, 1], [], []>} : vector<256x128xbf16>, vector<128x128xbf16>, vector<256x128xf32> -> vector<256x128xf32>
    %63 = arith.addf %59, %62 : vector<256x128xf32>
    %c0_77 = arith.constant 0 : index
    %c0_78 = arith.constant 0 : index
    %64 = vector.load %arg5[%c0_77, %c0_78] : memref<256x128xf32, #tpu.memory_space<vmem>>, vector<256x128xf32>
    tpu.vector_store %arg5[%c0_77, %c0_78], %63 {strides = array<i32>} : memref<256x128xf32, #tpu.memory_space<vmem>>, vector<256x128xf32>,
    %c0_79 = arith.constant 0 : index
    %c2_80 = arith.constant 2 : index
    %c1_81 = arith.constant 1 : index
    %c0_82 = arith.constant 0 : index
    %65 = vector.load %arg1[%c0_79, %c2_80, %c1_81, %c0_82] : memref<1x18x18x128xbf16, #tpu.memory_space<vmem>>, vector<1x16x16x128xbf16>
    %66 = vector.shape_cast %65 : vector<1x16x16x128xbf16> to vector<16x16x128xbf16>
    %67 = vector.shape_cast %66 : vector<16x16x128xbf16> to vector<256x128xbf16>
    %c0_83 = arith.constant 0 : index
    %c0_84 = arith.constant 0 : index
    %68 = vector.load %arg5[%c0_83, %c0_84] : memref<256x128xf32, #tpu.memory_space<vmem>>, vector<256x128xf32>
    %c7 = arith.constant 7 : index
    %c0_85 = arith.constant 0 : index
    %c0_86 = arith.constant 0 : index
    %69 = vector.load %arg2[%c7, %c0_85, %c0_86] : memref<9x128x128xbf16, #tpu.memory_space<vmem>>, vector<1x128x128xbf16>
    %70 = vector.shape_cast %69 : vector<1x128x128xbf16> to vector<128x128xbf16>
    %cst_87 = arith.constant dense<0.000000e+00> : vector<256x128xf32>
    %71 = tpu.matmul %67, %70, %cst_87 {dimension_numbers = #tpu.dot_dimension_numbers<[1], [0], [0], [1], [0, 0, 1, 1], [], []>} : vector<256x128xbf16>, vector<128x128xbf16>, vector<256x128xf32> -> vector<256x128xf32>
    %72 = arith.addf %68, %71 : vector<256x128xf32>
    %c0_88 = arith.constant 0 : index
    %c0_89 = arith.constant 0 : index
    %73 = vector.load %arg5[%c0_88, %c0_89] : memref<256x128xf32, #tpu.memory_space<vmem>>, vector<256x128xf32>
    tpu.vector_store %arg5[%c0_88, %c0_89], %72 {strides = array<i32>} : memref<256x128xf32, #tpu.memory_space<vmem>>, vector<256x128xf32>,
    %c0_90 = arith.constant 0 : index
    %c2_91 = arith.constant 2 : index
    %c2_92 = arith.constant 2 : index
    %c0_93 = arith.constant 0 : index
    %74 = vector.load %arg1[%c0_90, %c2_91, %c2_92, %c0_93] : memref<1x18x18x128xbf16, #tpu.memory_space<vmem>>, vector<1x16x16x128xbf16>
    %75 = vector.shape_cast %74 : vector<1x16x16x128xbf16> to vector<16x16x128xbf16>
    %76 = vector.shape_cast %75 : vector<16x16x128xbf16> to vector<256x128xbf16>
    %c0_94 = arith.constant 0 : index
    %c0_95 = arith.constant 0 : index
    %77 = vector.load %arg5[%c0_94, %c0_95] : memref<256x128xf32, #tpu.memory_space<vmem>>, vector<256x128xf32>
    %c8 = arith.constant 8 : index
    %c0_96 = arith.constant 0 : index
    %c0_97 = arith.constant 0 : index
    %78 = vector.load %arg2[%c8, %c0_96, %c0_97] : memref<9x128x128xbf16, #tpu.memory_space<vmem>>, vector<1x128x128xbf16>
    %79 = vector.shape_cast %78 : vector<1x128x128xbf16> to vector<128x128xbf16>
    %cst_98 = arith.constant dense<0.000000e+00> : vector<256x128xf32>
    %80 = tpu.matmul %76, %79, %cst_98 {dimension_numbers = #tpu.dot_dimension_numbers<[1], [0], [0], [1], [0, 0, 1, 1], [], []>} : vector<256x128xbf16>, vector<128x128xbf16>, vector<256x128xf32> -> vector<256x128xf32>
    %81 = arith.addf %77, %80 : vector<256x128xf32>
    %c0_99 = arith.constant 0 : index
    %c0_100 = arith.constant 0 : index
    %82 = vector.load %arg5[%c0_99, %c0_100] : memref<256x128xf32, #tpu.memory_space<vmem>>, vector<256x128xf32>
    tpu.vector_store %arg5[%c0_99, %c0_100], %81 {strides = array<i32>} : memref<256x128xf32, #tpu.memory_space<vmem>>, vector<256x128xf32>,
    %c0_101 = arith.constant 0 : index
    %c0_102 = arith.constant 0 : index
    %83 = vector.load %arg3[%c0_101, %c0_102] : memref<2x128xf32, #tpu.memory_space<vmem>>, vector<2x128xf32>
    %c0_103 = arith.constant 0 : index
    %c0_104 = arith.constant 0 : index
    %84 = vector.load %arg5[%c0_103, %c0_104] : memref<256x128xf32, #tpu.memory_space<vmem>>, vector<256x128xf32>
    %85 = vector.extract_strided_slice %83 {offsets = [0, 0], sizes = [1, 128], strides = [1, 1]} : vector<2x128xf32> to vector<1x128xf32>
    %86 = vector.broadcast %85 : vector<1x128xf32> to vector<256x128xf32>
    %87 = arith.mulf %84, %86 : vector<256x128xf32>
    %88 = vector.extract_strided_slice %83 {offsets = [1, 0], sizes = [1, 128], strides = [1, 1]} : vector<2x128xf32> to vector<1x128xf32>
    %89 = vector.broadcast %88 : vector<1x128xf32> to vector<256x128xf32>
    %90 = arith.addf %87, %89 : vector<256x128xf32>
    %cst_105 = arith.constant 0.000000e+00 : f32
    %91 = vector.broadcast %cst_105 : f32 to vector<256x128xf32>
    %92 = arith.maximumf %90, %91 : vector<256x128xf32>
    %c0_106 = arith.constant 0 : index
    %c0_107 = arith.constant 0 : index
    %c0_108 = arith.constant 0 : index
    %93 = vector.load %arg4[%c0_106, %c0_107, %c0_108] : memref<1x256x128xf32, #tpu.memory_space<vmem>>, vector<1x256x128xf32>
    %94 = vector.shape_cast %93 : vector<1x256x128xf32> to vector<256x128xf32>
    %95 = vector.shape_cast %92 : vector<256x128xf32> to vector<1x256x128xf32>
    tpu.vector_store %arg4[%c0_106, %c0_107, %c0_108], %95 {strides = array<i32>} : memref<1x256x128xf32, #tpu.memory_space<vmem>>, vector<1x256x128xf32>,
    return
  }
  func.func @transform_0(%arg0: i32) -> (i32, i32, i32, i32) {
    %c0_i32 = arith.constant 0 : i32
    %c0_i32_0 = arith.constant 0 : i32
    %c0_i32_1 = arith.constant 0 : i32
    %c0_i32_2 = arith.constant 0 : i32
    return %arg0, %c0_i32, %c0_i32_0, %c0_i32_1 : i32, i32, i32, i32
  }
  func.func @transform_1(%arg0: i32) -> (i32, i32, i32) {
    %c0_i32 = arith.constant 0 : i32
    %c0_i32_0 = arith.constant 0 : i32
    %c0_i32_1 = arith.constant 0 : i32
    %c0_i32_2 = arith.constant 0 : i32
    return %c0_i32, %c0_i32_0, %c0_i32_1 : i32, i32, i32
  }
  func.func @transform_2(%arg0: i32) -> (i32, i32) {
    %c0_i32 = arith.constant 0 : i32
    %c0_i32_0 = arith.constant 0 : i32
    %c0_i32_1 = arith.constant 0 : i32
    return %c0_i32, %c0_i32_0 : i32, i32
  }
  func.func @transform_3(%arg0: i32) -> (i32, i32, i32) {
    %c0_i32 = arith.constant 0 : i32
    %c0_i32_0 = arith.constant 0 : i32
    %c0_i32_1 = arith.constant 0 : i32
    return %arg0, %c0_i32, %c0_i32_0 : i32, i32, i32
  }
}

</mosaic_0001>

<bundles_post_ra>
// kernel: merge_cat_forward.3
= control target key start
LH: loop header
LB: loop body
LE: loop exit
PB: predicated region body
PF: predicated region fallthrough
CT: control target
= control target key end

     0   :  { %8 = vsyncpa [#allocation4], 0  ;;  %s9189_s0 = inlined_call_operand.vmem [shape: bf16[2,18,18,128], index: 0, kind: input, shape index: {}]   ;;  %s9190_s1 = inlined_call_operand.vmem [shape: bf16[9,128,128], index: 1, kind: input, shape index: {}]   ;;  %s9191_s2 = inlined_call_operand.vmem [shape: f32[2,128], index: 2, kind: input, shape index: {}]   ;;  %s9192_s3 = inlined_call_operand.hbm [shape: f32[2,256,128], index: 3, kind: output, shape index: {}]  }
   0x1   :  { %10 = vsyncpa [#allocation4 + $0x1], 0  ;;  %s7877_s12 = smov 0   ;;  %s7879_s13 = smov 0  }
   0x2   :  { %s7881_s14 = smov 0   ;;  %s7883_s15 = smov 0  }
   0x3 LB: > { %s7898_s16 = sadd.s32 4294967295, %s7852_s15   ;;  %s6040_s17 = sadd.s32 4294967294, %s7852_s15   ;;  %s7852_s15 = sphi %s7883_s15, %s9202_s15   ;;  %s7848_s14 = sphi %s7881_s14, %s9201_s14   ;;  %s7844_s13 = sphi %s7879_s13, %s9200_s13   ;;  %s7840_s12 = sphi %s7877_s12, %s9199_s12  }
   0x4   : > { %s7902_s18 = sadd.s32 1, %s7852_s15   ;;  %s91_s19 = sadd.s32 1, %s7848_s14 }
   0x5   : > { %s88_s20 = ssub.s32 %s7852_s15, %s7902_s18  ;;  %p101_p0 = scmp.ne.s32.totalorder %s7848_s14, %s7844_s13 }
   0x6   : > { %p89_p1 = scmp.eq.s32.totalorder %s88_s20, 0  ;;  %p102_p2 = scmp.eq.s32.totalorder %s7898_s16, 1 }
   0x7   : > { %p107_p3 = scmp.ne.s32.totalorder %s7844_s13, %s7840_s12  ;;  %p108_p4 = scmp.eq.s32.totalorder %s6040_s17, 1 }
   0x8   : > { %s7913_s21 = scalar_select %p89_p1, %s7848_s14, %s91_s19  }
   0x9   : > { %p7915_p5 = por %p102_p2, %p101_p0  ;;  %p7919_p6 = por %p108_p4, %p107_p3 }
   0xa   : > { %p6043_p7 = scmp.ge.s32.totalorder %s7852_s15, 1  ;;  %p140_p8 = scmp.lt.s32.totalorder %s7852_s15, 3 }
   0xc   : > { %p141_p9 = pnand %p6043_p7, %p140_p8 }
   0xd   : > { %v7662_v0 = vld [vmem:[%s9190_s1] sm:$0xff] (!%p141_p9)   ;;  %v7664_v2 = vld [vmem:[%s9190_s1 + $0x8] sm:$0xff] (!%p141_p9)   ;;  %p164_p10 = scmp.lt.s32.totalorder (!%p141_p9), %s7898_s16, 1  ;;  %v7666_v4 = vld [vmem:[%s9190_s1 + $0x10] sm:$0xff] (!%p141_p9)   ;;  %vm699_vm0 = vsmask.f32 (!%p141_p9), 3328 }
   0xe   : > { %144 = sbr.rel (%p141_p9) target bundleno = 579 (0x243), region = 32  ;;  %v7663_v1 = vld [vmem:[%s9190_s1 + $0x100] sm:$0xff] (!%p141_p9)   ;;  %6916 = vmatprep.subr.bf16.mxu1 (!%p141_p9), %v7662_v0  ;;  %v7665_v3 = vld [vmem:[%s9190_s1 + $0x108] sm:$0xff] (!%p141_p9)   ;;  %v7667_v5 = vld [vmem:[%s9190_s1 + $0x110] sm:$0xff] (!%p141_p9)   ;;  %vm700_vm1 = vsmask.f32 (!%p141_p9), 7440 }
   0xf   : > { %7108 = vmatprep.subr.bf16.mxu0 (!%p141_p9), %v7663_v1  ;;  %6917 = vmatpush3.bf16.msra.mxu1 (!%p141_p9), %v7662_v0  ;;  %v7668_v6 = vld [vmem:[%s9190_s1 + $0x18] sm:$0xff] (!%p141_p9)   ;;  %v7670_v8 = vld [vmem:[%s9190_s1 + $0x20] sm:$0xff] (!%p141_p9)   ;;  %v7672_v10 = vld [vmem:[%s9190_s1 + $0x28] sm:$0xff] (!%p141_p9)   ;;  %vm1568_vm3 = vcmask (!%p141_p9), 1042432   ;;  %vm1569_vm4 = vcmask (!%p141_p9), 1046532   ;;  %s6699_s17 = sshll.u32 (!%p141_p9), %s7898_s16, 12 }
  0x10   : > { %7109 = vmatpush3.bf16.msra.mxu0 (!%p141_p9), %v7663_v1  ;;  %6918 = vmatprep.subr.bf16.mxu1 (!%p141_p9), %v7664_v2  ;;  %v7669_v7 = vld [vmem:[%s9190_s1 + $0x118] sm:$0xff] (!%p141_p9)   ;;  %v7671_v9 = vld [vmem:[%s9190_s1 + $0x120] sm:$0xff] (!%p141_p9)   ;;  %v7673_v11 = vld [vmem:[%s9190_s1 + $0x128] sm:$0xff] (!%p141_p9)   ;;  %s9139_s25 = scalar_lea.hbm (!%p141_p9), %s9192_s3, %s6699_s17  ;;  %s7854_s27 = smov (!%p141_p9), [#allocation3]  }
  0x11   : > { %7110 = vmatprep.subr.bf16.mxu0 (!%p141_p9), %v7665_v3  ;;  %v7674_v18 = vld [vmem:[%s9190_s1 + $0x30] sm:$0xff] (!%p141_p9)   ;;  %v7676_v32 = vld [vmem:[%s9190_s1 + $0x38] sm:$0xff] (!%p141_p9)   ;;  %vm7986_vm2 = vmor (!%p141_p9), %vm699_vm0, %vm700_vm1  ;;  %s7794_s28 = sshll.u32 (!%p141_p9), %s7854_s27, 4  ;;  %s7795_s28 = int_to_ptr.vmem [resolvable:$false] %s7794_s28 }
  0x12   : > { %v7675_v24 = vld [vmem:[%s9190_s1 + $0x130] sm:$0xff] (!%p141_p9)   ;;  %v7677_v38 = vld [vmem:[%s9190_s1 + $0x138] sm:$0xff] (!%p141_p9)   ;;  %v7680_v47 = vld [vmem:[%s9190_s1 + $0x40] sm:$0xff] (!%p141_p9)   ;;  %s7796_s29 = scalar_lea.vmem (!%p141_p9), %s7795_s28, 8192 }
  0x13   : > { %6919 = vmatpush3.bf16.msra.mxu1 (!%p141_p9), %v7664_v2  ;;  %v7681_v52 = vld [vmem:[%s9190_s1 + $0x140] sm:$0xff] (!%p141_p9)   ;;  %vm8086_vm5 = vmor (!%p141_p9), %vm1568_vm3, %vm1569_vm4 }
  0x14   : > { %7111 = vmatpush3.bf16.msra.mxu0 (!%p141_p9), %v7665_v3  ;;  %6920 = vmatprep.subr.bf16.mxu1 (!%p141_p9), %v7666_v4 }
  0x15   : > { %s165_s9 = scalar_select %p164_p10, %s7898_s16, 1  ;;  %7112 = vmatprep.subr.bf16.mxu0 %v7667_v5 }
  0x17   : > { %s7620_s20 = smul.u32 216, %s165_s9  ;;  %6921 = vmatpush3.bf16.msra.mxu1 %v7666_v4  ;;  %s161_s9 = sand.u32 1, %s7844_s13  }
  0x18   : > { %7113 = vmatpush3.bf16.msra.mxu0 %v7667_v5  ;;  %6922 = vmatprep.subr.bf16.mxu1 %v7668_v6  ;;  %s6044_s10 = sshll.u32 %s161_s9, 8  ;;  %s9148_s16 = scalar_lea.sflag [#allocation4], %s161_s9 }
  0x19   : > { %7114 = vmatprep.subr.bf16.mxu0 %v7669_v7  ;;  %s7963_s5 = scalar_lea.vmem %s9189_s0, %s7620_s20  ;;  %s9039_s11 = scalar_lea.vmem [#allocation3], %s6044_s10 }
  0x1a   : > { %v7678_v12 = vld [vmem:[%s7963_s5] sm:$0xff]   ;;  %v6238_v13 = vld [vmem:[%s7963_s5 + $0xc] sm:$0xf]  ;;  %v6239_v14 = vld [vmem:[%s7963_s5 + $0x10] sm:$0xf]  ;;  %s5978_s19 = sshll.u32 %s9039_s11, 4  ;;  %s9141_s19 = int_to_ptr.vmem [resolvable:$true] %s5978_s19 }
  0x1b   : > { %6923 = vmatpush3.bf16.msra.mxu1 %v7668_v6  ;;  %6932 = vmatprep.mubr.bf16.mxu1 %v7678_v12  ;;  %v6240_v15 = vld [vmem:[%s7963_s5 + $0x14] sm:$0x1]  ;;  %v2569_v16 = vshrl.u32 %v6238_v13, 16  ;;  %v2572_v17 = vshll.u32 %v6238_v13, 16  ;;  %v2578_v19 = vshll.u32 %v6239_v14, 16  ;;  %v2582_v20 = vshrl.u32 %v6239_v14, 16  ;;  %p7797_p0 = scmp.lt.s32.totalorder %s9141_s19, %s7795_s28 }
  0x1c   : > { %7115 = vmatpush3.bf16.msra.mxu0 %v7669_v7  ;;  %6924 = vmatprep.subr.bf16.mxu1 %v7670_v8  ;;  %v2588_v21 = vshll.u32 %v6240_v15, 16  ;;  %v6241_v29 = vld [vmem:[%s7963_s5 + $0x18] sm:$0xf]  ;;  %v6242_v30 = vld [vmem:[%s7963_s5 + $0x1c] sm:$0xf]  ;;  %v7679_v55 = vld [vmem:[%s7963_s5 + $0xc] sm:$0xff]  }
  0x1d   : > { %7116 = vmatprep.subr.bf16.mxu0 %v7671_v9  ;;  %v2571_v22 = vrot.slane %v2569_v16, 4  ;;  %v2574_v23 = vrot.slane %v2572_v17, 5  ;;  %v2580_v25 = vrot.slane %v2578_v19, 5  ;;  %v2584_v26 = vrot.slane %v2582_v20, 4  ;;  %v6243_v31 = vld [vmem:[%s7963_s5 + $0x20] sm:$0x1] }
  0x1e   : > { %v2590_v27 = vrot.slane %v2588_v21, 5  ;;  %v2593_v35 = vshrl.u32 %v6241_v29, 16  ;;  %v2596_v36 = vshll.u32 %v6241_v29, 16  ;;  %v2602_v37 = vshll.u32 %v6242_v30, 16  ;;  %v6244_v53 = vld [vmem:[%s7963_s5 + $0x24] sm:$0xf] }
  0x1f   : > { %6925 = vmatpush3.bf16.msra.mxu1 %v7670_v8  ;;  %v2575_v28 = vor.u32 %v2574_v23, %v2571_v22  ;;  %v2585_v34 = vor.u32 %v2584_v26, %v2580_v25  ;;  %v2606_v40 = vshrl.u32 %v6242_v30, 16  ;;  %v2612_v41 = vshll.u32 %v6243_v31, 16  ;;  %v6245_v57 = vld [vmem:[%s7963_s5 + $0x28] sm:$0xf]  ;;  %v6246_v58 = vld [vmem:[%s7963_s5 + $0x2c] sm:$0x1] }
  0x20   : > { %7117 = vmatpush3.bf16.msra.mxu0 %v7671_v9  ;;  %6926 = vmatprep.subr.bf16.mxu1 %v7672_v10  ;;  %v2595_v43 = vrot.slane %v2593_v35, 4  ;;  %v2598_v44 = vrot.slane %v2596_v36, 5  ;;  %v2604_v45 = vrot.slane %v2602_v37, 5  ;;  %v2617_v59 = vshrl.u32 %v6244_v53, 16  ;;  %v7683_v2 = vld [vmem:[%s7963_s5 + $0x18] sm:$0xff]   ;;  %v7682_v6 = vld [vmem:[%s9190_s1 + $0x148] sm:$0xff]  }
  0x21   : > { %7118 = vmatprep.subr.bf16.mxu0 %v7673_v11  ;;  %v2576_v39 = vrot.slane %v2575_v28, 4  ;;  %v2586_v42 = vrot.slane %v2585_v34, 4  ;;  %v2608_v48 = vrot.slane %v2606_v40, 4  ;;  %v2614_v51 = vrot.slane %v2612_v41, 5  ;;  %v6247_v13 = vld [vmem:[%s7963_s5 + $0x30] sm:$0xf] }
  0x22   : > { %v2599_v50 = vor.u32 %v2598_v44, %v2595_v43  ;;  %v2620_v60 = vshll.u32 %v6244_v53, 16  ;;  %v2626_v62 = vshll.u32 %v6245_v57, 16  ;;  %v2630_v63 = vshrl.u32 %v6245_v57, 16  ;;  %v6248_v14 = vld [vmem:[%s7963_s5 + $0x34] sm:$0xf]  ;;  %v7684_v28 = vld [vmem:[%s7963_s5 + $0x24] sm:$0xff]  }
  0x23   : > { %6927 = vmatpush3.bf16.msra.mxu1 %v7672_v10  ;;  %v2581_v46 = vsel %vm7986_vm2, %v2576_v39, %v2580_v25  ;;  %v2591_v49 = vsel %vm7986_vm2, %v2586_v42, %v2590_v27  ;;  %v2609_v56 = vor.u32 %v2608_v48, %v2604_v45  ;;  %v2636_v0 = vshll.u32 %v6246_v58, 16  ;;  %v7685_v10 = vld [vmem:[%s9190_s1 + $0x48] sm:$0xff]   ;;  %v6249_v17 = vld [vmem:[%s7963_s5 + $0x38] sm:$0x1]  ;;  %v7686_v31 = vld [vmem:[%s9190_s1 + $0x150] sm:$0xff]   ;;  %s7790_s26 = scalar_lea.vmem %s9141_s19, 4096 }
  0x24   : > { %7119 = vmatpush3.bf16.msra.mxu0 %v7673_v11  ;;  %6928 = vmatprep.subr.bf16.mxu1 %v7674_v18  ;;  %v6302_v54 = vcombine.low %v2581_v46, %v2591_v49  ;;  %v2600_v61 = vrot.slane %v2599_v50, 4  ;;  %v2619_v3 = vrot.slane %v2617_v59, 4  ;;  %v2622_v4 = vrot.slane %v2620_v60, 5  ;;  %v7688_v36 = vld [vmem:[%s7963_s5 + $0x30] sm:$0xff]   ;;  %v6250_v39 = vld [vmem:[%s7963_s5 + $0x3c] sm:$0xf]  ;;  %p7791_p11 = scmp.ne.s32.totalorder %s9141_s19, %s7790_s26  ;;  %p7798_p1 = scmp.lt.s32.totalorder %s7796_s29, %s7790_s26 }
  0x25   : > { %7120 = vmatprep.subr.bf16.mxu0 %v7675_v24  ;;  %v2610_v1 = vrot.slane %v2609_v56, 4  ;;  %v2628_v7 = vrot.slane %v2626_v62, 5  ;;  %v2632_v8 = vrot.slane %v2630_v63, 4  ;;  %v2638_v9 = vrot.slane %v2636_v0, 5  ;;  %v6251_v40 = vld [vmem:[%s7963_s5 + $0x40] sm:$0xf] }
  0x26   : > { %7124 = vmatprep.mubr.bf16.mxu0 %v6302_v54  ;;  %v2605_v5 = vsel %vm7986_vm2, %v2600_v61, %v2604_v45  ;;  %v2623_v12 = vor.u32 %v2622_v4, %v2619_v3  ;;  %v2644_v19 = vshll.u32 %v6247_v13, 16  ;;  %v2650_v21 = vshll.u32 %v6248_v14, 16  ;;  %v6252_v41 = vld [vmem:[%s7963_s5 + $0x44] sm:$0x1]  ;;  %v7690_v54 = vld [vmem:[%s9190_s1 + $0x50] sm:$0xff]   ;;  %p7792_p12 = pnand %p7791_p11, %p7915_p5  ;;  %p7799_p2 = por %p7798_p1, %p7797_p0 }
  0x27   : > { %6929 = vmatpush3.bf16.msra.mxu1 %v7674_v18  ;;  %v2615_v11 = vsel %vm7986_vm2, %v2610_v1, %v2614_v51  ;;  %v2633_v16 = vor.u32 %v2632_v8, %v2628_v7  ;;  %v2641_v18 = vshrl.u32 %v6247_v13, 16  ;;  %v2654_v22 = vshrl.u32 %v6248_v14, 16  ;;  %v6253_v58 = vld [vmem:[%s7963_s5 + $0x48] sm:$0xf]  ;;  %v6254_v61 = vld [vmem:[%s7963_s5 + $0x4c] sm:$0xf] }
  0x28   : > { %7121 = vmatpush3.bf16.msra.mxu0 %v7675_v24  ;;  %6930 = vmatprep.subr.bf16.mxu1 %v7676_v32  ;;  %v6303_v15 = vcombine.low %v2605_v5, %v2615_v11  ;;  %v2624_v20 = vrot.slane %v2623_v12, 4  ;;  %v2660_v23 = vshll.u32 %v6249_v17, 16  ;;  %v2646_v26 = vrot.slane %v2644_v19, 5  ;;  %v6255_v62 = vld [vmem:[%s7963_s5 + $0x50] sm:$0x1]  ;;  %v7691_v8 = vld [vmem:[%s9190_s1 + $0x160] sm:$0xff]   ;;  %p7793_p13 = pneg %p7792_p12 }
  0x29   : > { %7122 = vmatprep.subr.bf16.mxu0 %v7677_v38  ;;  %v2634_v24 = vrot.slane %v2633_v16, 4  ;;  %v2643_v25 = vrot.slane %v2641_v18, 4  ;;  %v2652_v29 = vrot.slane %v2650_v21, 5  ;;  %v2656_v30 = vrot.slane %v2654_v22, 4  ;;  %v7693_v18 = vld [vmem:[%s7963_s5 + $0x48] sm:$0xff]  }
  0x2a   : > { %v2629_v27 = vsel %vm7986_vm2, %v2624_v20, %v2628_v7  ;;  %v2662_v35 = vrot.slane %v2660_v23, 5  ;;  %v2665_v43 = vshrl.u32 %v6250_v39, 16  ;;  %v2668_v44 = vshll.u32 %v6250_v39, 16  ;;  %v6256_v19 = vld [vmem:[%s7963_s5 + $0x54] sm:$0xf]  ;;  %v7692_v23 = vld [vmem:[%s9190_s1 + $0x168] sm:$0xff]   ;;  %p7800_p3 = pnand %p7799_p2, %p7793_p13 }
  0x2b   : > { %6931 = vmatpush3.bf16.msra.mxu1 %v7676_v32  ;;  %v2639_v32 = vsel %vm7986_vm2, %v2634_v24, %v2638_v9  ;;  %v2647_v34 = vor.u32 %v2646_v26, %v2643_v25  ;;  %v2674_v45 = vshll.u32 %v6251_v40, 16  ;;  %v2678_v48 = vshrl.u32 %v6251_v40, 16  ;;  %v6257_v20 = vld [vmem:[%s7963_s5 + $0x58] sm:$0xf]  ;;  %v6258_v24 = vld [vmem:[%s7963_s5 + $0x5c] sm:$0x1] }
  0x2c   : > { %7123 = vmatpush3.bf16.msra.mxu0 %v7677_v38  ;;  %6964 = vmatprep.subr.bf16.mxu1 %v7680_v47  ;;  %v6304_v37 = vcombine.low %v2629_v27, %v2639_v32  ;;  %v2657_v38 = vor.u32 %v2656_v30, %v2652_v29  ;;  %v2684_v49 = vshll.u32 %v6252_v41, 16  ;;  %v2667_v51 = vrot.slane %v2665_v43, 4  ;;  %v7694_v39 = vld [vmem:[%s7963_s5 + $0x54] sm:$0xff]   ;;  %v6259_v43 = vld [vmem:[%s7963_s5 + $0x60] sm:$0xf] }
  0x2d   : > { %7156 = vmatprep.subr.bf16.mxu0 %v7681_v52  ;;  %v2648_v42 = vrot.slane %v2647_v34, 4  ;;  %v2676_v53 = vrot.slane %v2674_v45, 5  ;;  %v2680_v56 = vrot.slane %v2678_v48, 4  ;;  %v2689_v63 = vshrl.u32 %v6253_v58, 16  ;;  %v7695_v40 = vld [vmem:[%s9190_s1 + $0x58] sm:$0xff]  }
  0x2e   : > { %6933 = vmatmul.mubr.bf16.vlgmr.msra.gmra.mrb[0].mxu1 %v7679_v55  ;;  %v2658_v46 = vrot.slane %v2657_v38, 4  ;;  %v2686_v57 = vrot.slane %v2684_v49, 5  ;;  %v2692_v0 = vshll.u32 %v6253_v58, 16  ;;  %v2702_v3 = vshrl.u32 %v6254_v61, 16  ;;  %v6261_v45 = vld [vmem:[%s7963_s5 + $0x68] sm:$0x1] }
  0x2f   : > { %7125 = vmatmul.mubr.bf16.vlgmr.msra.gmra.mrb[0].mxu0 %v6303_v15  ;;  %6965 = vmatpush3.bf16.msra.mxu1 %v7680_v47  ;;  %v7687_v47 = vld [vmem:[%s9190_s1 + $0x158] sm:$0xff]   ;;  %v2653_v50 = vsel %vm7986_vm2, %v2648_v42, %v2652_v29  ;;  %v2681_v1 = vor.u32 %v2680_v56, %v2676_v53  ;;  %v2708_v4 = vshll.u32 %v6255_v62, 16  ;;  %v2713_v25 = vshrl.u32 %v6256_v19, 16 }
  0x30   : > { %7157 = vmatpush3.bf16.msra.mxu0 %v7681_v52  ;;  %6936 = vmatprep.mubr.bf16.mxu1 %v7683_v2  ;;  %v2670_v52 = vrot.slane %v2668_v44, 5  ;;  %v2663_v55 = vsel %vm7986_vm2, %v2658_v46, %v2662_v35  ;;  %v2698_v2 = vshll.u32 %v6254_v61, 16  ;;  %v2694_v7 = vrot.slane %v2692_v0, 5  ;;  %v6260_v44 = vld [vmem:[%s7963_s5 + $0x64] sm:$0xf] }
  0x31   : > { %7158 = vmatprep.subr.bf16.mxu0 %v7682_v6  ;;  %6966 = vmatprep.subr.bf16.mxu1 %v7685_v10  ;;  %v6305_v59 = vcombine.low %v2653_v50, %v2663_v55  ;;  %v2682_v9 = vrot.slane %v2681_v1, 4  ;;  %v2704_v12 = vrot.slane %v2702_v3, 4  ;;  %v2710_v17 = vrot.slane %v2708_v4, 5  ;;  %v7696_v50 = vld [vmem:[%s9190_s1 + $0x170] sm:$0xff]   ;;  %v6326_v0 = vld [vmem:[%s7963_s5 + $0xc] sm:$0xe] }
  0x32   : > { %7128 = vmatprep.mubr.bf16.mxu0 %v6304_v37  ;;  %v2671_v60 = vor.u32 %v2670_v52, %v2667_v51  ;;  %v2700_v11 = vrot.slane %v2698_v2, 5  ;;  %v2716_v26 = vshll.u32 %v6256_v19, 16  ;;  %v2726_v29 = vshrl.u32 %v6257_v20, 16 }
  0x33   : > { %6967 = vmatpush3.bf16.msra.mxu1 %v7685_v10  ;;  %v7689_v10 = vld [vmem:[%s7963_s5 + $0x3c] sm:$0xff]   ;;  %v2687_v15 = vsel %vm7986_vm2, %v2682_v9, %v2686_v57  ;;  %v2732_v30 = vshll.u32 %v6258_v24, 16  ;;  %v2715_v32 = vrot.slane %v2713_v25, 4  ;;  %v2740_v48 = vshll.u32 %v6259_v43, 16 }
  0x34   : > { %7159 = vmatpush3.bf16.msra.mxu0 %v7682_v6  ;;  %6968 = vmatprep.subr.bf16.mxu1 %v7690_v54  ;;  %v2672_v5 = vrot.slane %v2671_v60, 4  ;;  %v2691_v6 = vrot.slane %v2689_v63, 4  ;;  %v2705_v16 = vor.u32 %v2704_v12, %v2700_v11  ;;  %v2718_v34 = vrot.slane %v2716_v26, 5  ;;  %v7697_v60 = vld [vmem:[%s9190_s1 + $0x178] sm:$0xff]   ;;  %v7698_v63 = vld [vmem:[%s7963_s5 + $0x60] sm:$0xff]  }
  0x35   : > { %7160 = vmatprep.subr.bf16.mxu0 %v7686_v31  ;;  %v2728_v37 = vrot.slane %v2726_v29, 4  ;;  %v2734_v38 = vrot.slane %v2732_v30, 5  ;;  %v2746_v49 = vshll.u32 %v6260_v44, 16  ;;  %v2750_v52 = vshrl.u32 %v6260_v44, 16  ;;  %v6332_v29 = vld [vmem:[%s7963_s5 + $0x24] sm:$0xe] }
  0x36   : > { %6937 = vmatmul.mubr.bf16.gmra.mrb[4].mxu1 %v7684_v28  ;;  %v2677_v13 = vsel %vm7986_vm2, %v2672_v5, %v2676_v53  ;;  %v2695_v14 = vor.u32 %v2694_v7, %v2691_v6  ;;  %v2706_v27 = vrot.slane %v2705_v16, 4  ;;  %v2722_v28 = vshll.u32 %v6257_v20, 16  ;;  %v6327_v5 = vld [vmem:[%s7963_s5 + $0x10] sm:$0xf]  ;;  %v6328_v6 = vld [vmem:[%s7963_s5 + $0x14] sm:$0x1] }
  0x37   : > { %6940 = vmatprep.mubr.bf16.mxu1 %v7688_v36  ;;  %6969 = vmatpush3.bf16.msra.mxu1 %v7690_v54  ;;  %v6306_v21 = vcombine.low %v2677_v13, %v2687_v15  ;;  %v2719_v42 = vor.u32 %v2718_v34, %v2715_v32  ;;  %v2756_v53 = vshll.u32 %v6261_v45, 16  ;;  %v2742_v56 = vrot.slane %v2740_v48, 5  ;;  %v7701_v13 = vld [vmem:[%s9190_s1 + $0x180] sm:$0xff]   ;;  %v6330_v20 = vld [vmem:[%s7963_s5 + $0x1c] sm:$0xf]  ;;  %v7705_v48 = vld [vmem:[%s9190_s1 + $0x188] sm:$0xff]  }
  0x38   : > { %7161 = vmatpush3.bf16.msra.mxu0 %v7686_v31  ;;  %v2696_v22 = vrot.slane %v2695_v14, 4  ;;  %v2711_v35 = vsel %vm7986_vm2, %v2706_v27, %v2710_v17  ;;  %v2724_v36 = vrot.slane %v2722_v28, 5  ;;  %6970 = vmatprep.subr.bf16.mxu1 %v7695_v40  ;;  %v2748_v57 = vrot.slane %v2746_v49, 5  ;;  %v7699_v17 = vld [vmem:[%s7963_s5 + $0x6c] sm:$0xff]   ;;  %v6336_v44 = vld [vmem:[%s7963_s5 + $0x34] sm:$0xf] }
  0x39   : > { %7129 = vmatmul.mubr.bf16.gmra.mrb[4].mxu0 %v6305_v59  ;;  %7162 = vmatprep.subr.bf16.mxu0 %v7687_v47  ;;  %v2720_v51 = vrot.slane %v2719_v42, 4  ;;  %v2752_v59 = vrot.slane %v2750_v52, 4  ;;  %v2758_v3 = vrot.slane %v2756_v53, 5  ;;  %v6374_v7 = vrot.slane %v6326_v0, 9  ;;  %v6334_v32 = vld [vmem:[%s7963_s5 + $0x2c] sm:$0x1] }
  0x3a   : > { %7132 = vmatprep.mubr.bf16.mxu0 %v6306_v21  ;;  %v2701_v31 = vsel %vm7986_vm2, %v2696_v22, %v2700_v11  ;;  %v2729_v46 = vor.u32 %v2728_v37, %v2724_v36  ;;  %v3436_v9 = vrot.slane %v6327_v5, 5  ;;  %v7700_v11 = vld [vmem:[%s9190_s1 + $0x60] sm:$0xff]   ;;  %v3443_v26 = vrot.slane %v6330_v20, 5  ;;  %v6341_v0 = vld [vmem:[%s7963_s5 + $0x48] sm:$0xe] }
  0x3b   : > { %v6307_v41 = vcombine.low %v2701_v31, %v2711_v35  ;;  %6971 = vmatpush3.bf16.msra.mxu1 %v7695_v40  ;;  %v2725_v58 = vsel %vm7986_vm2, %v2720_v51, %v2724_v36  ;;  %v2753_v2 = vor.u32 %v2752_v59, %v2748_v57  ;;  %v6331_v21 = vld [vmem:[%s7963_s5 + $0x20] sm:$0x1]  ;;  %v6333_v31 = vld [vmem:[%s7963_s5 + $0x28] sm:$0xf]  ;;  %v6376_v34 = vrot.slane %v6332_v29, 9  ;;  %v7708_v59 = vld [vmem:[%s9190_s1 + $0x70] sm:$0xff]  }
  0x3c   : > { %7163 = vmatpush3.bf16.msra.mxu0 %v7687_v47  ;;  %v2737_v47 = vshrl.u32 %v6259_v43, 16  ;;  %v2730_v54 = vrot.slane %v2729_v46, 4  ;;  %v3437_v15 = vsel %vm8086_vm5, %v6374_v7, %v3436_v9  ;;  %v3438_v16 = vrot.slane %v3436_v9, 4  ;;  %6972 = vmatprep.subr.bf16.mxu1 %v7700_v11  ;;  %v7703_v42 = vld [vmem:[%s7963_s5 + $0x84] sm:$0xff]   ;;  %v6335_v43 = vld [vmem:[%s7963_s5 + $0x30] sm:$0xe] }
  0x3d   : > { %7164 = vmatprep.subr.bf16.mxu0 %v7691_v8  ;;  %v2754_v12 = vrot.slane %v2753_v2, 4  ;;  %v3446_v27 = vrot.slane %v6331_v21, 5  ;;  %v3445_v30 = vrot.slane %v3443_v26, 4  ;;  %v3450_v36 = vrot.slane %v6333_v31, 5  ;;  %v6337_v46 = vld [vmem:[%s7963_s5 + $0x38] sm:$0x1] }
  0x3e   : > { %6941 = vmatmul.mubr.bf16.gmra.mrb[8].mxu1 %v7689_v10  ;;  %v2739_v55 = vrot.slane %v2737_v47, 4  ;;  %v2735_v61 = vsel %vm7986_vm2, %v2730_v54, %v2734_v38  ;;  %v3439_v10 = vrot.slane %v6328_v6, 5  ;;  %v3453_v37 = vrot.slane %v6334_v32, 5  ;;  %v7706_v54 = vld [vmem:[%s7963_s5 + $0x90] sm:$0xff]   ;;  %v6342_v5 = vld [vmem:[%s7963_s5 + $0x4c] sm:$0xf] }
  0x3f   : > { %6944 = vmatprep.mubr.bf16.mxu1 %v7693_v18  ;;  %v6308_v1 = vcombine.low %v2725_v58, %v2735_v61  ;;  %v6329_v18 = vld [vmem:[%s7963_s5 + $0x18] sm:$0xe]  ;;  %v2759_v19 = vsel %vm7986_vm2, %v2754_v12, %v2758_v3  ;;  %6973 = vmatpush3.bf16.msra.mxu1 %v7700_v11  ;;  %v3447_v38 = vsel %vm8086_vm5, %v3445_v30, %v3446_v27  ;;  %v3457_v47 = vrot.slane %v6336_v44, 5  ;;  %v7707_v3 = vld [vmem:[%s7963_s5 + $0x9c] sm:$0xff]   ;;  %v6343_v6 = vld [vmem:[%s7963_s5 + $0x50] sm:$0x1] }
  0x40   : > { %7165 = vmatpush3.bf16.msra.mxu0 %v7691_v8  ;;  %v2743_v62 = vor.u32 %v2742_v56, %v2739_v55  ;;  %v6375_v22 = vrot.slane %v6329_v18, 9  ;;  %v3440_v25 = vsel %vm8086_vm5, %v3438_v16, %v3439_v10  ;;  %v3451_v40 = vsel %vm8086_vm5, %v6376_v34, %v3450_v36  ;;  %v6338_v55 = vld [vmem:[%s7963_s5 + $0x3c] sm:$0xe]  ;;  %v6339_v56 = vld [vmem:[%s7963_s5 + $0x40] sm:$0xf]  ;;  %v7709_v12 = vld [vmem:[%s9190_s1 + $0x190] sm:$0xff]  }
  0x41   : > { %7166 = vmatprep.subr.bf16.mxu0 %v7692_v23  ;;  %7133 = vmatmul.mubr.bf16.gmra.mrb[8].mxu0 %v6307_v41  ;;  %v6406_v28 = vcombine.low %v3437_v15, %v3440_v25  ;;  %v3452_v41 = vrot.slane %v3450_v36, 4  ;;  %v3460_v51 = vrot.slane %v6337_v46, 5  ;;  %v3459_v53 = vrot.slane %v3457_v47, 4  ;;  %v7710_v15 = vld [vmem:[%s7963_s5 + $0xa8] sm:$0xff]   ;;  %v6344_v16 = vld [vmem:[%s7963_s5 + $0x54] sm:$0xe] }
  0x42   : > { %v2744_v8 = vrot.slane %v2743_v62, 4  ;;  %7136 = vmatprep.mubr.bf16.mxu0 %v6308_v1  ;;  %v3444_v35 = vsel %vm8086_vm5, %v6375_v22, %v3443_v26  ;;  %v6378_v58 = vrot.slane %v6338_v55, 9  ;;  %v6379_v7 = vrot.slane %v6341_v0, 9  ;;  %v6346_v18 = vld [vmem:[%s7963_s5 + $0x5c] sm:$0x1]  ;;  %v7711_v34 = vld [vmem:[%s7963_s5 + $0xb4] sm:$0xff]  }
  0x43   : > { %v6407_v45 = vcombine.low %v3444_v35, %v3447_v38  ;;  %v3454_v49 = vsel %vm8086_vm5, %v3452_v41, %v3453_v37  ;;  %v3474_v11 = vrot.slane %v6343_v6, 5  ;;  %v3481_v21 = vrot.slane %v6346_v18, 5  ;;  %v7712_v26 = vld [vmem:[%s9190_s1 + $0x78] sm:$0xff]   ;;  %v6347_v27 = vld [vmem:[%s7963_s5 + $0x60] sm:$0xe] }
  0x44   : > { %7167 = vmatpush3.bf16.msra.mxu0 %v7692_v23  ;;  %v2749_v14 = vsel %vm7986_vm2, %v2744_v8, %v2748_v57  ;;  %v7702_v23 = vld [vmem:[%s7963_s5 + $0x78] sm:$0xff]   ;;  %v6408_v52 = vcombine.low %v3451_v40, %v3454_v49  ;;  %v6340_v57 = vld [vmem:[%s7963_s5 + $0x44] sm:$0x1]  ;;  %v3471_v8 = vrot.slane %v6342_v5, 5  ;;  %v6349_v29 = vld [vmem:[%s7963_s5 + $0x68] sm:$0x1] }
  0x45   : > { %7168 = vmatprep.subr.bf16.mxu0 %v7696_v50  ;;  %v6309_v24 = vcombine.low %v2749_v14, %v2759_v19  ;;  %v3467_v61 = vrot.slane %v6340_v57, 5  ;;  %v6380_v19 = vrot.slane %v6344_v16, 9  ;;  %v6381_v30 = vrot.slane %v6347_v27, 9  ;;  %v7713_v31 = vld [vmem:[%s9190_s1 + $0x198] sm:$0xff]   ;;  %v652_v40 = vld [vmem:[%s7963_s5 + $0x4] sm:$0xf] }
  0x46   : > { %6945 = vmatmul.mubr.bf16.gmra.mrb[12].mxu1 %v7694_v39  ;;  %v7704_v39 = vld [vmem:[%s9190_s1 + $0x68] sm:$0xff]   ;;  %v3473_v14 = vrot.slane %v3471_v8, 4  ;;  %v3472_v22 = vsel %vm8086_vm5, %v6379_v7, %v3471_v8  ;;  %v3488_v36 = vrot.slane %v6349_v29, 5  ;;  %v716_v49 = vshrl.u32 %v652_v40, 16  ;;  %v655_v5 = vld [vmem:[%s7963_s5 + $0x10] sm:$0xf] }
  0x47   : > { %6948 = vmatprep.mubr.bf16.mxu1 %v7698_v63  ;;  %6974 = vmatprep.subr.bf16.mxu1 %v7704_v39  ;;  %v3461_v63 = vsel %vm8086_vm5, %v3459_v53, %v3460_v51  ;;  %v653_v41 = vld [vmem:[%s7963_s5 + $0x8] sm:$0x1]  ;;  %v6350_v46 = vld [vmem:[%s7963_s5 + $0x6c] sm:$0xe]  ;;  %v6351_v51 = vld [vmem:[%s7963_s5 + $0x70] sm:$0xf] }
  0x48   : > { %7169 = vmatpush3.bf16.msra.mxu0 %v7696_v50  ;;  %v6377_v50 = vrot.slane %v6335_v43, 9  ;;  %6975 = vmatpush3.bf16.msra.mxu1 %v7704_v39  ;;  %v651_v39 = vld [vmem:[%s7963_s5] sm:$0xf]  ;;  %v3492_v57 = vrot.slane %v6351_v51, 5  ;;  %v656_v6 = vld [vmem:[%s7963_s5 + $0x14] sm:$0x1] }
  0x49   : > { %7170 = vmatprep.subr.bf16.mxu0 %v7697_v60  ;;  %7137 = vmatmul.mubr.bf16.gmra.mrb[12].mxu0 %v6309_v24  ;;  %v703_v44 = vshrl.u32 %v651_v39, 16  ;;  %v6355_v29 = vld [vmem:[%s7963_s5 + $0x80] sm:$0x1] }
  0x4a   : > { %7172 = vmatprep.mubr.bf16.mxu0 %v6406_v28  ;;  %v3458_v62 = vsel %vm8086_vm5, %v6377_v50, %v3457_v47  ;;  %6976 = vmatprep.subr.bf16.mxu1 %v7708_v59  ;;  %v6348_v28 = vld [vmem:[%s7963_s5 + $0x64] sm:$0xf]  ;;  %v722_v50 = vshll.u32 %v653_v41, 16  ;;  %v658_v41 = vld [vmem:[%s7963_s5 + $0x1c] sm:$0xf] }
  0x4b   : > { %v6409_v9 = vcombine.low %v3458_v62, %v3461_v63  ;;  %v3485_v35 = vrot.slane %v6348_v28, 5  ;;  %v8187_v47 = vld [vmem:[%s9190_s1 + $0x80] sm:$0xff]   ;;  %v654_v63 = vld [vmem:[%s7963_s5 + $0xc] sm:$0xf]  ;;  %v764_v51 = vshrl.u32 %v658_v41, 16 }
  0x4c   : > { %7171 = vmatpush3.bf16.msra.mxu0 %v7697_v60  ;;  %v3464_v60 = vrot.slane %v6339_v56, 5  ;;  %6977 = vmatpush3.bf16.msra.mxu1 %v7708_v59  ;;  %v6352_v56 = vld [vmem:[%s7963_s5 + $0x74] sm:$0x1]  ;;  %v724_v62 = vrot.slane %v722_v50, 5  ;;  %v727_v8 = vshrl.u32 %v654_v63, 16 }
  0x4d   : > { %7204 = vmatprep.subr.bf16.mxu0 %v7701_v13  ;;  %6978 = vmatprep.subr.bf16.mxu1 %v7712_v26  ;;  %v3487_v43 = vrot.slane %v3485_v35, 4 }
  0x4e   : > { %6949 = vmatmul.mubr.bf16.gmra.mrb[16].mxu1 %v7699_v17  ;;  %v3465_v1 = vsel %vm8086_vm5, %v6378_v58, %v3464_v60  ;;  %v3466_v2 = vrot.slane %v3464_v60, 4  ;;  %v6345_v17 = vld [vmem:[%s7963_s5 + $0x58] sm:$0xf]  ;;  %v7715_v58 = vld [vmem:[%s9190_s1 + $0x1a0] sm:$0xff]   ;;  %v729_v18 = vrot.slane %v727_v8, 4 }
  0x4f   : > { %6952 = vmatprep.mubr.bf16.mxu1 %v7702_v23  ;;  %v3478_v20 = vrot.slane %v6345_v17, 5  ;;  %v3475_v23 = vsel %vm8086_vm5, %v3473_v14, %v3474_v11  ;;  %v3489_v53 = vsel %vm8086_vm5, %v3487_v43, %v3488_v36  ;;  %v7717_v11 = vld [vmem:[%s9190_s1 + $0x1a8] sm:$0xff]   ;;  %v740_v14 = vshrl.u32 %v655_v5, 16  ;;  %v657_v36 = vld [vmem:[%s7963_s5 + $0x18] sm:$0xf] }
  0x50   : > { %v3468_v10 = vsel %vm8086_vm5, %v3466_v2, %v3467_v61  ;;  %v6411_v37 = vcombine.low %v3472_v22, %v3475_v23  ;;  %6979 = vmatpush3.bf16.msra.mxu1 %v7712_v26  ;;  %v718_v61 = vrot.slane %v716_v49, 4  ;;  %v3494_v2 = vrot.slane %v3492_v57, 4  ;;  %v6354_v26 = vld [vmem:[%s7963_s5 + $0x7c] sm:$0xf] }
  0x51   : > { %7173 = vmatmul.mubr.bf16.vlgmr.msra.gmra.mrb[0].mxu0 %v6407_v45  ;;  %v3479_v24 = vsel %vm8086_vm5, %v6380_v19, %v3478_v20  ;;  %v3480_v25 = vrot.slane %v3478_v20, 4  ;;  %v706_v45 = vshll.u32 %v651_v39, 16  ;;  %7012 = vmatprep.subr.bf16.mxu1 %v8187_v47  ;;  %v6353_v20 = vld [vmem:[%s7963_s5 + $0x78] sm:$0xe] }
  0x52   : > { %7205 = vmatpush3.bf16.msra.mxu0 %v7701_v13  ;;  %7176 = vmatprep.mubr.bf16.mxu0 %v6408_v52  ;;  %v6410_v13 = vcombine.low %v3465_v1, %v3468_v10  ;;  %v6382_v52 = vrot.slane %v6350_v46, 9  ;;  %v736_v10 = vshll.u32 %v655_v5, 16  ;;  %v760_v46 = vshll.u32 %v658_v41, 16 }
  0x53   : > { %7206 = vmatprep.subr.bf16.mxu0 %v7705_v48  ;;  %v3482_v32 = vsel %vm8086_vm5, %v3480_v25, %v3481_v21  ;;  %v708_v55 = vrot.slane %v706_v45, 5  ;;  %v7719_v21 = vld [vmem:[%s9190_s1 + $0x1b0] sm:$0xff]   ;;  %v754_v45 = vshll.u32 %v657_v36, 16 }
  0x54   : > { %v6412_v38 = vcombine.low %v3479_v24, %v3482_v32  ;;  %v3493_v1 = vsel %vm8086_vm5, %v6382_v52, %v3492_v57  ;;  %v738_v23 = vrot.slane %v736_v10, 5  ;;  %v742_v24 = vrot.slane %v740_v14, 4 }
  0x56   : > { %6953 = vmatmul.mubr.bf16.gmra.mrb[20].mxu1 %v7703_v42  ;;  %7207 = vmatpush3.bf16.msra.mxu0 %v7705_v48  ;;  %v8181_v42 = vsel %vm8086_vm5, %v6381_v30, %v3485_v35  ;;  %v712_v48 = vshll.u32 %v652_v40, 16  ;;  %v6383_v30 = vrot.slane %v6353_v20, 9  ;;  %v3502_v35 = vrot.slane %v6355_v29, 5 }
  0x57   : > { %6956 = vmatprep.mubr.bf16.mxu1 %v7706_v54  ;;  %7208 = vmatprep.subr.bf16.mxu0 %v7709_v12  ;;  %v705_v54 = vrot.slane %v703_v44, 4  ;;  %v6413_v59 = vcombine.low %v8181_v42, %v3489_v53  ;;  %v659_v42 = vld [vmem:[%s7963_s5 + $0x20] sm:$0x1]  ;;  %v751_v44 = vshrl.u32 %v657_v36, 16  ;;  %v6357_v53 = vld [vmem:[%s7963_s5 + $0x88] sm:$0xf] }
  0x58   : > { %v714_v60 = vrot.slane %v712_v48, 5  ;;  %v6356_v48 = vld [vmem:[%s7963_s5 + $0x84] sm:$0xe]  ;;  %v770_v52 = vshll.u32 %v659_v42, 16 }
  0x59   : > { %7177 = vmatmul.mubr.bf16.gmra.mrb[4].mxu0 %v6409_v9  ;;  %v709_v0 = vor.u32 %v708_v55, %v705_v54  ;;  %v730_v9 = vshll.u32 %v654_v63, 16  ;;  %v6358_v54 = vld [vmem:[%s7963_s5 + $0x8c] sm:$0x1]  ;;  %v753_v57 = vrot.slane %v751_v44, 4  ;;  %v766_v63 = vrot.slane %v764_v51, 4 }
  0x5a   : > { %7180 = vmatprep.mubr.bf16.mxu0 %v6410_v13  ;;  %7209 = vmatpush3.bf16.msra.mxu0 %v7709_v12  ;;  %v719_v7 = vor.u32 %v718_v61, %v714_v60  ;;  %v6384_v5 = vrot.slane %v6356_v48, 9  ;;  %v6363_v51 = vld [vmem:[%s7963_s5 + $0xa0] sm:$0xf] }
  0x5b   : > { %7210 = vmatprep.subr.bf16.mxu0 %v7713_v31  ;;  %v710_v12 = vrot.slane %v709_v0, 4  ;;  %v732_v19 = vrot.slane %v730_v9, 5  ;;  %v772_v0 = vrot.slane %v770_v52, 5 }
  0x5c   : > { %v720_v16 = vrot.slane %v719_v7, 4  ;;  %v3509_v7 = vrot.slane %v6358_v54, 5 }
  0x5d   : > { %v715_v22 = vsel %vm7986_vm2, %v710_v12, %v714_v60  ;;  %v733_v28 = vor.u32 %v732_v19, %v729_v18  ;;  %v661_v60 = vld [vmem:[%s7963_s5 + $0x28] sm:$0xf]  ;;  %v7718_v12 = vld [vmem:[%s9190_s1 + $0x90] sm:$0xff]   ;;  %v8251_v18 = vld [vmem:[%s9190_s1 + $0x1c0] sm:$0xff]  }
  0x5e   : > { %6957 = vmatmul.mubr.bf16.gmra.mrb[24].mxu1 %v7707_v3  ;;  %7211 = vmatpush3.bf16.msra.mxu0 %v7713_v31  ;;  %v3495_v3 = vrot.slane %v6352_v56, 5  ;;  %v725_v27 = vsel %vm7986_vm2, %v720_v16, %v724_v62  ;;  %v3499_v31 = vrot.slane %v6354_v26, 5  ;;  %v762_v62 = vrot.slane %v760_v46, 5 }
  0x5f   : > { %6960 = vmatprep.mubr.bf16.mxu1 %v7710_v15  ;;  %7212 = vmatprep.subr.bf16.mxu0 %v7715_v58  ;;  %v746_v15 = vshll.u32 %v656_v6, 16  ;;  %v6086_v32 = vcombine.low %v715_v22, %v725_v27  ;;  %v3506_v6 = vrot.slane %v6357_v53, 5  ;;  %v788_v16 = vshrl.u32 %v661_v60, 16  ;;  %v6361_v27 = vld [vmem:[%s7963_s5 + $0x98] sm:$0x1] }
  0x60   : > { %v3496_v13 = vsel %vm8086_vm5, %v3494_v2, %v3495_v3  ;;  %v3500_v39 = vsel %vm8086_vm5, %v6383_v30, %v3499_v31  ;;  %v3501_v40 = vrot.slane %v3499_v31, 4  ;;  %v7716_v2 = vld [vmem:[%s9190_s1 + $0x88] sm:$0xff]   ;;  %v767_v8 = vor.u32 %v766_v63, %v762_v62 }
  0x61   : > { %7181 = vmatmul.mubr.bf16.gmra.mrb[8].mxu0 %v6411_v37  ;;  %v6414_v17 = vcombine.low %v3493_v1, %v3496_v13  ;;  %v748_v25 = vrot.slane %v746_v15, 5  ;;  %v7721_v37 = vld [vmem:[%s9190_s1 + $0x1b8] sm:$0xff]   ;;  %v662_v1 = vld [vmem:[%s7963_s5 + $0x2c] sm:$0x1]  ;;  %v3507_v14 = vsel %vm8086_vm5, %v6384_v5, %v3506_v6  ;;  %v3508_v15 = vrot.slane %v3506_v6, 4  ;;  %v7723_v5 = vld [vmem:[%s9190_s1 + $0xa0] sm:$0xff]  }
  0x62   : > { %7184 = vmatprep.mubr.bf16.mxu0 %v6412_v38  ;;  %7213 = vmatpush3.bf16.msra.mxu0 %v7715_v58  ;;  %v734_v38 = vrot.slane %v733_v28, 4  ;;  %v3503_v50 = vsel %vm8086_vm5, %v3501_v40, %v3502_v35  ;;  %v756_v58 = vrot.slane %v754_v45, 5  ;;  %v768_v19 = vrot.slane %v767_v8, 4  ;;  %v665_v40 = vld [vmem:[%s7963_s5 + $0x38] sm:$0x1] }
  0x63   : > { %7214 = vmatprep.subr.bf16.mxu0 %v7717_v11  ;;  %v6415_v56 = vcombine.low %v3500_v39, %v3503_v50  ;;  %v794_v26 = vshll.u32 %v662_v1, 16  ;;  %v664_v39 = vld [vmem:[%s7963_s5 + $0x34] sm:$0xf]  ;;  %v3516_v42 = vrot.slane %v6361_v27, 5  ;;  %v6362_v45 = vld [vmem:[%s7963_s5 + $0x9c] sm:$0xe] }
  0x64   : > { %v739_v49 = vsel %vm7986_vm2, %v734_v38, %v738_v23  ;;  %v757_v3 = vor.u32 %v756_v58, %v753_v57  ;;  %v773_v28 = vsel %vm7986_vm2, %v768_v19, %v772_v0  ;;  %v808_v50 = vshll.u32 %v664_v39, 16 }
  0x65   : > { %v3520_v8 = vrot.slane %v6363_v51, 5 }
  0x66   : > { %6961 = vmatmul.mubr.bf16.gmra.mrb[28].mxu1 %v7711_v34  ;;  %v743_v34 = vor.u32 %v742_v24, %v738_v23  ;;  %7215 = vmatpush3.bf16.msra.mxu0 %v7717_v11  ;;  %v784_v11 = vshll.u32 %v661_v60, 16  ;;  %v758_v13 = vrot.slane %v757_v3, 4  ;;  %v3510_v24 = vsel %vm8086_vm5, %v3508_v15, %v3509_v7  ;;  %v668_v3 = vld [vmem:[%s7963_s5 + $0x44] sm:$0x1] }
  0x67   : > { %7216 = vmatprep.subr.bf16.mxu0 %v7719_v21  ;;  %6980 = vmatprep.mubr.bf16.mxu1 %v6086_v32  ;;  %v6416_v29 = vcombine.low %v3507_v14, %v3510_v24  ;;  %v663_v32 = vld [vmem:[%s7963_s5 + $0x30] sm:$0xf]  ;;  %v818_v60 = vshll.u32 %v665_v40, 16  ;;  %v6386_v7 = vrot.slane %v6362_v45, 9  ;;  %v6365_v14 = vld [vmem:[%s7963_s5 + $0xa8] sm:$0xe] }
  0x68   : > { %v744_v43 = vrot.slane %v743_v34, 4  ;;  %v786_v22 = vrot.slane %v784_v11, 5  ;;  %v763_v23 = vsel %vm7986_vm2, %v758_v13, %v762_v62  ;;  %v7720_v34 = vld [vmem:[%s9190_s1 + $0x98] sm:$0xff]   ;;  %v802_v44 = vshll.u32 %v663_v32, 16  ;;  %v667_v62 = vld [vmem:[%s7963_s5 + $0x40] sm:$0xf] }
  0x69   : > { %7185 = vmatmul.mubr.bf16.gmra.mrb[12].mxu0 %v6413_v59  ;;  %v660_v59 = vld [vmem:[%s7963_s5 + $0x24] sm:$0xf]  ;;  %v6088_v35 = vcombine.low %v763_v23, %v773_v28  ;;  %v820_v6 = vrot.slane %v818_v60, 5  ;;  %v3521_v15 = vsel %vm8086_vm5, %v6386_v7, %v3520_v8  ;;  %v836_v19 = vshrl.u32 %v667_v62, 16  ;;  %v6367_v24 = vld [vmem:[%s7963_s5 + $0xb0] sm:$0x1] }
  0x6a   : > { %7188 = vmatprep.mubr.bf16.mxu0 %v6414_v17  ;;  %v749_v55 = vsel %vm7986_vm2, %v744_v43, %v748_v25  ;;  %7217 = vmatpush3.bf16.msra.mxu0 %v7719_v21  ;;  %v775_v9 = vshrl.u32 %v660_v59, 16  ;;  %v778_v10 = vshll.u32 %v660_v59, 16  ;;  %v6359_v17 = vld [vmem:[%s7963_s5 + $0x90] sm:$0xe]  ;;  %v790_v25 = vrot.slane %v788_v16, 4  ;;  %v7735_v7 = vld [vmem:[%s9190_s1 + $0xb8] sm:$0xff]  }
  0x6b   : > { %v6087_v61 = vcombine.low %v739_v49, %v749_v55  ;;  %7218 = vmatprep.subr.bf16.mxu0 %v7721_v37  ;;  %v6385_v31 = vrot.slane %v6359_v17, 9  ;;  %v799_v43 = vshrl.u32 %v663_v32, 16  ;;  %v804_v54 = vrot.slane %v802_v44, 5 }
  0x6c   : > { %v777_v20 = vrot.slane %v775_v9, 4  ;;  %v780_v21 = vrot.slane %v778_v10, 5  ;;  %v791_v36 = vor.u32 %v790_v25, %v786_v22  ;;  %v812_v55 = vshrl.u32 %v664_v39, 16  ;;  %v7727_v25 = vld [vmem:[%s9190_s1 + $0xa8] sm:$0xff]  }
  0x6d   : > { %v801_v53 = vrot.slane %v799_v43, 4  ;;  %v810_v59 = vrot.slane %v808_v50, 5  ;;  %v3522_v16 = vrot.slane %v3520_v8, 4  ;;  %v832_v17 = vshll.u32 %v667_v62, 16 }
  0x6e   : > { %6981 = vmatmul.mubr.bf16.vlgmr.msra.gmra.mrb[0].mxu1 %v6087_v61  ;;  %7219 = vmatpush3.bf16.msra.mxu0 %v7721_v37  ;;  %v781_v30 = vor.u32 %v780_v21, %v777_v20  ;;  %v796_v37 = vrot.slane %v794_v26, 5  ;;  %v792_v46 = vrot.slane %v791_v36, 4  ;;  %v666_v61 = vld [vmem:[%s7963_s5 + $0x3c] sm:$0xf]  ;;  %v6366_v20 = vld [vmem:[%s7963_s5 + $0xac] sm:$0xf] }
  0x6f   : > { %7013 = vmatpush3.bf16.msra.mxu1 %v8187_v47  ;;  %v6360_v47 = vld [vmem:[%s7963_s5 + $0x94] sm:$0xf]  ;;  %7252 = vmatprep.subr.bf16.mxu0 %v8251_v18  ;;  %v805_v1 = vor.u32 %v804_v54, %v801_v53  ;;  %v826_v13 = vshll.u32 %v666_v61, 16  ;;  %v834_v27 = vrot.slane %v832_v17, 5  ;;  %v838_v28 = vrot.slane %v836_v19, 4 }
  0x70   : > { %7014 = vmatprep.subr.bf16.mxu1 %v7716_v2  ;;  %v3513_v38 = vrot.slane %v6360_v47, 5  ;;  %v782_v41 = vrot.slane %v781_v30, 4  ;;  %6984 = vmatprep.mubr.bf16.mxu1 %v6088_v35  ;;  %v797_v57 = vsel %vm7986_vm2, %v792_v46, %v796_v37  ;;  %v669_v35 = vld [vmem:[%s7963_s5 + $0x48] sm:$0xf]  ;;  %v7731_v36 = vld [vmem:[%s9190_s1 + $0xb0] sm:$0xff]   ;;  %v3527_v40 = vrot.slane %v6366_v20, 5 }
  0x71   : > { %7189 = vmatmul.mubr.bf16.gmra.mrb[16].mxu0 %v6415_v56  ;;  %v6364_v56 = vld [vmem:[%s7963_s5 + $0xa4] sm:$0x1]  ;;  %v806_v10 = vrot.slane %v805_v1, 4  ;;  %v828_v23 = vrot.slane %v826_v13, 5  ;;  %v3530_v44 = vrot.slane %v6367_v24, 5  ;;  %v847_v45 = vshrl.u32 %v669_v35, 16 }
  0x72   : > { %7192 = vmatprep.mubr.bf16.mxu0 %v6416_v29  ;;  %v3514_v48 = vsel %vm8086_vm5, %v6385_v31, %v3513_v38  ;;  %v3515_v49 = vrot.slane %v3513_v38, 4  ;;  %v787_v52 = vsel %vm7986_vm2, %v782_v41, %v786_v22  ;;  %v3523_v9 = vrot.slane %v6364_v56, 5  ;;  %v670_v41 = vld [vmem:[%s7963_s5 + $0x4c] sm:$0xf]  ;;  %v6369_v53 = vld [vmem:[%s7963_s5 + $0xb8] sm:$0xf] }
  0x73   : > { %7015 = vmatpush3.bf16.msra.mxu1 %v7716_v2  ;;  %v6089_v63 = vcombine.low %v787_v52, %v797_v57  ;;  %v814_v2 = vrot.slane %v812_v55, 4  ;;  %v811_v21 = vsel %vm7986_vm2, %v806_v10, %v810_v59  ;;  %v842_v29 = vshll.u32 %v668_v3, 16 }
  0x74   : > { %7016 = vmatprep.subr.bf16.mxu1 %v7718_v12  ;;  %v3517_v58 = vsel %vm8086_vm5, %v3515_v49, %v3516_v42  ;;  %v3524_v26 = vsel %vm8086_vm5, %v3522_v16, %v3523_v9  ;;  %v839_v38 = vor.u32 %v838_v28, %v834_v27  ;;  %v671_v42 = vld [vmem:[%s7963_s5 + $0x50] sm:$0x1]  ;;  %v850_v46 = vshll.u32 %v669_v35, 16  ;;  %v6371_v16 = vld [vmem:[%s7963_s5 + $0xc0] sm:$0xe] }
  0x75   : > { %v6417_v0 = vcombine.low %v3514_v48, %v3517_v58  ;;  %v815_v11 = vor.u32 %v814_v2, %v810_v59  ;;  %v6418_v31 = vcombine.low %v3521_v15, %v3524_v26  ;;  %v844_v39 = vrot.slane %v842_v29, 5  ;;  %v6368_v48 = vld [vmem:[%s7963_s5 + $0xb4] sm:$0xe]  ;;  %v6370_v58 = vld [vmem:[%s7963_s5 + $0xbc] sm:$0x1] }
  0x76   : > { %6985 = vmatmul.mubr.bf16.gmra.mrb[4].mxu1 %v6089_v63  ;;  %v840_v49 = vrot.slane %v839_v38, 4  ;;  %v3529_v51 = vrot.slane %v3527_v40, 4  ;;  %v856_v52 = vshll.u32 %v670_v41, 16  ;;  %v849_v55 = vrot.slane %v847_v45, 4  ;;  %v672_v63 = vld [vmem:[%s7963_s5 + $0x54] sm:$0xf] }
  0x77   : > { %7017 = vmatpush3.bf16.msra.mxu1 %v7718_v12  ;;  %v823_v12 = vshrl.u32 %v666_v61, 16  ;;  %v816_v22 = vrot.slane %v815_v11, 4  ;;  %v852_v56 = vrot.slane %v850_v46, 5  ;;  %v860_v57 = vshrl.u32 %v670_v41, 16  ;;  %v6373_v26 = vld [vmem:[%s7963_s5 + $0xc8] sm:$0x1] }
  0x78   : > { %7018 = vmatprep.subr.bf16.mxu1 %v7720_v34  ;;  %v845_v59 = vsel %vm7986_vm2, %v840_v49, %v844_v39  ;;  %v3531_v60 = vsel %vm8086_vm5, %v3529_v51, %v3530_v44  ;;  %v858_v61 = vrot.slane %v856_v52, 5  ;;  %v866_v62 = vshll.u32 %v671_v42, 16  ;;  %v676_v42 = vld [vmem:[%s7963_s5 + $0x64] sm:$0xf] }
  0x79   : > { %7193 = vmatmul.mubr.bf16.gmra.mrb[20].mxu0 %v6417_v0  ;;  %v825_v47 = vrot.slane %v823_v12, 4  ;;  %v821_v30 = vsel %vm7986_vm2, %v816_v22, %v820_v6  ;;  %v673_v0 = vld [vmem:[%s7963_s5 + $0x58] sm:$0xf]  ;;  %v853_v3 = vor.u32 %v852_v56, %v849_v55  ;;  %v674_v6 = vld [vmem:[%s7963_s5 + $0x5c] sm:$0x1]  ;;  %v6388_v9 = vrot.slane %v6368_v48, 9 }
  0x7a   : > { %v6090_v37 = vcombine.low %v811_v21, %v821_v30  ;;  %7196 = vmatprep.mubr.bf16.mxu0 %v6418_v31  ;;  %v868_v8 = vrot.slane %v866_v62, 5  ;;  %v3534_v10 = vrot.slane %v6369_v53, 5  ;;  %v3537_v11 = vrot.slane %v6370_v58, 5  ;;  %v6372_v22 = vld [vmem:[%s7963_s5 + $0xc4] sm:$0xf] }
  0x7b   : > { %7019 = vmatpush3.bf16.msra.mxu1 %v7720_v34  ;;  %v829_v32 = vor.u32 %v828_v23, %v825_v47  ;;  %v6387_v34 = vrot.slane %v6365_v14, 9  ;;  %v854_v12 = vrot.slane %v853_v3, 4  ;;  %v871_v14 = vshrl.u32 %v672_v63, 16  ;;  %v678_v58 = vld [vmem:[%s7963_s5 + $0x6c] sm:$0xf] }
  0x7c   : > { %7020 = vmatprep.subr.bf16.mxu1 %v7723_v5  ;;  %6988 = vmatprep.mubr.bf16.mxu1 %v6090_v37  ;;  %v874_v15 = vshll.u32 %v672_v63, 16  ;;  %v3535_v17 = vsel %vm8086_vm5, %v6388_v9, %v3534_v10  ;;  %v3536_v19 = vrot.slane %v3534_v10, 4  ;;  %v880_v20 = vshll.u32 %v673_v0, 16  ;;  %v675_v37 = vld [vmem:[%s7963_s5 + $0x60] sm:$0xf] }
  0x7d   : > { %v830_v43 = vrot.slane %v829_v32, 4  ;;  %v3528_v50 = vsel %vm8086_vm5, %v6387_v34, %v3527_v40  ;;  %v884_v21 = vshrl.u32 %v673_v0, 16  ;;  %v859_v47 = vsel %vm7986_vm2, %v854_v12, %v858_v61  ;;  %v679_v63 = vld [vmem:[%s7963_s5 + $0x70] sm:$0xf]  ;;  %v680_v0 = vld [vmem:[%s7963_s5 + $0x74] sm:$0x1] }
  0x7e   : > { %v6419_v2 = vcombine.low %v3528_v50, %v3531_v60  ;;  %v873_v24 = vrot.slane %v871_v14, 4  ;;  %v3538_v28 = vsel %vm8086_vm5, %v3536_v19, %v3537_v11  ;;  %v882_v29 = vrot.slane %v880_v20, 5 }
  0x7f   : > { %7021 = vmatpush3.bf16.msra.mxu1 %v7723_v5  ;;  %v835_v54 = vsel %vm7986_vm2, %v830_v43, %v834_v27  ;;  %v862_v5 = vrot.slane %v860_v57, 4  ;;  %v8332_v27 = vld [vmem:[%s9190_s1 + $0xc0] sm:$0xff]   ;;  %v886_v30 = vrot.slane %v884_v21, 4  ;;  %v890_v31 = vshll.u32 %v674_v6, 16  ;;  %v677_v43 = vld [vmem:[%s7963_s5 + $0x68] sm:$0x1] }
  0x80   : > { %7022 = vmatprep.subr.bf16.mxu1 %v7727_v25  ;;  %v6091_v1 = vcombine.low %v835_v54, %v845_v59  ;;  %v6420_v34 = vcombine.low %v3535_v17, %v3538_v28  ;;  %v3541_v41 = vrot.slane %v6372_v22, 5  ;;  %v3544_v45 = vrot.slane %v6373_v26, 5  ;;  %v7722_v57 = vld [vmem:[%s7963_s5 + $0x18] sm:$0xff]   ;;  %v7724_v22 = vld [vmem:[%s7963_s5 + $0x24] sm:$0xff]   ;;  %v7726_v26 = vld [vmem:[%s7963_s5 + $0x30] sm:$0xff]  }
  0x81   : > { %7197 = vmatmul.mubr.bf16.gmra.mrb[24].mxu0 %v6419_v2  ;;  %v863_v13 = vor.u32 %v862_v5, %v858_v61  ;;  %v887_v39 = vor.u32 %v886_v30, %v882_v29  ;;  %v892_v40 = vrot.slane %v890_v31, 5  ;;  %v895_v46 = vshrl.u32 %v675_v37, 16 }
  0x82   : > { %6989 = vmatmul.mubr.bf16.gmra.mrb[8].mxu1 %v6091_v1  ;;  %7200 = vmatprep.mubr.bf16.mxu0 %v6420_v34  ;;  %v898_v48 = vshll.u32 %v675_v37, 16  ;;  %v3543_v51 = vrot.slane %v3541_v41, 4  ;;  %v904_v52 = vshll.u32 %v676_v42, 16  ;;  %v908_v56 = vshrl.u32 %v676_v42, 16  ;;  %v684_v37 = vld [vmem:[%s7963_s5 + $0x84] sm:$0xf] }
  0x83   : > { %7023 = vmatpush3.bf16.msra.mxu1 %v7727_v25  ;;  %v864_v23 = vrot.slane %v863_v13, 4  ;;  %v876_v25 = vrot.slane %v874_v15, 5  ;;  %v888_v49 = vrot.slane %v887_v39, 4  ;;  %v897_v54 = vrot.slane %v895_v46, 4 }
  0x84   : > { %7024 = vmatprep.subr.bf16.mxu1 %v7731_v36  ;;  %v900_v55 = vrot.slane %v898_v48, 5  ;;  %v3545_v60 = vsel %vm8086_vm5, %v3543_v51, %v3544_v45  ;;  %v906_v61 = vrot.slane %v904_v52, 5  ;;  %v914_v62 = vshll.u32 %v677_v43, 16  ;;  %v685_v43 = vld [vmem:[%s7963_s5 + $0x88] sm:$0xf] }
  0x85   : > { %v869_v32 = vsel %vm7986_vm2, %v864_v23, %v868_v8  ;;  %v877_v35 = vor.u32 %v876_v25, %v873_v24  ;;  %v893_v59 = vsel %vm7986_vm2, %v888_v49, %v892_v40  ;;  %v910_v5 = vrot.slane %v908_v56, 4  ;;  %v681_v23 = vld [vmem:[%s7963_s5 + $0x78] sm:$0xf]  ;;  %v682_v24 = vld [vmem:[%s7963_s5 + $0x7c] sm:$0xf] }
  0x86   : > { %v6092_v38 = vcombine.low %v859_v47, %v869_v32  ;;  %v901_v3 = vor.u32 %v900_v55, %v897_v54  ;;  %v916_v6 = vrot.slane %v914_v62, 5  ;;  %v922_v8 = vshll.u32 %v678_v58, 16  ;;  %v683_v25 = vld [vmem:[%s7963_s5 + $0x80] sm:$0x1]  ;;  %v686_v48 = vld [vmem:[%s7963_s5 + $0x8c] sm:$0x1] }
  0x87   : > { %7025 = vmatpush3.bf16.msra.mxu1 %v7731_v36  ;;  %v6389_v36 = vrot.slane %v6371_v16, 9  ;;  %v878_v44 = vrot.slane %v877_v35, 4  ;;  %v928_v9 = vshll.u32 %v679_v63, 16  ;;  %v911_v11 = vor.u32 %v910_v5, %v906_v61  ;;  %v7733_v54 = vld [vmem:[%s9190_s1 + $0x1d0] sm:$0xff]  }
  0x88   : > { %7026 = vmatprep.subr.bf16.mxu1 %v7735_v7  ;;  %6992 = vmatprep.mubr.bf16.mxu1 %v6092_v38  ;;  %v902_v10 = vrot.slane %v901_v3, 4  ;;  %v932_v12 = vshrl.u32 %v679_v63, 16  ;;  %v938_v13 = vshll.u32 %v680_v0, 16  ;;  %v924_v15 = vrot.slane %v922_v8, 5  ;;  %v7729_v38 = vld [vmem:[%s9190_s1 + $0x1c8] sm:$0xff]   ;;  %v7728_v63 = vld [vmem:[%s7963_s5 + $0x3c] sm:$0xff]  }
  0x89   : > { %v3542_v50 = vsel %vm8086_vm5, %v6389_v36, %v3541_v41  ;;  %v883_v53 = vsel %vm7986_vm2, %v878_v44, %v882_v29  ;;  %v930_v16 = vrot.slane %v928_v9, 5  ;;  %v912_v19 = vrot.slane %v911_v11, 4  ;;  %v7730_v3 = vld [vmem:[%s7963_s5 + $0x48] sm:$0xff]   ;;  %v688_v8 = vld [vmem:[%s7963_s5 + $0x94] sm:$0xf] }
  0x8a   : > { %v6093_v1 = vcombine.low %v883_v53, %v893_v59  ;;  %v6421_v2 = vcombine.low %v3542_v50, %v3545_v60  ;;  %v907_v17 = vsel %vm7986_vm2, %v902_v10, %v906_v61  ;;  %v934_v20 = vrot.slane %v932_v12, 4  ;;  %v689_v9 = vld [vmem:[%s7963_s5 + $0x98] sm:$0x1] }
  0x8b   : > { %7027 = vmatpush3.bf16.msra.mxu1 %v7735_v7  ;;  %v919_v7 = vshrl.u32 %v678_v58, 16  ;;  %v940_v21 = vrot.slane %v938_v13, 5  ;;  %v917_v28 = vsel %vm7986_vm2, %v912_v19, %v916_v6  ;;  %v943_v30 = vshrl.u32 %v681_v23, 16 }
  0x8c   : > { %7060 = vmatprep.subr.bf16.mxu1 %v8332_v27  ;;  %6993 = vmatmul.mubr.bf16.gmra.mrb[12].mxu1 %v6093_v1  ;;  %v935_v29 = vor.u32 %v934_v20, %v930_v16  ;;  %v946_v31 = vshll.u32 %v681_v23, 16  ;;  %v6094_v32 = vcombine.low %v907_v17, %v917_v28  ;;  %v952_v35 = vshll.u32 %v682_v24, 16  ;;  %v690_v20 = vld [vmem:[%s7963_s5 + $0x9c] sm:$0xf] }
  0x8d   : > { %7201 = vmatmul.mubr.bf16.gmra.mrb[28].mxu0 %v6421_v2  ;;  %v921_v14 = vrot.slane %v919_v7, 4  ;;  %v956_v36 = vshrl.u32 %v682_v24, 16  ;;  %v945_v40 = vrot.slane %v943_v30, 4  ;;  %v962_v42 = vshll.u32 %v683_v25, 16  ;;  %v687_v2 = vld [vmem:[%s7963_s5 + $0x90] sm:$0xf] }
  0x8e   : > { %7220 = vmatprep.mubr.bf16.mxu0 %v7722_v57  ;;  %v936_v39 = vrot.slane %v935_v29, 4  ;;  %v948_v41 = vrot.slane %v946_v31, 5  ;;  %6996 = vmatprep.mubr.bf16.mxu1 %v6094_v32  ;;  %v954_v45 = vrot.slane %v952_v35, 5  ;;  %v967_v49 = vshrl.u32 %v684_v37, 16  ;;  %v691_v24 = vld [vmem:[%s7963_s5 + $0xa0] sm:$0xf] }
  0x8f   : > { %v925_v47 = vor.u32 %v924_v15, %v921_v14  ;;  %v958_v46 = vrot.slane %v956_v36, 4  ;;  %v964_v52 = vrot.slane %v962_v42, 5  ;;  %v970_v53 = vshll.u32 %v684_v37, 16  ;;  %v7737_v14 = vld [vmem:[%s9190_s1 + $0x1d8] sm:$0xff]   ;;  %v692_v29 = vld [vmem:[%s7963_s5 + $0xa4] sm:$0x1] }
  0x90   : > { %v941_v50 = vsel %vm7986_vm2, %v936_v39, %v940_v21  ;;  %v949_v51 = vor.u32 %v948_v41, %v945_v40  ;;  %v969_v57 = vrot.slane %v967_v49, 4  ;;  %v976_v58 = vshll.u32 %v685_v43, 16  ;;  %v7741_v36 = vld [vmem:[%s9190_s1 + $0x1e0] sm:$0xff]  }
  0x91   : > { %v926_v34 = vrot.slane %v925_v47, 4  ;;  %v959_v56 = vor.u32 %v958_v46, %v954_v45  ;;  %v972_v60 = vrot.slane %v970_v53, 5  ;;  %v980_v61 = vshrl.u32 %v685_v43, 16  ;;  %v693_v53 = vld [vmem:[%s7963_s5 + $0xa8] sm:$0xf] }
  0x92   : > { %v950_v59 = vrot.slane %v949_v51, 4  ;;  %v986_v62 = vshll.u32 %v686_v48, 16  ;;  %v978_v1 = vrot.slane %v976_v58, 5  ;;  %v991_v11 = vshrl.u32 %v687_v2, 16  ;;  %v695_v58 = vld [vmem:[%s7963_s5 + $0xb0] sm:$0x1] }
  0x93   : > { %v931_v44 = vsel %vm7986_vm2, %v926_v34, %v930_v16  ;;  %v960_v0 = vrot.slane %v959_v56, 4  ;;  %v973_v5 = vor.u32 %v972_v60, %v969_v57  ;;  %v982_v6 = vrot.slane %v980_v61, 4 }
  0x94   : > { %v6095_v55 = vcombine.low %v931_v44, %v941_v50  ;;  %v988_v7 = vrot.slane %v986_v62, 5  ;;  %v994_v12 = vshll.u32 %v687_v2, 16  ;;  %v1000_v13 = vshll.u32 %v688_v8, 16  ;;  %v7734_v50 = vld [vmem:[%s7963_s5 + $0x60] sm:$0xff]  }
  0x95   : > { %7221 = vmatmul.mubr.bf16.vlgmr.msra.gmra.mrb[0].mxu0 %v7724_v22  ;;  %v965_v10 = vsel %vm7986_vm2, %v960_v0, %v964_v52  ;;  %v974_v16 = vrot.slane %v973_v5, 4  ;;  %v983_v17 = vor.u32 %v982_v6, %v978_v1  ;;  %v1004_v19 = vshrl.u32 %v688_v8, 16  ;;  %v7745_v0 = vld [vmem:[%s9190_s1 + $0x1e8] sm:$0xff]   ;;  %v696_v5 = vld [vmem:[%s7963_s5 + $0xb4] sm:$0xf] }
  0x96   : > { %7253 = vmatpush3.bf16.msra.mxu0 %v8251_v18  ;;  %7224 = vmatprep.mubr.bf16.mxu0 %v7726_v26  ;;  %v955_v18 = vsel %vm7986_vm2, %v950_v59, %v954_v45  ;;  %v993_v21 = vrot.slane %v991_v11, 4  ;;  %v996_v22 = vrot.slane %v994_v12, 5  ;;  %v1002_v47 = vrot.slane %v1000_v13, 5  ;;  %v7732_v45 = vld [vmem:[%s7963_s5 + $0x54] sm:$0xff]  }
  0x97   : > { %7254 = vmatprep.subr.bf16.mxu0 %v7729_v38  ;;  %6997 = vmatmul.mubr.bf16.gmra.mrb[16].mxu1 %v6095_v55  ;;  %v6096_v15 = vcombine.low %v955_v18, %v965_v10  ;;  %v1010_v23 = vshll.u32 %v689_v9, 16  ;;  %v979_v25 = vsel %vm7986_vm2, %v974_v16, %v978_v1  ;;  %v984_v26 = vrot.slane %v983_v17, 4  ;;  %v697_v9 = vld [vmem:[%s7963_s5 + $0xb8] sm:$0xf]  ;;  %v698_v10 = vld [vmem:[%s7963_s5 + $0xbc] sm:$0x1] }
  0x98   : > { %v1006_v28 = vrot.slane %v1004_v19, 4  ;;  %v1015_v30 = vshrl.u32 %v690_v20, 16  ;;  %v997_v31 = vor.u32 %v996_v22, %v993_v21  ;;  %v1018_v34 = vshll.u32 %v690_v20, 16 }
  0x99   : > { %7000 = vmatprep.mubr.bf16.mxu1 %v6096_v15  ;;  %v1012_v32 = vrot.slane %v1010_v23, 5  ;;  %v1024_v35 = vshll.u32 %v691_v24, 16  ;;  %v989_v37 = vsel %vm7986_vm2, %v984_v26, %v988_v7  ;;  %v1028_v40 = vshrl.u32 %v691_v24, 16  ;;  %v7749_v15 = vld [vmem:[%s9190_s1 + $0x1f0] sm:$0xff]  }
  0x9a   : > { %7255 = vmatpush3.bf16.msra.mxu0 %v7729_v38  ;;  %v1007_v38 = vor.u32 %v1006_v28, %v1002_v47  ;;  %v1017_v39 = vrot.slane %v1015_v30, 4  ;;  %v6097_v41 = vcombine.low %v979_v25, %v989_v37  ;;  %v998_v42 = vrot.slane %v997_v31, 4  ;;  %v7736_v24 = vld [vmem:[%s7963_s5 + $0x6c] sm:$0xff]   ;;  %v1472_v37 = vld [vmem:[%s7963_s5] sm:$0xe] }
  0x9b   : > { %7256 = vmatprep.subr.bf16.mxu0 %v7733_v54  ;;  %v1020_v43 = vrot.slane %v1018_v34, 5  ;;  %v1026_v44 = vrot.slane %v1024_v35, 5  ;;  %v1030_v48 = vrot.slane %v1028_v40, 4  ;;  %v1034_v49 = vshll.u32 %v692_v29, 16  ;;  %v7738_v29 = vld [vmem:[%s7963_s5 + $0x78] sm:$0xff]  }
  0x9c   : > { %v1008_v46 = vrot.slane %v1007_v38, 4  ;;  %v1003_v51 = vsel %vm7986_vm2, %v998_v42, %v1002_v47  ;;  %v1039_v59 = vshrl.u32 %v693_v53, 16  ;;  %v1042_v62 = vshll.u32 %v693_v53, 16  ;;  %v7753_v34 = vld [vmem:[%s9190_s1 + $0x1f8] sm:$0xff]   ;;  %v1473_v38 = vld [vmem:[%s7963_s5 + $0x4] sm:$0xf] }
  0x9d   : > { %7225 = vmatmul.mubr.bf16.gmra.mrb[4].mxu0 %v7728_v63  ;;  %v1021_v52 = vor.u32 %v1020_v43, %v1017_v39  ;;  %v1031_v56 = vor.u32 %v1030_v48, %v1026_v44  ;;  %v1036_v57 = vrot.slane %v1034_v49, 5  ;;  %v1058_v18 = vshll.u32 %v695_v58, 16  ;;  %v1474_v39 = vld [vmem:[%s7963_s5 + $0x8] sm:$0x1]  ;;  %v1475_v48 = vld [vmem:[%s7963_s5 + $0xc] sm:$0xe] }
  0x9e   : > { %7228 = vmatprep.mubr.bf16.mxu0 %v7730_v3  ;;  %7257 = vmatpush3.bf16.msra.mxu0 %v7733_v54  ;;  %v694_v54 = vld [vmem:[%s7963_s5 + $0xac] sm:$0xf]  ;;  %v1013_v55 = vsel %vm7986_vm2, %v1008_v46, %v1012_v32  ;;  %v1041_v2 = vrot.slane %v1039_v59, 4  ;;  %v1044_v7 = vrot.slane %v1042_v62, 5  ;;  %v1066_v19 = vshll.u32 %v696_v5, 16 }
  0x9f   : > { %7258 = vmatprep.subr.bf16.mxu0 %v7737_v14  ;;  %7001 = vmatmul.mubr.bf16.gmra.mrb[20].mxu1 %v6097_v41  ;;  %v6098_v60 = vcombine.low %v1003_v51, %v1013_v55  ;;  %v1022_v61 = vrot.slane %v1021_v52, 4  ;;  %v1048_v63 = vshll.u32 %v694_v54, 16  ;;  %v1032_v1 = vrot.slane %v1031_v56, 4  ;;  %v1476_v49 = vld [vmem:[%s7963_s5 + $0x10] sm:$0xf]  ;;  %v7740_v55 = vld [vmem:[%s7963_s5 + $0x84] sm:$0xff]  }
  0xa0   : > { %v1052_v3 = vshrl.u32 %v694_v54, 16  ;;  %v1060_v13 = vrot.slane %v1058_v18, 5  ;;  %v1045_v17 = vor.u32 %v1044_v7, %v1041_v2  ;;  %v1072_v20 = vshll.u32 %v697_v9, 16  ;;  %v1477_v53 = vld [vmem:[%s7963_s5 + $0x14] sm:$0x1]  ;;  %v8442_v56 = vld [vmem:[%s9190_s1 + $0x200] sm:$0xff]  }
  0xa1   : > { %7004 = vmatprep.mubr.bf16.mxu1 %v6098_v60  ;;  %v1027_v6 = vsel %vm7986_vm2, %v1022_v61, %v1026_v44  ;;  %v1050_v8 = vrot.slane %v1048_v63, 5  ;;  %v1037_v11 = vsel %vm7986_vm2, %v1032_v1, %v1036_v57  ;;  %v1076_v47 = vshrl.u32 %v697_v9, 16  ;;  %v1478_v1 = vld [vmem:[%s7963_s5 + $0x18] sm:$0xe]  ;;  %v7742_v2 = vld [vmem:[%s7963_s5 + $0x90] sm:$0xff]  }
  0xa2   : > { %7259 = vmatpush3.bf16.msra.mxu0 %v7737_v14  ;;  %v1054_v12 = vrot.slane %v1052_v3, 4  ;;  %v1063_v14 = vshrl.u32 %v696_v5, 16  ;;  %v6099_v16 = vcombine.low %v1027_v6, %v1037_v11  ;;  %v1082_v23 = vshll.u32 %v698_v10, 16  ;;  %v1479_v3 = vld [vmem:[%s7963_s5 + $0x1c] sm:$0xf] }
  0xa3   : > { %7260 = vmatprep.subr.bf16.mxu0 %v7741_v36  ;;  %v1046_v25 = vrot.slane %v1045_v17, 4  ;;  %v1068_v26 = vrot.slane %v1066_v19, 5  ;;  %v1074_v28 = vrot.slane %v1072_v20, 5  ;;  %v1078_v31 = vrot.slane %v1076_v47, 4  ;;  %v1480_v18 = vld [vmem:[%s7963_s5 + $0x20] sm:$0x1] }
  0xa4   : > { %v1055_v21 = vor.u32 %v1054_v12, %v1050_v8  ;;  %v1065_v22 = vrot.slane %v1063_v14, 4  ;;  %v1084_v32 = vrot.slane %v1082_v23, 5  ;;  %v6110_v42 = vrot.slane %v1472_v37, 9  ;;  %v1481_v10 = vld [vmem:[%s7963_s5 + $0x24] sm:$0xe]  ;;  %v7744_v47 = vld [vmem:[%s7963_s5 + $0x9c] sm:$0xff]  }
  0xa5   : > { %7229 = vmatmul.mubr.bf16.gmra.mrb[8].mxu0 %v7732_v45  ;;  %v1051_v35 = vsel %vm7986_vm2, %v1046_v25, %v1050_v8  ;;  %v1079_v41 = vor.u32 %v1078_v31, %v1074_v28  ;;  %v1573_v43 = vrot.slane %v1473_v38, 5  ;;  %v1576_v46 = vrot.slane %v1474_v39, 5  ;;  %v1482_v11 = vld [vmem:[%s7963_s5 + $0x28] sm:$0xf]  ;;  %v1483_v12 = vld [vmem:[%s7963_s5 + $0x2c] sm:$0x1] }
  0xa6   : > { %7232 = vmatprep.mubr.bf16.mxu0 %v7734_v50  ;;  %7261 = vmatpush3.bf16.msra.mxu0 %v7741_v36  ;;  %v1056_v30 = vrot.slane %v1055_v21, 4  ;;  %v1069_v36 = vor.u32 %v1068_v26, %v1065_v22  ;;  %v6111_v54 = vrot.slane %v1475_v48, 9  ;;  %v1580_v58 = vrot.slane %v1476_v49, 5  ;;  %v7743_v22 = vld [vmem:[%s9190_s1 + $0xc8] sm:$0xff]   ;;  %v1485_v25 = vld [vmem:[%s7963_s5 + $0x34] sm:$0xf] }
  0xa7   : > { %7262 = vmatprep.subr.bf16.mxu0 %v7745_v0  ;;  %7005 = vmatmul.mubr.bf16.gmra.mrb[24].mxu1 %v6099_v16  ;;  %v1080_v50 = vrot.slane %v1079_v41, 4  ;;  %v1574_v51 = vsel %vm8086_vm5, %v6110_v42, %v1573_v43  ;;  %v1575_v52 = vrot.slane %v1573_v43, 4  ;;  %v1583_v59 = vrot.slane %v1477_v53, 5  ;;  %v1486_v26 = vld [vmem:[%s7963_s5 + $0x38] sm:$0x1]  ;;  %v7746_v31 = vld [vmem:[%s7963_s5 + $0xa8] sm:$0xff]  }
  0xa8   : > { %v1061_v40 = vsel %vm7986_vm2, %v1056_v30, %v1060_v13  ;;  %v1070_v45 = vrot.slane %v1069_v36, 4  ;;  %v6112_v5 = vrot.slane %v1478_v1, 9  ;;  %v1587_v6 = vrot.slane %v1479_v3, 5  ;;  %v1489_v36 = vld [vmem:[%s7963_s5 + $0x44] sm:$0x1]  ;;  %v7748_v48 = vld [vmem:[%s7963_s5 + $0xb4] sm:$0xff]  }
  0xa9   : > { %v6100_v44 = vcombine.low %v1051_v35, %v1061_v40  ;;  %v1085_v60 = vsel %vm7986_vm2, %v1080_v50, %v1084_v32  ;;  %v1577_v61 = vsel %vm8086_vm5, %v1575_v52, %v1576_v46  ;;  %v1590_v7 = vrot.slane %v1480_v18, 5  ;;  %v1487_v32 = vld [vmem:[%s7963_s5 + $0x3c] sm:$0xe]  ;;  %v1488_v35 = vld [vmem:[%s7963_s5 + $0x40] sm:$0xf]  ;;  %v7747_v40 = vld [vmem:[%s9190_s1 + $0xd0] sm:$0xff]  }
  0xaa   : > { %7263 = vmatpush3.bf16.msra.mxu0 %v7745_v0  ;;  %v1075_v57 = vsel %vm7986_vm2, %v1070_v45, %v1074_v28  ;;  %v6142_v63 = vcombine.low %v1574_v51, %v1577_v61  ;;  %v1582_v0 = vrot.slane %v1580_v58, 4  ;;  %v1581_v8 = vsel %vm8086_vm5, %v6111_v54, %v1580_v58  ;;  %v1491_v49 = vld [vmem:[%s7963_s5 + $0x4c] sm:$0xf]  ;;  %v1492_v50 = vld [vmem:[%s7963_s5 + $0x50] sm:$0x1]  ;;  %v7751_v52 = vld [vmem:[%s9190_s1 + $0xd8] sm:$0xff]  }
  0xab   : > { %7264 = vmatprep.subr.bf16.mxu0 %v7749_v15  ;;  %7008 = vmatprep.mubr.bf16.mxu1 %v6100_v44  ;;  %v6101_v62 = vcombine.low %v1075_v57, %v1085_v60  ;;  %v1588_v13 = vsel %vm8086_vm5, %v6112_v5, %v1587_v6  ;;  %v1589_v14 = vrot.slane %v1587_v6, 4  ;;  %v6113_v16 = vrot.slane %v1481_v10, 9  ;;  %v1490_v44 = vld [vmem:[%s7963_s5 + $0x48] sm:$0xe]  ;;  %v1493_v57 = vld [vmem:[%s7963_s5 + $0x54] sm:$0xe] }
  0xac   : > { %v1584_v9 = vsel %vm8086_vm5, %v1582_v0, %v1583_v59  ;;  %v1597_v21 = vrot.slane %v1483_v12, 5  ;;  %v1604_v30 = vrot.slane %v1486_v26, 5  ;;  %v1608_v39 = vrot.slane %v1488_v35, 5  ;;  %v1494_v58 = vld [vmem:[%s7963_s5 + $0x58] sm:$0xf]  ;;  %v7750_v61 = vld [vmem:[%s7963_s5 + $0xc0] sm:$0xff]  }
  0xad   : > { %7233 = vmatmul.mubr.bf16.gmra.mrb[12].mxu0 %v7736_v24  ;;  %v6143_v17 = vcombine.low %v1581_v8, %v1584_v9  ;;  %v1591_v19 = vsel %vm8086_vm5, %v1589_v14, %v1590_v7  ;;  %v1484_v24 = vld [vmem:[%s7963_s5 + $0x30] sm:$0xe]  ;;  %v6115_v42 = vrot.slane %v1487_v32, 9  ;;  %v1611_v43 = vrot.slane %v1489_v36, 5  ;;  %v1495_v59 = vld [vmem:[%s7963_s5 + $0x5c] sm:$0x1] }
  0xae   : > { %7236 = vmatprep.mubr.bf16.mxu0 %v7738_v29  ;;  %7265 = vmatpush3.bf16.msra.mxu0 %v7749_v15  ;;  %v1594_v15 = vrot.slane %v1482_v11, 5  ;;  %v6144_v23 = vcombine.low %v1588_v13, %v1591_v19  ;;  %v6114_v28 = vrot.slane %v1484_v24, 9  ;;  %v1601_v29 = vrot.slane %v1485_v25, 5  ;;  %v7754_v6 = vld [vmem:[%s9190_s1 + $0xe0] sm:$0xff]   ;;  %v1498_v11 = vld [vmem:[%s7963_s5 + $0x68] sm:$0x1] }
  0xaf   : > { %7266 = vmatprep.subr.bf16.mxu0 %v7753_v34  ;;  %7009 = vmatmul.mubr.bf16.gmra.mrb[28].mxu1 %v6101_v62  ;;  %v1610_v46 = vrot.slane %v1608_v39, 4  ;;  %v6116_v51 = vrot.slane %v1490_v44, 9  ;;  %v1615_v54 = vrot.slane %v1491_v49, 5  ;;  %v6117_v62 = vrot.slane %v1493_v57, 9  ;;  %v1496_v7 = vld [vmem:[%s7963_s5 + $0x60] sm:$0xe] }
  0xb0   : > { %7028 = vmatprep.mubr.bf16.mxu1 %v6142_v63  ;;  %v1596_v20 = vrot.slane %v1594_v15, 4  ;;  %v1595_v37 = vsel %vm8086_vm5, %v6113_v16, %v1594_v15  ;;  %v1622_v63 = vrot.slane %v1494_v58, 5  ;;  %v1609_v0 = vsel %vm8086_vm5, %v6115_v42, %v1608_v39  ;;  %v1497_v8 = vld [vmem:[%s7963_s5 + $0x64] sm:$0xf]  ;;  %v6502_v13 = vld [vmem:[%s7963_s5 + $0x18] sm:$0xf] }
  0xb1   : > { %v1617_v60 = vrot.slane %v1615_v54, 4  ;;  %v1612_v1 = vsel %vm8086_vm5, %v1610_v46, %v1611_v43  ;;  %v1616_v3 = vsel %vm8086_vm5, %v6116_v51, %v1615_v54  ;;  %v1629_v12 = vrot.slane %v1497_v8, 5  ;;  %v7752_v16 = vld [vmem:[%s7963_s5 + $0xcc] sm:$0xff]   ;;  %v6503_v19 = vld [vmem:[%s7963_s5 + $0x1c] sm:$0xf] }
  0xb2   : > { %7267 = vmatpush3.bf16.msra.mxu0 %v7753_v34  ;;  %v1603_v34 = vrot.slane %v1601_v29, 4  ;;  %v1598_v38 = vsel %vm8086_vm5, %v1596_v20, %v1597_v21  ;;  %v1624_v5 = vrot.slane %v1622_v63, 4  ;;  %v6147_v9 = vcombine.low %v1609_v0, %v1612_v1  ;;  %v6504_v20 = vld [vmem:[%s7963_s5 + $0x20] sm:$0x1]  ;;  %v1499_v26 = vld [vmem:[%s7963_s5 + $0x6c] sm:$0xe] }
  0xb3   : > { %7300 = vmatprep.subr.bf16.mxu0 %v8442_v56  ;;  %v6145_v45 = vcombine.low %v1595_v37, %v1598_v38  ;;  %v8515_v10 = vsel %vm8086_vm5, %v6117_v62, %v1622_v63  ;;  %v4432_v21 = vshrl.u32 %v6502_v13, 16  ;;  %v4435_v24 = vshll.u32 %v6502_v13, 16  ;;  %v1501_v36 = vld [vmem:[%s7963_s5 + $0x74] sm:$0x1]  ;;  %v6505_v46 = vld [vmem:[%s7963_s5 + $0x24] sm:$0xf] }
  0xb4   : > { %v1605_v41 = vsel %vm8086_vm5, %v1603_v34, %v1604_v30  ;;  %v4441_v25 = vshll.u32 %v6503_v19, 16  ;;  %v4451_v30 = vshll.u32 %v6504_v20, 16  ;;  %v6119_v32 = vrot.slane %v1499_v26, 9  ;;  %v6507_v51 = vld [vmem:[%s7963_s5 + $0x2c] sm:$0x1] }
  0xb5   : > { %7237 = vmatmul.mubr.bf16.gmra.mrb[16].mxu0 %v7740_v55  ;;  %v1618_v55 = vrot.slane %v1492_v50, 5  ;;  %v4437_v34 = vrot.slane %v4435_v24, 5  ;;  %v6506_v50 = vld [vmem:[%s7963_s5 + $0x28] sm:$0xf]  ;;  %v1504_v8 = vld [vmem:[%s7963_s5 + $0x80] sm:$0x1] }
  0xb6   : > { %7240 = vmatprep.mubr.bf16.mxu0 %v7742_v2  ;;  %v1625_v2 = vrot.slane %v1495_v59, 5  ;;  %v4443_v35 = vrot.slane %v4441_v25, 5  ;;  %v4453_v44 = vrot.slane %v4451_v30, 5  ;;  %v4465_v57 = vshll.u32 %v6506_v50, 16  ;;  %v6510_v20 = vld [vmem:[%s7963_s5 + $0x38] sm:$0x1] }
  0xb7   : > { %7029 = vmatmul.mubr.bf16.vlgmr.msra.gmra.mrb[0].mxu1 %v6143_v17  ;;  %v1619_v18 = vsel %vm8086_vm5, %v1617_v60, %v1618_v55  ;;  %v6118_v17 = vrot.slane %v1496_v7, 9  ;;  %v4469_v58 = vshrl.u32 %v6506_v50, 16  ;;  %v1503_v7 = vld [vmem:[%s7963_s5 + $0x7c] sm:$0xf]  ;;  %v1505_v26 = vld [vmem:[%s7963_s5 + $0x84] sm:$0xe] }
  0xb8   : > { %7061 = vmatpush3.bf16.msra.mxu1 %v8332_v27  ;;  %7032 = vmatprep.mubr.bf16.mxu1 %v6144_v23  ;;  %v1602_v27 = vsel %vm8086_vm5, %v6114_v28, %v1601_v29  ;;  %v6148_v14 = vcombine.low %v1616_v3, %v1619_v18  ;;  %v8521_v15 = vsel %vm8086_vm5, %v1624_v5, %v1625_v2  ;;  %v1632_v23 = vrot.slane %v1498_v11, 5  ;;  %v1502_v3 = vld [vmem:[%s7963_s5 + $0x78] sm:$0xe] }
  0xb9   : > { %7062 = vmatprep.subr.bf16.mxu1 %v7743_v22  ;;  %v6146_v53 = vcombine.low %v1602_v27, %v1605_v41  ;;  %v4434_v28 = vrot.slane %v4432_v21, 4  ;;  %v4445_v29 = vshrl.u32 %v6503_v19, 16  ;;  %v6149_v38 = vcombine.low %v8515_v10, %v8521_v15  ;;  %v7758_v41 = vld [vmem:[%s9190_s1 + $0xf0] sm:$0xff]   ;;  %v7760_v10 = vld [vmem:[%s9190_s1 + $0xf8] sm:$0xff]  }
  0xba   : > { %v1630_v39 = vsel %vm8086_vm5, %v6118_v17, %v1629_v12  ;;  %v1639_v27 = vrot.slane %v1501_v36, 5  ;;  %v4467_v0 = vrot.slane %v4465_v57, 5  ;;  %v4471_v1 = vrot.slane %v4469_v58, 4  ;;  %v6508_v15 = vld [vmem:[%s7963_s5 + $0x30] sm:$0xf] }
  0xbb   : > { %v4438_v43 = vor.u32 %v4437_v34, %v4434_v28  ;;  %v4475_v2 = vshll.u32 %v6507_v51, 16  ;;  %v1646_v19 = vrot.slane %v1504_v8, 5  ;;  %v4480_v21 = vshrl.u32 %v6508_v15, 16 }
  0xbc   : > { %7063 = vmatpush3.bf16.msra.mxu1 %v7743_v22  ;;  %v7756_v22 = vld [vmem:[%s9190_s1 + $0xe8] sm:$0xff]  }
  0xbd   : > { %7241 = vmatmul.mubr.bf16.gmra.mrb[20].mxu0 %v7744_v47  ;;  %7064 = vmatprep.subr.bf16.mxu1 %v7747_v40  ;;  %v1631_v47 = vrot.slane %v1629_v12, 4  ;;  %v4439_v54 = vrot.slane %v4438_v43, 4  ;;  %v4472_v12 = vor.u32 %v4471_v1, %v4467_v0  ;;  %v4477_v13 = vrot.slane %v4475_v2, 5  ;;  %v6511_v43 = vld [vmem:[%s7963_s5 + $0x3c] sm:$0xf] }
  0xbe   : > { %7244 = vmatprep.mubr.bf16.mxu0 %v7746_v31  ;;  %v1500_v31 = vld [vmem:[%s7963_s5 + $0x70] sm:$0xf] }
  0xbf   : > { %7033 = vmatmul.mubr.bf16.gmra.mrb[4].mxu1 %v6145_v45  ;;  %v1636_v37 = vrot.slane %v1500_v31, 5  ;;  %v1633_v42 = vsel %vm8086_vm5, %v1631_v47, %v1632_v23  ;;  %v4444_v63 = vsel %vm7986_vm2, %v4439_v54, %v4443_v35  ;;  %v4473_v47 = vrot.slane %v4472_v12, 4  ;;  %v7761_v12 = vld [vmem:[%s9190_s1 + $0x218] sm:$0xff]  }
  0xc0   : > { %7036 = vmatprep.mubr.bf16.mxu1 %v6146_v53  ;;  %7065 = vmatpush3.bf16.msra.mxu1 %v7747_v40  ;;  %v4447_v40 = vrot.slane %v4445_v29, 4  ;;  %v4459_v53 = vshll.u32 %v6505_v46, 16  ;;  %v6150_v59 = vcombine.low %v1630_v39, %v1633_v42  ;;  %v4482_v29 = vrot.slane %v4480_v21, 4 }
  0xc1   : > { %7066 = vmatprep.subr.bf16.mxu1 %v7751_v52  ;;  %v1638_v45 = vrot.slane %v1636_v37, 4  ;;  %v8544_v49 = vsel %vm8086_vm5, %v6119_v32, %v1636_v37  ;;  %v1506_v32 = vld [vmem:[%s7963_s5 + $0x88] sm:$0xf]  ;;  %v4478_v34 = vsel %vm7986_vm2, %v4473_v47, %v4477_v13  ;;  %v4499_v37 = vshll.u32 %v6510_v20, 16 }
  0xc2   : > { %v4461_v62 = vrot.slane %v4459_v53, 5  ;;  %v4504_v53 = vshrl.u32 %v6511_v43, 16  ;;  %v4507_v54 = vshll.u32 %v6511_v43, 16 }
  0xc3   : > { %v8550_v55 = vsel %vm8086_vm5, %v1638_v45, %v1639_v27  ;;  %v6121_v45 = vrot.slane %v1505_v26, 9 }
  0xc4   : > { %7067 = vmatpush3.bf16.msra.mxu1 %v7751_v52  ;;  %v4456_v52 = vshrl.u32 %v6505_v46, 16  ;;  %v6151_v5 = vcombine.low %v8544_v49, %v8550_v55  ;;  %v1650_v46 = vrot.slane %v1506_v32, 5  ;;  %v6512_v49 = vld [vmem:[%s7963_s5 + $0x40] sm:$0xf] }
  0xc5   : > { %7245 = vmatmul.mubr.bf16.gmra.mrb[24].mxu0 %v7748_v48  ;;  %7068 = vmatprep.subr.bf16.mxu1 %v7754_v6  ;;  %v4448_v48 = vor.u32 %v4447_v40, %v4443_v35  ;;  %v4513_v58 = vshll.u32 %v6512_v49, 16 }
  0xc6   : > { %7248 = vmatprep.mubr.bf16.mxu0 %v7750_v61  ;;  %v4458_v61 = vrot.slane %v4456_v52, 4  ;;  %v6513_v52 = vld [vmem:[%s7963_s5 + $0x44] sm:$0x1]  ;;  %v1651_v55 = vsel %vm8086_vm5, %v6121_v45, %v1650_v46  ;;  %v1652_v57 = vrot.slane %v1650_v46, 4 }
  0xc7   : > { %7037 = vmatmul.mubr.bf16.gmra.mrb[8].mxu1 %v6147_v9  ;;  %v4449_v60 = vrot.slane %v4448_v48, 4  ;;  %v6120_v9 = vrot.slane %v1502_v3, 9  ;;  %v4515_v2 = vrot.slane %v4513_v58, 5  ;;  %v7764_v45 = vld [vmem:[%s9190_s1 + $0x220] sm:$0xff]  }
  0xc8   : > { %7040 = vmatprep.mubr.bf16.mxu1 %v6148_v14  ;;  %7069 = vmatpush3.bf16.msra.mxu1 %v7754_v6  ;;  %v4462_v6 = vor.u32 %v4461_v62, %v4458_v61  ;;  %v1643_v14 = vrot.slane %v1503_v7, 5  ;;  %v4506_v62 = vrot.slane %v4504_v53, 4 }
  0xc9   : > { %7070 = vmatprep.subr.bf16.mxu1 %v7756_v22  ;;  %v4454_v18 = vsel %vm7986_vm2, %v4449_v60, %v4453_v44  ;;  %v4501_v44 = vrot.slane %v4499_v37, 5  ;;  %v8590_v60 = vld [vmem:[%s9190_s1 + $0x100] sm:$0xff]  }
  0xca   : > { %v6566_v11 = vcombine.low %v4444_v63, %v4454_v18  ;;  %v4463_v17 = vrot.slane %v4462_v6, 4  ;;  %v1644_v23 = vsel %vm8086_vm5, %v6120_v9, %v1643_v14  ;;  %v1645_v24 = vrot.slane %v1643_v14, 4  ;;  %v1509_v9 = vld [vmem:[%s7963_s5 + $0x94] sm:$0xf] }
  0xcb   : > { %v4509_v63 = vrot.slane %v4507_v54, 5  ;;  %v4523_v18 = vshll.u32 %v6513_v52, 16  ;;  %v6519_v54 = vld [vmem:[%s7963_s5 + $0x5c] sm:$0x1] }
  0xcc   : > { %7071 = vmatpush3.bf16.msra.mxu1 %v7756_v22  ;;  %v4483_v22 = vshll.u32 %v6508_v15, 16  ;;  %v4468_v28 = vsel %vm7986_vm2, %v4463_v17, %v4467_v0  ;;  %v1647_v35 = vsel %vm8086_vm5, %v1645_v24, %v1646_v19  ;;  %v7759_v0 = vld [vmem:[%s9190_s1 + $0x210] sm:$0xff]   ;;  %v6514_v17 = vld [vmem:[%s7963_s5 + $0x48] sm:$0xf]  ;;  %v6515_v19 = vld [vmem:[%s7963_s5 + $0x4c] sm:$0xf] }
  0xcd   : > { %7249 = vmatmul.mubr.bf16.gmra.mrb[28].mxu0 %v7752_v16  ;;  %7072 = vmatprep.subr.bf16.mxu1 %v7758_v41  ;;  %v6509_v16 = vld [vmem:[%s7963_s5 + $0x34] sm:$0xf]  ;;  %v6567_v39 = vcombine.low %v4468_v28, %v4478_v34  ;;  %v6152_v40 = vcombine.low %v1644_v23, %v1647_v35  ;;  %v4510_v8 = vor.u32 %v4509_v63, %v4506_v62  ;;  %v4525_v15 = vrot.slane %v4523_v18, 5  ;;  %v1512_v35 = vld [vmem:[%s7963_s5 + $0xa0] sm:$0xf] }
  0xce   : > { %7268 = vmatprep.mubr.bf16.mxu0 %v6566_v11  ;;  %v4489_v25 = vshll.u32 %v6509_v16, 16  ;;  %v4485_v30 = vrot.slane %v4483_v22, 5  ;;  %v4493_v31 = vshrl.u32 %v6509_v16, 16  ;;  %v1657_v16 = vrot.slane %v1509_v9, 5  ;;  %v6516_v22 = vld [vmem:[%s7963_s5 + $0x50] sm:$0x1] }
  0xcf   : > { %7041 = vmatmul.mubr.bf16.gmra.mrb[12].mxu1 %v6149_v38  ;;  %v1507_v38 = vld [vmem:[%s7963_s5 + $0x8c] sm:$0x1]  ;;  %v4511_v20 = vrot.slane %v4510_v8, 4  ;;  %v4528_v47 = vshrl.u32 %v6514_v17, 16  ;;  %v4531_v23 = vshll.u32 %v6514_v17, 16  ;;  %v4537_v28 = vshll.u32 %v6515_v19, 16 }
  0xd0   : > { %7044 = vmatprep.mubr.bf16.mxu1 %v6150_v59  ;;  %7073 = vmatpush3.bf16.msra.mxu1 %v7758_v41  ;;  %v4491_v36 = vrot.slane %v4489_v25, 5  ;;  %v4486_v27 = vor.u32 %v4485_v30, %v4482_v29  ;;  %v4495_v42 = vrot.slane %v4493_v31, 4  ;;  %v7757_v41 = vld [vmem:[%s9190_s1 + $0x208] sm:$0xff]   ;;  %v1653_v48 = vrot.slane %v1507_v38, 5  ;;  %v1511_v29 = vld [vmem:[%s7963_s5 + $0x9c] sm:$0xe] }
  0xd1   : > { %7074 = vmatprep.subr.bf16.mxu1 %v7760_v10  ;;  %v4517_v59 = vshrl.u32 %v6512_v49, 16  ;;  %v1659_v26 = vrot.slane %v1657_v16, 4  ;;  %v4516_v30 = vsel %vm7986_vm2, %v4511_v20, %v4515_v2  ;;  %v4530_v31 = vrot.slane %v4528_v47, 4  ;;  %v6520_v20 = vld [vmem:[%s7963_s5 + $0x60] sm:$0xf] }
  0xd2   : > { %v4487_v50 = vrot.slane %v4486_v27, 4  ;;  %v4496_v51 = vor.u32 %v4495_v42, %v4491_v36  ;;  %v1654_v1 = vsel %vm8086_vm5, %v1652_v57, %v1653_v48  ;;  %v4533_v32 = vrot.slane %v4531_v23, 5  ;;  %v6522_v23 = vld [vmem:[%s7963_s5 + $0x68] sm:$0x1] }
  0xd3   : > { %v4519_v3 = vrot.slane %v4517_v59, 4  ;;  %v6153_v7 = vcombine.low %v1651_v55, %v1654_v1  ;;  %v4541_v34 = vshrl.u32 %v6515_v19, 16  ;;  %v4539_v38 = vrot.slane %v4537_v28, 5 }
  0xd4   : > { %7075 = vmatpush3.bf16.msra.mxu1 %v7760_v10  ;;  %v4492_v61 = vsel %vm7986_vm2, %v4487_v50, %v4491_v36  ;;  %v1510_v10 = vld [vmem:[%s7963_s5 + $0x98] sm:$0x1]  ;;  %v4534_v43 = vor.u32 %v4533_v32, %v4530_v31  ;;  %v6123_v48 = vrot.slane %v1511_v29, 9  ;;  %v1664_v49 = vrot.slane %v1512_v35, 5  ;;  %v1517_v31 = vld [vmem:[%s7963_s5 + $0xb4] sm:$0xe] }
  0xd5   : > { %7269 = vmatmul.mubr.bf16.vlgmr.msra.gmra.mrb[0].mxu0 %v6567_v39  ;;  %7348 = vmatprep.subr.bf16.mxu1 %v8590_v60  ;;  %v4520_v14 = vor.u32 %v4519_v3, %v4515_v2  ;;  %v1660_v21 = vrot.slane %v1510_v10, 5  ;;  %v4547_v39 = vshll.u32 %v6516_v22, 16  ;;  %v7767_v2 = vld [vmem:[%s9190_s1 + $0x228] sm:$0xff]  }
  0xd6   : > { %7301 = vmatpush3.bf16.msra.mxu0 %v8442_v56  ;;  %v4497_v56 = vrot.slane %v4496_v51, 4  ;;  %v6518_v51 = vld [vmem:[%s7963_s5 + $0x58] sm:$0xf]  ;;  %v4535_v52 = vrot.slane %v4534_v43, 4  ;;  %v1665_v58 = vsel %vm8086_vm5, %v6123_v48, %v1664_v49  ;;  %v1666_v59 = vrot.slane %v1664_v49, 4 }
  0xd7   : > { %7045 = vmatmul.mubr.bf16.gmra.mrb[16].mxu1 %v6151_v5  ;;  %7302 = vmatprep.subr.bf16.mxu0 %v7757_v41  ;;  %v1508_v5 = vld [vmem:[%s7963_s5 + $0x90] sm:$0xe]  ;;  %v4521_v24 = vrot.slane %v4520_v14, 4  ;;  %v1661_v37 = vsel %vm8086_vm5, %v1659_v26, %v1660_v21  ;;  %v4549_v46 = vrot.slane %v4547_v39, 5  ;;  %v6521_v21 = vld [vmem:[%s7963_s5 + $0x64] sm:$0xf] }
  0xd8   : > { %7048 = vmatprep.mubr.bf16.mxu1 %v6152_v40  ;;  %v4502_v6 = vsel %vm7986_vm2, %v4497_v56, %v4501_v44  ;;  %v6122_v11 = vrot.slane %v1508_v5, 9  ;;  %v1513_v40 = vld [vmem:[%s7963_s5 + $0xa4] sm:$0x1]  ;;  %v6517_v44 = vld [vmem:[%s7963_s5 + $0x54] sm:$0xf]  ;;  %v4565_v56 = vshrl.u32 %v6518_v51, 16  ;;  %v4540_v62 = vsel %vm7986_vm2, %v4535_v52, %v4539_v38 }
  0xd9   : > { %v6568_v13 = vcombine.low %v4492_v61, %v4502_v6  ;;  %v4526_v36 = vsel %vm7986_vm2, %v4521_v24, %v4525_v15  ;;  %v1667_v50 = vrot.slane %v1513_v40, 5  ;;  %v4552_v55 = vshrl.u32 %v6517_v44, 16  ;;  %v7770_v14 = vld [vmem:[%s9190_s1 + $0x230] sm:$0xff]   ;;  %v7773_v48 = vld [vmem:[%s9190_s1 + $0x238] sm:$0xff]  }
  0xda   : > { %7303 = vmatpush3.bf16.msra.mxu0 %v7757_v41  ;;  %v1658_v25 = vsel %vm8086_vm5, %v6122_v11, %v1657_v16  ;;  %v6569_v27 = vcombine.low %v4516_v30, %v4526_v36  ;;  %v4543_v41 = vrot.slane %v4541_v34, 4  ;;  %v4555_v57 = vshll.u32 %v6517_v44, 16  ;;  %v1515_v11 = vld [vmem:[%s7963_s5 + $0xac] sm:$0xf] }
  0xdb   : > { %7304 = vmatprep.subr.bf16.mxu0 %v7759_v0  ;;  %7272 = vmatprep.mubr.bf16.mxu0 %v6568_v13  ;;  %v6154_v42 = vcombine.low %v1658_v25, %v1661_v37  ;;  %v4561_v61 = vshll.u32 %v6518_v51, 16  ;;  %v1668_v3 = vsel %vm8086_vm5, %v1666_v59, %v1667_v50  ;;  %v4567_v5 = vrot.slane %v4565_v56, 4  ;;  %v1518_v37 = vld [vmem:[%s7963_s5 + $0xb8] sm:$0xf] }
  0xdc   : > { %v4544_v53 = vor.u32 %v4543_v41, %v4539_v38  ;;  %v4557_v1 = vrot.slane %v4555_v57, 5  ;;  %v4571_v6 = vshll.u32 %v6519_v54, 16  ;;  %v6155_v9 = vcombine.low %v1665_v58, %v1668_v3  ;;  %v6525_v57 = vld [vmem:[%s7963_s5 + $0x74] sm:$0x1] }
  0xdd   : > { %7273 = vmatmul.mubr.bf16.gmra.mrb[4].mxu0 %v6569_v27  ;;  %v4563_v18 = vrot.slane %v4561_v61, 5  ;;  %v1671_v19 = vrot.slane %v1515_v11, 5  ;;  %v4576_v24 = vshrl.u32 %v6520_v20, 16  ;;  %v4579_v25 = vshll.u32 %v6520_v20, 16 }
  0xde   : > { %7305 = vmatpush3.bf16.msra.mxu0 %v7759_v0  ;;  %v4545_v63 = vrot.slane %v4544_v53, 4  ;;  %v4554_v0 = vrot.slane %v4552_v55, 4  ;;  %v4573_v17 = vrot.slane %v4571_v6, 5  ;;  %v4585_v30 = vshll.u32 %v6521_v21, 16  ;;  %v6524_v53 = vld [vmem:[%s7963_s5 + $0x70] sm:$0xf] }
  0xdf   : > { %7049 = vmatmul.mubr.bf16.gmra.mrb[20].mxu1 %v6153_v7  ;;  %7306 = vmatprep.subr.bf16.mxu0 %v7761_v12  ;;  %v1514_v7 = vld [vmem:[%s7963_s5 + $0xa8] sm:$0xe]  ;;  %v4568_v16 = vor.u32 %v4567_v5, %v4563_v18  ;;  %v1673_v29 = vrot.slane %v1671_v19, 4  ;;  %v4578_v34 = vrot.slane %v4576_v24, 4  ;;  %v4581_v35 = vrot.slane %v4579_v25, 5 }
  0xe0   : > { %7052 = vmatprep.mubr.bf16.mxu1 %v6154_v42  ;;  %v4550_v8 = vsel %vm7986_vm2, %v4545_v63, %v4549_v46  ;;  %v4558_v10 = vor.u32 %v4557_v1, %v4554_v0  ;;  %v6124_v13 = vrot.slane %v1514_v7, 9  ;;  %v4589_v36 = vshrl.u32 %v6521_v21, 16  ;;  %v1519_v42 = vld [vmem:[%s7963_s5 + $0xbc] sm:$0x1]  ;;  %v6523_v46 = vld [vmem:[%s7963_s5 + $0x6c] sm:$0xf] }
  0xe1   : > { %v6570_v15 = vcombine.low %v4540_v62, %v4550_v8  ;;  %v4569_v26 = vrot.slane %v4568_v16, 4  ;;  %v4587_v40 = vrot.slane %v4585_v30, 5  ;;  %v4595_v27 = vshll.u32 %v6522_v23, 16  ;;  %v7762_v8 = vld [vmem:[%s7963_s5 + $0xc] sm:$0xff]  }
  0xe2   : > { %7307 = vmatpush3.bf16.msra.mxu0 %v7761_v12  ;;  %v1516_v12 = vld [vmem:[%s7963_s5 + $0xb0] sm:$0x1]  ;;  %v4559_v22 = vrot.slane %v4558_v10, 4  ;;  %v1672_v28 = vsel %vm8086_vm5, %v6124_v13, %v1671_v19  ;;  %v4582_v44 = vor.u32 %v4581_v35, %v4578_v34  ;;  %v6125_v50 = vrot.slane %v1517_v31, 9  ;;  %v6527_v13 = vld [vmem:[%s7963_s5 + $0x7c] sm:$0xf] }
  0xe3   : > { %7308 = vmatprep.subr.bf16.mxu0 %v7764_v45  ;;  %v1674_v47 = vrot.slane %v1516_v12, 5  ;;  %7276 = vmatprep.mubr.bf16.mxu0 %v6570_v15  ;;  %v4574_v38 = vsel %vm7986_vm2, %v4569_v26, %v4573_v17  ;;  %v4597_v49 = vrot.slane %v4595_v27, 5  ;;  %v1678_v51 = vrot.slane %v1518_v37, 5  ;;  %v6526_v12 = vld [vmem:[%s7963_s5 + $0x78] sm:$0xf] }
  0xe4   : > { %v4564_v32 = vsel %vm7986_vm2, %v4559_v22, %v4563_v18  ;;  %v1681_v52 = vrot.slane %v1519_v42, 5  ;;  %v4583_v54 = vrot.slane %v4582_v44, 4  ;;  %v4600_v58 = vshrl.u32 %v6523_v46, 16  ;;  %v6528_v17 = vld [vmem:[%s7963_s5 + $0x80] sm:$0x1] }
  0xe5   : > { %v1675_v39 = vsel %vm8086_vm5, %v1673_v29, %v1674_v47  ;;  %v6571_v43 = vcombine.low %v4564_v32, %v4574_v38  ;;  %v4603_v59 = vshll.u32 %v6523_v46, 16  ;;  %v1679_v61 = vsel %vm8086_vm5, %v6125_v50, %v1678_v51  ;;  %v6529_v26 = vld [vmem:[%s7963_s5 + $0x84] sm:$0xf]  ;;  %v6530_v32 = vld [vmem:[%s7963_s5 + $0x88] sm:$0xf] }
  0xe6   : > { %7309 = vmatpush3.bf16.msra.mxu0 %v7764_v45  ;;  %v6156_v41 = vcombine.low %v1672_v28, %v1675_v39  ;;  %v4591_v45 = vrot.slane %v4589_v36, 4  ;;  %v1680_v56 = vrot.slane %v1678_v51, 4  ;;  %v4609_v62 = vshll.u32 %v6524_v53, 16  ;;  %v7763_v36 = vld [vmem:[%s7963_s5 + $0x18] sm:$0xff]   ;;  %v6531_v37 = vld [vmem:[%s7963_s5 + $0x8c] sm:$0x1] }
  0xe7   : > { %7053 = vmatmul.mubr.bf16.gmra.mrb[24].mxu1 %v6155_v9  ;;  %7310 = vmatprep.subr.bf16.mxu0 %v7767_v2  ;;  %v4613_v63 = vshrl.u32 %v6524_v53, 16  ;;  %v4588_v0 = vsel %vm7986_vm2, %v4583_v54, %v4587_v40  ;;  %v4605_v3 = vrot.slane %v4603_v59, 5  ;;  %v4619_v7 = vshll.u32 %v6525_v57, 16  ;;  %v6533_v57 = vld [vmem:[%s7963_s5 + $0x94] sm:$0xf] }
  0xe8   : > { %7277 = vmatmul.mubr.bf16.gmra.mrb[8].mxu0 %v6571_v43  ;;  %7056 = vmatprep.mubr.bf16.mxu1 %v6156_v41  ;;  %v4592_v55 = vor.u32 %v4591_v45, %v4587_v40  ;;  %v1682_v18 = vsel %vm8086_vm5, %v1680_v56, %v1681_v52  ;;  %v4611_v5 = vrot.slane %v4609_v62, 5  ;;  %v4624_v19 = vshrl.u32 %v6526_v12, 16  ;;  %v7765_v41 = vld [vmem:[%s7963_s5 + $0x24] sm:$0xff]  }
  0xe9   : > { %v4615_v6 = vrot.slane %v4613_v63, 4  ;;  %v6157_v10 = vcombine.low %v1679_v61, %v1682_v18  ;;  %v4621_v16 = vrot.slane %v4619_v7, 5  ;;  %v4627_v21 = vshll.u32 %v6526_v12, 16  ;;  %v6534_v61 = vld [vmem:[%s7963_s5 + $0x98] sm:$0x1] }
  0xea   : > { %7311 = vmatpush3.bf16.msra.mxu0 %v7767_v2  ;;  %v4593_v1 = vrot.slane %v4592_v55, 4  ;;  %v4602_v2 = vrot.slane %v4600_v58, 4  ;;  %v4633_v22 = vshll.u32 %v6527_v13, 16  ;;  %v4637_v47 = vshrl.u32 %v6527_v13, 16  ;;  %v6532_v55 = vld [vmem:[%s7963_s5 + $0x90] sm:$0xf] }
  0xeb   : > { %7312 = vmatprep.subr.bf16.mxu0 %v7770_v14  ;;  %v4616_v15 = vor.u32 %v4615_v6, %v4611_v5  ;;  %v4626_v24 = vrot.slane %v4624_v19, 4  ;;  %v4643_v25 = vshll.u32 %v6528_v17, 16  ;;  %v4629_v29 = vrot.slane %v4627_v21, 5  ;;  %v6537_v12 = vld [vmem:[%s7963_s5 + $0xa4] sm:$0x1]  ;;  %v7766_v17 = vld [vmem:[%s7963_s5 + $0x30] sm:$0xff]  }
  0xec   : > { %v4598_v9 = vsel %vm7986_vm2, %v4593_v1, %v4597_v49  ;;  %v4606_v11 = vor.u32 %v4605_v3, %v4602_v2  ;;  %v4635_v30 = vrot.slane %v4633_v22, 5  ;;  %v4639_v31 = vrot.slane %v4637_v47, 4  ;;  %v6535_v3 = vld [vmem:[%s7963_s5 + $0x9c] sm:$0xf] }
  0xed   : > { %v4617_v23 = vrot.slane %v4616_v15, 4  ;;  %v4645_v35 = vrot.slane %v4643_v25, 5  ;;  %v4648_v38 = vshrl.u32 %v6529_v26, 16  ;;  %v4651_v39 = vshll.u32 %v6529_v26, 16 }
  0xee   : > { %7313 = vmatpush3.bf16.msra.mxu0 %v7770_v14  ;;  %v6572_v14 = vcombine.low %v4588_v0, %v4598_v9  ;;  %v4607_v20 = vrot.slane %v4606_v11, 4  ;;  %v4630_v27 = vor.u32 %v4629_v29, %v4626_v24  ;;  %v4640_v42 = vor.u32 %v4639_v31, %v4635_v30  ;;  %v6536_v9 = vld [vmem:[%s7963_s5 + $0xa0] sm:$0xf]  ;;  %v7784_v29 = vld [vmem:[%s9190_s1 + $0x110] sm:$0xff]  }
  0xef   : > { %7314 = vmatprep.subr.bf16.mxu0 %v7773_v48  ;;  %7057 = vmatmul.mubr.bf16.gmra.mrb[28].mxu1 %v6157_v10  ;;  %v4622_v34 = vsel %vm7986_vm2, %v4617_v23, %v4621_v16  ;;  %v4657_v43 = vshll.u32 %v6530_v32, 16  ;;  %v4650_v44 = vrot.slane %v4648_v38, 4  ;;  %v4653_v45 = vrot.slane %v4651_v39, 5  ;;  %v7768_v23 = vld [vmem:[%s7963_s5 + $0x3c] sm:$0xff]   ;;  %v6539_v38 = vld [vmem:[%s7963_s5 + $0xac] sm:$0xf] }
  0xf0   : > { %7280 = vmatprep.mubr.bf16.mxu0 %v6572_v14  ;;  %7076 = vmatprep.mubr.bf16.mxu1 %v7762_v8  ;;  %v4612_v28 = vsel %vm7986_vm2, %v4607_v20, %v4611_v5  ;;  %v4661_v46 = vshrl.u32 %v6530_v32, 16  ;;  %v4631_v49 = vrot.slane %v4630_v27, 4  ;;  %v4641_v50 = vrot.slane %v4640_v42, 4  ;;  %v7783_v8 = vld [vmem:[%s9190_s1 + $0x108] sm:$0xff]   ;;  %v6540_v39 = vld [vmem:[%s7963_s5 + $0xb0] sm:$0x1] }
  0xf1   : > { %v6573_v40 = vcombine.low %v4612_v28, %v4622_v34  ;;  %v4659_v51 = vrot.slane %v4657_v43, 5  ;;  %v4654_v52 = vor.u32 %v4653_v45, %v4650_v44  ;;  %v4672_v56 = vshrl.u32 %v6532_v55, 16  ;;  %v6538_v34 = vld [vmem:[%s7963_s5 + $0xa8] sm:$0xf] }
  0xf2   : > { %7315 = vmatpush3.bf16.msra.mxu0 %v7773_v48  ;;  %v4667_v48 = vshll.u32 %v6531_v37, 16  ;;  %v4663_v53 = vrot.slane %v4661_v46, 4  ;;  %v4636_v58 = vsel %vm7986_vm2, %v4631_v49, %v4635_v30  ;;  %v4646_v59 = vsel %vm7986_vm2, %v4641_v50, %v4645_v35  ;;  %v7769_v49 = vld [vmem:[%s7963_s5 + $0x48] sm:$0xff]   ;;  %v7785_v50 = vld [vmem:[%s9190_s1 + $0x118] sm:$0xff]  }
  0xf3   : > { %7281 = vmatmul.mubr.bf16.gmra.mrb[12].mxu0 %v6573_v40  ;;  %v4675_v62 = vshll.u32 %v6532_v55, 16  ;;  %v6574_v63 = vcombine.low %v4636_v58, %v4646_v59  ;;  %v4655_v0 = vrot.slane %v4654_v52, 4  ;;  %v4681_v2 = vshll.u32 %v6533_v57, 16  ;;  %v6541_v55 = vld [vmem:[%s7963_s5 + $0xb4] sm:$0xf] }
  0xf4   : > { %v4669_v54 = vrot.slane %v4667_v48, 5  ;;  %v4664_v1 = vor.u32 %v4663_v53, %v4659_v51  ;;  %v4674_v18 = vrot.slane %v4672_v56, 4  ;;  %v4685_v6 = vshrl.u32 %v6533_v57, 16  ;;  %v7771_v57 = vld [vmem:[%s7963_s5 + $0x54] sm:$0xff]  }
  0xf5   : > { %v4677_v5 = vrot.slane %v4675_v62, 5  ;;  %v4691_v7 = vshll.u32 %v6534_v61, 16  ;;  %7284 = vmatprep.mubr.bf16.mxu0 %v6574_v63  ;;  %v4660_v10 = vsel %vm7986_vm2, %v4655_v0, %v4659_v51  ;;  %v4683_v11 = vrot.slane %v4681_v2, 5  ;;  %v6542_v56 = vld [vmem:[%s7963_s5 + $0xb8] sm:$0xf] }
  0xf6   : > { %v4696_v13 = vshrl.u32 %v6535_v3, 16  ;;  %v4687_v15 = vrot.slane %v4685_v6, 4  ;;  %v4699_v19 = vshll.u32 %v6535_v3, 16  ;;  %v4705_v22 = vshll.u32 %v6536_v9, 16  ;;  %v6543_v62 = vld [vmem:[%s7963_s5 + $0xbc] sm:$0x1] }
  0xf7   : > { %7077 = vmatmul.mubr.bf16.vlgmr.msra.gmra.mrb[0].mxu1 %v7763_v36  ;;  %v4678_v14 = vor.u32 %v4677_v5, %v4674_v18  ;;  %v4693_v16 = vrot.slane %v4691_v7, 5  ;;  %v4709_v47 = vshrl.u32 %v6536_v9, 16  ;;  %v4715_v32 = vshll.u32 %v6537_v12, 16  ;;  %v7786_v7 = vld [vmem:[%s9190_s1 + $0x120] sm:$0xff]  }
  0xf8   : > { %7356 = vmatpush3.bf16.msra.mxu1 %v8590_v60  ;;  %7080 = vmatprep.mubr.bf16.mxu1 %v7765_v41  ;;  %v4665_v60 = vrot.slane %v4664_v1, 4  ;;  %v4698_v21 = vrot.slane %v4696_v13, 4  ;;  %v4688_v26 = vor.u32 %v4687_v15, %v4683_v11  ;;  %v4701_v28 = vrot.slane %v4699_v19, 5  ;;  %v6545_v15 = vld [vmem:[%s7963_s5 + $0xc4] sm:$0xf] }
  0xf9   : > { %7349 = vmatprep.subr.bf16.mxu1 %v7783_v8  ;;  %v4679_v25 = vrot.slane %v4678_v14, 4  ;;  %v4707_v30 = vrot.slane %v4705_v22, 5  ;;  %v4711_v31 = vrot.slane %v4709_v47, 4  ;;  %v4720_v40 = vshrl.u32 %v6538_v34, 16 }
  0xfa   : > { %v4670_v20 = vsel %vm7986_vm2, %v4665_v60, %v4669_v54  ;;  %v4689_v36 = vrot.slane %v4688_v26, 4  ;;  %v4702_v37 = vor.u32 %v4701_v28, %v4698_v21  ;;  %v4717_v42 = vrot.slane %v4715_v32, 5  ;;  %v6546_v21 = vld [vmem:[%s7963_s5 + $0xc8] sm:$0x1]  ;;  %v7772_v26 = vld [vmem:[%s7963_s5 + $0x60] sm:$0xff]  }
  0xfb   : > { %v6575_v24 = vcombine.low %v4660_v10, %v4670_v20  ;;  %v4684_v35 = vsel %vm7986_vm2, %v4679_v25, %v4683_v11  ;;  %v4712_v27 = vor.u32 %v4711_v31, %v4707_v30  ;;  %v4723_v43 = vshll.u32 %v6538_v34, 16  ;;  %v6544_v11 = vld [vmem:[%s7963_s5 + $0xc0] sm:$0xf]  ;;  %v7787_v28 = vld [vmem:[%s9190_s1 + $0x128] sm:$0xff]  }
  0xfc   : > { %7357 = vmatpush3.bf16.msra.mxu1 %v7783_v8  ;;  %v4729_v41 = vshll.u32 %v6539_v38, 16  ;;  %v4694_v44 = vsel %vm7986_vm2, %v4689_v36, %v4693_v16  ;;  %v4703_v45 = vrot.slane %v4702_v37, 4  ;;  %v4722_v46 = vrot.slane %v4720_v40, 4  ;;  %v6547_v34 = vld [vmem:[%s7963_s5 + $0xcc] sm:$0xf] }
  0xfd   : > { %7350 = vmatprep.subr.bf16.mxu1 %v7784_v29  ;;  %7285 = vmatmul.mubr.bf16.gmra.mrb[16].mxu0 %v6575_v24  ;;  %v4733_v48 = vshrl.u32 %v6539_v38, 16  ;;  %v6576_v51 = vcombine.low %v4684_v35, %v4694_v44  ;;  %v4713_v52 = vrot.slane %v4712_v27, 4  ;;  %v4725_v53 = vrot.slane %v4723_v43, 5  ;;  %v6548_v35 = vld [vmem:[%s7963_s5 + $0xd0] sm:$0xf] }
  0xfe   : > { %v4731_v54 = vrot.slane %v4729_v41, 5  ;;  %v4708_v58 = vsel %vm7986_vm2, %v4703_v45, %v4707_v30  ;;  %v4739_v61 = vshll.u32 %v6540_v39, 16  ;;  %v4744_v1 = vshrl.u32 %v6541_v55, 16  ;;  %v7774_v36 = vld [vmem:[%s7963_s5 + $0x6c] sm:$0xff]   ;;  %v6549_v40 = vld [vmem:[%s7963_s5 + $0xd4] sm:$0x1] }
  0xff   : > { %7081 = vmatmul.mubr.bf16.gmra.mrb[4].mxu1 %v7766_v17  ;;  %v4735_v59 = vrot.slane %v4733_v48, 4  ;;  %7288 = vmatprep.mubr.bf16.mxu0 %v6576_v51  ;;  %v4718_v63 = vsel %vm7986_vm2, %v4713_v52, %v4717_v42  ;;  %v4726_v0 = vor.u32 %v4725_v53, %v4722_v46  ;;  %v4747_v2 = vshll.u32 %v6541_v55, 16 }
 0x100   : > { %7084 = vmatprep.mubr.bf16.mxu1 %v7768_v23  ;;  %7358 = vmatpush3.bf16.msra.mxu1 %v7784_v29  ;;  %v6577_v3 = vcombine.low %v4708_v58, %v4718_v63  ;;  %v4741_v5 = vrot.slane %v4739_v61, 5  ;;  %v4753_v6 = vshll.u32 %v6542_v56, 16  ;;  %v4746_v9 = vrot.slane %v4744_v1, 4  ;;  %v6590_v61 = vld [vmem:[%s7963_s5 + $0x18] sm:$0xe] }
 0x101   : > { %7351 = vmatprep.subr.bf16.mxu1 %v7785_v50  ;;  %v4736_v18 = vor.u32 %v4735_v59, %v4731_v54  ;;  %v4727_v8 = vrot.slane %v4726_v0, 4  ;;  %v4749_v10 = vrot.slane %v4747_v2, 5  ;;  %v4757_v60 = vshrl.u32 %v6542_v56, 16  ;;  %v6591_v56 = vld [vmem:[%s7963_s5 + $0x1c] sm:$0xf] }
 0x102   : > { %v4755_v13 = vrot.slane %v4753_v6, 5  ;;  %v4763_v14 = vshll.u32 %v6543_v62, 16  ;;  %v4768_v16 = vshrl.u32 %v6544_v11, 16  ;;  %v4771_v22 = vshll.u32 %v6544_v11, 16  ;;  %v6592_v0 = vld [vmem:[%s7963_s5 + $0x20] sm:$0x1] }
 0x103   : > { %v4737_v12 = vrot.slane %v4736_v18, 4  ;;  %v4732_v17 = vsel %vm7986_vm2, %v4727_v8, %v4731_v54  ;;  %v4750_v19 = vor.u32 %v4749_v10, %v4746_v9  ;;  %v4759_v20 = vrot.slane %v4757_v60, 4  ;;  %v7775_v6 = vld [vmem:[%s7963_s5 + $0x78] sm:$0xff]   ;;  %v6593_v60 = vld [vmem:[%s7963_s5 + $0x24] sm:$0xe] }
 0x104   : > { %7359 = vmatpush3.bf16.msra.mxu1 %v7785_v50  ;;  %v4765_v23 = vrot.slane %v4763_v14, 5  ;;  %v4770_v24 = vrot.slane %v4768_v16, 4  ;;  %v4777_v25 = vshll.u32 %v6545_v15, 16  ;;  %v4773_v32 = vrot.slane %v4771_v22, 5  ;;  %v7788_v50 = vld [vmem:[%s9190_s1 + $0x130] sm:$0xff]   ;;  %v7776_v16 = vld [vmem:[%s7963_s5 + $0x84] sm:$0xff]  }
 0x105   : > { %7352 = vmatprep.subr.bf16.mxu1 %v7786_v7  ;;  %7289 = vmatmul.mubr.bf16.gmra.mrb[20].mxu0 %v6577_v3  ;;  %v4742_v47 = vsel %vm7986_vm2, %v4737_v12, %v4741_v5  ;;  %v4751_v30 = vrot.slane %v4750_v19, 4  ;;  %v4760_v31 = vor.u32 %v4759_v20, %v4755_v13  ;;  %v4781_v38 = vshrl.u32 %v6545_v15, 16  ;;  %v6594_v11 = vld [vmem:[%s7963_s5 + $0x28] sm:$0xf]  ;;  %v6595_v15 = vld [vmem:[%s7963_s5 + $0x2c] sm:$0x1] }
 0x106   : > { %v6578_v29 = vcombine.low %v4732_v17, %v4742_v47  ;;  %v4779_v37 = vrot.slane %v4777_v25, 5  ;;  %v4787_v39 = vshll.u32 %v6546_v21, 16  ;;  %v4792_v27 = vshrl.u32 %v6547_v34, 16  ;;  %v6596_v22 = vld [vmem:[%s7963_s5 + $0x30] sm:$0xe] }
 0x107   : > { %7085 = vmatmul.mubr.bf16.gmra.mrb[8].mxu1 %v7769_v49  ;;  %v4756_v42 = vsel %vm7986_vm2, %v4751_v30, %v4755_v13  ;;  %v4761_v43 = vrot.slane %v4760_v31, 4  ;;  %v4774_v41 = vor.u32 %v4773_v32, %v4770_v24  ;;  %v4795_v44 = vshll.u32 %v6547_v34, 16  ;;  %v6597_v25 = vld [vmem:[%s7963_s5 + $0x34] sm:$0xf] }
 0x108   : > { %7088 = vmatprep.mubr.bf16.mxu1 %v7771_v57  ;;  %7360 = vmatpush3.bf16.msra.mxu1 %v7786_v7  ;;  %v4783_v45 = vrot.slane %v4781_v38, 4  ;;  %v4789_v46 = vrot.slane %v4787_v39, 5  ;;  %v4794_v48 = vrot.slane %v4792_v27, 4  ;;  %v4801_v49 = vshll.u32 %v6548_v35, 16  ;;  %v7789_v7 = vld [vmem:[%s9190_s1 + $0x138] sm:$0xff]  }
 0x109   : > { %7353 = vmatprep.subr.bf16.mxu1 %v7787_v28  ;;  %7292 = vmatprep.mubr.bf16.mxu0 %v6578_v29  ;;  %v4766_v51 = vsel %vm7986_vm2, %v4761_v43, %v4765_v23  ;;  %v4775_v52 = vrot.slane %v4774_v41, 4  ;;  %v4797_v53 = vrot.slane %v4795_v44, 5  ;;  %v4805_v54 = vshrl.u32 %v6548_v35, 16  ;;  %v6601_v38 = vld [vmem:[%s7963_s5 + $0x44] sm:$0x1] }
 0x10a   : > { %v6579_v55 = vcombine.low %v4756_v42, %v4766_v51  ;;  %v4784_v57 = vor.u32 %v4783_v45, %v4779_v37  ;;  %v4803_v58 = vrot.slane %v4801_v49, 5  ;;  %v4811_v59 = vshll.u32 %v6549_v40, 16  ;;  %v7777_v42 = vld [vmem:[%s7963_s5 + $0x90] sm:$0xff]   ;;  %v6602_v41 = vld [vmem:[%s7963_s5 + $0x48] sm:$0xe] }
 0x10b   : > { %v4798_v62 = vor.u32 %v4797_v53, %v4794_v48  ;;  %v4807_v63 = vrot.slane %v4805_v54, 4  ;;  %v6638_v1 = vrot.slane %v6590_v61, 9  ;;  %v4780_v2 = vsel %vm7986_vm2, %v4775_v52, %v4779_v37  ;;  %v6600_v37 = vld [vmem:[%s7963_s5 + $0x40] sm:$0xf]  ;;  %v6603_v49 = vld [vmem:[%s7963_s5 + $0x4c] sm:$0xf] }
 0x10c   : > { %7361 = vmatpush3.bf16.msra.mxu1 %v7787_v28  ;;  %v4785_v3 = vrot.slane %v4784_v57, 4  ;;  %v5299_v18 = vrot.slane %v6591_v56, 5  ;;  %v5302_v5 = vrot.slane %v6592_v0, 5  ;;  %v4813_v10 = vrot.slane %v4811_v59, 5  ;;  %v7778_v48 = vld [vmem:[%s7963_s5 + $0x9c] sm:$0xff]  }
 0x10d   : > { %7354 = vmatprep.subr.bf16.mxu1 %v7788_v50  ;;  %7293 = vmatmul.mubr.bf16.gmra.mrb[24].mxu0 %v6579_v55  ;;  %v4799_v8 = vrot.slane %v4798_v62, 4  ;;  %v4808_v9 = vor.u32 %v4807_v63, %v4803_v58  ;;  %v5306_v21 = vrot.slane %v6594_v11, 5  ;;  %v6639_v23 = vrot.slane %v6593_v60, 9  ;;  %v6605_v57 = vld [vmem:[%s7963_s5 + $0x54] sm:$0xe] }
 0x10e   : > { %v4790_v12 = vsel %vm7986_vm2, %v4785_v3, %v4789_v46  ;;  %v5300_v13 = vsel %vm8086_vm5, %v6638_v1, %v5299_v18  ;;  %v5301_v14 = vrot.slane %v5299_v18, 4  ;;  %v5309_v24 = vrot.slane %v6595_v15, 5  ;;  %v6607_v59 = vld [vmem:[%s7963_s5 + $0x5c] sm:$0x1]  ;;  %v6608_v18 = vld [vmem:[%s7963_s5 + $0x60] sm:$0xe] }
 0x10f   : > { %7089 = vmatmul.mubr.bf16.gmra.mrb[12].mxu1 %v7772_v26  ;;  %v6580_v17 = vcombine.low %v4780_v2, %v4790_v12  ;;  %v4804_v19 = vsel %vm7986_vm2, %v4799_v8, %v4803_v58  ;;  %v4809_v20 = vrot.slane %v4808_v9, 4  ;;  %v6598_v26 = vld [vmem:[%s7963_s5 + $0x38] sm:$0x1]  ;;  %v5308_v30 = vrot.slane %v5306_v21, 4  ;;  %v6610_v8 = vld [vmem:[%s7963_s5 + $0x68] sm:$0x1] }
 0x110   : > { %7092 = vmatprep.mubr.bf16.mxu1 %v7774_v36  ;;  %7362 = vmatpush3.bf16.msra.mxu1 %v7788_v50  ;;  %v5303_v47 = vsel %vm8086_vm5, %v5301_v14, %v5302_v5  ;;  %v6640_v31 = vrot.slane %v6596_v22, 9  ;;  %v5313_v34 = vrot.slane %v6597_v25, 5  ;;  %v5316_v35 = vrot.slane %v6598_v26, 5  ;;  %v6599_v36 = vld [vmem:[%s7963_s5 + $0x3c] sm:$0xe]  ;;  %v7779_v15 = vld [vmem:[%s7963_s5 + $0xa8] sm:$0xff]  }
 0x111   : > { %7355 = vmatprep.subr.bf16.mxu1 %v7789_v7  ;;  %7296 = vmatprep.mubr.bf16.mxu0 %v6580_v17  ;;  %v4814_v28 = vsel %vm7986_vm2, %v4809_v20, %v4813_v10  ;;  %v6670_v29 = vcombine.low %v5300_v13, %v5303_v47  ;;  %v6641_v39 = vrot.slane %v6599_v36, 9  ;;  %v5320_v40 = vrot.slane %v6600_v37, 5  ;;  %v6604_v50 = vld [vmem:[%s7963_s5 + $0x50] sm:$0x1]  ;;  %v6606_v58 = vld [vmem:[%s7963_s5 + $0x58] sm:$0xf] }
 0x112   : > { %v6581_v32 = vcombine.low %v4804_v19, %v4814_v28  ;;  %v5315_v27 = vrot.slane %v5313_v34, 4  ;;  %v5323_v43 = vrot.slane %v6601_v38, 5  ;;  %v5307_v44 = vsel %vm8086_vm5, %v6639_v23, %v5306_v21  ;;  %v6609_v5 = vld [vmem:[%s7963_s5 + $0x64] sm:$0xf]  ;;  %v6611_v13 = vld [vmem:[%s7963_s5 + $0x6c] sm:$0xe] }
 0x113   : > { %v5310_v45 = vsel %vm8086_vm5, %v5308_v30, %v5309_v24  ;;  %v5322_v46 = vrot.slane %v5320_v40, 4  ;;  %v6642_v51 = vrot.slane %v6602_v41, 9  ;;  %v5314_v52 = vsel %vm8086_vm5, %v6640_v31, %v5313_v34  ;;  %v6612_v19 = vld [vmem:[%s7963_s5 + $0x70] sm:$0xf]  ;;  %v6613_v20 = vld [vmem:[%s7963_s5 + $0x74] sm:$0x1] }
 0x114   : > { %7363 = vmatpush3.bf16.msra.mxu1 %v7789_v7  ;;  %v5317_v53 = vsel %vm8086_vm5, %v5315_v27, %v5316_v35  ;;  %v5327_v54 = vrot.slane %v6603_v49, 5  ;;  %v5330_v55 = vrot.slane %v6604_v50, 5  ;;  %v6671_v61 = vcombine.low %v5307_v44, %v5310_v45  ;;  %v7780_v23 = vld [vmem:[%s7963_s5 + $0xb4] sm:$0xff]   ;;  %v6262_v26 = vld [vmem:[%s7963_s5 + $0x6c] sm:$0xf] }
 0x115   : > { %7297 = vmatmul.mubr.bf16.gmra.mrb[28].mxu0 %v6581_v32  ;;  %v8800_v56 = vsel %vm8086_vm5, %v6641_v39, %v5320_v40  ;;  %v6643_v63 = vrot.slane %v6605_v57, 9  ;;  %v6672_v0 = vcombine.low %v5314_v52, %v5317_v53  ;;  %v8804_v1 = vsel %vm8086_vm5, %v5322_v46, %v5323_v43  ;;  %v6263_v28 = vld [vmem:[%s7963_s5 + $0x70] sm:$0xf]  ;;  %v6264_v31 = vld [vmem:[%s7963_s5 + $0x74] sm:$0x1] }
 0x116   : > { %7316 = vmatprep.mubr.bf16.mxu0 %v6670_v29  ;;  %v5329_v62 = vrot.slane %v5327_v54, 4  ;;  %v5334_v2 = vrot.slane %v6606_v58, 5  ;;  %v5337_v3 = vrot.slane %v6607_v59, 5  ;;  %v6644_v9 = vrot.slane %v6608_v18, 9  ;;  %v6614_v35 = vld [vmem:[%s7963_s5 + $0x78] sm:$0xe] }
 0x117   : > { %7093 = vmatmul.mubr.bf16.gmra.mrb[16].mxu1 %v7775_v6  ;;  %v8810_v6 = vsel %vm8086_vm5, %v6642_v51, %v5327_v54  ;;  %v5341_v10 = vrot.slane %v6609_v5, 5  ;;  %v5344_v12 = vrot.slane %v6610_v8, 5  ;;  %v6673_v14 = vcombine.low %v8800_v56, %v8804_v1  ;;  %v6615_v40 = vld [vmem:[%s7963_s5 + $0x7c] sm:$0xf]  ;;  %v6616_v27 = vld [vmem:[%s7963_s5 + $0x80] sm:$0x1] }
 0x118   : > { %7096 = vmatprep.mubr.bf16.mxu1 %v7776_v16  ;;  %v8814_v7 = vsel %vm8086_vm5, %v5329_v62, %v5330_v55  ;;  %v8819_v60 = vsel %vm8086_vm5, %v6643_v63, %v5334_v2  ;;  %v5336_v11 = vrot.slane %v5334_v2, 4  ;;  %v6645_v21 = vrot.slane %v6611_v13, 9  ;;  %v6265_v45 = vld [vmem:[%s7963_s5 + $0x78] sm:$0xf]  ;;  %v6266_v51 = vld [vmem:[%s7963_s5 + $0x7c] sm:$0xf] }
 0x119   : > { %v8827_v16 = vsel %vm8086_vm5, %v6644_v9, %v5341_v10  ;;  %v5343_v17 = vrot.slane %v5341_v10, 4  ;;  %v6674_v22 = vcombine.low %v8810_v6, %v8814_v7  ;;  %v5348_v24 = vrot.slane %v6612_v19, 5  ;;  %v6267_v57 = vld [vmem:[%s7963_s5 + $0x80] sm:$0x1]  ;;  %v6617_v62 = vld [vmem:[%s7963_s5 + $0x84] sm:$0xe] }
 0x11a   : > { %v8835_v47 = vsel %vm8086_vm5, %v5336_v11, %v5337_v3  ;;  %v5351_v25 = vrot.slane %v6613_v20, 5  ;;  %v2761_v32 = vshrl.u32 %v6262_v26, 16  ;;  %v2764_v34 = vshll.u32 %v6262_v26, 16  ;;  %v6618_v3 = vld [vmem:[%s7963_s5 + $0x88] sm:$0xf]  ;;  %v7781_v9 = vld [vmem:[%s7963_s5 + $0xc0] sm:$0xff]  }
 0x11b   : > { %v6675_v29 = vcombine.low %v8819_v60, %v8835_v47  ;;  %v8844_v30 = vsel %vm8086_vm5, %v5343_v17, %v5344_v12  ;;  %v8852_v37 = vsel %vm8086_vm5, %v6645_v21, %v5348_v24  ;;  %v5350_v38 = vrot.slane %v5348_v24, 4  ;;  %v6619_v8 = vld [vmem:[%s7963_s5 + $0x8c] sm:$0x1]  ;;  %v6269_v21 = vld [vmem:[%s7963_s5 + $0x88] sm:$0xf] }
 0x11c   : > { %v6676_v36 = vcombine.low %v8827_v16, %v8844_v30  ;;  %v2770_v39 = vshll.u32 %v6263_v28, 16  ;;  %v2766_v43 = vrot.slane %v2764_v34, 5  ;;  %v2774_v41 = vshrl.u32 %v6263_v28, 16 }
 0x11d   : > { %7317 = vmatmul.mubr.bf16.vlgmr.msra.gmra.mrb[0].mxu0 %v6671_v61  ;;  %v2780_v44 = vshll.u32 %v6264_v31, 16  ;;  %v8859_v46 = vsel %vm8086_vm5, %v5350_v38, %v5351_v25  ;;  %v6646_v49 = vrot.slane %v6614_v35, 9  ;;  %v5355_v50 = vrot.slane %v6615_v40, 5  ;;  %v6270_v31 = vld [vmem:[%s7963_s5 + $0x8c] sm:$0x1] }
 0x11e   : > { %7320 = vmatprep.mubr.bf16.mxu0 %v6672_v0  ;;  %v6677_v52 = vcombine.low %v8852_v37, %v8859_v46  ;;  %v2776_v54 = vrot.slane %v2774_v41, 4  ;;  %v5358_v61 = vrot.slane %v6616_v27, 5  ;;  %v2785_v56 = vshrl.u32 %v6265_v45, 16  ;;  %v6620_v27 = vld [vmem:[%s7963_s5 + $0x90] sm:$0xe] }
 0x11f   : > { %7097 = vmatmul.mubr.bf16.gmra.mrb[20].mxu1 %v7777_v42  ;;  %v2763_v42 = vrot.slane %v2761_v32, 4  ;;  %v2782_v55 = vrot.slane %v2780_v44, 5  ;;  %v8867_v58 = vsel %vm8086_vm5, %v6646_v49, %v5355_v50  ;;  %v5357_v59 = vrot.slane %v5355_v50, 4 }
 0x120   : > { %7100 = vmatprep.mubr.bf16.mxu1 %v7778_v48  ;;  %v2772_v48 = vrot.slane %v2770_v39, 5  ;;  %v2788_v1 = vshll.u32 %v6265_v45, 16  ;;  %v2794_v2 = vshll.u32 %v6266_v51, 16  ;;  %v2787_v5 = vrot.slane %v2785_v56, 4  ;;  %v6621_v45 = vld [vmem:[%s7963_s5 + $0x94] sm:$0xf] }
 0x121   : > { %v2767_v53 = vor.u32 %v2766_v43, %v2763_v42  ;;  %v8873_v18 = vsel %vm8086_vm5, %v5357_v59, %v5358_v61  ;;  %v2798_v6 = vshrl.u32 %v6266_v51, 16  ;;  %v2804_v7 = vshll.u32 %v6267_v57, 16  ;;  %v6272_v57 = vld [vmem:[%s7963_s5 + $0x94] sm:$0xf] }
 0x122   : > { %v2777_v0 = vor.u32 %v2776_v54, %v2772_v48  ;;  %v6678_v12 = vcombine.low %v8867_v58, %v8873_v18  ;;  %v2790_v13 = vrot.slane %v2788_v1, 5  ;;  %v6647_v20 = vrot.slane %v6617_v62, 9  ;;  %v6271_v54 = vld [vmem:[%s7963_s5 + $0x90] sm:$0xf]  ;;  %v6623_v1 = vld [vmem:[%s7963_s5 + $0x9c] sm:$0xe] }
 0x123   : > { %v2768_v63 = vrot.slane %v2767_v53, 4  ;;  %v2800_v17 = vrot.slane %v2798_v6, 4  ;;  %v2806_v19 = vrot.slane %v2804_v7, 5  ;;  %v5362_v24 = vrot.slane %v6618_v3, 5  ;;  %v6622_v53 = vld [vmem:[%s7963_s5 + $0x98] sm:$0x1] }
 0x124   : > { %v2778_v11 = vrot.slane %v2777_v0, 4  ;;  %v5365_v25 = vrot.slane %v6619_v8, 5  ;;  %v2818_v40 = vshll.u32 %v6269_v21, 16  ;;  %v2822_v44 = vshrl.u32 %v6269_v21, 16  ;;  %v6624_v7 = vld [vmem:[%s7963_s5 + $0xa0] sm:$0xf] }
 0x125   : > { %7321 = vmatmul.mubr.bf16.gmra.mrb[4].mxu0 %v6673_v14  ;;  %v2773_v10 = vsel %vm7986_vm2, %v2768_v63, %v2772_v48  ;;  %v6268_v14 = vld [vmem:[%s7963_s5 + $0x84] sm:$0xf]  ;;  %v8888_v38 = vsel %vm8086_vm5, %v6647_v20, %v5362_v24  ;;  %v5364_v39 = vrot.slane %v5362_v24, 4  ;;  %v2828_v51 = vshll.u32 %v6270_v31, 16  ;;  %v6273_v63 = vld [vmem:[%s7963_s5 + $0x98] sm:$0x1] }
 0x126   : > { %7324 = vmatprep.mubr.bf16.mxu0 %v6674_v22  ;;  %v2783_v22 = vsel %vm7986_vm2, %v2778_v11, %v2782_v55  ;;  %v2809_v32 = vshrl.u32 %v6268_v14, 16  ;;  %v2812_v34 = vshll.u32 %v6268_v14, 16  ;;  %v2820_v50 = vrot.slane %v2818_v40, 5  ;;  %v6274_v20 = vld [vmem:[%s7963_s5 + $0x9c] sm:$0xf] }
 0x127   : > { %7101 = vmatmul.mubr.bf16.gmra.mrb[24].mxu1 %v7779_v15  ;;  %v2796_v15 = vrot.slane %v2794_v2, 5  ;;  %v6310_v26 = vcombine.low %v2773_v10, %v2783_v22  ;;  %v8899_v49 = vsel %vm8086_vm5, %v5364_v39, %v5365_v25  ;;  %v2824_v55 = vrot.slane %v2822_v44, 4  ;;  %v6275_v25 = vld [vmem:[%s7963_s5 + $0xa0] sm:$0xf]  ;;  %v6276_v39 = vld [vmem:[%s7963_s5 + $0xa4] sm:$0x1] }
 0x128   : > { %7104 = vmatprep.mubr.bf16.mxu1 %v7780_v23  ;;  %v2791_v23 = vor.u32 %v2790_v13, %v2787_v5  ;;  %v2811_v43 = vrot.slane %v2809_v32, 4  ;;  %v2814_v41 = vrot.slane %v2812_v34, 5  ;;  %v6679_v47 = vcombine.low %v8888_v38, %v8899_v49  ;;  %v6625_v13 = vld [vmem:[%s7963_s5 + $0xa4] sm:$0x1]  ;;  %v6627_v44 = vld [vmem:[%s7963_s5 + $0xac] sm:$0xf] }
 0x129   : > { %v2801_v28 = vor.u32 %v2800_v17, %v2796_v15  ;;  %v2830_v61 = vrot.slane %v2828_v51, 5  ;;  %v6648_v56 = vrot.slane %v6620_v27, 9  ;;  %v5369_v62 = vrot.slane %v6621_v45, 5 }
 0x12a   : > { %v2792_v35 = vrot.slane %v2791_v23, 4  ;;  %v2825_v16 = vor.u32 %v2824_v55, %v2820_v50  ;;  %v5372_v30 = vrot.slane %v6622_v53, 5  ;;  %v2836_v5 = vshll.u32 %v6271_v54, 16  ;;  %v6628_v53 = vld [vmem:[%s7963_s5 + $0xb0] sm:$0x1] }
 0x12b   : > { %v2802_v42 = vrot.slane %v2801_v28, 4  ;;  %v8915_v2 = vsel %vm8086_vm5, %v6648_v56, %v5369_v62  ;;  %v5371_v3 = vrot.slane %v5369_v62, 4  ;;  %v2842_v6 = vshll.u32 %v6272_v57, 16 }
 0x12c   : > { %v2797_v48 = vsel %vm7986_vm2, %v2792_v35, %v2796_v15  ;;  %v2846_v11 = vshrl.u32 %v6272_v57, 16  ;;  %v2838_v15 = vrot.slane %v2836_v5, 5  ;;  %v6649_v24 = vrot.slane %v6623_v1, 9 }
 0x12d   : > { %7325 = vmatmul.mubr.bf16.gmra.mrb[8].mxu0 %v6675_v29  ;;  %v2807_v60 = vsel %vm7986_vm2, %v2802_v42, %v2806_v19  ;;  %v2815_v29 = vor.u32 %v2814_v41, %v2811_v43  ;;  %v5373_v14 = vsel %vm8086_vm5, %v5371_v3, %v5372_v30  ;;  %v2844_v17 = vrot.slane %v2842_v6, 5  ;;  %v6626_v43 = vld [vmem:[%s7963_s5 + $0xa8] sm:$0xe] }
 0x12e   : > { %7328 = vmatprep.mubr.bf16.mxu0 %v6676_v36  ;;  %v6311_v59 = vcombine.low %v2797_v48, %v2807_v60  ;;  %v2833_v36 = vshrl.u32 %v6271_v54, 16  ;;  %v2852_v19 = vshll.u32 %v6273_v63, 16  ;;  %v6680_v22 = vcombine.low %v8915_v2, %v5373_v14  ;;  %v6277_v54 = vld [vmem:[%s7963_s5 + $0xa8] sm:$0xf]  ;;  %v6629_v2 = vld [vmem:[%s7963_s5 + $0xb4] sm:$0xe] }
 0x12f   : > { %7105 = vmatmul.mubr.bf16.gmra.mrb[28].mxu1 %v7781_v9  ;;  %v2816_v0 = vrot.slane %v2815_v29, 4  ;;  %v2826_v9 = vrot.slane %v2825_v16, 4  ;;  %v2848_v23 = vrot.slane %v2846_v11, 4  ;;  %v5376_v32 = vrot.slane %v6624_v7, 5  ;;  %v6631_v14 = vld [vmem:[%s7963_s5 + $0xbc] sm:$0x1] }
 0x130   : > { %7140 = vmatprep.mubr.bf16.mxu1 %v6310_v26  ;;  %v2835_v10 = vrot.slane %v2833_v36, 4  ;;  %v2854_v31 = vrot.slane %v2852_v19, 5  ;;  %v5379_v35 = vrot.slane %v6625_v13, 5  ;;  %v2857_v40 = vshrl.u32 %v6274_v20, 16 }
 0x131   : > { %v2821_v8 = vsel %vm7986_vm2, %v2816_v0, %v2820_v50  ;;  %v2831_v21 = vsel %vm7986_vm2, %v2826_v9, %v2830_v61  ;;  %v2849_v34 = vor.u32 %v2848_v23, %v2844_v17  ;;  %v2860_v27 = vshll.u32 %v6274_v20, 16  ;;  %v6279_v0 = vld [vmem:[%s7963_s5 + $0xb0] sm:$0x1]  ;;  %v6281_v23 = vld [vmem:[%s7963_s5 + $0xb8] sm:$0xf] }
 0x132   : > { %v6312_v26 = vcombine.low %v2821_v8, %v2831_v21  ;;  %v2839_v28 = vor.u32 %v2838_v15, %v2835_v10  ;;  %v8937_v46 = vsel %vm8086_vm5, %v6649_v24, %v5376_v32  ;;  %v2866_v42 = vshll.u32 %v6275_v25, 16  ;;  %v6630_v8 = vld [vmem:[%s7963_s5 + $0xb8] sm:$0xf] }
 0x133   : > { %v2850_v58 = vrot.slane %v2849_v34, 4  ;;  %v2859_v18 = vrot.slane %v2857_v40, 4  ;;  %v2870_v41 = vshrl.u32 %v6275_v25, 16  ;;  %v2876_v51 = vshll.u32 %v6276_v39, 16  ;;  %v6282_v34 = vld [vmem:[%s7963_s5 + $0xbc] sm:$0x1] }
 0x134   : > { %v2840_v37 = vrot.slane %v2839_v28, 4  ;;  %v2868_v50 = vrot.slane %v2866_v42, 5  ;;  %v6650_v62 = vrot.slane %v6626_v43, 9  ;;  %v5383_v63 = vrot.slane %v6627_v44, 5 }
 0x135   : > { %7329 = vmatmul.mubr.bf16.gmra.mrb[12].mxu0 %v6677_v52  ;;  %v5378_v52 = vrot.slane %v5376_v32, 4  ;;  %v2855_v60 = vsel %vm7986_vm2, %v2850_v58, %v2854_v31  ;;  %v2872_v57 = vrot.slane %v2870_v41, 4  ;;  %v2878_v56 = vrot.slane %v2876_v51, 5  ;;  %v6283_v51 = vld [vmem:[%s7963_s5 + $0xc0] sm:$0xf] }
 0x136   : > { %7332 = vmatprep.mubr.bf16.mxu0 %v6678_v12  ;;  %v2862_v12 = vrot.slane %v2860_v27, 5  ;;  %v2845_v45 = vsel %vm7986_vm2, %v2840_v37, %v2844_v17  ;;  %v5386_v36 = vrot.slane %v6628_v53, 5  ;;  %v2881_v1 = vshrl.u32 %v6277_v54, 16  ;;  %v6280_v17 = vld [vmem:[%s7963_s5 + $0xb4] sm:$0xf] }
 0x137   : > { %7141 = vmatmul.mubr.bf16.vlgmr.msra.gmra.mrb[16].mxu1 %v6311_v59  ;;  %v8945_v48 = vsel %vm8086_vm5, %v5378_v52, %v5379_v35  ;;  %v6278_v59 = vld [vmem:[%s7963_s5 + $0xac] sm:$0xf]  ;;  %v6313_v61 = vcombine.low %v2845_v45, %v2855_v60  ;;  %v2873_v30 = vor.u32 %v2872_v57, %v2868_v50  ;;  %v5384_v3 = vsel %vm8086_vm5, %v6650_v62, %v5383_v63  ;;  %v6632_v52 = vld [vmem:[%s7963_s5 + $0xc0] sm:$0xe] }
 0x138   : > { %7144 = vmatprep.mubr.bf16.mxu1 %v6312_v26  ;;  %v6681_v29 = vcombine.low %v8937_v46, %v8945_v48  ;;  %v2863_v55 = vor.u32 %v2862_v12, %v2859_v18  ;;  %v5385_v5 = vrot.slane %v5383_v63, 4  ;;  %v2884_v6 = vshll.u32 %v6277_v54, 16  ;;  %v6633_v12 = vld [vmem:[%s7963_s5 + $0xc4] sm:$0xf] }
 0x139   : > { %v2890_v7 = vshll.u32 %v6278_v59, 16  ;;  %v2874_v10 = vrot.slane %v2873_v30, 4  ;;  %v2883_v11 = vrot.slane %v2881_v1, 4  ;;  %v2894_v13 = vshrl.u32 %v6278_v59, 16 }
 0x13a   : > { %v2864_v16 = vrot.slane %v2863_v55, 4  ;;  %v5387_v38 = vsel %vm8086_vm5, %v5385_v5, %v5386_v36  ;;  %v2886_v49 = vrot.slane %v2884_v6, 5  ;;  %v2900_v15 = vshll.u32 %v6279_v0, 16  ;;  %v6635_v5 = vld [vmem:[%s7963_s5 + $0xcc] sm:$0xe] }
 0x13b   : > { %v2879_v19 = vsel %vm7986_vm2, %v2874_v10, %v2878_v56  ;;  %v6682_v20 = vcombine.low %v5384_v3, %v5387_v38  ;;  %v2896_v21 = vrot.slane %v2894_v13, 4  ;;  %v5390_v28 = vrot.slane %v6630_v8, 5  ;;  %v6636_v10 = vld [vmem:[%s7963_s5 + $0xd0] sm:$0xf] }
 0x13c   : > { %v2869_v9 = vsel %vm7986_vm2, %v2864_v16, %v2868_v50  ;;  %v2887_v25 = vor.u32 %v2886_v49, %v2883_v11  ;;  %v2902_v26 = vrot.slane %v2900_v15, 5  ;;  %v5393_v32 = vrot.slane %v6631_v14, 5  ;;  %v6634_v50 = vld [vmem:[%s7963_s5 + $0xc8] sm:$0x1]  ;;  %v6637_v49 = vld [vmem:[%s7963_s5 + $0xd4] sm:$0x1] }
 0x13d   : > { %7333 = vmatmul.mubr.bf16.gmra.mrb[16].mxu0 %v6679_v47  ;;  %v2892_v47 = vrot.slane %v2890_v7, 5  ;;  %v6314_v24 = vcombine.low %v2869_v9, %v2879_v19  ;;  %v2905_v35 = vshrl.u32 %v6280_v17, 16  ;;  %v2908_v39 = vshll.u32 %v6280_v17, 16  ;;  %v6285_v16 = vld [vmem:[%s7963_s5 + $0xc8] sm:$0x1] }
 0x13e   : > { %7336 = vmatprep.mubr.bf16.mxu0 %v6680_v22  ;;  %v6651_v22 = vrot.slane %v6629_v2, 9  ;;  %v2888_v40 = vrot.slane %v2887_v25, 4  ;;  %v5392_v37 = vrot.slane %v5390_v28, 4  ;;  %v2914_v46 = vshll.u32 %v6281_v23, 16 }
 0x13f   : > { %7145 = vmatmul.mubr.bf16.gmra.mrb[20].mxu1 %v6313_v61  ;;  %v2897_v31 = vor.u32 %v2896_v21, %v2892_v47  ;;  %v2907_v43 = vrot.slane %v2905_v35, 4  ;;  %v2910_v58 = vrot.slane %v2908_v39, 5  ;;  %v2918_v18 = vshrl.u32 %v6281_v23, 16 }
 0x140   : > { %7148 = vmatprep.mubr.bf16.mxu1 %v6314_v24  ;;  %v5391_v27 = vsel %vm8086_vm5, %v6651_v22, %v5390_v28  ;;  %v2893_v41 = vsel %vm7986_vm2, %v2888_v40, %v2892_v47  ;;  %v5394_v44 = vsel %vm8086_vm5, %v5392_v37, %v5393_v32  ;;  %v2916_v45 = vrot.slane %v2914_v46, 5 }
 0x141   : > { %v2898_v42 = vrot.slane %v2897_v31, 4  ;;  %v2924_v48 = vshll.u32 %v6282_v34, 16  ;;  %v6683_v54 = vcombine.low %v5391_v27, %v5394_v44  ;;  %v2911_v60 = vor.u32 %v2910_v58, %v2907_v43 }
 0x142   : > { %v2920_v55 = vrot.slane %v2918_v18, 4  ;;  %v6652_v61 = vrot.slane %v6632_v52, 9  ;;  %v5397_v56 = vrot.slane %v6633_v12, 5  ;;  %v5400_v0 = vrot.slane %v6634_v50, 5 }
 0x143   : > { %v2903_v53 = vsel %vm7986_vm2, %v2898_v42, %v2902_v26  ;;  %v2926_v59 = vrot.slane %v2924_v48, 5  ;;  %v2912_v62 = vrot.slane %v2911_v60, 4  ;;  %v2929_v30 = vshrl.u32 %v6283_v51, 16 }
 0x144   : > { %v6315_v57 = vcombine.low %v2893_v41, %v2903_v53  ;;  %v2921_v63 = vor.u32 %v2920_v55, %v2916_v45  ;;  %v5398_v36 = vsel %vm8086_vm5, %v6652_v61, %v5397_v56  ;;  %v5399_v1 = vrot.slane %v5397_v56, 4  ;;  %v5795_v55 = vld [vmem:[%s9191_s2] sm:$0x3] }
 0x145   : > { %7337 = vmatmul.mubr.bf16.gmra.mrb[20].mxu0 %v6681_v29  ;;  %v6284_v29 = vld [vmem:[%s7963_s5 + $0xc4] sm:$0xf]  ;;  %v2932_v2 = vshll.u32 %v6283_v51, 16  ;;  %v2917_v6 = vsel %vm7986_vm2, %v2912_v62, %v2916_v45  ;;  %v2931_v8 = vrot.slane %v2929_v30, 4  ;;  %v2948_v38 = vshll.u32 %v6285_v16, 16 }
 0x146   : > { %7340 = vmatprep.mubr.bf16.mxu0 %v6682_v20  ;;  %v2938_v3 = vshll.u32 %v6284_v29, 16  ;;  %v2922_v7 = vrot.slane %v2921_v63, 4  ;;  %v2942_v9 = vshrl.u32 %v6284_v29, 16  ;;  %v5401_v11 = vsel %vm8086_vm5, %v5399_v1, %v5400_v0 }
 0x147   : > { %7149 = vmatmul.mubr.bf16.gmra.mrb[24].mxu1 %v6315_v57  ;;  %v2934_v13 = vrot.slane %v2932_v2, 5  ;;  %v6684_v15 = vcombine.low %v5398_v36, %v5401_v11  ;;  %v6653_v19 = vrot.slane %v6635_v5, 9  ;;  %v5404_v22 = vrot.slane %v6636_v10, 5 }
 0x148   : > { %v2940_v14 = vrot.slane %v2938_v3, 5  ;;  %v2927_v47 = vsel %vm7986_vm2, %v2922_v7, %v2926_v59  ;;  %v2944_v17 = vrot.slane %v2942_v9, 4  ;;  %v2950_v24 = vrot.slane %v2948_v38, 5 }
 0x149   : > { %v6316_v20 = vcombine.low %v2917_v6, %v2927_v47  ;;  %v2935_v21 = vor.u32 %v2934_v13, %v2931_v8  ;;  %v5407_v25 = vrot.slane %v6637_v49, 5  ;;  %v5405_v28 = vsel %vm8086_vm5, %v6653_v19, %v5404_v22 }
 0x14a   : > { %v2945_v23 = vor.u32 %v2944_v17, %v2940_v14  ;;  %v5406_v31 = vrot.slane %v5404_v22, 4  ;;  %v5828_v53 = vlaneseq }
 0x14b   : > { %7152 = vmatprep.mubr.bf16.mxu1 %v6316_v20  ;;  %v2936_v26 = vrot.slane %v2935_v21, 4 }
 0x14c   : > { %v2946_v32 = vrot.slane %v2945_v23, 4  ;;  %v5408_v35 = vsel %vm8086_vm5, %v5406_v31, %v5407_v25 }
 0x14d   : > { %7341 = vmatmul.mubr.bf16.gmra.mrb[24].mxu0 %v6683_v54  ;;  %v2941_v34 = vsel %vm7986_vm2, %v2936_v26, %v2940_v14  ;;  %v6685_v40 = vcombine.low %v5405_v28, %v5408_v35  ;;  %v5829_v54 = vshrl.u32 %v5828_v53, 7 }
 0x14e   : > { %7344 = vmatprep.mubr.bf16.mxu0 %v6684_v15  ;;  %v2951_v39 = vsel %vm7986_vm2, %v2946_v32, %v2950_v24 }
 0x14f   : > { %v6317_v27 = vcombine.low %v2941_v34, %v2951_v39  ;;  %v5830_v60 = vsub.s32 0, %v5829_v54  ;;  %v5866_v29 = vsub.s32 1, %v5829_v54 }
 0x151   : > { %7153 = vmatmul.mubr.bf16.gmra.mrb[28].mxu1 %v6317_v27  ;;  %v9024_v57 = vrot.slane %v5795_v55, %v5830_v60  ;;  %v9027_v56 = vrot.slane %v5795_v55, %v5866_v29 }
 0x155   : > { %7345 = vmatmul.mubr.bf16.gmra.mrb[28].mxu0 %v6685_v40 }
 0x1ca   : > { %v7078_v37 = vpop.f32.mrb[0].mxu1 }
 0x1cb   : > { %v2329_v46 = vpop.f32.mrb[1].mxu1 }
 0x1cc   : > { %v7079_v52 = vpop.f32.mrb[2].mxu1 }
 0x1cd   : > { %v2332_v42 = vpop.f32.mrb[3].mxu1 }
 0x1d2   : > { %v7082_v43 = vpop.f32.mrb[4].mxu1 }
 0x1d3   : > { %v2345_v58 = vpop.f32.mrb[5].mxu1 }
 0x1d4   : > { %v7083_v18 = vpop.f32.mrb[6].mxu1 }
 0x1d5   : > { %v2348_v12 = vpop.f32.mrb[7].mxu1 }
 0x1da   : > { %v9005_v41 = vpop.f32.mrb[8].mxu1 }
 0x1db   : > { %v9007_v4 = vpop.f32.mrb[9].mxu1 }
 0x1dc   : > { %v9009_v44 = vpop.f32.mrb[10].mxu1 }
 0x1dd   : > { %v9011_v33 = vpop.f32.mrb[11].mxu1 }
 0x1e2   : > { %v9013_v45 = vpop.f32.mrb[12].mxu1 }
 0x1e3   : > { %v9015_v48 = vpop.f32.mrb[13].mxu1 }
 0x1e4   : > { %v9017_v50 = vpop.f32.mrb[14].mxu1 }
 0x1e5   : > { %v9019_v51 = vpop.f32.mrb[15].mxu1 }
 0x1f0   : > { %v7318_v59 = vpop.f32.mrb[0].mxu0 }
 0x1f1   : > { %v7364_v61 = vadd.f32 %v7318_v59, %v7078_v37  ;;  %v5604_v62 = vpop.f32.mrb[1].mxu0 }
 0x1f2   : > { %v7365_v63 = vadd.f32 %v5604_v62, %v2329_v46  ;;  %v7319_v0 = vpop.f32.mrb[2].mxu0 }
 0x1f3   : > { %v5834_v16 = vmul.f32 %v7364_v61, %v9024_v57  ;;  %v7366_v30 = vadd.f32 %v7319_v0, %v7079_v52  ;;  %v5607_v36 = vpop.f32.mrb[3].mxu0 }
 0x1f4   : > { %v5832_v1 = vmul.f32 %v7365_v63, %v9024_v57  ;;  %v7367_v2 = vadd.f32 %v5607_v36, %v2332_v42 }
 0x1f5   : > { %v5870_v3 = vadd.f32 %v9027_v56, %v5834_v16  ;;  %v5835_v5 = vmul.f32 %v7366_v30, %v9024_v57 }
 0x1f6   : > { %v5868_v6 = vadd.f32 %v9027_v56, %v5832_v1  ;;  %v5833_v7 = vmul.f32 %v7367_v2, %v9024_v57 }
 0x1f7   : > { %v5902_v8 = vmax.f32 %v5870_v3, 0.0  ;;  %v5871_v9 = vadd.f32 %v9027_v56, %v5835_v5 }
 0x1f8   : > { %v5900_v10 = vmax.f32 %v5868_v6, 0.0  ;;  %v5869_v11 = vadd.f32 %v9027_v56, %v5833_v7  ;;  %v7322_v13 = vpop.f32.mrb[4].mxu0 }
 0x1f9   : > { %5934 = vst [vmem:[%s9039_s11 + $0x10] sm:$0xff] %v5902_v8  ;;  %v5903_v14 = vmax.f32 %v5871_v9, 0.0  ;;  %v7368_v38 = vadd.f32 %v7322_v13, %v7082_v43  ;;  %v5620_v49 = vpop.f32.mrb[5].mxu0 }
 0x1fa   : > { %5932 = vst [vmem:[%s9039_s11] sm:$0xff] %v5900_v10  ;;  %v5901_v47 = vmax.f32 %v5869_v11, 0.0  ;;  %v7369_v15 = vadd.f32 %v5620_v49, %v2345_v58  ;;  %v7323_v17 = vpop.f32.mrb[6].mxu0 }
 0x1fb   : > { %5935 = vst [vmem:[%s9039_s11 + $0x18] sm:$0xff] %v5903_v14  ;;  %v5838_v19 = vmul.f32 %v7368_v38, %v9024_v57  ;;  %v7370_v20 = vadd.f32 %v7323_v17, %v7083_v18  ;;  %v5623_v21 = vpop.f32.mrb[7].mxu0 }
 0x1fc   : > { %5933 = vst [vmem:[%s9039_s11 + $0x8] sm:$0xff] %v5901_v47  ;;  %v5836_v22 = vmul.f32 %v7369_v15, %v9024_v57  ;;  %v7371_v23 = vadd.f32 %v5623_v21, %v2348_v12 }
 0x1fd   : > { %v5874_v24 = vadd.f32 %v9027_v56, %v5838_v19  ;;  %v5839_v25 = vmul.f32 %v7370_v20, %v9024_v57 }
 0x1fe   : > { %v5872_v26 = vadd.f32 %v9027_v56, %v5836_v22  ;;  %v5837_v28 = vmul.f32 %v7371_v23, %v9024_v57 }
 0x1ff   : > { %v5906_v31 = vmax.f32 %v5874_v24, 0.0  ;;  %v5875_v32 = vadd.f32 %v9027_v56, %v5839_v25 }
 0x200   : > { %v5904_v34 = vmax.f32 %v5872_v26, 0.0  ;;  %v5873_v35 = vadd.f32 %v9027_v56, %v5837_v28  ;;  %v7326_v39 = vpop.f32.mrb[8].mxu0 }
 0x201   : > { %5938 = vst [vmem:[%s9039_s11 + $0x30] sm:$0xff] %v5906_v31  ;;  %v5907_v40 = vmax.f32 %v5875_v32, 0.0  ;;  %v7372_v27 = vadd.f32 %v7326_v39, %v9005_v41  ;;  %v5636_v37 = vpop.f32.mrb[9].mxu0 }
 0x202   : > { %5936 = vst [vmem:[%s9039_s11 + $0x20] sm:$0xff] %v5904_v34  ;;  %v5905_v46 = vmax.f32 %v5873_v35, 0.0  ;;  %v7373_v52 = vadd.f32 %v5636_v37, %v9007_v4  ;;  %v7327_v42 = vpop.f32.mrb[10].mxu0 }
 0x203   : > { %5939 = vst [vmem:[%s9039_s11 + $0x38] sm:$0xff] %v5907_v40  ;;  %v5842_v43 = vmul.f32 %v7372_v27, %v9024_v57  ;;  %v7374_v58 = vadd.f32 %v7327_v42, %v9009_v44  ;;  %v5639_v18 = vpop.f32.mrb[11].mxu0 }
 0x204   : > { %5937 = vst [vmem:[%s9039_s11 + $0x28] sm:$0xff] %v5905_v46  ;;  %v5840_v12 = vmul.f32 %v7373_v52, %v9024_v57  ;;  %v7375_v53 = vadd.f32 %v5639_v18, %v9011_v33 }
 0x205   : > { %v5878_v41 = vadd.f32 %v9027_v56, %v5842_v43  ;;  %v5843_v54 = vmul.f32 %v7374_v58, %v9024_v57 }
 0x206   : > { %v5876_v4 = vadd.f32 %v9027_v56, %v5840_v12  ;;  %v5841_v60 = vmul.f32 %v7375_v53, %v9024_v57 }
 0x207   : > { %v5910_v29 = vmax.f32 %v5878_v41, 0.0  ;;  %v5879_v44 = vadd.f32 %v9027_v56, %v5843_v54 }
 0x208   : > { %v5908_v61 = vmax.f32 %v5876_v4, 0.0  ;;  %v5877_v62 = vadd.f32 %v9027_v56, %v5841_v60  ;;  %v7330_v33 = vpop.f32.mrb[12].mxu0 }
 0x209   : > { %5942 = vst [vmem:[%s9039_s11 + $0x50] sm:$0xff] %v5910_v29  ;;  %v5911_v0 = vmax.f32 %v5879_v44, 0.0  ;;  %v7376_v16 = vadd.f32 %v7330_v33, %v9013_v45  ;;  %v5652_v30 = vpop.f32.mrb[13].mxu0 }
 0x20a   : > { %v7142_v55 = vpop.f32.mrb[16].mxu1  ;;  %5940 = vst [vmem:[%s9039_s11 + $0x40] sm:$0xff] %v5908_v61  ;;  %v5909_v1 = vmax.f32 %v5877_v62, 0.0  ;;  %v7377_v2 = vadd.f32 %v5652_v30, %v9015_v48  ;;  %v7331_v3 = vpop.f32.mrb[14].mxu0 }
 0x20b   : > { %v3211_v59 = vpop.f32.mrb[17].mxu1  ;;  %5943 = vst [vmem:[%s9039_s11 + $0x58] sm:$0xff] %v5911_v0  ;;  %v5846_v5 = vmul.f32 %v7376_v16, %v9024_v57  ;;  %v7378_v6 = vadd.f32 %v7331_v3, %v9017_v50  ;;  %v5655_v7 = vpop.f32.mrb[15].mxu0 }
 0x20c   : > { %v7143_v63 = vpop.f32.mrb[18].mxu1  ;;  %5941 = vst [vmem:[%s9039_s11 + $0x48] sm:$0xff] %v5909_v1  ;;  %v5844_v8 = vmul.f32 %v7377_v2, %v9024_v57  ;;  %v7379_v9 = vadd.f32 %v5655_v7, %v9019_v51 }
 0x20d   : > { %v3214_v36 = vpop.f32.mrb[19].mxu1  ;;  %v5882_v45 = vadd.f32 %v9027_v56, %v5846_v5  ;;  %v5847_v10 = vmul.f32 %v7378_v6, %v9024_v57 }
 0x20e   : > { %v5880_v48 = vadd.f32 %v9027_v56, %v5844_v8  ;;  %v5845_v11 = vmul.f32 %v7379_v9, %v9024_v57 }
 0x20f   : > { %v5914_v13 = vmax.f32 %v5882_v45, 0.0  ;;  %v5883_v14 = vadd.f32 %v9027_v56, %v5847_v10 }
 0x210   : > { %v5912_v50 = vmax.f32 %v5880_v48, 0.0  ;;  %v5881_v38 = vadd.f32 %v9027_v56, %v5845_v11  ;;  %v7334_v49 = vpop.f32.mrb[16].mxu0 }
 0x211   : > { %5946 = vst [vmem:[%s9039_s11 + $0x70] sm:$0xff] %v5914_v13  ;;  %v5915_v51 = vmax.f32 %v5883_v14, 0.0  ;;  %v7380_v15 = vadd.f32 %v7334_v49, %v7142_v55  ;;  %v5668_v17 = vpop.f32.mrb[17].mxu0 }
 0x212   : > { %v7146_v47 = vpop.f32.mrb[20].mxu1  ;;  %5944 = vst [vmem:[%s9039_s11 + $0x60] sm:$0xff] %v5912_v50  ;;  %v5913_v20 = vmax.f32 %v5881_v38, 0.0  ;;  %v7381_v21 = vadd.f32 %v5668_v17, %v3211_v59  ;;  %v7335_v22 = vpop.f32.mrb[18].mxu0 }
 0x213   : > { %v3227_v19 = vpop.f32.mrb[21].mxu1  ;;  %5947 = vst [vmem:[%s9039_s11 + $0x78] sm:$0xff] %v5915_v51  ;;  %v5850_v24 = vmul.f32 %v7380_v15, %v9024_v57  ;;  %v7382_v25 = vadd.f32 %v7335_v22, %v7143_v63  ;;  %v5671_v26 = vpop.f32.mrb[19].mxu0 }
 0x214   : > { %v7147_v23 = vpop.f32.mrb[22].mxu1  ;;  %5945 = vst [vmem:[%s9039_s11 + $0x68] sm:$0xff] %v5913_v20  ;;  %v5848_v31 = vmul.f32 %v7381_v21, %v9024_v57  ;;  %v7383_v32 = vadd.f32 %v5671_v26, %v3214_v36 }
 0x215   : > { %v3230_v28 = vpop.f32.mrb[23].mxu1  ;;  %v5886_v34 = vadd.f32 %v9027_v56, %v5850_v24  ;;  %v5851_v35 = vmul.f32 %v7382_v25, %v9024_v57 }
 0x216   : > { %v5884_v39 = vadd.f32 %v9027_v56, %v5848_v31  ;;  %v5849_v40 = vmul.f32 %v7383_v32, %v9024_v57 }
 0x217   : > { %v5918_v27 = vmax.f32 %v5886_v34, 0.0  ;;  %v5887_v37 = vadd.f32 %v9027_v56, %v5851_v35 }
 0x218   : > { %v5916_v46 = vmax.f32 %v5884_v39, 0.0  ;;  %v5885_v52 = vadd.f32 %v9027_v56, %v5849_v40  ;;  %v7338_v42 = vpop.f32.mrb[20].mxu0 }
 0x219   : > { %5950 = vst [vmem:[%s9039_s11 + $0x90] sm:$0xff] %v5918_v27  ;;  %v5919_v43 = vmax.f32 %v5887_v37, 0.0  ;;  %v7384_v58 = vadd.f32 %v7338_v42, %v7146_v47  ;;  %v5684_v18 = vpop.f32.mrb[21].mxu0 }
 0x21a   : > { %5948 = vst [vmem:[%s9039_s11 + $0x80] sm:$0xff] %v5916_v46  ;;  %v5917_v12 = vmax.f32 %v5885_v52, 0.0  ;;  %v7385_v53 = vadd.f32 %v5684_v18, %v3227_v19  ;;  %v7339_v41 = vpop.f32.mrb[22].mxu0  ;;  %v7150_v44 = vpop.f32.mrb[24].mxu1 }
 0x21b   : > { %5951 = vst [vmem:[%s9039_s11 + $0x98] sm:$0xff] %v5919_v43  ;;  %v5854_v54 = vmul.f32 %v7384_v58, %v9024_v57  ;;  %v7386_v4 = vadd.f32 %v7339_v41, %v7147_v23  ;;  %v5687_v60 = vpop.f32.mrb[23].mxu0  ;;  %v3243_v62 = vpop.f32.mrb[25].mxu1 }
 0x21c   : > { %5949 = vst [vmem:[%s9039_s11 + $0x88] sm:$0xff] %v5917_v12  ;;  %v5852_v55 = vmul.f32 %v7385_v53, %v9024_v57  ;;  %v7387_v29 = vadd.f32 %v5687_v60, %v3230_v28  ;;  %v7151_v0 = vpop.f32.mrb[26].mxu1 }
 0x21d   : > { %v5890_v59 = vadd.f32 %v9027_v56, %v5854_v54  ;;  %v5855_v61 = vmul.f32 %v7386_v4, %v9024_v57  ;;  %v3246_v36 = vpop.f32.mrb[27].mxu1 }
 0x21e   : > { %v5888_v33 = vadd.f32 %v9027_v56, %v5852_v55  ;;  %v5853_v63 = vmul.f32 %v7387_v29, %v9024_v57 }
 0x21f   : > { %v5922_v16 = vmax.f32 %v5890_v59, 0.0  ;;  %v5891_v30 = vadd.f32 %v9027_v56, %v5855_v61 }
 0x220   : > { %v5920_v1 = vmax.f32 %v5888_v33, 0.0  ;;  %v5889_v2 = vadd.f32 %v9027_v56, %v5853_v63  ;;  %v7342_v3 = vpop.f32.mrb[24].mxu0 }
 0x221   : > { %5954 = vst [vmem:[%s9039_s11 + $0xb0] sm:$0xff] %v5922_v16  ;;  %v5923_v5 = vmax.f32 %v5891_v30, 0.0  ;;  %v7388_v6 = vadd.f32 %v7342_v3, %v7150_v44  ;;  %v5700_v7 = vpop.f32.mrb[25].mxu0 }
 0x222   : > { %5952 = vst [vmem:[%s9039_s11 + $0xa0] sm:$0xff] %v5920_v1  ;;  %v5921_v8 = vmax.f32 %v5889_v2, 0.0  ;;  %v7389_v9 = vadd.f32 %v5700_v7, %v3243_v62  ;;  %v7343_v45 = vpop.f32.mrb[26].mxu0 }
 0x223   : > { %5955 = vst [vmem:[%s9039_s11 + $0xb8] sm:$0xff] %v5923_v5  ;;  %v5858_v10 = vmul.f32 %v7388_v6, %v9024_v57  ;;  %v7390_v48 = vadd.f32 %v7343_v45, %v7151_v0  ;;  %v5703_v11 = vpop.f32.mrb[27].mxu0 }
 0x224   : > { %5953 = vst [vmem:[%s9039_s11 + $0xa8] sm:$0xff] %v5921_v8  ;;  %v5856_v13 = vmul.f32 %v7389_v9, %v9024_v57  ;;  %v7391_v14 = vadd.f32 %v5703_v11, %v3246_v36  ;;  %v7154_v20 = vpop.f32.mrb[28].mxu1 }
 0x225   : > { %v5894_v50 = vadd.f32 %v9027_v56, %v5858_v10  ;;  %v5859_v38 = vmul.f32 %v7390_v48, %v9024_v57  ;;  %v3259_v24 = vpop.f32.mrb[29].mxu1 }
 0x226   : > { %v5892_v49 = vadd.f32 %v9027_v56, %v5856_v13  ;;  %v5857_v47 = vmul.f32 %v7391_v14, %v9024_v57  ;;  %v7155_v31 = vpop.f32.mrb[30].mxu1 }
 0x227   : > { %v5926_v51 = vmax.f32 %v5894_v50, 0.0  ;;  %v5895_v15 = vadd.f32 %v9027_v56, %v5859_v38  ;;  %v3262_v39 = vpop.f32.mrb[31].mxu1 }
 0x228   : > { %v5924_v17 = vmax.f32 %v5892_v49, 0.0  ;;  %v5893_v19 = vadd.f32 %v9027_v56, %v5857_v47  ;;  %v7346_v21 = vpop.f32.mrb[28].mxu0 }
 0x229   : > { %5958 = vst [vmem:[%s9039_s11 + $0xd0] sm:$0xff] %v5926_v51  ;;  %v5927_v22 = vmax.f32 %v5895_v15, 0.0  ;;  %v7392_v23 = vadd.f32 %v7346_v21, %v7154_v20  ;;  %v5716_v25 = vpop.f32.mrb[29].mxu0 }
 0x22a   : > { %5956 = vst [vmem:[%s9039_s11 + $0xc0] sm:$0xff] %v5924_v17  ;;  %v5925_v26 = vmax.f32 %v5893_v19, 0.0  ;;  %v7393_v28 = vadd.f32 %v5716_v25, %v3259_v24  ;;  %v7347_v32 = vpop.f32.mrb[30].mxu0 }
 0x22b   : > { %5959 = vst [vmem:[%s9039_s11 + $0xd8] sm:$0xff] %v5927_v22  ;;  %v5862_v34 = vmul.f32 %v7392_v23, %v9024_v57  ;;  %v7394_v35 = vadd.f32 %v7347_v32, %v7155_v31  ;;  %v5719_v40 = vpop.f32.mrb[31].mxu0 }
 0x22c   : > { %5957 = vst [vmem:[%s9039_s11 + $0xc8] sm:$0xff] %v5925_v26  ;;  %v5860_v27 = vmul.f32 %v7393_v28, %v9024_v57  ;;  %v7395_v37 = vadd.f32 %v5719_v40, %v3262_v39 }
 0x22d   : > { %v5898_v46 = vadd.f32 %v9027_v56, %v5862_v34  ;;  %v5863_v52 = vmul.f32 %v7394_v35, %v9024_v57 }
 0x22e   : > { %v5896_v42 = vadd.f32 %v9027_v56, %v5860_v27  ;;  %v5861_v43 = vmul.f32 %v7395_v37, %v9024_v57 }
 0x22f   : > { %v5930_v58 = vmax.f32 %v5898_v46, 0.0  ;;  %v5899_v18 = vadd.f32 %v9027_v56, %v5863_v52 }
 0x230   : > { %v5928_v12 = vmax.f32 %v5896_v42, 0.0  ;;  %v5897_v53 = vadd.f32 %v9027_v56, %v5861_v43 }
 0x231   : > { %5962 = vst [vmem:[%s9039_s11 + $0xf0] sm:$0xff] %v5930_v58  ;;  %v5931_v41 = vmax.f32 %v5899_v18, 0.0 }
 0x232   : > { %5960 = vst [vmem:[%s9039_s11 + $0xe0] sm:$0xff] %v5928_v12  ;;  %v5929_v57 = vmax.f32 %v5897_v53, 0.0 }
 0x233   : > { %5963 = vst [vmem:[%s9039_s11 + $0xf8] sm:$0xff] %v5931_v41 }
 0x234   : > { %5961 = vst [vmem:[%s9039_s11 + $0xe8] sm:$0xff] %v5929_v57 }
 0x235   : > { %7803 = shalt.err (!%p7800_p3)
}
 0x236   : > { %s7804_s30 = scalar_lea.hbm %s9139_s25, 4096  ;;  %s7808_s7 = scalar_lea.hbm %s9192_s3, 8192 }
 0x237   : > { %p7805_p4 = scmp.ne.s32.totalorder %s9139_s25, %s7804_s30  ;;  %p7809_p9 = scmp.lt.u32.totalorder %s9139_s25, %s9192_s3 }
 0x238   : > { %p7810_p10 = scmp.lt.u32.totalorder %s7808_s7, %s7804_s30  ;;  %p7812_p12 = scmp.lt.u32.totalorder %s7804_s30, %s9139_s25 }
 0x239   : > { %p7806_p7 = pnand %p7805_p4, %p7915_p5 }
 0x23a   : > { %p7811_p11 = por %p7810_p10, %p7809_p9 }
 0x23b   : > { %p7807_p8 = pneg %p7806_p7 }
 0x23c   : > { %p7813_p13 = por %p7812_p12, %p7811_p11 }
 0x23e   : > { %p7814_p0 = pnand %p7813_p13, %p7807_p8 }
 0x240   : > { %7817 = shalt.err (!%p7814_p0)
}
 0x241   : > { %s7855_s9 = smov 128   ;;  %s7856_s10 = smov 8  }
 0x242   : > { %7621 = dma.vmem_to_hbm [thread:$0]  (%p7915_p5), %s9141_s19, 4096, %s9139_s25, %s9148_s16, %s7855_s9, %s7855_s9, %s7856_s10  }
 0x243 PF: > { %p7627_p1 = scmp.ge.s32.totalorder %s7852_s15, 2  ;;  %s5993_s11 = sand.u32 1, %s7840_s12  }
 0x244   : > { %s5994_s17 = scalar_lea.sflag [#allocation4], %s5993_s11 }
 0x245   : > { %p7624_p2 = pnand %p7627_p1, %p7919_p6 }
 0x247   : > { %7835 = dma.done.wait (!%p7624_p2), %s5994_s17, 4096  }
 0x248   : > { %7837 = vsyncadd (!%p7624_p2), %s5994_s17, 4294963200  ;;  %p13_p3 = scmp.ge.s32.totalorder %s7902_s18, 4   ;;  %s9199_s12 = smov %s7844_s13 }
 0x249   : > { %s9200_s13 = smov %s7848_s14  ;;  %s9201_s14 = smov %s7913_s21 }
 0x24a   : > { %s9202_s15 = smov %s7902_s18  ;;  %15 = sbr.rel (!%p13_p3) target bundleno = 3 (0x3), region = 77 }
 0x251   :  { %5999 = vsyncpa [#allocation4], 1 }
 0x252   :  { %6001 = vsyncpa [#allocation4 + $0x1], 1 }

// kernel: merge_cat_forward.2
= control target key start
LH: loop header
LB: loop body
LE: loop exit
PB: predicated region body
PF: predicated region fallthrough
CT: control target
= control target key end

     0   :  { %s10764_s15 = smov 0   ;;  %s13537_s0 = inlined_call_operand.vmem [shape: bf16[2,18,18,128], index: 0, kind: input, shape index: {}]   ;;  %s13538_s1 = inlined_call_operand.vmem [shape: bf16[2,18,18,1], index: 1, kind: input, shape index: {}]   ;;  %s13539_s2 = inlined_call_operand.vmem [shape: bf16[9,256,128], index: 2, kind: input, shape index: {}]   ;;  %s13540_s3 = inlined_call_operand.vmem [shape: f32[2,128], index: 3, kind: input, shape index: {}]   ;;  %s13541_s4 = inlined_call_operand.vmem [shape: bf16[2,256,128], index: 4, kind: output, shape index: {}]  }
   0x1 LB: > { %s8296_s16 = sadd.s32 4294967295, %s10736_s15   ;;  %p8300_p0 = scmp.ge.s32.totalorder %s10736_s15, 1  ;;  %s10736_s15 = sphi %s10764_s15, %s14_s15  }
   0x2   : > { %p172_p1 = scmp.lt.s32.totalorder %s10736_s15, 3 }
   0x4   : > { %p173_p2 = pnand %p8300_p0, %p172_p1 }
   0x6   : > { %176 = sbr.rel (%p173_p2) target bundleno = 982 (0x3d6), region = 36 }
   0xd   : > { %p203_p3 = scmp.lt.s32.totalorder %s8296_s16, 1  ;;  %v10738_v0 = vmov 0   ;;  %v10481_v1 = vld [vmem:[%s13539_s2 + $0x40] sm:$0xff]   ;;  %v10483_v3 = vld [vmem:[%s13539_s2 + $0x48] sm:$0xff]   ;;  %v10485_v5 = vld [vmem:[%s13539_s2 + $0x50] sm:$0xff]   ;;  %vm2809_vm2 = vcmask 1042432  }
   0xe   : > { %10400 = vset.pattern.permute.xlu1 %v10738_v0  ;;  %10389 = vset.pattern.permute.xlu0 %v10738_v0  ;;  %v10482_v2 = vld [vmem:[%s13539_s2] sm:$0xff]   ;;  %v10484_v4 = vld [vmem:[%s13539_s2 + $0x8] sm:$0xff]   ;;  %v10486_v20 = vld [vmem:[%s13539_s2 + $0x10] sm:$0xff]   ;;  %vm1812_vm0 = vsmask.f32 3328  ;;  %vm2810_vm3 = vcmask 1046532  }
   0xf   : > { %s13711_s16 = smov (!%p203_p3, %s8296_s16), 1  ;;  %10363 = vmatprep.subr.bf16.mxu1 %v10481_v1  ;;  %9355 = vmatprep.subr.bf16.mxu0 %v10481_v1  ;;  %v10487_v43 = vld [vmem:[%s13539_s2 + $0x58] sm:$0xff]   ;;  %v10489_v54 = vld [vmem:[%s13539_s2 + $0x60] sm:$0xff]   ;;  %vm1813_vm1 = vsmask.f32 7440  ;;  %vm11407_vm5 = vmor %vm2809_vm2, %vm2810_vm3 }
  0x10   : > { %s10379_s23 = smul.u32 216, %s13711_s16  ;;  %10371 = vmatpush3.bf16.msra.mxu1 %v10482_v2  ;;  %9356 = vmatpush3.bf16.msra.mxu0 %v10482_v2  ;;  %v10488_v52 = vld [vmem:[%s13539_s2 + $0x18] sm:$0xff]   ;;  %v10490_v2 = vld [vmem:[%s13539_s2 + $0x20] sm:$0xff]   ;;  %vm11386_vm4 = vmor %vm1812_vm0, %vm1813_vm1  ;;  %s9129_s26 = sshll.u32 %s13711_s16, 7 }
  0x11   : > { %10364 = vmatprep.subr.bf16.mxu1 %v10483_v3  ;;  %9357 = vmatprep.subr.bf16.mxu0 %v10483_v3  ;;  %v10491_v3 = vld [vmem:[%s13539_s2 + $0x68] sm:$0xff]   ;;  %s13428_s29 = scalar_lea.vmem %s13541_s4, %s9129_s26 }
  0x12   : > { %s10795_s30 = scalar_lea.vmem %s13538_s1, %s10379_s23  ;;  %s10814_s9 = scalar_lea.vmem %s13537_s0, %s10379_s23 }
  0x13   : > { %v300_v6 = vld [vmem:[%s10795_s30 + $0x6c] sm:$0xff]   ;;  %v9335_v7 = vld [vmem:[%s10795_s30 + $0x60] sm:$0xff]   ;;  %v9332_v14 = vld [vmem:[%s10795_s30 + $0x18] sm:$0xff]  }
  0x14   : > { %v276_v8 = vld [vmem:[%s10795_s30 + $0xc] sm:$0xff]   ;;  %v354_v9 = vunpack.c.l.bf16 %v300_v6  ;;  %v355_v10 = vunpack.c.h.bf16 %v300_v6  ;;  %v9234_v11 = vunpack.c.l.bf16 %v9335_v7  ;;  %v9235_v12 = vunpack.c.h.bf16 %v9335_v7  ;;  %v9217_v13 = vld [vmem:[%s10795_s30] sm:$0xff]   ;;  %10372 = vmatpush3.bf16.msra.mxu1 %v10484_v4  ;;  %9358 = vmatpush3.bf16.msra.mxu0 %v10484_v4  ;;  %v9336_v19 = vld [vmem:[%s10795_s30 + $0x78] sm:$0xff]  }
  0x15   : > { %v330_v15 = vunpack.c.l.bf16 %v276_v8  ;;  %v331_v16 = vunpack.c.h.bf16 %v276_v8  ;;  %v9218_v17 = vunpack.c.l.bf16 %v9217_v13  ;;  %v9219_v18 = vunpack.c.h.bf16 %v9217_v13  ;;  %10365 = vmatprep.subr.bf16.mxu1 %v10485_v5  ;;  %9359 = vmatprep.subr.bf16.mxu0 %v10485_v5  ;;  %v282_v29 = vld [vmem:[%s10795_s30 + $0x24] sm:$0xff]   ;;  %v9333_v37 = vld [vmem:[%s10795_s30 + $0x30] sm:$0xff]   ;;  %v10818_v39 = vld [vmem:[%s10795_s30 + $0x3c] sm:$0xff]  }
  0x16   : > { %v10401_v21 = vpack.i.bf16 %v355_v10, %v354_v9  ;;  %v10390_v22 = vpack.i.bf16 %v9235_v12, %v9234_v11  ;;  %v9222_v23 = vunpack.c.l.bf16 %v9332_v14  ;;  %v9223_v24 = vunpack.c.h.bf16 %v9332_v14  ;;  %v306_v30 = vld [vmem:[%s10795_s30 + $0x84] sm:$0xff]   ;;  %v9337_v38 = vld [vmem:[%s10795_s30 + $0x90] sm:$0xff]   ;;  %v312_v42 = vld [vmem:[%s10795_s30 + $0x9c] sm:$0xff]  }
  0x17   : > { %v10406_v25 = vpack.i.bf16 %v331_v16, %v330_v15  ;;  %v10395_v26 = vpack.i.bf16 %v9219_v18, %v9218_v17  ;;  %v9238_v27 = vunpack.c.l.bf16 %v9336_v19  ;;  %v9239_v28 = vunpack.c.h.bf16 %v9336_v19  ;;  %v10825_v44 = vld [vmem:[%s10814_s9 + $0x6c] sm:$0xf]  ;;  %v10828_v45 = vld [vmem:[%s10814_s9 + $0x70] sm:$0xf]  ;;  %v10833_v50 = vld [vmem:[%s10814_s9 + $0x60] sm:$0xf] }
  0x18   : > { %10402 = vperm.xlu1 %10400, %v10401_v21   ;;  %10391 = vperm.xlu0 %10389, %v10390_v22   ;;  %v10416_v31 = vpack.i.bf16 %v9223_v24, %v9222_v23  ;;  %v336_v32 = vunpack.c.l.bf16 %v282_v29  ;;  %v337_v34 = vunpack.c.h.bf16 %v282_v29  ;;  %v360_v35 = vunpack.c.l.bf16 %v306_v30  ;;  %1128 = vst [vmem:[#allocation2 + $0xdc] sm:$0xf] %v10825_v44  ;;  %1129 = vst [vmem:[#allocation2 + $0xe4] sm:$0xf] %v10828_v45  ;;  %v10836_v51 = vld [vmem:[%s10814_s9 + $0x64] sm:$0xf] }
  0x19   : > { %10373 = vmatpush3.bf16.msra.mxu1 %v10486_v20  ;;  %9360 = vmatpush3.bf16.msra.mxu0 %v10486_v20  ;;  %v10411_v33 = vpack.i.bf16 %v9239_v28, %v9238_v27  ;;  %v361_v36 = vunpack.c.h.bf16 %v306_v30  ;;  %v9226_v40 = vunpack.c.l.bf16 %v9333_v37  ;;  %v9227_v41 = vunpack.c.h.bf16 %v9333_v37  ;;  %1125 = vst [vmem:[#allocation2 + $0xc4] sm:$0xf] %v10833_v50  ;;  %1126 = vst [vmem:[#allocation2 + $0xcc] sm:$0xf] %v10836_v51  ;;  %v9334_v53 = vld [vmem:[%s10795_s30 + $0x48] sm:$0xff]   ;;  %v10873_v4 = vld [vmem:[%s10795_s30 + $0x54] sm:$0xff]  }
  0x1a   : > { %v10426_v46 = vpack.i.bf16 %v337_v34, %v336_v32  ;;  %v9242_v48 = vunpack.c.l.bf16 %v9337_v38  ;;  %v9243_v49 = vunpack.c.h.bf16 %v9337_v38  ;;  %10366 = vmatprep.subr.bf16.mxu1 %v10487_v43  ;;  %9361 = vmatprep.subr.bf16.mxu0 %v10487_v43  ;;  %v10848_v55 = vld [vmem:[%s10814_s9 + $0xc] sm:$0xf]  ;;  %v342_v57 = vunpack.c.l.bf16 %v10818_v39  ;;  %v10853_v59 = vld [vmem:[%s10814_s9 + $0x10] sm:$0xf]  ;;  %v10857_v60 = vld [vmem:[%s10814_s9] sm:$0xf] }
  0x1b   : > { %v10421_v47 = vpack.i.bf16 %v361_v36, %v360_v35  ;;  %v10436_v56 = vpack.i.bf16 %v9227_v41, %v9226_v40  ;;  %v9338_v58 = vld [vmem:[%s10795_s30 + $0xa8] sm:$0xff]   ;;  %1104 = vst [vmem:[#allocation2 + $0x1c] sm:$0xf] %v10848_v55  ;;  %v10860_v61 = vld [vmem:[%s10814_s9 + $0x4] sm:$0xf]  ;;  %v343_v63 = vunpack.c.h.bf16 %v10818_v39  ;;  %v366_v0 = vunpack.c.l.bf16 %v312_v42  ;;  %v318_v10 = vld [vmem:[%s10795_s30 + $0xb4] sm:$0xff]  }
  0x1c   : > { %10407 = vperm.xlu1 %10400, %v10406_v25   ;;  %10396 = vperm.xlu0 %10389, %v10395_v26   ;;  %v10431_v62 = vpack.i.bf16 %v9243_v49, %v9242_v48  ;;  %v367_v1 = vunpack.c.h.bf16 %v312_v42  ;;  %1105 = vst [vmem:[#allocation2 + $0x24] sm:$0xf] %v10853_v59  ;;  %1101 = vst [vmem:[#allocation2 + $0x4] sm:$0xf] %v10857_v60  ;;  %v10876_v5 = vld [vmem:[%s10814_s9 + $0x18] sm:$0xf]  ;;  %v9230_v8 = vunpack.c.l.bf16 %v9334_v53  ;;  %v9231_v9 = vunpack.c.h.bf16 %v9334_v53 }
  0x1d   : > { %10374 = vmatpush3.bf16.msra.mxu1 %v10488_v52  ;;  %9362 = vmatpush3.bf16.msra.mxu0 %v10488_v52  ;;  %1102 = vst [vmem:[#allocation2 + $0xc] sm:$0xf] %v10860_v61  ;;  %v10879_v6 = vld [vmem:[%s10814_s9 + $0x1c] sm:$0xf]  ;;  %v10882_v7 = vld [vmem:[%s10814_s9 + $0x78] sm:$0xf]  ;;  %v10446_v12 = vpack.i.bf16 %v343_v63, %v342_v57  ;;  %v9246_v14 = vunpack.c.l.bf16 %v9338_v58  ;;  %v9247_v15 = vunpack.c.h.bf16 %v9338_v58  ;;  %v348_v23 = vunpack.c.l.bf16 %v10873_v4 }
  0x1e   : > { %10367 = vmatprep.subr.bf16.mxu1 %v10489_v54  ;;  %9363 = vmatprep.subr.bf16.mxu0 %v10489_v54  ;;  %1107 = vst [vmem:[#allocation2 + $0x34] sm:$0xf] %v10876_v5  ;;  %1108 = vst [vmem:[#allocation2 + $0x3c] sm:$0xf] %v10879_v6  ;;  %v10888_v11 = vld [vmem:[%s10814_s9 + $0x7c] sm:$0xf]  ;;  %v10441_v13 = vpack.i.bf16 %v367_v1, %v366_v0  ;;  %v10456_v22 = vpack.i.bf16 %v9231_v9, %v9230_v8  ;;  %v349_v26 = vunpack.c.h.bf16 %v10873_v4 }
  0x1f   : > { %1131 = vst [vmem:[#allocation2 + $0xf4] sm:$0xf] %v10882_v7  ;;  %1132 = vst [vmem:[#allocation2 + $0xfc] sm:$0xf] %v10888_v11  ;;  %v10492_v16 = vld [vmem:[%s13539_s2 + $0x28] sm:$0xff]   ;;  %v10493_v17 = vld [vmem:[%s13539_s2 + $0x70] sm:$0xff]   ;;  %v10451_v25 = vpack.i.bf16 %v9247_v15, %v9246_v14  ;;  %v372_v27 = vunpack.c.l.bf16 %v318_v10  ;;  %v373_v28 = vunpack.c.h.bf16 %v318_v10 }
  0x20   : > { %10417 = vperm.xlu1 %10400, %v10416_v31   ;;  %10412 = vperm.xlu0 %10389, %v10411_v33   ;;  %v10899_v18 = vld [vmem:[%s10814_s9 + $0x24] sm:$0xf]  ;;  %v10902_v19 = vld [vmem:[%s10814_s9 + $0x28] sm:$0xf]  ;;  %v10494_v24 = vld [vmem:[%s13539_s2 + $0x30] sm:$0xff]   ;;  %v10466_v40 = vpack.i.bf16 %v349_v26, %v348_v23 }
  0x21   : > { %10375 = vmatpush3.bf16.msra.mxu1 %v10490_v2  ;;  %9364 = vmatpush3.bf16.msra.mxu0 %v10490_v2  ;;  %1110 = vst [vmem:[#allocation2 + $0x4c] sm:$0xf] %v10899_v18  ;;  %1111 = vst [vmem:[#allocation2 + $0x54] sm:$0xf] %v10902_v19  ;;  %v10907_v20 = vld [vmem:[%s10814_s9 + $0x84] sm:$0xf]  ;;  %v10461_v41 = vpack.i.bf16 %v373_v28, %v372_v27 }
  0x22   : > { %10368 = vmatprep.subr.bf16.mxu1 %v10491_v3  ;;  %9365 = vmatprep.subr.bf16.mxu0 %v10491_v3  ;;  %v10910_v21 = vld [vmem:[%s10814_s9 + $0x88] sm:$0xf]  ;;  %1134 = vst [vmem:[#allocation2 + $0x10c] sm:$0xf] %v10907_v20  ;;  %v10495_v29 = vld [vmem:[%s13539_s2 + $0x78] sm:$0xff]   ;;  %v10504_v57 = vld [vmem:[%s13539_s2 + $0x140] sm:$0xff]  }
  0x23   : > { %1135 = vst [vmem:[#allocation2 + $0x114] sm:$0xf] %v10910_v21  ;;  %v10923_v30 = vld [vmem:[%s10814_s9 + $0x30] sm:$0xf]  ;;  %v10926_v31 = vld [vmem:[%s10814_s9 + $0x34] sm:$0xf] }
  0x24   : > { %10427 = vperm.xlu1 %10400, %v10426_v46   ;;  %10422 = vperm.xlu0 %10389, %v10421_v47   ;;  %1113 = vst [vmem:[#allocation2 + $0x64] sm:$0xf] %v10923_v30  ;;  %v10930_v32 = vld [vmem:[%s10814_s9 + $0x90] sm:$0xf]  ;;  %v10933_v33 = vld [vmem:[%s10814_s9 + $0x94] sm:$0xf] }
  0x25   : > { %10376 = vmatpush3.bf16.msra.mxu1 %v10492_v16  ;;  %9366 = vmatpush3.bf16.msra.mxu0 %v10492_v16  ;;  %1114 = vst [vmem:[#allocation2 + $0x6c] sm:$0xf] %v10926_v31  ;;  %1137 = vst [vmem:[#allocation2 + $0x124] sm:$0xf] %v10930_v32  ;;  %v10496_v34 = vld [vmem:[%s13539_s2 + $0x38] sm:$0xff]  }
  0x26   : > { %10369 = vmatprep.subr.bf16.mxu1 %v10493_v17  ;;  %9367 = vmatprep.subr.bf16.mxu0 %v10493_v17  ;;  %1138 = vst [vmem:[#allocation2 + $0x12c] sm:$0xf] %v10933_v33  ;;  %v278_v35 = vld [vmem:[%s10795_s30 + $0x14] sm:$0x1]  ;;  %v275_v36 = vld [vmem:[%s10795_s30 + $0x8] sm:$0x1] }
  0x27   : > { %v10944_v37 = vld [vmem:[%s10814_s9 + $0x3c] sm:$0xf]  ;;  %v10947_v38 = vld [vmem:[%s10814_s9 + $0x40] sm:$0xf]  ;;  %v284_v43 = vld [vmem:[%s10795_s30 + $0x2c] sm:$0x1]  ;;  %v332_v49 = vunpack.c.l.bf16 %v278_v35  ;;  %v329_v52 = vunpack.c.l.bf16 %v275_v36 }
  0x28   : > { %10437 = vperm.xlu1 %10400, %v10436_v56   ;;  %10432 = vperm.xlu0 %10389, %v10431_v62   ;;  %v10950_v39 = vld [vmem:[%s10814_s9 + $0x9c] sm:$0xf]  ;;  %1116 = vst [vmem:[#allocation2 + $0x7c] sm:$0xf] %v10944_v37  ;;  %1117 = vst [vmem:[#allocation2 + $0x84] sm:$0xf] %v10947_v38  ;;  %v338_v63 = vunpack.c.l.bf16 %v284_v43 }
  0x29   : > { %10377 = vmatpush3.bf16.msra.mxu1 %v10494_v24  ;;  %9368 = vmatpush3.bf16.msra.mxu0 %v10494_v24  ;;  %v10955_v42 = vld [vmem:[%s10814_s9 + $0xa0] sm:$0xf]  ;;  %1140 = vst [vmem:[#allocation2 + $0x13c] sm:$0xf] %v10950_v39  ;;  %v10961_v46 = vld [vmem:[%s10814_s9 + $0x48] sm:$0xf] }
  0x2a   : > { %10370 = vmatprep.subr.bf16.mxu1 %v10495_v29  ;;  %9369 = vmatprep.subr.bf16.mxu0 %v10495_v29  ;;  %1141 = vst [vmem:[#allocation2 + $0x144] sm:$0xf] %v10955_v42  ;;  %v10964_v47 = vld [vmem:[%s10814_s9 + $0x4c] sm:$0xf]  ;;  %v10967_v48 = vld [vmem:[%s10814_s9 + $0xa8] sm:$0xf] }
  0x2b   : > { %1119 = vst [vmem:[#allocation2 + $0x94] sm:$0xf] %v10961_v46  ;;  %1120 = vst [vmem:[#allocation2 + $0x9c] sm:$0xf] %v10964_v47  ;;  %v10972_v53 = vld [vmem:[%s10814_s9 + $0xac] sm:$0xf] }
  0x2c   : > { %10447 = vperm.xlu1 %10400, %v10446_v12   ;;  %10442 = vperm.xlu0 %10389, %v10441_v13   ;;  %1143 = vst [vmem:[#allocation2 + $0x154] sm:$0xf] %v10967_v48  ;;  %v281_v54 = vld [vmem:[%s10795_s30 + $0x20] sm:$0x1]  ;;  %1144 = vst [vmem:[#allocation2 + $0x15c] sm:$0xf] %v10972_v53 }
  0x2d   : > { %10378 = vmatpush3.bf16.msra.mxu1 %v10496_v34  ;;  %9370 = vmatpush3.bf16.msra.mxu0 %v10496_v34  ;;  %v10500_v56 = vld [vmem:[%s13539_s2 + $0xc0] sm:$0xff]   ;;  %v287_v62 = vld [vmem:[%s10795_s30 + $0x38] sm:$0x1]  ;;  %v335_v0 = vunpack.c.l.bf16 %v281_v54  ;;  %v10986_v1 = vld [vmem:[%s10814_s9 + $0x54] sm:$0xf] }
  0x2e   : > { %v290_v58 = vld [vmem:[%s10795_s30 + $0x44] sm:$0x1]  ;;  %9467 = vmatprep.subr.bf16.mxu1 %v10500_v56  ;;  %9579 = vmatprep.subr.bf16.mxu0 %v10504_v57  ;;  %v10989_v2 = vld [vmem:[%s10814_s9 + $0x58] sm:$0xf]  ;;  %v296_v3 = vld [vmem:[%s10795_s30 + $0x5c] sm:$0x1]  ;;  %v341_v12 = vunpack.c.l.bf16 %v287_v62 }
  0x2f   : > { %v293_v4 = vld [vmem:[%s10795_s30 + $0x50] sm:$0x1]  ;;  %1122 = vst [vmem:[#allocation2 + $0xac] sm:$0xf] %v10986_v1  ;;  %1123 = vst [vmem:[#allocation2 + $0xb4] sm:$0xf] %v10989_v2  ;;  %v344_v10 = vunpack.c.l.bf16 %v290_v58  ;;  %v350_v16 = vunpack.c.l.bf16 %v296_v3 }
  0x30   : > { %10457 = vperm.xlu1 %10400, %v10456_v22   ;;  %10452 = vperm.xlu0 %10389, %v10451_v25   ;;  %v10996_v8 = vld [vmem:[%s10814_s9 + $0xb4] sm:$0xf]  ;;  %v10999_v9 = vld [vmem:[%s10814_s9 + $0xb8] sm:$0xf]  ;;  %v11007_v14 = vld [vmem:[%s10814_s9 + $0x8] sm:$0x1]  ;;  %v347_v17 = vunpack.c.l.bf16 %v293_v4 }
  0x31   : > { %1146 = vst [vmem:[#allocation2 + $0x16c] sm:$0xf] %v10996_v8  ;;  %1147 = vst [vmem:[#allocation2 + $0x174] sm:$0xf] %v10999_v9  ;;  %v11004_v13 = vld [vmem:[%s10814_s9 + $0x14] sm:$0x1] }
  0x32   : > { %1106 = vst [vmem:[#allocation2 + $0x2c] sm:$0x1] %v11004_v13  ;;  %1103 = vst [vmem:[#allocation2 + $0x14] sm:$0x1] %v11007_v14  ;;  %v302_v15 = vld [vmem:[%s10795_s30 + $0x74] sm:$0x1] }
  0x33   : > { %v299_v22 = vld [vmem:[%s10795_s30 + $0x68] sm:$0x1]  ;;  %v11014_v23 = vld [vmem:[%s10814_s9 + $0x2c] sm:$0x1]  ;;  %v11018_v24 = vld [vmem:[%s10814_s9 + $0x20] sm:$0x1]  ;;  %v356_v28 = vunpack.c.l.bf16 %v302_v15 }
  0x34   : > { %10467 = vperm.xlu1 %10400, %v10466_v40   ;;  %10462 = vperm.xlu0 %10389, %v10461_v41   ;;  %1112 = vst [vmem:[#allocation2 + $0x5c] sm:$0x1] %v11014_v23  ;;  %v308_v25 = vld [vmem:[%s10795_s30 + $0x8c] sm:$0x1]  ;;  %v305_v26 = vld [vmem:[%s10795_s30 + $0x80] sm:$0x1]  ;;  %v353_v29 = vunpack.c.l.bf16 %v299_v22 }
  0x35   : > { %1109 = vst [vmem:[#allocation2 + $0x44] sm:$0x1] %v11018_v24  ;;  %v11024_v27 = vld [vmem:[%s10814_s9 + $0x44] sm:$0x1]  ;;  %v11028_v34 = vld [vmem:[%s10814_s9 + $0x38] sm:$0x1]  ;;  %v362_v41 = vunpack.c.l.bf16 %v308_v25  ;;  %v359_v43 = vunpack.c.l.bf16 %v305_v26 }
  0x36   : > { %1118 = vst [vmem:[#allocation2 + $0x8c] sm:$0x1] %v11024_v27  ;;  %v11031_v35 = vld [vmem:[%s10814_s9 + $0x5c] sm:$0x1]  ;;  %v314_v36 = vld [vmem:[%s10795_s30 + $0xa4] sm:$0x1] }
  0x37   : > { %v311_v40 = vld [vmem:[%s10795_s30 + $0x98] sm:$0x1]  ;;  %1115 = vst [vmem:[#allocation2 + $0x74] sm:$0x1] %v11028_v34  ;;  %1124 = vst [vmem:[#allocation2 + $0xbc] sm:$0x1] %v11031_v35  ;;  %v368_v58 = vunpack.c.l.bf16 %v314_v36 }
  0x38   : > { %462 = vperm.xlu1 %10400, %v332_v49   ;;  %447 = vperm.xlu0 %10389, %v329_v52   ;;  %v11038_v49 = vld [vmem:[%s10814_s9 + $0x50] sm:$0x1]  ;;  %v320_v52 = vld [vmem:[%s10795_s30 + $0xbc] sm:$0x1]  ;;  %v9339_v56 = vld [vmem:[%s10795_s30 + $0xc0] sm:$0xff]   ;;  %v365_v62 = vunpack.c.l.bf16 %v311_v40 }
  0x39   : > { %13560 = vst [vmem:[#allocation4_spill] sm:$0xff] %v11038_v49  ;;  %v317_v54 = vld [vmem:[%s10795_s30 + $0xb0] sm:$0x1]  ;;  %1121 = vst [vmem:[#allocation2 + $0xa4] sm:$0x1] %v11038_v49  ;;  %v374_v4 = vunpack.c.l.bf16 %v320_v52  ;;  %v9251_v15 = vunpack.c.h.bf16 %v9339_v56 }
  0x3a   : > { %v11045_v57 = vld [vmem:[%s10814_s9 + $0x74] sm:$0x1]  ;;  %v323_v3 = vld [vmem:[%s10795_s30 + $0xc8] sm:$0x1]  ;;  %v11064_v25 = vld [vmem:[%s10814_s9 + $0xa4] sm:$0x1] }
  0x3b   : > { %13561 = vst [vmem:[#allocation5_spill] sm:$0xff] %v11045_v57  ;;  %1130 = vst [vmem:[#allocation2 + $0xec] sm:$0x1] %v11045_v57  ;;  %v326_v22 = vld [vmem:[%s10795_s30 + $0xd4] sm:$0x1]  ;;  %v377_v26 = vunpack.c.l.bf16 %v323_v3 }
  0x3c   : > { %492 = vperm.xlu1 %10400, %v338_v63   ;;  %477 = vperm.xlu0 %10389, %v335_v0   ;;  %v11049_v63 = vld [vmem:[%s10814_s9 + $0x68] sm:$0x1]  ;;  %v11052_v0 = vld [vmem:[%s10814_s9 + $0x8c] sm:$0x1]  ;;  %13565 = vst [vmem:[#allocation9_spill] sm:$0xff] %v11064_v25 }
  0x3d   : > { %13562 = vst [vmem:[#allocation6_spill] sm:$0xff] %v11049_v63  ;;  %13563 = vst [vmem:[#allocation7_spill] sm:$0xff] %v11052_v0  ;;  %v11068_v40 = vld [vmem:[%s10814_s9 + $0x98] sm:$0x1]  ;;  %v11092_v3 = vld [vmem:[%s10814_s9 + $0xd4] sm:$0x1] }
  0x3e   : > { %1127 = vst [vmem:[#allocation2 + $0xd4] sm:$0x1] %v11049_v63  ;;  %1136 = vst [vmem:[#allocation2 + $0x11c] sm:$0x1] %v11052_v0 }
  0x3f   : > { %1142 = vst [vmem:[#allocation2 + $0x14c] sm:$0x1] %v11064_v25  ;;  %13566 = vst [vmem:[#allocation10_spill] sm:$0xff] %v11068_v40 }
  0x40   : > { %522 = vperm.xlu1 %10400, %v344_v10   ;;  %507 = vperm.xlu0 %10389, %v341_v12   ;;  %v371_v10 = vunpack.c.l.bf16 %v317_v54  ;;  %v9250_v12 = vunpack.c.l.bf16 %v9339_v56  ;;  %1139 = vst [vmem:[#allocation2 + $0x134] sm:$0x1] %v11068_v40  ;;  %v11076_v54 = vld [vmem:[%s10814_s9 + $0xb0] sm:$0x1]  ;;  %v11080_v56 = vld [vmem:[%s10814_s9 + $0xc8] sm:$0x1] }
  0x41   : > { %13568 = vst [vmem:[#allocation12_spill] sm:$0xff] %v11076_v54  ;;  %1145 = vst [vmem:[#allocation2 + $0x164] sm:$0x1] %v11076_v54 }
  0x42   : > { %13569 = vst [vmem:[#allocation13_spill] sm:$0xff] %v11080_v56  ;;  %1151 = vst [vmem:[#allocation2 + $0x194] sm:$0x1] %v11080_v56 }
  0x43   : > { %13572 = vst [vmem:[#allocation16_spill] sm:$0xff] %v11092_v3  ;;  %1154 = vst [vmem:[#allocation2 + $0x1ac] sm:$0x1] %v11092_v3 }
  0x44   : > { %552 = vperm.xlu1 %10400, %v350_v16   ;;  %537 = vperm.xlu0 %10389, %v347_v17   ;;  %v324_v16 = vld [vmem:[%s10795_s30 + $0xcc] sm:$0xff]   ;;  %v11059_v17 = vld [vmem:[%s10814_s9 + $0x80] sm:$0x1] }
  0x45   : > { %13564 = vst [vmem:[#allocation8_spill] sm:$0xff] %v11059_v17  ;;  %1133 = vst [vmem:[#allocation2 + $0x104] sm:$0x1] %v11059_v17  ;;  %v379_v36 = vunpack.c.h.bf16 %v324_v16 }
  0x48   : > { %582 = vperm.xlu1 %10400, %v356_v28   ;;  %567 = vperm.xlu0 %10389, %v353_v29   ;;  %v10471_v28 = vpack.i.bf16 %v9251_v15, %v9250_v12  ;;  %v378_v29 = vunpack.c.l.bf16 %v324_v16  ;;  %v408_v12 = vunpack.c.l.bf16 %v10825_v44  ;;  %v409_v15 = vunpack.c.l.bf16 %v10828_v45 }
  0x49   : > { %v405_v16 = vunpack.c.l.bf16 %v10833_v50 }
  0x4a   : > { %v10476_v52 = vpack.i.bf16 %v379_v36, %v378_v29  ;;  %v381_v29 = vunpack.c.l.bf16 %v10857_v60  ;;  %v382_v36 = vunpack.c.l.bf16 %v10860_v61 }
  0x4c   : > { %612 = vperm.xlu1 %10400, %v362_v41   ;;  %597 = vperm.xlu0 %10389, %v359_v43   ;;  %v11071_v41 = vld [vmem:[%s10814_s9 + $0xbc] sm:$0x1]  ;;  %v380_v43 = vunpack.c.l.bf16 %v326_v22  ;;  %v406_v22 = vunpack.c.l.bf16 %v10836_v51  ;;  %v395_v51 = vunpack.c.l.bf16 %v11028_v34 }
  0x4d   : > { %13567 = vst [vmem:[#allocation11_spill] sm:$0xff] %v11071_v41  ;;  %1148 = vst [vmem:[#allocation2 + $0x17c] sm:$0x1] %v11071_v41 }
  0x50   : > { %642 = vperm.xlu1 %10400, %v368_v58   ;;  %627 = vperm.xlu0 %10389, %v365_v62   ;;  %v11084_v58 = vld [vmem:[%s10814_s9 + $0xc0] sm:$0xf]  ;;  %v11087_v62 = vld [vmem:[%s10814_s9 + $0xc4] sm:$0xf] }
  0x51   : > { %13570 = vst [vmem:[#allocation14_spill] sm:$0xff] %v11084_v58  ;;  %13571 = vst [vmem:[#allocation15_spill] sm:$0xff] %v11087_v62 }
  0x52   : > { %1149 = vst [vmem:[#allocation2 + $0x184] sm:$0xf] %v11084_v58  ;;  %1150 = vst [vmem:[#allocation2 + $0x18c] sm:$0xf] %v11087_v62 }
  0x54   : > { %672 = vperm.xlu1 %10400, %v374_v4   ;;  %657 = vperm.xlu0 %10389, %v371_v10   ;;  %v11096_v4 = vld [vmem:[%s10814_s9 + $0xcc] sm:$0xf]  ;;  %v11099_v10 = vld [vmem:[%s10814_s9 + $0xd0] sm:$0xf] }
  0x55   : > { %13573 = vst [vmem:[#allocation17_spill] sm:$0xff] %v11096_v4  ;;  %13574 = vst [vmem:[#allocation18_spill] sm:$0xff] %v11099_v10 }
  0x56   : > { %1152 = vst [vmem:[#allocation2 + $0x19c] sm:$0xf] %v11096_v4  ;;  %1153 = vst [vmem:[#allocation2 + $0x1a4] sm:$0xf] %v11099_v10 }
  0x58   : > { %687 = vperm.xlu1 %10400, %v377_v26   ;;  %10472 = vperm.xlu0 %10389, %v10471_v28   ;;  %v384_v26 = vunpack.c.l.bf16 %v10848_v55  ;;  %v385_v28 = vunpack.c.l.bf16 %v10853_v59 }
  0x5c   : > { %702 = vperm.xlu1 %10400, %v380_v43   ;;  %10477 = vperm.xlu0 %10389, %v10476_v52  }
  0x97   : > { %v10403_v10 = vpop.permute.xlu1 %10402  ;;  %v10392_v60 = vpop.permute.xlu0 %10391 }
  0x98   : > { %v10405_v4 = vunpack.i.h.bf16 %v10403_v10  ;;  %v10404_v45 = vunpack.i.l.bf16 %v10403_v10  ;;  %v10394_v3 = vunpack.i.h.bf16 %v10392_v60  ;;  %v10393_v50 = vunpack.i.l.bf16 %v10392_v60 }
  0x9a   : > { %v732_v58 = vmul.f32 %v10404_v45, %v408_v12  ;;  %v733_v61 = vmul.f32 %v10405_v4, %v409_v15  ;;  %v729_v56 = vmul.f32 %v10393_v50, %v405_v16  ;;  %v730_v43 = vmul.f32 %v10394_v3, %v406_v22 }
  0x9b   : > { %v10408_v54 = vpop.permute.xlu1 %10407  ;;  %v10397_v52 = vpop.permute.xlu0 %10396 }
  0x9c   : > { %v786_v41 = vadd.f32 %v10404_v45, %v732_v58  ;;  %v787_v55 = vadd.f32 %v10405_v4, %v733_v61  ;;  %v783_v40 = vadd.f32 %v10393_v50, %v729_v56  ;;  %v784_v59 = vadd.f32 %v10394_v3, %v730_v43 }
  0x9d   : > { %v10410_v25 = vunpack.i.h.bf16 %v10408_v54  ;;  %v10409_v62 = vunpack.i.l.bf16 %v10408_v54  ;;  %v10399_v12 = vunpack.i.h.bf16 %v10397_v52  ;;  %v10398_v15 = vunpack.i.l.bf16 %v10397_v52 }
  0x9e   : > { %v9157_v16 = vpack.c.bf16 %v786_v41, %v786_v41  ;;  %v9158_v22 = vpack.c.bf16 %v787_v55, %v787_v55  ;;  %v9154_v17 = vpack.c.bf16 %v783_v40, %v783_v40  ;;  %v9155_v0 = vpack.c.bf16 %v784_v59, %v784_v59 }
  0x9f   : > { %v708_v63 = vmul.f32 %v10409_v62, %v384_v26  ;;  %v709_v44 = vmul.f32 %v10410_v25, %v385_v28  ;;  %v705_v57 = vmul.f32 %v10398_v15, %v381_v29  ;;  %v706_v10 = vmul.f32 %v10399_v12, %v382_v36  ;;  %v10418_v49 = vpop.permute.xlu1 %10417  ;;  %v10413_v60 = vpop.permute.xlu0 %10412 }
  0xa0   : > { %1074 = vst [vmem:[#allocation2 + $0xd8] sm:$0xf] %v9157_v16  ;;  %1075 = vst [vmem:[#allocation2 + $0xe0] sm:$0xf] %v9158_v22  ;;  %v10420_v56 = vunpack.i.h.bf16 %v10418_v49  ;;  %v10419_v58 = vunpack.i.l.bf16 %v10418_v49  ;;  %v10415_v3 = vunpack.i.h.bf16 %v10413_v60  ;;  %v10414_v54 = vunpack.i.l.bf16 %v10413_v60  ;;  %v10501_v16 = vld [vmem:[%s13539_s2 + $0x80] sm:$0xff]  }
  0xa1   : > { %1071 = vst [vmem:[#allocation2 + $0xc0] sm:$0xf] %v9154_v17  ;;  %1072 = vst [vmem:[#allocation2 + $0xc8] sm:$0xf] %v9155_v0  ;;  %v762_v4 = vadd.f32 %v10409_v62, %v708_v63  ;;  %v763_v43 = vadd.f32 %v10410_v25, %v709_v44  ;;  %v759_v41 = vadd.f32 %v10398_v15, %v705_v57  ;;  %v13575_v40 = vunpack.c.l.bf16 %v10876_v5 }
  0xa2   : > { %v760_v52 = vadd.f32 %v10399_v12, %v706_v10  ;;  %v13576_v28 = vunpack.c.l.bf16 %v10879_v6  ;;  %v13577_v36 = vunpack.c.l.bf16 %v10882_v7  ;;  %v13578_v17 = vunpack.c.l.bf16 %v10888_v11 }
  0xa3   : > { %v711_v26 = vmul.f32 %v10419_v58, %v13575_v40  ;;  %v9133_v50 = vpack.c.bf16 %v762_v4, %v762_v4  ;;  %v9134_v49 = vpack.c.bf16 %v763_v43, %v763_v43  ;;  %v9130_v55 = vpack.c.bf16 %v759_v41, %v759_v41  ;;  %v10428_v63 = vpop.permute.xlu1 %10427  ;;  %v10423_v25 = vpop.permute.xlu0 %10422 }
  0xa4   : > { %v712_v29 = vmul.f32 %v10420_v56, %v13576_v28  ;;  %v735_v45 = vmul.f32 %v10414_v54, %v13577_v36  ;;  %v736_v0 = vmul.f32 %v10415_v3, %v13578_v17  ;;  %v9131_v59 = vpack.c.bf16 %v760_v52, %v760_v52 }
  0xa5   : > { %v765_v57 = vadd.f32 %v10419_v58, %v711_v26  ;;  %1050 = vst [vmem:[#allocation2 + $0x18] sm:$0xf] %v9133_v50  ;;  %1051 = vst [vmem:[#allocation2 + $0x20] sm:$0xf] %v9134_v49  ;;  %v10430_v6 = vunpack.i.h.bf16 %v10428_v63  ;;  %v10429_v7 = vunpack.i.l.bf16 %v10428_v63  ;;  %v10425_v61 = vunpack.i.h.bf16 %v10423_v25  ;;  %v10507_v50 = vld [vmem:[#allocation2 + $0xdc] ss:$8 sps:$4 sm:$0xff]  }
  0xa6   : > { %v766_v62 = vadd.f32 %v10420_v56, %v712_v29  ;;  %v789_v44 = vadd.f32 %v10414_v54, %v735_v45  ;;  %v790_v5 = vadd.f32 %v10415_v3, %v736_v0  ;;  %1047 = vst [vmem:[#allocation2] sm:$0xf] %v9130_v55  ;;  %1048 = vst [vmem:[#allocation2 + $0x8] sm:$0xf] %v9131_v59  ;;  %v10424_v10 = vunpack.i.l.bf16 %v10423_v25  ;;  %v10499_v45 = vld [vmem:[#allocation2 + $0xc4] ss:$8 sps:$4 sm:$0xff]  }
  0xa7   : > { %v9136_v11 = vpack.c.bf16 %v765_v57, %v765_v57  ;;  %v13579_v22 = vunpack.c.l.bf16 %v10899_v18  ;;  %v13580_v58 = vunpack.c.l.bf16 %v10902_v19  ;;  %v13581_v54 = vunpack.c.l.bf16 %v10907_v20  ;;  %v10438_v52 = vpop.permute.xlu1 %10437  ;;  %v10433_v40 = vpop.permute.xlu0 %10432  ;;  %1635 = vmatprep.mubr.bf16.mxu1 %v10499_v45 }
  0xa8   : > { %v9137_v60 = vpack.c.bf16 %v766_v62, %v766_v62  ;;  %v9160_v12 = vpack.c.bf16 %v789_v44, %v789_v44  ;;  %v9161_v15 = vpack.c.bf16 %v790_v5, %v790_v5  ;;  %v13582_v43 = vunpack.c.l.bf16 %v10910_v21  ;;  %v10497_v26 = vld [vmem:[#allocation2 + $0xc0] ss:$8 sps:$4 sm:$0xff]  }
  0xa9   : > { %v714_v56 = vmul.f32 %v10429_v7, %v13579_v22  ;;  %v715_v3 = vmul.f32 %v10430_v6, %v13580_v58  ;;  %v738_v4 = vmul.f32 %v10424_v10, %v13581_v54  ;;  %1053 = vst [vmem:[#allocation2 + $0x30] sm:$0xf] %v9136_v11  ;;  %v10440_v28 = vunpack.i.h.bf16 %v10438_v52  ;;  %v10512_v21 = vld [vmem:[%s13539_s2 + $0xc8] sm:$0xff]   ;;  %1636 = vmatmul.mubr.bf16.vlgmr.msra.gmra.mrb[0].mxu1 %v10497_v26 }
  0xaa   : > { %v739_v41 = vmul.f32 %v10425_v61, %v13582_v43  ;;  %1054 = vst [vmem:[#allocation2 + $0x38] sm:$0xf] %v9137_v60  ;;  %1077 = vst [vmem:[#allocation2 + $0xf0] sm:$0xf] %v9160_v12  ;;  %v10439_v29 = vunpack.i.l.bf16 %v10438_v52  ;;  %v10435_v18 = vunpack.i.h.bf16 %v10433_v40  ;;  %v10434_v36 = vunpack.i.l.bf16 %v10433_v40  ;;  %9468 = vmatpush3.bf16.msra.mxu1 %v10501_v16  ;;  %1643 = vmatprep.mubr.bf16.mxu1 %v10507_v50  ;;  %v10521_v16 = vld [vmem:[%s13539_s2 + $0xd0] sm:$0xff]  }
  0xab   : > { %1078 = vst [vmem:[#allocation2 + $0xf8] sm:$0xf] %v9161_v15  ;;  %v768_v19 = vadd.f32 %v10429_v7, %v714_v56  ;;  %v769_v17 = vadd.f32 %v10430_v6, %v715_v3  ;;  %v792_v0 = vadd.f32 %v10424_v10, %v738_v4  ;;  %v13583_v49 = vunpack.c.l.bf16 %v10923_v30  ;;  %v10448_v10 = vpop.permute.xlu1 %10447  ;;  %v10443_v11 = vpop.permute.xlu0 %10442  ;;  %9469 = vmatprep.subr.bf16.mxu1 %v10512_v21 }
  0xac   : > { %v793_v20 = vadd.f32 %v10425_v61, %v739_v41  ;;  %v13584_v59 = vunpack.c.l.bf16 %v10926_v31  ;;  %v13585_v25 = vunpack.c.l.bf16 %v10930_v32  ;;  %v13586_v62 = vunpack.c.l.bf16 %v10933_v33  ;;  %v10513_v31 = vld [vmem:[%s13539_s2 + $0x88] sm:$0xff]  }
  0xad   : > { %v717_v55 = vmul.f32 %v10439_v29, %v13583_v49  ;;  %v9139_v5 = vpack.c.bf16 %v768_v19, %v768_v19  ;;  %v9140_v6 = vpack.c.bf16 %v769_v17, %v769_v17  ;;  %v9163_v7 = vpack.c.bf16 %v792_v0, %v792_v0  ;;  %v11174_v58 = vld [vmem:[#allocation2] sm:$0xff]  ;;  %v11176_v3 = vld [vmem:[#allocation2 + $0x8] sm:$0xff] }
  0xae   : > { %v718_v63 = vmul.f32 %v10440_v28, %v13584_v59  ;;  %v741_v57 = vmul.f32 %v10434_v36, %v13585_v25  ;;  %v742_v44 = vmul.f32 %v10435_v18, %v13586_v62  ;;  %v9164_v61 = vpack.c.bf16 %v793_v20, %v793_v20  ;;  %9470 = vmatpush3.bf16.msra.mxu1 %v10513_v31 }
  0xaf   : > { %v771_v60 = vadd.f32 %v10439_v29, %v717_v55  ;;  %1056 = vst [vmem:[#allocation2 + $0x48] sm:$0xf] %v9139_v5  ;;  %1057 = vst [vmem:[#allocation2 + $0x50] sm:$0xf] %v9140_v6  ;;  %v10450_v32 = vunpack.i.h.bf16 %v10448_v10  ;;  %v10449_v33 = vunpack.i.l.bf16 %v10448_v10  ;;  %v10445_v22 = vunpack.i.h.bf16 %v10443_v11  ;;  %v10458_v19 = vpop.permute.xlu1 %10457  ;;  %v10453_v17 = vpop.permute.xlu0 %10452  ;;  %v10514_v55 = vld [vmem:[%s13539_s2 + $0x148] sm:$0xff]   ;;  %9471 = vmatprep.subr.bf16.mxu1 %v10521_v16  ;;  %v11203_v5 = vld [vmem:[#allocation2 + $0x20] sm:$0xff] }
  0xb0   : > { %v772_v30 = vadd.f32 %v10440_v28, %v718_v63  ;;  %v795_v12 = vadd.f32 %v10434_v36, %v741_v57  ;;  %v796_v15 = vadd.f32 %v10435_v18, %v742_v44  ;;  %1080 = vst [vmem:[#allocation2 + $0x108] sm:$0xf] %v9163_v7  ;;  %1081 = vst [vmem:[#allocation2 + $0x110] sm:$0xf] %v9164_v61  ;;  %v10444_v56 = vunpack.i.l.bf16 %v10443_v11  ;;  %v10516_v6 = vld [vmem:[%s13539_s2 + $0x108] sm:$0xff]  }
  0xb1   : > { %v9142_v54 = vpack.c.bf16 %v771_v60, %v771_v60  ;;  %v13587_v52 = vunpack.c.l.bf16 %v10944_v37  ;;  %v13588_v26 = vunpack.c.l.bf16 %v10947_v38  ;;  %v13589_v29 = vunpack.c.l.bf16 %v10950_v39  ;;  %v10505_v39 = vld [vmem:[%s13539_s2 + $0x100] sm:$0xff]   ;;  %v11208_v60 = vld [vmem:[#allocation2 + $0x18] sm:$0xff] }
  0xb2   : > { %v9143_v4 = vpack.c.bf16 %v772_v30, %v772_v30  ;;  %v9166_v43 = vpack.c.bf16 %v795_v12, %v795_v12  ;;  %v9167_v41 = vpack.c.bf16 %v796_v15, %v796_v15  ;;  %v13590_v36 = vunpack.c.l.bf16 %v10955_v42  ;;  %v10509_v12 = vld [vmem:[#allocation2 + $0xd8] ss:$8 sps:$4 sm:$0xff]   ;;  %v10510_v16 = vld [vmem:[#allocation2 + $0xf4] ss:$8 sps:$4 sm:$0xff]  }
  0xb3   : > { %v720_v40 = vmul.f32 %v10449_v33, %v13587_v52  ;;  %v721_v28 = vmul.f32 %v10450_v32, %v13588_v26  ;;  %v744_v18 = vmul.f32 %v10444_v56, %v13589_v29  ;;  %1059 = vst [vmem:[#allocation2 + $0x60] sm:$0xf] %v9142_v54  ;;  %v8359_v0 = vcombine.low %v11174_v58, %v11176_v3  ;;  %v10463_v30 = vpop.permute.xlu0 %10462  ;;  %v10530_v29 = vld [vmem:[%s13539_s2 + $0xd8] sm:$0xff]  }
  0xb4   : > { %v745_v45 = vmul.f32 %v10445_v22, %v13590_v36  ;;  %1060 = vst [vmem:[#allocation2 + $0x68] sm:$0xf] %v9143_v4  ;;  %1083 = vst [vmem:[#allocation2 + $0x120] sm:$0xf] %v9166_v43  ;;  %v8360_v37 = vcombine.high %v11174_v58, %v11176_v3  ;;  %v10460_v38 = vunpack.i.h.bf16 %v10458_v19  ;;  %v10459_v20 = vunpack.i.l.bf16 %v10458_v19  ;;  %1644 = vmatmul.mubr.bf16.gmra.mrb[4].mxu1 %v10509_v12  ;;  %v10518_v12 = vld [vmem:[#allocation2 + $0xf0] ss:$8 sps:$4 sm:$0xff]  }
  0xb5   : > { %1084 = vst [vmem:[#allocation2 + $0x128] sm:$0xf] %v9167_v41  ;;  %v774_v42 = vadd.f32 %v10449_v33, %v720_v40  ;;  %v775_v50 = vadd.f32 %v10450_v32, %v721_v28  ;;  %v798_v21 = vadd.f32 %v10444_v56, %v744_v18  ;;  %v13591_v59 = vunpack.c.l.bf16 %v10961_v46  ;;  %v10468_v46 = vpop.permute.xlu1 %10467  ;;  %1651 = vmatprep.mubr.bf16.mxu1 %v10510_v16  ;;  %v11222_v28 = vld [vmem:[#allocation2 + $0x30] sm:$0xff]  ;;  %v10531_v18 = vld [vmem:[%s13539_s2 + $0x98] sm:$0xff]  }
  0xb6   : > { %v799_v49 = vadd.f32 %v10445_v22, %v745_v45  ;;  %1571 = vmatprep.mubr.bf16.mxu0 %v8360_v37  ;;  %v13592_v25 = vunpack.c.l.bf16 %v10964_v47  ;;  %v10455_v62 = vunpack.i.h.bf16 %v10453_v17  ;;  %v10454_v44 = vunpack.i.l.bf16 %v10453_v17  ;;  %v10522_v47 = vld [vmem:[%s13539_s2 + $0x90] sm:$0xff]  }
  0xb7   : > { %v723_v63 = vmul.f32 %v10459_v20, %v13591_v59  ;;  %v9145_v7 = vpack.c.bf16 %v774_v42, %v774_v42  ;;  %v9146_v61 = vpack.c.bf16 %v775_v50, %v775_v50  ;;  %v9169_v10 = vpack.c.bf16 %v798_v21, %v798_v21  ;;  %1572 = vmatmul.mubr.bf16.vlgmr.msra.gmra.mrb[0].mxu0 %v8359_v0  ;;  %v11236_v42 = vld [vmem:[#allocation2 + $0x38] sm:$0xff] }
  0xb8   : > { %v724_v57 = vmul.f32 %v10460_v38, %v13592_v25  ;;  %v9170_v11 = vpack.c.bf16 %v799_v49, %v799_v49  ;;  %v13593_v32 = vunpack.c.l.bf16 %v10967_v48  ;;  %v13594_v22 = vunpack.c.l.bf16 %v10972_v53  ;;  %9580 = vmatpush3.bf16.msra.mxu0 %v10505_v39  ;;  %v10523_v48 = vld [vmem:[%s13539_s2 + $0x150] sm:$0xff]   ;;  %v448_v39 = vpop.permute.xlu0 %447  ;;  %9472 = vmatpush3.bf16.msra.mxu1 %v10522_v47  ;;  %v10539_v47 = vld [vmem:[%s13539_s2 + $0xe0] sm:$0xff]  }
  0xb9   : > { %v777_v15 = vadd.f32 %v10459_v20, %v723_v63  ;;  %1062 = vst [vmem:[#allocation2 + $0x78] sm:$0xf] %v9145_v7  ;;  %1063 = vst [vmem:[#allocation2 + $0x80] sm:$0xf] %v9146_v61  ;;  %v8362_v54 = vcombine.high %v11208_v60, %v11203_v5  ;;  %v10470_v4 = vunpack.i.h.bf16 %v10468_v46  ;;  %v10469_v43 = vunpack.i.l.bf16 %v10468_v46  ;;  %9581 = vmatprep.subr.bf16.mxu0 %v10514_v55  ;;  %v463_v20 = vpop.permute.xlu1 %462 }
  0xba   : > { %v778_v31 = vadd.f32 %v10460_v38, %v724_v57  ;;  %v747_v33 = vmul.f32 %v10454_v44, %v13593_v32  ;;  %v748_v56 = vmul.f32 %v10455_v62, %v13594_v22  ;;  %1086 = vst [vmem:[#allocation2 + $0x138] sm:$0xf] %v9169_v10  ;;  %1087 = vst [vmem:[#allocation2 + $0x140] sm:$0xf] %v9170_v11  ;;  %v10465_v41 = vunpack.i.h.bf16 %v10463_v30 }
  0xbb   : > { %v9148_v53 = vpack.c.bf16 %v777_v15, %v777_v15  ;;  %1579 = vmatprep.mubr.bf16.mxu0 %v8362_v54  ;;  %v13595_v36 = vunpack.c.l.bf16 %v10986_v1  ;;  %v13596_v19 = vunpack.c.l.bf16 %v10989_v2  ;;  %v10464_v0 = vunpack.i.l.bf16 %v10463_v30  ;;  %9473 = vmatprep.subr.bf16.mxu1 %v10530_v29  ;;  %v10540_v15 = vld [vmem:[%s13539_s2 + $0xa0] sm:$0xff]   ;;  %v10519_v54 = vld [vmem:[#allocation2 + $0x10c] ss:$8 sps:$4 sm:$0xff]  }
  0xbc   : > { %v9149_v52 = vpack.c.bf16 %v778_v31, %v778_v31  ;;  %v801_v40 = vadd.f32 %v10454_v44, %v747_v33  ;;  %v802_v26 = vadd.f32 %v10455_v62, %v748_v56  ;;  %v13597_v37 = vunpack.c.l.bf16 %v10999_v9  ;;  %9582 = vmatpush3.bf16.msra.mxu0 %v10516_v6  ;;  %v478_v30 = vpop.permute.xlu0 %477  ;;  %9474 = vmatpush3.bf16.msra.mxu1 %v10531_v18  ;;  %v10541_v29 = vld [vmem:[%s13539_s2 + $0x160] sm:$0xff]  }
  0xbd   : > { %v726_v45 = vmul.f32 %v10469_v43, %v13595_v36  ;;  %v727_v17 = vmul.f32 %v10470_v4, %v13596_v19  ;;  %1065 = vst [vmem:[#allocation2 + $0x90] sm:$0xf] %v9148_v53  ;;  %v13598_v49 = vunpack.c.l.bf16 %v11004_v13  ;;  %v13599_v55 = vunpack.c.l.bf16 %v11007_v14  ;;  %9583 = vmatprep.subr.bf16.mxu0 %v10523_v48  ;;  %v10525_v14 = vld [vmem:[%s13539_s2 + $0x110] sm:$0xff]   ;;  %v493_v46 = vpop.permute.xlu1 %492  ;;  %1652 = vmatmul.mubr.bf16.gmra.mrb[8].mxu1 %v10518_v12 }
  0xbe   : > { %v751_v38 = vmul.f32 %v10465_v41, %v13597_v37  ;;  %1066 = vst [vmem:[#allocation2 + $0x98] sm:$0xf] %v9149_v52  ;;  %v9172_v50 = vpack.c.bf16 %v801_v40, %v801_v40  ;;  %v9173_v21 = vpack.c.bf16 %v802_v26, %v802_v26  ;;  %v13600_v9 = vunpack.c.l.bf16 %v10996_v8  ;;  %v10532_v8 = vld [vmem:[%s13539_s2 + $0x158] sm:$0xff]   ;;  %1659 = vmatprep.mubr.bf16.mxu1 %v10519_v54  ;;  %v13603_v40 = vld [vmem:[#allocation4_spill] sm:$0xff] }
  0xbf   : > { %v710_v1 = vmul.f32 %v463_v20, %v13598_v49  ;;  %v707_v2 = vmul.f32 %v448_v39, %v13599_v55  ;;  %v780_v59 = vadd.f32 %v10469_v43, %v726_v45  ;;  %v781_v63 = vadd.f32 %v10470_v4, %v727_v17  ;;  %v10548_v43 = vld [vmem:[%s13539_s2 + $0xe8] sm:$0xff]   ;;  %9475 = vmatprep.subr.bf16.mxu1 %v10539_v47  ;;  %v11281_v37 = vld [vmem:[#allocation2 + $0x50] sm:$0xff] }
  0xc0   : > { %v750_v25 = vmul.f32 %v10464_v0, %v13600_v9  ;;  %v805_v57 = vadd.f32 %v10465_v41, %v751_v38  ;;  %1089 = vst [vmem:[#allocation2 + $0x150] sm:$0xf] %v9172_v50  ;;  %1090 = vst [vmem:[#allocation2 + $0x158] sm:$0xf] %v9173_v21  ;;  %v8361_v7 = vcombine.low %v11208_v60, %v11203_v5  ;;  %v13601_v33 = vunpack.c.l.bf16 %v11014_v23  ;;  %v10534_v23 = vld [vmem:[%s13539_s2 + $0x118] sm:$0xff]   ;;  %v508_v53 = vpop.permute.xlu0 %507  ;;  %v10559_v12 = vld [vmem:[%s13539_s2 + $0x170] sm:$0xff]  }
  0xc1   : > { %v764_v62 = vadd.f32 %v710_v1, %v463_v20  ;;  %v761_v44 = vadd.f32 %v707_v2, %v448_v39  ;;  %v8364_v13 = vcombine.high %v11222_v28, %v11236_v42  ;;  %v9151_v6 = vpack.c.bf16 %v780_v59, %v780_v59  ;;  %9584 = vmatpush3.bf16.msra.mxu0 %v10525_v14  ;;  %v10527_v50 = vld [vmem:[#allocation2 + $0x108] ss:$8 sps:$4 sm:$0xff]   ;;  %v13605_v21 = vld [vmem:[#allocation5_spill] sm:$0xff]  ;;  %v13606_v1 = vld [vmem:[#allocation6_spill] sm:$0xff] }
  0xc2   : > { %v9152_v61 = vpack.c.bf16 %v781_v63, %v781_v63  ;;  %v804_v10 = vadd.f32 %v10464_v0, %v750_v25  ;;  %v9176_v11 = vpack.c.bf16 %v805_v57, %v805_v57  ;;  %1580 = vmatmul.mubr.bf16.gmra.mrb[4].mxu0 %v8361_v7  ;;  %v716_v22 = vmul.f32 %v493_v46, %v13601_v33  ;;  %v11279_v0 = vld [vmem:[#allocation2 + $0x48] sm:$0xff]  ;;  %v11312_v33 = vld [vmem:[#allocation2 + $0x60] sm:$0xff] }
  0xc3   : > { %v9135_v31 = vpack.c.bf16 %v764_v62, %v764_v62  ;;  %v9132_v32 = vpack.c.bf16 %v761_v44, %v761_v44  ;;  %v13602_v56 = vunpack.c.l.bf16 %v11018_v24  ;;  %1068 = vst [vmem:[#allocation2 + $0xa8] sm:$0xf] %v9151_v6  ;;  %1587 = vmatprep.mubr.bf16.mxu0 %v8364_v13  ;;  %v523_v24 = vpop.permute.xlu1 %522  ;;  %v404_v52 = vunpack.c.l.bf16 %v11031_v35  ;;  %9585 = vmatprep.subr.bf16.mxu0 %v10532_v8  ;;  %v10549_v2 = vld [vmem:[%s13539_s2 + $0xa8] sm:$0xff]   ;;  %v10557_v44 = vld [vmem:[%s13539_s2 + $0xf0] sm:$0xff]  }
  0xc4   : > { %1069 = vst [vmem:[#allocation2 + $0xb0] sm:$0xf] %v9152_v61  ;;  %v9175_v4 = vpack.c.bf16 %v804_v10, %v804_v10  ;;  %1093 = vst [vmem:[#allocation2 + $0x170] sm:$0xf] %v9176_v11  ;;  %v770_v41 = vadd.f32 %v716_v22, %v493_v46  ;;  %v401_v26 = vunpack.c.l.bf16 %v13603_v40  ;;  %v13604_v45 = vunpack.c.l.bf16 %v11024_v27  ;;  %9476 = vmatpush3.bf16.msra.mxu1 %v10540_v15  ;;  %v10543_v27 = vld [vmem:[%s13539_s2 + $0x120] sm:$0xff]   ;;  %v538_v39 = vpop.permute.xlu0 %537  ;;  %v10550_v59 = vld [vmem:[%s13539_s2 + $0x168] sm:$0xff]  }
  0xc5   : > { %v713_v16 = vmul.f32 %v478_v30, %v13602_v56  ;;  %1052 = vst [vmem:[#allocation2 + $0x28] sm:$0x1] %v9135_v31  ;;  %1049 = vst [vmem:[#allocation2 + $0x10] sm:$0x1] %v9132_v32  ;;  %v719_v17 = vmul.f32 %v508_v53, %v395_v51  ;;  %9477 = vmatprep.subr.bf16.mxu1 %v10548_v43  ;;  %v8363_v20 = vcombine.low %v11222_v28, %v11236_v42  ;;  %v10528_v62 = vld [vmem:[#allocation2 + $0x124] ss:$8 sps:$4 sm:$0xff]  }
  0xc6   : > { %1092 = vst [vmem:[#allocation2 + $0x168] sm:$0xf] %v9175_v4  ;;  %v9141_v18 = vpack.c.bf16 %v770_v41, %v770_v41  ;;  %v722_v19 = vmul.f32 %v523_v24, %v13604_v45  ;;  %9586 = vmatpush3.bf16.msra.mxu0 %v10534_v23  ;;  %v8366_v34 = vcombine.high %v11279_v0, %v11281_v37  ;;  %v410_v49 = vunpack.c.l.bf16 %v13605_v21  ;;  %v10552_v14 = vld [vmem:[%s13539_s2 + $0x128] sm:$0xff]   ;;  %v13608_v11 = vld [vmem:[#allocation8_spill] sm:$0xff] }
  0xc7   : > { %v767_v48 = vadd.f32 %v713_v16, %v478_v30  ;;  %v773_v38 = vadd.f32 %v719_v17, %v508_v53  ;;  %v553_v51 = vpop.permute.xlu1 %552  ;;  %v407_v55 = vunpack.c.l.bf16 %v13606_v1  ;;  %9587 = vmatprep.subr.bf16.mxu0 %v10541_v29  ;;  %v725_v57 = vmul.f32 %v538_v39, %v401_v26  ;;  %1660 = vmatmul.mubr.bf16.gmra.mrb[12].mxu1 %v10527_v50  ;;  %v13607_v61 = vld [vmem:[#allocation7_spill] sm:$0xff]  ;;  %v10558_v30 = vld [vmem:[%s13539_s2 + $0xb0] sm:$0xff]   ;;  %v10564_v26 = vld [vmem:[%s13539_s2 + $0xf8] sm:$0xff]  }
  0xc8   : > { %1058 = vst [vmem:[#allocation2 + $0x58] sm:$0x1] %v9141_v18  ;;  %v776_v35 = vadd.f32 %v722_v19, %v523_v24  ;;  %v728_v25 = vmul.f32 %v553_v51, %v404_v52  ;;  %1667 = vmatprep.mubr.bf16.mxu1 %v10528_v62  ;;  %v568_v6 = vpop.permute.xlu0 %567  ;;  %v416_v10 = vunpack.c.l.bf16 %v13607_v61  ;;  %v413_v46 = vunpack.c.l.bf16 %v13608_v11  ;;  %9478 = vmatpush3.bf16.msra.mxu1 %v10549_v2  ;;  %v11314_v22 = vld [vmem:[#allocation2 + $0x68] sm:$0xff]  ;;  %v10561_v4 = vld [vmem:[%s13539_s2 + $0x130] sm:$0xff]   ;;  %v13609_v24 = vld [vmem:[#allocation9_spill] sm:$0xff] }
  0xc9   : > { %v9138_v36 = vpack.c.bf16 %v767_v48, %v767_v48  ;;  %v9144_v9 = vpack.c.bf16 %v773_v38, %v773_v38  ;;  %v779_v13 = vadd.f32 %v725_v57, %v538_v39  ;;  %v731_v32 = vmul.f32 %v568_v6, %v407_v55  ;;  %9479 = vmatprep.subr.bf16.mxu1 %v10557_v44  ;;  %v10536_v23 = vld [vmem:[#allocation2 + $0x120] ss:$8 sps:$4 sm:$0xff]   ;;  %v10566_v29 = vld [vmem:[%s13539_s2 + $0x178] sm:$0xff]   ;;  %v13612_v55 = vld [vmem:[#allocation12_spill] sm:$0xff] }
  0xca   : > { %v9147_v63 = vpack.c.bf16 %v776_v35, %v776_v35  ;;  %1588 = vmatmul.mubr.bf16.gmra.mrb[8].mxu0 %v8363_v20  ;;  %v782_v7 = vadd.f32 %v728_v25, %v553_v51  ;;  %v8365_v54 = vcombine.low %v11279_v0, %v11281_v37  ;;  %v8368_v43 = vcombine.high %v11312_v33, %v11314_v22  ;;  %v13610_v52 = vld [vmem:[#allocation10_spill] sm:$0xff]  ;;  %v10565_v35 = vld [vmem:[%s13539_s2 + $0xb8] sm:$0xff]  }
  0xcb   : > { %1055 = vst [vmem:[#allocation2 + $0x40] sm:$0x1] %v9138_v36  ;;  %1595 = vmatprep.mubr.bf16.mxu0 %v8366_v34  ;;  %1061 = vst [vmem:[#allocation2 + $0x70] sm:$0x1] %v9144_v9  ;;  %9588 = vmatpush3.bf16.msra.mxu0 %v10543_v27  ;;  %v583_v8 = vpop.permute.xlu1 %582  ;;  %v9150_v15 = vpack.c.bf16 %v779_v13, %v779_v13  ;;  %v785_v16 = vadd.f32 %v731_v32, %v568_v6  ;;  %v422_v53 = vunpack.c.l.bf16 %v13609_v24  ;;  %v10537_v17 = vld [vmem:[#allocation2 + $0x13c] ss:$8 sps:$4 sm:$0xff]  }
  0xcc   : > { %1064 = vst [vmem:[#allocation2 + $0x88] sm:$0x1] %v9147_v63  ;;  %9589 = vmatprep.subr.bf16.mxu0 %v10550_v59  ;;  %v9153_v47 = vpack.c.bf16 %v782_v7, %v782_v7  ;;  %v734_v31 = vmul.f32 %v583_v8, %v410_v49  ;;  %v598_v48 = vpop.permute.xlu0 %597  ;;  %v419_v40 = vunpack.c.l.bf16 %v13610_v52  ;;  %9480 = vmatpush3.bf16.msra.mxu1 %v10558_v30  ;;  %v10569_v38 = vld [vmem:[%s13539_s2 + $0x1c0] sm:$0xff]   ;;  %v1816_v34 = vshrl.u32 %v11174_v58, 16  ;;  %v10568_v39 = vld [vmem:[%s13539_s2 + $0x138] sm:$0xff]   ;;  %v13611_v49 = vld [vmem:[#allocation11_spill] sm:$0xff] }
  0xcd   : > { %1067 = vst [vmem:[#allocation2 + $0xa0] sm:$0x1] %v9150_v15  ;;  %v9156_v36 = vpack.c.bf16 %v785_v16, %v785_v16  ;;  %v737_v19 = vmul.f32 %v598_v48, %v413_v46  ;;  %v1819_v51 = vshll.u32 %v11174_v58, 16  ;;  %v428_v1 = vunpack.c.l.bf16 %v13611_v49  ;;  %9481 = vmatprep.subr.bf16.mxu1 %v10564_v26  ;;  %v10571_v58 = vld [vmem:[%s13539_s2 + $0x240] sm:$0xff]   ;;  %v11349_v44 = vld [vmem:[#allocation2 + $0x78] sm:$0xff]  ;;  %v13615_v24 = vld [vmem:[#allocation15_spill] sm:$0xff] }
  0xce   : > { %1070 = vst [vmem:[#allocation2 + $0xb8] sm:$0x1] %v9153_v47  ;;  %v788_v56 = vadd.f32 %v734_v31, %v583_v8  ;;  %v425_v2 = vunpack.c.l.bf16 %v13612_v55  ;;  %v1825_v59 = vshll.u32 %v11176_v3, 16  ;;  %v1829_v63 = vshrl.u32 %v11176_v3, 16  ;;  %v11351_v7 = vld [vmem:[#allocation2 + $0x80] sm:$0xff]  ;;  %v13616_v52 = vld [vmem:[#allocation16_spill] sm:$0xff] }
  0xcf   : > { %9590 = vmatpush3.bf16.msra.mxu0 %v10552_v14  ;;  %v613_v41 = vpop.permute.xlu1 %612  ;;  %1668 = vmatmul.mubr.bf16.gmra.mrb[16].mxu1 %v10536_v23  ;;  %1073 = vst [vmem:[#allocation2 + $0xd0] sm:$0x1] %v9156_v36  ;;  %v791_v27 = vadd.f32 %v737_v19, %v598_v48  ;;  %v8367_v13 = vcombine.low %v11312_v33, %v11314_v22  ;;  %v1818_v6 = vrot.slane %v1816_v34, 4  ;;  %v1821_v61 = vrot.slane %v1819_v51, 5  ;;  %v10545_v30 = vld [vmem:[#allocation2 + $0x138] ss:$8 sps:$4 sm:$0xff]  }
  0xd0   : > { %9591 = vmatprep.subr.bf16.mxu0 %v10559_v12  ;;  %v9159_v18 = vpack.c.bf16 %v788_v56, %v788_v56  ;;  %v740_v45 = vmul.f32 %v613_v41, %v416_v10  ;;  %1675 = vmatprep.mubr.bf16.mxu1 %v10537_v17  ;;  %v628_v21 = vpop.permute.xlu0 %627  ;;  %v8370_v10 = vcombine.high %v11349_v44, %v11351_v7  ;;  %v13613_v12 = vld [vmem:[#allocation13_spill] sm:$0xff]  ;;  %v11358_v15 = vrot.slane %v1825_v59, 5  ;;  %v13614_v48 = vld [vmem:[#allocation14_spill] sm:$0xff] }
  0xd1   : > { %v9162_v25 = vpack.c.bf16 %v791_v27, %v791_v27  ;;  %v743_v62 = vmul.f32 %v628_v21, %v419_v40  ;;  %9482 = vmatpush3.bf16.msra.mxu1 %v10565_v35  ;;  %v431_v47 = vunpack.c.l.bf16 %v13613_v12  ;;  %v1831_v31 = vrot.slane %v1829_v63, 4  ;;  %v13618_v27 = vld [vmem:[#allocation18_spill] sm:$0xff]  ;;  %v10555_v12 = vld [vmem:[#allocation2 + $0x16c] ss:$8 sps:$4 sm:$0xff]  }
  0xd2   : > { %1596 = vmatmul.mubr.bf16.gmra.mrb[12].mxu0 %v8365_v54  ;;  %1076 = vst [vmem:[#allocation2 + $0xe8] sm:$0x1] %v9159_v18  ;;  %v794_v20 = vadd.f32 %v740_v45, %v613_v41  ;;  %9691 = vmatprep.subr.bf16.mxu1 %v10569_v38  ;;  %v11362_v41 = vld [vmem:[#allocation2 + $0x98] sm:$0xff]  ;;  %v429_v23 = vunpack.c.l.bf16 %v13614_v48  ;;  %v434_v40 = vunpack.c.l.bf16 %v13616_v52  ;;  %v1766_v45 = vld [vmem:[#allocation2 + $0x10] sm:$0x11]  ;;  %v1822_v19 = vor.u32 %v1821_v61, %v1818_v6 }
  0xd3   : > { %1603 = vmatprep.mubr.bf16.mxu0 %v8368_v43  ;;  %9592 = vmatpush3.bf16.msra.mxu0 %v10561_v4  ;;  %v643_v50 = vpop.permute.xlu1 %642  ;;  %1079 = vst [vmem:[#allocation2 + $0x100] sm:$0x1] %v9162_v25  ;;  %v797_v8 = vadd.f32 %v743_v62, %v628_v21  ;;  %v10546_v4 = vld [vmem:[#allocation2 + $0x154] ss:$8 sps:$4 sm:$0xff]   ;;  %v8369_v38 = vcombine.low %v11349_v44, %v11351_v7  ;;  %v433_v34 = vunpack.c.l.bf16 %v13618_v27  ;;  %v1840_v59 = vshrl.u32 %v11208_v60, 16 }
  0xd4   : > { %9593 = vmatprep.subr.bf16.mxu0 %v10566_v29  ;;  %v9165_v9 = vpack.c.bf16 %v794_v20, %v794_v20  ;;  %v746_v57 = vmul.f32 %v643_v50, %v422_v53  ;;  %v658_v46 = vpop.permute.xlu0 %657  ;;  %v11360_v43 = vld [vmem:[#allocation2 + $0x90] sm:$0xff]  ;;  %v430_v53 = vunpack.c.l.bf16 %v13615_v24  ;;  %v13617_v18 = vld [vmem:[#allocation17_spill] sm:$0xff]  ;;  %v1832_v51 = vor.u32 %v1831_v31, %v11358_v15 }
  0xd5   : > { %v9168_v56 = vpack.c.bf16 %v797_v8, %v797_v8  ;;  %v749_v54 = vmul.f32 %v658_v46, %v425_v2  ;;  %v432_v36 = vunpack.c.l.bf16 %v13617_v18  ;;  %v8372_v20 = vcombine.high %v11360_v43, %v11362_v41  ;;  %v2715_v48 = vld [vmem:[#allocation2 + $0x10] sm:$0x11] }
  0xd6   : > { %1082 = vst [vmem:[#allocation2 + $0x118] sm:$0x1] %v9165_v9  ;;  %v800_v14 = vadd.f32 %v746_v57, %v643_v50  ;;  %v8371_v55 = vcombine.low %v11360_v43, %v11362_v41  ;;  %v1835_v2 = vshll.u32 %v1766_v45, 16  ;;  %v1823_v9 = vrot.slane %v1822_v19, 4  ;;  %v11380_v45 = vld [vmem:[#allocation2 + $0xa8] sm:$0xff]  ;;  %v11382_v19 = vld [vmem:[#allocation2 + $0xb0] sm:$0xff] }
  0xd7   : > { %9594 = vmatpush3.bf16.msra.mxu0 %v10568_v39  ;;  %v673_v11 = vpop.permute.xlu1 %672  ;;  %1676 = vmatmul.mubr.bf16.gmra.mrb[20].mxu1 %v10545_v30  ;;  %1085 = vst [vmem:[#allocation2 + $0x130] sm:$0x1] %v9168_v56  ;;  %v803_v29 = vadd.f32 %v749_v54, %v658_v46  ;;  %v1843_v25 = vshll.u32 %v11208_v60, 16  ;;  %v1833_v8 = vrot.slane %v1832_v51, 4  ;;  %v1849_v6 = vshll.u32 %v11203_v5, 16 }
  0xd8   : > { %9803 = vmatprep.subr.bf16.mxu0 %v10571_v58  ;;  %v9171_v32 = vpack.c.bf16 %v800_v14, %v800_v14  ;;  %v752_v16 = vmul.f32 %v673_v11, %v428_v1  ;;  %1683 = vmatprep.mubr.bf16.mxu1 %v10546_v4  ;;  %v10473_v35 = vpop.permute.xlu0 %10472  ;;  %v10554_v14 = vld [vmem:[#allocation2 + $0x150] ss:$8 sps:$4 sm:$0xff]   ;;  %v1853_v61 = vshrl.u32 %v11203_v5, 16  ;;  %v1837_v60 = vrot.slane %v1835_v2, 5 }
  0xd9   : > { %v9174_v50 = vpack.c.bf16 %v803_v29, %v803_v29  ;;  %v10475_v49 = vunpack.i.h.bf16 %v10473_v35  ;;  %v10474_v1 = vunpack.i.l.bf16 %v10473_v35  ;;  %v1842_v56 = vrot.slane %v1840_v59, 4  ;;  %v10563_v2 = vld [vmem:[#allocation2 + $0x168] ss:$8 sps:$4 sm:$0xff]  }
  0xda   : > { %1604 = vmatmul.mubr.bf16.gmra.mrb[16].mxu0 %v8367_v13  ;;  %1088 = vst [vmem:[#allocation2 + $0x148] sm:$0x1] %v9171_v32  ;;  %v806_v26 = vadd.f32 %v752_v16, %v673_v11  ;;  %v2713_v32 = vld [vmem:[#allocation2] sm:$0xee]  ;;  %v1845_v24 = vrot.slane %v1843_v25, 5  ;;  %v2817_v27 = vrot.slane %v2715_v48, 5 }
  0xdb   : > { %1611 = vmatprep.mubr.bf16.mxu0 %v8370_v10  ;;  %v688_v17 = vpop.permute.xlu1 %687  ;;  %1091 = vst [vmem:[#allocation2 + $0x160] sm:$0x1] %v9174_v50  ;;  %v754_v58 = vmul.f32 %v10475_v49, %v430_v53  ;;  %v753_v57 = vmul.f32 %v10474_v1, %v429_v23  ;;  %v1769_v23 = vld [vmem:[#allocation2 + $0x28] sm:$0x11]  ;;  %v8487_v35 = vrot.slane %v2713_v32, 9  ;;  %v1864_v50 = vshrl.u32 %v11222_v28, 16 }
  0xdc   : > { %v9177_v39 = vpack.c.bf16 %v806_v26, %v806_v26  ;;  %v755_v21 = vmul.f32 %v688_v17, %v431_v47  ;;  %v10478_v13 = vpop.permute.xlu0 %10477  ;;  %v1855_v26 = vrot.slane %v1853_v61, 4  ;;  %v1873_v25 = vshll.u32 %v11236_v42, 16 }
  0xdd   : > { %v808_v11 = vadd.f32 %v10475_v49, %v754_v58  ;;  %v10480_v30 = vunpack.i.h.bf16 %v10478_v13  ;;  %v807_v47 = vadd.f32 %v10474_v1, %v753_v57  ;;  %v10479_v31 = vunpack.i.l.bf16 %v10478_v13 }
  0xde   : > { %1094 = vst [vmem:[#allocation2 + $0x178] sm:$0x1] %v9177_v39  ;;  %v809_v63 = vadd.f32 %v755_v21, %v688_v17  ;;  %v1846_v39 = vor.u32 %v1845_v24, %v1842_v56  ;;  %v1867_v21 = vshll.u32 %v11222_v28, 16  ;;  %v8374_v1 = vcombine.high %v11380_v45, %v11382_v19 }
  0xdf   : > { %v703_v62 = vpop.permute.xlu1 %702  ;;  %1684 = vmatmul.mubr.bf16.gmra.mrb[24].mxu1 %v10554_v14  ;;  %v9179_v16 = vpack.c.bf16 %v808_v11, %v808_v11  ;;  %v757_v4 = vmul.f32 %v10480_v30, %v433_v34  ;;  %v9178_v53 = vpack.c.bf16 %v807_v47, %v807_v47  ;;  %v756_v52 = vmul.f32 %v10479_v31, %v432_v36 }
  0xe0   : > { %v9180_v10 = vpack.c.bf16 %v809_v63, %v809_v63  ;;  %v758_v46 = vmul.f32 %v703_v62, %v434_v40  ;;  %1691 = vmatprep.mubr.bf16.mxu1 %v10555_v12  ;;  %v1851_v40 = vrot.slane %v1849_v6, 5  ;;  %v1859_v34 = vshll.u32 %v1769_v23, 16  ;;  %v1772_v6 = vld [vmem:[#allocation2 + $0x40] sm:$0x11] }
  0xe1   : > { %1096 = vst [vmem:[#allocation2 + $0x188] sm:$0xf] %v9179_v16  ;;  %v811_v18 = vadd.f32 %v10480_v30, %v757_v4  ;;  %1095 = vst [vmem:[#allocation2 + $0x180] sm:$0xf] %v9178_v53  ;;  %v810_v36 = vadd.f32 %v10479_v31, %v756_v52  ;;  %v1877_v28 = vshrl.u32 %v11236_v42, 16  ;;  %v1869_v13 = vrot.slane %v1867_v21, 5 }
  0xe2   : > { %1612 = vmatmul.mubr.bf16.gmra.mrb[20].mxu0 %v8369_v38  ;;  %1097 = vst [vmem:[#allocation2 + $0x190] sm:$0x1] %v9180_v10  ;;  %v812_v54 = vadd.f32 %v758_v46, %v703_v62  ;;  %v2814_v38 = vrot.slane %v11176_v3, 5  ;;  %v1828_v3 = vsel %vm11386_vm4, %v1823_v9, %v11358_v15  ;;  %v1856_v59 = vor.u32 %v1855_v26, %v1851_v40  ;;  %v10573_v53 = vld [vmem:[%s13539_s2 + $0x1c8] sm:$0xff]  }
  0xe3   : > { %1619 = vmatprep.mubr.bf16.mxu0 %v8372_v20  ;;  %v1838_v20 = vsel %vm11386_vm4, %v1833_v8, %v1837_v60  ;;  %v9182_v51 = vpack.c.bf16 %v811_v18, %v811_v18  ;;  %v9181_v49 = vpack.c.bf16 %v810_v36, %v810_v36  ;;  %v1861_v15 = vrot.slane %v1859_v34, 5  ;;  %v2718_v8 = vld [vmem:[#allocation2 + $0x28] sm:$0x11]  ;;  %v2716_v60 = vld [vmem:[#allocation2 + $0x18] sm:$0xee] }
  0xe4   : > { %v9183_v29 = vpack.c.bf16 %v812_v54, %v812_v54  ;;  %v8440_v63 = vcombine.high %v1828_v3, %v1838_v20  ;;  %v2816_v58 = vrot.slane %v2814_v38, 4  ;;  %v1847_v9 = vrot.slane %v1846_v39, 4  ;;  %v2721_v36 = vld [vmem:[#allocation2 + $0x40] sm:$0x11]  ;;  %v1775_v34 = vld [vmem:[#allocation2 + $0x58] sm:$0x11] }
  0xe5   : > { %1099 = vst [vmem:[#allocation2 + $0x1a0] sm:$0xf] %v9182_v51  ;;  %1098 = vst [vmem:[#allocation2 + $0x198] sm:$0xf] %v9181_v49  ;;  %v1866_v62 = vrot.slane %v1864_v50, 4  ;;  %v1857_v14 = vrot.slane %v1856_v59, 4  ;;  %v2815_v61 = vsel %vm11407_vm5, %v8487_v35, %v2814_v38  ;;  %v8439_v30 = vcombine.low %v1828_v3, %v1838_v20 }
  0xe6   : > { %1100 = vst [vmem:[#allocation2 + $0x1a8] sm:$0x1] %v9183_v29  ;;  %v2821_v10 = vrot.slane %v11203_v5, 5  ;;  %v1875_v11 = vrot.slane %v1873_v25, 5  ;;  %v1879_v46 = vrot.slane %v1877_v28, 4  ;;  %v8373_v12 = vcombine.low %v11380_v45, %v11382_v19  ;;  %v10570_v5 = vld [vmem:[%s13539_s2 + $0x180] sm:$0xff]  }
  0xe7   : > { %1692 = vmatmul.mubr.bf16.gmra.mrb[28].mxu1 %v10563_v2  ;;  %v11423_v31 = vsel %vm11386_vm4, %v1857_v14, %v1861_v15  ;;  %v1852_v32 = vsel %vm11386_vm4, %v1847_v9, %v1851_v40  ;;  %v2824_v56 = vrot.slane %v2718_v8, 5  ;;  %v1870_v16 = vor.u32 %v1869_v13, %v1866_v62  ;;  %v2719_v2 = vld [vmem:[#allocation2 + $0x30] sm:$0xee] }
  0xe8   : > { %2520 = vmatprep.mubr.bf16.mxu1 %v8440_v63  ;;  %v1883_v54 = vshll.u32 %v1772_v6, 16  ;;  %v1888_v4 = vshrl.u32 %v11279_v0, 16  ;;  %v1891_v48 = vshll.u32 %v11279_v0, 16  ;;  %v1897_v23 = vshll.u32 %v11281_v37, 16  ;;  %v10574_v0 = vld [vmem:[%s13539_s2 + $0x188] sm:$0xff]   ;;  %v10578_v8 = vld [vmem:[%s13539_s2 + $0x190] sm:$0xff]  }
  0xe9   : > { %v1901_v24 = vshrl.u32 %v11281_v37, 16  ;;  %v8442_v52 = vcombine.high %v1852_v32, %v11423_v31  ;;  %v8488_v40 = vrot.slane %v2716_v60, 9  ;;  %v2823_v26 = vrot.slane %v2821_v10, 4  ;;  %v2724_v60 = vld [vmem:[#allocation2 + $0x58] sm:$0x11] }
  0xea   : > { %1620 = vmatmul.mubr.bf16.gmra.mrb[24].mxu0 %v8371_v55  ;;  %v11413_v55 = vsel %vm11407_vm5, %v2816_v58, %v2817_v27  ;;  %v1880_v29 = vor.u32 %v1879_v46, %v1875_v11  ;;  %v1871_v35 = vrot.slane %v1870_v16, 4  ;;  %v1885_v38 = vrot.slane %v1883_v54, 5  ;;  %v10577_v27 = vld [vmem:[%s13539_s2 + $0x1d0] sm:$0xff]   ;;  %v10581_v46 = vld [vmem:[%s13539_s2 + $0x1d8] sm:$0xff]  }
  0xeb   : > { %1627 = vmatprep.mubr.bf16.mxu0 %v8374_v1  ;;  %v8536_v47 = vcombine.high %v2815_v61, %v11413_v55  ;;  %v11443_v18 = vsel %vm11407_vm5, %v2823_v26, %v2824_v56  ;;  %v2828_v20 = vrot.slane %v11236_v42, 5  ;;  %v1890_v51 = vrot.slane %v1888_v4, 4  ;;  %v10572_v42 = vld [vmem:[%s13539_s2 + $0x200] sm:$0xff]   ;;  %v1778_v4 = vld [vmem:[#allocation2 + $0x70] sm:$0x11] }
  0xec   : > { %v1893_v39 = vrot.slane %v1891_v48, 5  ;;  %v11449_v50 = vrot.slane %v1897_v23, 5  ;;  %v1903_v21 = vrot.slane %v1901_v24, 4  ;;  %v11453_v49 = vsel %vm11407_vm5, %v8488_v40, %v2821_v10  ;;  %v10582_v48 = vld [vmem:[%s13539_s2 + $0x198] sm:$0xff]   ;;  %v10585_v40 = vld [vmem:[%s13539_s2 + $0x1e0] sm:$0xff]  }
  0xed   : > { %v1881_v1 = vrot.slane %v1880_v29, 4  ;;  %v8535_v3 = vcombine.low %v2815_v61, %v11413_v55  ;;  %v8538_v59 = vcombine.high %v11453_v49, %v11443_v18  ;;  %v8441_v63 = vcombine.low %v1852_v32, %v11423_v31  ;;  %v10575_v55 = vld [vmem:[%s13539_s2 + $0x248] sm:$0xff]   ;;  %v10579_v32 = vld [vmem:[%s13539_s2 + $0x250] sm:$0xff]  }
  0xee   : > { %v11464_v58 = vsel %vm11386_vm4, %v1871_v35, %v1875_v11  ;;  %v2831_v28 = vrot.slane %v2721_v36, 5  ;;  %v1907_v15 = vshll.u32 %v1775_v34, 16  ;;  %v8489_v9 = vrot.slane %v2719_v2, 9  ;;  %v2722_v31 = vld [vmem:[#allocation2 + $0x48] sm:$0xee] }
  0xef   : > { %2521 = vmatmul.mubr.bf16.vlgmr.msra.gmra.mrb[32].mxu1 %v8439_v30  ;;  %v11468_v25 = vsel %vm11386_vm4, %v1881_v1, %v1885_v38  ;;  %v2830_v62 = vrot.slane %v2828_v20, 4  ;;  %v1894_v13 = vor.u32 %v1893_v39, %v1890_v51  ;;  %v1904_v14 = vor.u32 %v1903_v21, %v11449_v50  ;;  %v10586_v21 = vld [vmem:[%s13539_s2 + $0x1a0] sm:$0xff]  }
  0xf0   : > { %2528 = vmatprep.mubr.bf16.mxu1 %v8442_v52  ;;  %9692 = vmatpush3.bf16.msra.mxu1 %v10570_v5  ;;  %v1912_v6 = vshrl.u32 %v11312_v33, 16  ;;  %v1915_v61 = vshll.u32 %v11312_v33, 16  ;;  %v1921_v10 = vshll.u32 %v11314_v22, 16  ;;  %v1925_v11 = vshrl.u32 %v11314_v22, 16 }
  0xf1   : > { %9693 = vmatprep.subr.bf16.mxu1 %v10573_v53  ;;  %v8444_v30 = vcombine.high %v11464_v58, %v11468_v25  ;;  %v11491_v33 = vsel %vm11407_vm5, %v2830_v62, %v2831_v28  ;;  %v11498_v5 = vsel %vm11407_vm5, %v8489_v9, %v2828_v20  ;;  %v1895_v56 = vrot.slane %v1894_v13, 4  ;;  %v10587_v28 = vld [vmem:[%s13539_s2 + $0x260] sm:$0xff]   ;;  %v1781_v9 = vld [vmem:[#allocation2 + $0x88] sm:$0x11] }
  0xf2   : > { %1628 = vmatmul.mubr.bf16.gmra.mrb[28].mxu0 %v8373_v12  ;;  %v10576_v12 = vld [vmem:[%s13539_s2 + $0x208] sm:$0xff]   ;;  %v1905_v16 = vrot.slane %v1904_v14, 4  ;;  %v2835_v54 = vrot.slane %v11281_v37, 5  ;;  %v1914_v23 = vrot.slane %v1912_v6, 4  ;;  %v1917_v24 = vrot.slane %v1915_v61, 5 }
  0xf3   : > { %3245 = vmatprep.mubr.bf16.mxu0 %v8536_v47  ;;  %v1909_v47 = vrot.slane %v1907_v15, 5  ;;  %v11504_v53 = vrot.slane %v1921_v10, 5  ;;  %v1927_v52 = vrot.slane %v1925_v11, 4  ;;  %v8537_v26 = vcombine.low %v11453_v49, %v11443_v18  ;;  %v10583_v18 = vld [vmem:[%s13539_s2 + $0x258] sm:$0xff]   ;;  %v10590_v14 = vld [vmem:[%s13539_s2 + $0x1a8] sm:$0xff]   ;;  %v10593_v11 = vld [vmem:[%s13539_s2 + $0x1f0] sm:$0xff]  }
  0xf4   : > { %9694 = vmatpush3.bf16.msra.mxu1 %v10574_v0  ;;  %v8540_v37 = vcombine.high %v11498_v5, %v11491_v33  ;;  %v8443_v29 = vcombine.low %v11464_v58, %v11468_v25  ;;  %v10580_v0 = vld [vmem:[%s13539_s2 + $0x210] sm:$0xff]   ;;  %v8490_v38 = vrot.slane %v2722_v31, 9  ;;  %v2838_v36 = vrot.slane %v2724_v60, 5  ;;  %v2725_v58 = vld [vmem:[#allocation2 + $0x60] sm:$0xee] }
  0xf5   : > { %9695 = vmatprep.subr.bf16.mxu1 %v10577_v27  ;;  %v11520_v35 = vsel %vm11386_vm4, %v1905_v16, %v1909_v47  ;;  %v1931_v20 = vshll.u32 %v1778_v4, 16  ;;  %v11528_v27 = vsel %vm11386_vm4, %v1895_v56, %v11449_v50  ;;  %v2837_v34 = vrot.slane %v2835_v54, 4  ;;  %v10589_v50 = vld [vmem:[%s13539_s2 + $0x1e8] sm:$0xff]   ;;  %v2727_v25 = vld [vmem:[#allocation2 + $0x70] sm:$0x11] }
  0xf6   : > { %v1936_v51 = vshrl.u32 %v11349_v44, 16  ;;  %v1939_v39 = vshll.u32 %v11349_v44, 16  ;;  %v1918_v49 = vor.u32 %v1917_v24, %v1914_v23  ;;  %v1928_v1 = vor.u32 %v1927_v52, %v11504_v53  ;;  %v10594_v4 = vld [vmem:[%s13539_s2 + $0x1b0] sm:$0xff]   ;;  %v10597_v52 = vld [vmem:[%s13539_s2 + $0x1f8] sm:$0xff]  }
  0xf7   : > { %2529 = vmatmul.mubr.bf16.gmra.mrb[36].mxu1 %v8441_v63  ;;  %v1945_v2 = vshll.u32 %v11351_v7, 16  ;;  %v8446_v44 = vcombine.high %v11528_v27, %v11520_v35  ;;  %v1933_v63 = vrot.slane %v1931_v20, 5  ;;  %v11555_v15 = vsel %vm11407_vm5, %v8490_v38, %v2835_v54  ;;  %v2730_v20 = vld [vmem:[#allocation2 + $0x88] sm:$0x11] }
  0xf8   : > { %2536 = vmatprep.mubr.bf16.mxu1 %v8444_v30  ;;  %9696 = vmatpush3.bf16.msra.mxu1 %v10578_v8  ;;  %v1938_v62 = vrot.slane %v1936_v51, 4  ;;  %v1941_v13 = vrot.slane %v1939_v39, 5  ;;  %v1919_v8 = vrot.slane %v1918_v49, 4  ;;  %v1929_v6 = vrot.slane %v1928_v1, 4  ;;  %v10604_v49 = vld [vmem:[%s13539_s2 + $0x2c0] sm:$0xff]  }
  0xf9   : > { %9697 = vmatprep.subr.bf16.mxu1 %v10581_v46  ;;  %v11561_v61 = vrot.slane %v1945_v2, 5  ;;  %v2845_v30 = vrot.slane %v2727_v25, 5  ;;  %v1955_v31 = vshll.u32 %v1781_v9, 16  ;;  %v1960_v60 = vshrl.u32 %v11360_v43, 16 }
  0xfa   : > { %3246 = vmatmul.mubr.bf16.vlgmr.msra.gmra.mrb[32].mxu0 %v8535_v3  ;;  %v1949_v3 = vshrl.u32 %v11351_v7, 16  ;;  %v11575_v47 = vsel %vm11386_vm4, %v1929_v6, %v1933_v63  ;;  %v8491_v56 = vrot.slane %v2725_v58, 9  ;;  %v1942_v54 = vor.u32 %v1941_v13, %v1938_v62  ;;  %v2731_v6 = vld [vmem:[#allocation2 + $0x90] sm:$0xee] }
  0xfb   : > { %9804 = vmatpush3.bf16.msra.mxu0 %v10572_v42  ;;  %3253 = vmatprep.mubr.bf16.mxu0 %v8538_v59  ;;  %v10584_v42 = vld [vmem:[%s13539_s2 + $0x218] sm:$0xff]   ;;  %v11548_v59 = vsel %vm11407_vm5, %v2837_v34, %v2838_v36  ;;  %v1969_v23 = vshll.u32 %v11362_v41, 16  ;;  %v1973_v24 = vshrl.u32 %v11362_v41, 16  ;;  %v2849_v51 = vrot.slane %v11351_v7, 5  ;;  %v10596_v7 = vld [vmem:[%s13539_s2 + $0x230] sm:$0xff]  }
  0xfc   : > { %9805 = vmatprep.subr.bf16.mxu0 %v10575_v55  ;;  %9698 = vmatpush3.bf16.msra.mxu1 %v10582_v48  ;;  %v2842_v55 = vrot.slane %v11314_v22, 5  ;;  %v1951_v10 = vrot.slane %v1949_v3, 4  ;;  %v8539_v22 = vcombine.low %v11498_v5, %v11491_v33  ;;  %v8542_v46 = vcombine.high %v11555_v15, %v11548_v59  ;;  %v10591_v33 = vld [vmem:[%s13539_s2 + $0x268] sm:$0xff]  }
  0xfd   : > { %9699 = vmatprep.subr.bf16.mxu1 %v10585_v40  ;;  %v8445_v5 = vcombine.low %v11528_v27, %v11520_v35  ;;  %v10595_v35 = vld [vmem:[%s13539_s2 + $0x270] sm:$0xff]   ;;  %v1943_v36 = vrot.slane %v1942_v54, 4  ;;  %v10598_v27 = vld [vmem:[%s13539_s2 + $0x1b8] sm:$0xff]   ;;  %v1971_v39 = vrot.slane %v1969_v23, 5  ;;  %v8541_v1 = vcombine.low %v11555_v15, %v11548_v59  ;;  %v1788_v54 = vld [vmem:[#allocation2 + $0xc0] sm:$0xff] }
  0xfe   : > { %v2844_v16 = vrot.slane %v2842_v55, 4  ;;  %v1952_v48 = vor.u32 %v1951_v10, %v11561_v61  ;;  %v11609_v38 = vsel %vm11407_vm5, %v8491_v56, %v2842_v55  ;;  %v10599_v59 = vld [vmem:[%s13539_s2 + $0x278] sm:$0xff]   ;;  %v1984_v25 = vshrl.u32 %v11380_v45, 16 }
  0xff   : > { %9806 = vmatpush3.bf16.msra.mxu0 %v10576_v12  ;;  %2537 = vmatmul.mubr.bf16.gmra.mrb[40].mxu1 %v8443_v29  ;;  %v10588_v12 = vld [vmem:[%s13539_s2 + $0x220] sm:$0xff]   ;;  %v1962_v29 = vrot.slane %v1960_v60, 4  ;;  %v1993_v15 = vshll.u32 %v11382_v19, 16  ;;  %v1997_v55 = vshrl.u32 %v11382_v19, 16  ;;  %v1948_v9 = vsel %vm11386_vm4, %v1943_v36, %v11561_v61 }
 0x100   : > { %9807 = vmatprep.subr.bf16.mxu0 %v10579_v32  ;;  %2544 = vmatprep.mubr.bf16.mxu1 %v8446_v44  ;;  %v1963_v32 = vshll.u32 %v11360_v43, 16  ;;  %v1924_v43 = vsel %vm11386_vm4, %v1919_v8, %v11504_v53  ;;  %v11602_v53 = vsel %vm11407_vm5, %v2844_v16, %v2845_v30  ;;  %v1953_v34 = vrot.slane %v1952_v48, 4  ;;  %v2733_v61 = vld [vmem:[#allocation2 + $0xa0] sm:$0x11] }
 0x101   : > { %9700 = vmatpush3.bf16.msra.mxu1 %v10586_v21  ;;  %v8448_v40 = vcombine.high %v1924_v43, %v11575_v47  ;;  %v1975_v21 = vrot.slane %v1973_v24, 4  ;;  %v8544_v2 = vcombine.high %v11609_v38, %v11602_v53  ;;  %v8447_v3 = vcombine.low %v1924_v43, %v11575_v47  ;;  %v10606_v30 = vld [vmem:[%s13539_s2 + $0x340] sm:$0xff]  }
 0x102   : > { %3254 = vmatmul.mubr.bf16.gmra.mrb[36].mxu0 %v8537_v26  ;;  %9701 = vmatprep.subr.bf16.mxu1 %v10589_v50  ;;  %v10592_v26 = vld [vmem:[%s13539_s2 + $0x228] sm:$0xff]   ;;  %v2728_v50 = vld [vmem:[#allocation2 + $0x78] sm:$0xee]  ;;  %v2851_v13 = vrot.slane %v2849_v51, 4  ;;  %v1986_v47 = vrot.slane %v1984_v25, 4  ;;  %v1995_v60 = vrot.slane %v1993_v15, 5  ;;  %v8543_v56 = vcombine.low %v11609_v38, %v11602_v53 }
 0x103   : > { %3261 = vmatprep.mubr.bf16.mxu0 %v8540_v37  ;;  %9808 = vmatpush3.bf16.msra.mxu0 %v10580_v0  ;;  %v1957_v37 = vrot.slane %v1955_v31, 5  ;;  %v1965_v0 = vrot.slane %v1963_v32, 5  ;;  %v8492_v62 = vrot.slane %v2728_v50, 9  ;;  %v1999_v32 = vrot.slane %v1997_v55, 4 }
 0x104   : > { %9809 = vmatprep.subr.bf16.mxu0 %v10583_v18  ;;  %v1784_v18 = vld [vmem:[#allocation2 + $0xa0] sm:$0x11]  ;;  %v8493_v16 = vrot.slane %v2731_v6, 9  ;;  %v2859_v23 = vrot.slane %v2733_v61, 5 }
 0x105   : > { %9702 = vmatpush3.bf16.msra.mxu1 %v10590_v14  ;;  %v1958_v44 = vsel %vm11386_vm4, %v1953_v34, %v1957_v37  ;;  %v1966_v63 = vor.u32 %v1965_v0, %v1962_v29  ;;  %v1979_v58 = vshll.u32 %v1784_v18, 16  ;;  %v1976_v14 = vor.u32 %v1975_v21, %v1971_v39  ;;  %v2734_v18 = vld [vmem:[#allocation2 + $0xa8] sm:$0xee] }
 0x106   : > { %9703 = vmatprep.subr.bf16.mxu1 %v10593_v11  ;;  %v8450_v8 = vcombine.high %v1948_v9, %v1958_v44  ;;  %v8449_v43 = vcombine.low %v1948_v9, %v1958_v44  ;;  %v2000_v53 = vor.u32 %v1999_v32, %v1995_v60  ;;  %v2008_v37 = vshrl.u32 %v1788_v54, 16 }
 0x107   : > { %9810 = vmatpush3.bf16.msra.mxu0 %v10584_v42  ;;  %2545 = vmatmul.mubr.bf16.gmra.mrb[44].mxu1 %v8445_v5  ;;  %v2852_v42 = vrot.slane %v2730_v20, 5  ;;  %v1967_v11 = vrot.slane %v1966_v63, 4  ;;  %v1977_v5 = vrot.slane %v1976_v14, 4  ;;  %v2011_v29 = vshll.u32 %v1788_v54, 16 }
 0x108   : > { %9811 = vmatprep.subr.bf16.mxu0 %v10587_v28  ;;  %2552 = vmatprep.mubr.bf16.mxu1 %v8448_v40  ;;  %v1987_v28 = vshll.u32 %v11380_v45, 16  ;;  %v10600_v45 = vld [vmem:[%s13539_s2 + $0x238] sm:$0xff]   ;;  %v2863_v21 = vrot.slane %v11382_v19, 5  ;;  %v8494_v25 = vrot.slane %v2734_v18, 9 }
 0x109   : > { %9704 = vmatpush3.bf16.msra.mxu1 %v10594_v4  ;;  %v11643_v10 = vsel %vm11407_vm5, %v2851_v13, %v2852_v42  ;;  %v11654_v4 = vld [vmem:[#allocation2 + $0xc8] sm:$0xff] }
 0x10a   : > { %3262 = vmatmul.mubr.bf16.gmra.mrb[40].mxu0 %v8539_v22  ;;  %9705 = vmatprep.subr.bf16.mxu1 %v10597_v52  ;;  %v1981_v22 = vrot.slane %v1979_v58, 5  ;;  %v1989_v31 = vrot.slane %v1987_v28, 5  ;;  %v1972_v52 = vsel %vm11386_vm4, %v1967_v11, %v1971_v39  ;;  %v2017_v0 = vshll.u32 %v11654_v4, 16  ;;  %v11668_v58 = vld [vmem:[#allocation2 + $0xe0] sm:$0xff] }
 0x10b   : > { %3269 = vmatprep.mubr.bf16.mxu0 %v8542_v46  ;;  %9812 = vmatpush3.bf16.msra.mxu0 %v10588_v12  ;;  %v2856_v46 = vrot.slane %v11362_v41, 5  ;;  %v1787_v12 = vld [vmem:[#allocation2 + $0xb8] sm:$0x11]  ;;  %v2001_v39 = vrot.slane %v2000_v53, 4  ;;  %v2865_v55 = vrot.slane %v2863_v21, 4  ;;  %v2045_v6 = vshrl.u32 %v11668_v58, 16 }
 0x10c   : > { %9813 = vmatprep.subr.bf16.mxu0 %v10591_v33  ;;  %v2850_v33 = vsel %vm11407_vm5, %v8492_v62, %v2849_v51  ;;  %v1982_v48 = vsel %vm11386_vm4, %v1977_v5, %v1981_v22  ;;  %v2003_v24 = vshll.u32 %v1787_v12, 16  ;;  %v2739_v22 = vld [vmem:[#allocation2 + $0xd0] sm:$0x11]  ;;  %v2864_v61 = vsel %vm11407_vm5, %v8494_v25, %v2863_v21  ;;  %v1796_v21 = vld [vmem:[#allocation2 + $0x100] sm:$0x11] }
 0x10d   : > { %9706 = vmatpush3.bf16.msra.mxu1 %v10598_v27  ;;  %v8546_v41 = vcombine.high %v2850_v33, %v11643_v10  ;;  %v2858_v40 = vrot.slane %v2856_v46, 4  ;;  %v8452_v38 = vcombine.high %v1972_v52, %v1982_v48  ;;  %v2736_v27 = vld [vmem:[#allocation2 + $0xb8] sm:$0x11]  ;;  %v2857_v34 = vsel %vm11407_vm5, %v8493_v16, %v2856_v46 }
 0x10e   : > { %9915 = vmatprep.subr.bf16.mxu1 %v10604_v49  ;;  %v2005_v20 = vrot.slane %v2003_v24, 5  ;;  %v1790_v49 = vld [vmem:[#allocation2 + $0xd0] sm:$0x11]  ;;  %v8545_v44 = vcombine.low %v2850_v33, %v11643_v10  ;;  %v8451_v63 = vcombine.low %v1972_v52, %v1982_v48  ;;  %v2866_v28 = vrot.slane %v2736_v27, 5  ;;  %v2737_v33 = vld [vmem:[#allocation2 + $0xc0] sm:$0xee] }
 0x10f   : > { %9814 = vmatpush3.bf16.msra.mxu0 %v10592_v26  ;;  %2553 = vmatmul.mubr.bf16.gmra.mrb[48].mxu1 %v8447_v3  ;;  %v1990_v26 = vor.u32 %v1989_v31, %v1986_v47  ;;  %v2860_v36 = vsel %vm11407_vm5, %v2858_v40, %v2859_v23  ;;  %v2019_v3 = vrot.slane %v2017_v0, 5  ;;  %v2027_v15 = vshll.u32 %v1790_v49, 16  ;;  %v1794_v31 = vld [vmem:[#allocation2 + $0xf0] sm:$0xff] }
 0x110   : > { %9815 = vmatprep.subr.bf16.mxu0 %v10595_v35  ;;  %2560 = vmatprep.mubr.bf16.mxu1 %v8450_v8  ;;  %v2021_v35 = vshrl.u32 %v11654_v4, 16  ;;  %v8548_v42 = vcombine.high %v2857_v34, %v2860_v36  ;;  %v2041_v8 = vshll.u32 %v11668_v58, 16  ;;  %v2867_v10 = vsel %vm11407_vm5, %v2865_v55, %v2866_v28 }
 0x111   : > { %v1991_v51 = vrot.slane %v1990_v26, 4  ;;  %v2029_v11 = vrot.slane %v2027_v15, 5  ;;  %v2870_v46 = vrot.slane %v11654_v4, 5  ;;  %v8550_v16 = vcombine.high %v2864_v61, %v2867_v10 }
 0x112   : > { %3270 = vmatmul.mubr.bf16.gmra.mrb[44].mxu0 %v8541_v1  ;;  %v2010_v1 = vrot.slane %v2008_v37, 4  ;;  %v2023_v50 = vrot.slane %v2021_v35, 4  ;;  %v2043_v5 = vrot.slane %v2041_v8, 5  ;;  %v2873_v54 = vrot.slane %v2739_v22, 5 }
 0x113   : > { %3277 = vmatprep.mubr.bf16.mxu0 %v8544_v2  ;;  %9816 = vmatpush3.bf16.msra.mxu0 %v10596_v7  ;;  %v2013_v2 = vrot.slane %v2011_v29, 5  ;;  %v1791_v7 = vld [vmem:[#allocation2 + $0xd8] sm:$0xff]  ;;  %v1996_v19 = vsel %vm11386_vm4, %v1991_v51, %v1995_v60  ;;  %v2056_v24 = vshrl.u32 %v1794_v31, 16  ;;  %v2059_v4 = vshll.u32 %v1794_v31, 16 }
 0x114   : > { %9817 = vmatprep.subr.bf16.mxu0 %v10599_v59  ;;  %v2006_v59 = vsel %vm11386_vm4, %v2001_v39, %v2005_v20  ;;  %v2032_v9 = vshrl.u32 %v1791_v7, 16  ;;  %v2035_v62 = vshll.u32 %v1791_v7, 16  ;;  %v2024_v14 = vor.u32 %v2023_v50, %v2019_v3  ;;  %v2742_v39 = vld [vmem:[#allocation2 + $0xe8] sm:$0x11]  ;;  %v11694_v7 = vld [vmem:[#allocation2 + $0x110] sm:$0xff] }
 0x115   : > { %v2014_v13 = vor.u32 %v2013_v2, %v2010_v1  ;;  %v8453_v52 = vcombine.low %v1996_v19, %v2006_v59  ;;  %v8495_v40 = vrot.slane %v2737_v33, 9  ;;  %v2872_v26 = vrot.slane %v2870_v46, 4  ;;  %v1797_v50 = vld [vmem:[#allocation2 + $0x108] sm:$0xff] }
 0x116   : > { %v2034_v12 = vrot.slane %v2032_v9, 4  ;;  %v2037_v47 = vrot.slane %v2035_v62, 5  ;;  %v2025_v32 = vrot.slane %v2024_v14, 4  ;;  %v2058_v18 = vrot.slane %v2056_v24, 4 }
 0x117   : > { %9818 = vmatpush3.bf16.msra.mxu0 %v10600_v45  ;;  %2561 = vmatmul.mubr.bf16.gmra.mrb[52].mxu1 %v8449_v43  ;;  %v8454_v45 = vcombine.high %v1996_v19, %v2006_v59  ;;  %v2015_v60 = vrot.slane %v2014_v13, 4  ;;  %v11681_v43 = vld [vmem:[#allocation2 + $0xf8] sm:$0xff]  ;;  %v2061_v27 = vrot.slane %v2059_v4, 5  ;;  %v2877_v1 = vrot.slane %v11668_v58, 5 }
 0x118   : > { %10027 = vmatprep.subr.bf16.mxu0 %v10606_v30  ;;  %2568 = vmatprep.mubr.bf16.mxu1 %v8452_v38  ;;  %v1793_v30 = vld [vmem:[#allocation2 + $0xe8] sm:$0x11]  ;;  %v2030_v48 = vsel %vm11386_vm4, %v2025_v32, %v2029_v11  ;;  %v2038_v53 = vor.u32 %v2037_v47, %v2034_v12  ;;  %v2065_v0 = vshll.u32 %v11681_v43, 16  ;;  %v2069_v35 = vshrl.u32 %v11681_v43, 16  ;;  %v2740_v59 = vld [vmem:[#allocation2 + $0xd8] sm:$0xee] }
 0x119   : > { %v2051_v23 = vshll.u32 %v1793_v30, 16  ;;  %v2020_v37 = vsel %vm11386_vm4, %v2015_v60, %v2019_v3  ;;  %v2880_v25 = vrot.slane %v2742_v39, 5  ;;  %v2062_v28 = vor.u32 %v2061_v27, %v2058_v18  ;;  %v2745_v60 = vld [vmem:[#allocation2 + $0x100] sm:$0x11]  ;;  %v1802_v39 = vld [vmem:[#allocation2 + $0x130] sm:$0x11] }
 0x11a   : > { %3278 = vmatmul.mubr.bf16.gmra.mrb[48].mxu0 %v8543_v56  ;;  %v2047_v56 = vrot.slane %v2045_v6, 4  ;;  %v8456_v38 = vcombine.high %v2020_v37, %v2030_v48  ;;  %v2039_v51 = vrot.slane %v2038_v53, 4  ;;  %v2067_v2 = vrot.slane %v2065_v0, 5 }
 0x11b   : > { %3285 = vmatprep.mubr.bf16.mxu0 %v8546_v41  ;;  %v8547_v41 = vcombine.low %v2857_v34, %v2860_v36  ;;  %v2874_v36 = vsel %vm11407_vm5, %v2872_v26, %v2873_v54  ;;  %v2053_v20 = vrot.slane %v2051_v23, 5  ;;  %v2871_v34 = vsel %vm11407_vm5, %v8495_v40, %v2870_v46  ;;  %v2743_v23 = vld [vmem:[#allocation2 + $0xf0] sm:$0xee] }
 0x11c   : > { %v2048_v29 = vor.u32 %v2047_v56, %v2043_v5  ;;  %v2071_v3 = vrot.slane %v2069_v35, 4  ;;  %v2075_v15 = vshll.u32 %v1796_v21, 16  ;;  %v2080_v19 = vshrl.u32 %v1797_v50, 16  ;;  %v1800_v56 = vld [vmem:[#allocation2 + $0x120] sm:$0xff]  ;;  %v1803_v21 = vld [vmem:[#allocation2 + $0x138] sm:$0xff] }
 0x11d   : > { %v2083_v55 = vshll.u32 %v1797_v50, 16  ;;  %v2089_v9 = vshll.u32 %v11694_v7, 16  ;;  %v2093_v58 = vshrl.u32 %v11694_v7, 16  ;;  %v8455_v62 = vcombine.low %v2020_v37, %v2030_v48 }
 0x11e   : > { %v2049_v49 = vrot.slane %v2048_v29, 4  ;;  %v2044_v13 = vsel %vm11386_vm4, %v2039_v51, %v2043_v5  ;;  %v2879_v14 = vrot.slane %v2877_v1, 4  ;;  %v2072_v8 = vor.u32 %v2071_v3, %v2067_v2 }
 0x11f   : > { %2569 = vmatmul.mubr.bf16.gmra.mrb[56].mxu1 %v8451_v63  ;;  %v2063_v11 = vrot.slane %v2062_v28, 4  ;;  %v2077_v22 = vrot.slane %v2075_v15, 5  ;;  %v2082_v46 = vrot.slane %v2080_v19, 4  ;;  %v2085_v30 = vrot.slane %v2083_v55, 5 }
 0x120   : > { %2576 = vmatprep.mubr.bf16.mxu1 %v8454_v45  ;;  %v2054_v63 = vsel %vm11386_vm4, %v2049_v49, %v2053_v20  ;;  %v8496_v45 = vrot.slane %v2740_v59, 9  ;;  %v2091_v12 = vrot.slane %v2089_v9, 5  ;;  %v2095_v47 = vrot.slane %v2093_v58, 4  ;;  %v2748_v20 = vld [vmem:[#allocation2 + $0x118] sm:$0x11] }
 0x121   : > { %v8458_v6 = vcombine.high %v2044_v13, %v2054_v63  ;;  %v2073_v31 = vrot.slane %v2072_v8, 4  ;;  %v8551_v32 = vcombine.low %v2871_v34, %v2874_v36  ;;  %v2884_v5 = vrot.slane %v11681_v43, 5  ;;  %v2746_v49 = vld [vmem:[#allocation2 + $0x108] sm:$0xee] }
 0x122   : > { %3286 = vmatmul.mubr.bf16.gmra.mrb[52].mxu0 %v8545_v44  ;;  %v8549_v44 = vcombine.low %v2864_v61, %v2867_v10  ;;  %v2881_v10 = vsel %vm11407_vm5, %v2879_v14, %v2880_v25  ;;  %v1799_v61 = vld [vmem:[#allocation2 + $0x118] sm:$0x11]  ;;  %v2878_v33 = vsel %vm11407_vm5, %v8496_v45, %v2877_v1  ;;  %v8457_v54 = vcombine.low %v2044_v13, %v2054_v63  ;;  %v11720_v25 = vld [vmem:[#allocation2 + $0x140] sm:$0xff] }
 0x123   : > { %3293 = vmatprep.mubr.bf16.mxu0 %v8548_v42  ;;  %v8552_v42 = vcombine.high %v2871_v34, %v2874_v36  ;;  %v2078_v48 = vsel %vm11386_vm4, %v2073_v31, %v2077_v22  ;;  %v2099_v24 = vshll.u32 %v1799_v61, 16  ;;  %v2068_v4 = vsel %vm11386_vm4, %v2063_v11, %v2067_v2 }
 0x124   : > { %v2086_v40 = vor.u32 %v2085_v30, %v2082_v46  ;;  %v2096_v26 = vor.u32 %v2095_v47, %v2091_v12  ;;  %v2104_v53 = vshrl.u32 %v1800_v56, 16  ;;  %v2107_v37 = vshll.u32 %v1800_v56, 16  ;;  %v2751_v30 = vld [vmem:[#allocation2 + $0x130] sm:$0x11]  ;;  %v1805_v47 = vld [vmem:[#allocation2 + $0x148] sm:$0x11] }
 0x125   : > { %v8460_v0 = vcombine.high %v2068_v4, %v2078_v48  ;;  %v8497_v35 = vrot.slane %v2743_v23, 9  ;;  %v2101_v36 = vrot.slane %v2099_v24, 5  ;;  %v2891_v51 = vrot.slane %v11694_v7, 5  ;;  %v11733_v56 = vld [vmem:[#allocation2 + $0x158] sm:$0xff]  ;;  %v2749_v23 = vld [vmem:[#allocation2 + $0x120] sm:$0xee] }
 0x126   : > { %v2087_v27 = vrot.slane %v2086_v40, 4  ;;  %v2097_v34 = vrot.slane %v2096_v26, 4  ;;  %v2106_v1 = vrot.slane %v2104_v53, 4  ;;  %v2109_v2 = vrot.slane %v2107_v37, 5 }
 0x127   : > { %2577 = vmatmul.mubr.bf16.gmra.mrb[60].mxu1 %v8453_v52  ;;  %v2887_v52 = vrot.slane %v2745_v60, 5  ;;  %v8459_v63 = vcombine.low %v2068_v4, %v2078_v48  ;;  %v2894_v59 = vrot.slane %v2748_v20, 5  ;;  %v2123_v15 = vshll.u32 %v1802_v39, 16 }
 0x128   : > { %2584 = vmatprep.mubr.bf16.mxu1 %v8456_v38  ;;  %v2886_v38 = vrot.slane %v2884_v5, 4  ;;  %v2102_v28 = vsel %vm11386_vm4, %v2097_v34, %v2101_v36  ;;  %v2128_v7 = vshrl.u32 %v1803_v21, 16  ;;  %v2131_v19 = vshll.u32 %v1803_v21, 16 }
 0x129   : > { %v2092_v9 = vsel %vm11386_vm4, %v2087_v27, %v2091_v12  ;;  %v8498_v58 = vrot.slane %v2746_v49, 9  ;;  %v2110_v13 = vor.u32 %v2109_v2, %v2106_v1  ;;  %v2137_v8 = vshll.u32 %v11720_v25, 16  ;;  %v1808_v27 = vld [vmem:[#allocation2 + $0x160] sm:$0x11]  ;;  %v2754_v1 = vld [vmem:[#allocation2 + $0x148] sm:$0x11] }
 0x12a   : > { %3294 = vmatmul.mubr.bf16.gmra.mrb[56].mxu0 %v8547_v41  ;;  %v11707_v41 = vld [vmem:[#allocation2 + $0x128] sm:$0xff]  ;;  %v2888_v18 = vsel %vm11407_vm5, %v2886_v38, %v2887_v52  ;;  %v8462_v45 = vcombine.high %v2092_v9, %v2102_v28  ;;  %v2125_v11 = vrot.slane %v2123_v15, 5  ;;  %v2130_v22 = vrot.slane %v2128_v7, 4 }
 0x12b   : > { %3301 = vmatprep.mubr.bf16.mxu0 %v8550_v16  ;;  %v8554_v16 = vcombine.high %v2878_v33, %v2881_v10  ;;  %v2113_v43 = vshll.u32 %v11707_v41, 16  ;;  %v2117_v29 = vshrl.u32 %v11707_v41, 16  ;;  %v2133_v61 = vrot.slane %v2131_v19, 5  ;;  %v2752_v19 = vld [vmem:[#allocation2 + $0x138] sm:$0xee] }
 0x12c   : > { %v2892_v46 = vsel %vm11407_vm5, %v8498_v58, %v2891_v51  ;;  %v2898_v12 = vrot.slane %v11707_v41, 5  ;;  %v2111_v31 = vrot.slane %v2110_v13, 4  ;;  %v2901_v24 = vrot.slane %v2751_v30, 5 }
 0x12d   : > { %v2115_v3 = vrot.slane %v2113_v43, 5  ;;  %v2119_v50 = vrot.slane %v2117_v29, 4  ;;  %v2134_v4 = vor.u32 %v2133_v61, %v2130_v22  ;;  %v2147_v52 = vshll.u32 %v1805_v47, 16 }
 0x12e   : > { %v2161_v41 = vshll.u32 %v11733_v56, 16  ;;  %v2165_v53 = vshrl.u32 %v11733_v56, 16  ;;  %v8461_v37 = vcombine.low %v2092_v9, %v2102_v28  ;;  %v2900_v29 = vrot.slane %v2898_v12, 4 }
 0x12f   : > { %2585 = vmatmul.mubr.bf16.gmra.mrb[64].mxu1 %v8455_v62  ;;  %v2893_v62 = vrot.slane %v2891_v51, 4  ;;  %v2120_v14 = vor.u32 %v2119_v50, %v2115_v3  ;;  %v2116_v43 = vsel %vm11386_vm4, %v2111_v31, %v2115_v3  ;;  %v8499_v38 = vrot.slane %v2749_v23, 9 }
 0x130   : > { %2592 = vmatprep.mubr.bf16.mxu1 %v8458_v6  ;;  %v2141_v6 = vshrl.u32 %v11720_v25, 16  ;;  %v2902_v36 = vsel %vm11407_vm5, %v2900_v29, %v2901_v24  ;;  %v2135_v20 = vrot.slane %v2134_v4, 4  ;;  %v2163_v39 = vrot.slane %v2161_v41, 5  ;;  %v11763_v29 = vld [vmem:[#allocation2 + $0x18] sm:$0xff] }
 0x131   : > { %v2121_v60 = vrot.slane %v2120_v14, 4  ;;  %v2167_v21 = vrot.slane %v2165_v53, 4  ;;  %v2899_v3 = vsel %vm11407_vm5, %v8499_v38, %v2898_v12  ;;  %v2905_v50 = vrot.slane %v11720_v25, 5 }
 0x132   : > { %3302 = vmatmul.mubr.bf16.gmra.mrb[60].mxu0 %v8549_v44  ;;  %v8553_v44 = vcombine.low %v2878_v33, %v2881_v10  ;;  %v2895_v10 = vsel %vm11407_vm5, %v2893_v62, %v2894_v59  ;;  %v2143_v33 = vrot.slane %v2141_v6, 4  ;;  %v2171_v15 = vshll.u32 %v1808_v27, 16 }
 0x133   : > { %3309 = vmatprep.mubr.bf16.mxu0 %v8552_v42  ;;  %v2885_v42 = vsel %vm11407_vm5, %v8497_v35, %v2884_v5  ;;  %v1806_v5 = vld [vmem:[#allocation2 + $0x150] sm:$0xff]  ;;  %v2126_v48 = vsel %vm11386_vm4, %v2121_v60, %v2125_v11  ;;  %v8557_v2 = vcombine.low %v2892_v46, %v2895_v10  ;;  %v2168_v58 = vor.u32 %v2167_v21, %v2163_v39 }
 0x134   : > { %v8556_v55 = vcombine.high %v2885_v42, %v2888_v18  ;;  %v2152_v40 = vshrl.u32 %v1806_v5, 16  ;;  %v2155_v26 = vshll.u32 %v1806_v5, 16  ;;  %v8464_v35 = vcombine.high %v2116_v43, %v2126_v48 }
 0x135   : > { %v8463_v59 = vcombine.low %v2116_v43, %v2126_v48  ;;  %v2907_v6 = vrot.slane %v2905_v50, 4  ;;  %v2169_v61 = vrot.slane %v2168_v58, 4  ;;  %v8559_v60 = vcombine.low %v2899_v3, %v2902_v36  ;;  %v11782_v58 = vld [vmem:[#allocation2 + $0x38] sm:$0xff] }
 0x136   : > { %v2154_v34 = vrot.slane %v2152_v40, 4  ;;  %v2157_v51 = vrot.slane %v2155_v26, 5  ;;  %v4069_v21 = vshll.u32 %v11763_v29, 16 }
 0x137   : > { %2593 = vmatmul.mubr.bf16.gmra.mrb[68].mxu1 %v8457_v54  ;;  %v8558_v54 = vcombine.high %v2892_v46, %v2895_v10  ;;  %v2173_v10 = vrot.slane %v2171_v15, 5  ;;  %v1811_v46 = vld [vmem:[#allocation2 + $0x178] sm:$0x11] }
 0x138   : > { %2600 = vmatprep.mubr.bf16.mxu1 %v8460_v0  ;;  %v2158_v9 = vor.u32 %v2157_v51, %v2154_v34  ;;  %v2195_v48 = vshll.u32 %v1811_v46, 16  ;;  %v4066_v34 = vshrl.u32 %v11763_v29, 16 }
 0x139   : > { %v2174_v5 = vsel %vm11386_vm4, %v2169_v61, %v2173_v10 }
 0x13a   : > { %3310 = vmatmul.mubr.bf16.gmra.mrb[64].mxu0 %v8551_v32  ;;  %v2139_v32 = vrot.slane %v2137_v8, 5  ;;  %v2159_v22 = vrot.slane %v2158_v9, 4  ;;  %v2197_v43 = vrot.slane %v2195_v48, 5  ;;  %v4068_v15 = vrot.slane %v4066_v34, 4  ;;  %v11780_v9 = vld [vmem:[#allocation2 + $0x30] sm:$0xff] }
 0x13b   : > { %3317 = vmatprep.mubr.bf16.mxu0 %v8554_v16  ;;  %v8555_v16 = vcombine.low %v2885_v42, %v2888_v18  ;;  %v2149_v18 = vrot.slane %v2147_v52, 5  ;;  %v11746_v42 = vld [vmem:[#allocation2 + $0x170] sm:$0xff] }
 0x13c   : > { %v2144_v0 = vor.u32 %v2143_v33, %v2139_v32  ;;  %v2140_v7 = vsel %vm11386_vm4, %v2135_v20, %v2139_v32  ;;  %v2185_v25 = vshll.u32 %v11746_v42, 16  ;;  %v2189_v14 = vshrl.u32 %v11746_v42, 16  ;;  %v2757_v32 = vld [vmem:[#allocation2 + $0x160] sm:$0x11]  ;;  %v11796_v48 = vld [vmem:[#allocation2 + $0x50] sm:$0xff] }
 0x13d   : > { %v2164_v4 = vsel %vm11386_vm4, %v2159_v22, %v2163_v39  ;;  %v2915_v52 = vrot.slane %v2757_v32, 5  ;;  %v2919_v27 = vrot.slane %v11746_v42, 5  ;;  %v2758_v39 = vld [vmem:[#allocation2 + $0x168] sm:$0xee]  ;;  %v4103_v22 = vshrl.u32 %v11782_v58, 16 }
 0x13e   : > { %v2145_v49 = vrot.slane %v2144_v0, 4  ;;  %v2187_v47 = vrot.slane %v2185_v25, 5  ;;  %v2191_v31 = vrot.slane %v2189_v14, 4  ;;  %v8468_v41 = vcombine.high %v2164_v4, %v2174_v5  ;;  %v11794_v32 = vld [vmem:[#allocation2 + $0x48] sm:$0xff] }
 0x13f   : > { %2601 = vmatmul.mubr.bf16.gmra.mrb[72].mxu1 %v8459_v63  ;;  %v8560_v63 = vcombine.high %v2899_v3, %v2902_v36  ;;  %v8467_v3 = vcombine.low %v2164_v4, %v2174_v5  ;;  %v4114_v4 = vshrl.u32 %v11794_v32, 16 }
 0x140   : > { %2608 = vmatprep.mubr.bf16.mxu1 %v8462_v45  ;;  %v2150_v28 = vsel %vm11386_vm4, %v2145_v49, %v2149_v18  ;;  %v8500_v45 = vrot.slane %v2752_v19, 9  ;;  %v2192_v26 = vor.u32 %v2191_v31, %v2187_v47  ;;  %v2760_v18 = vld [vmem:[#allocation2 + $0x178] sm:$0x11] }
 0x141   : > { %v8466_v8 = vcombine.high %v2140_v7, %v2150_v28  ;;  %v8465_v24 = vcombine.low %v2140_v7, %v2150_v28  ;;  %v4019_v28 = vld [vmem:[#allocation2 + $0x28] sm:$0x11]  ;;  %v4071_v7 = vrot.slane %v4069_v21, 5 }
 0x142   : > { %3318 = vmatmul.mubr.bf16.gmra.mrb[68].mxu0 %v8553_v44  ;;  %v1809_v44 = vld [vmem:[#allocation2 + $0x168] sm:$0xff]  ;;  %v2906_v33 = vsel %vm11407_vm5, %v8500_v45, %v2905_v50  ;;  %v2193_v38 = vrot.slane %v2192_v26, 4  ;;  %v4123_v26 = vshll.u32 %v11796_v48, 16 }
 0x143   : > { %3325 = vmatprep.mubr.bf16.mxu0 %v8556_v55  ;;  %v2908_v55 = vrot.slane %v2754_v1, 5  ;;  %v2176_v62 = vshrl.u32 %v1809_v44, 16  ;;  %v2179_v13 = vshll.u32 %v1809_v44, 16  ;;  %v2922_v44 = vrot.slane %v2760_v18, 5 }
 0x144   : > { %v2198_v51 = vsel %vm11386_vm4, %v2193_v38, %v2197_v43  ;;  %v4072_v45 = vor.u32 %v4071_v7, %v4068_v15  ;;  %v4116_v18 = vrot.slane %v4114_v4, 4  ;;  %v4125_v21 = vrot.slane %v4123_v26, 5  ;;  %v10614_v7 = vld [vmem:[%s13539_s2 + $0x348] sm:$0xff]  }
 0x145   : > { %v2909_v11 = vsel %vm11407_vm5, %v2907_v6, %v2908_v55  ;;  %v2178_v30 = vrot.slane %v2176_v62, 4  ;;  %v2181_v12 = vrot.slane %v2179_v13, 5  ;;  %v4085_v13 = vshll.u32 %v4019_v28, 16 }
 0x146   : > { %v8562_v23 = vcombine.high %v2906_v33, %v2909_v11  ;;  %v8561_v36 = vcombine.low %v2906_v33, %v2909_v11  ;;  %v4093_v6 = vshll.u32 %v11780_v9, 16  ;;  %v4099_v11 = vshll.u32 %v11782_v58, 16 }
 0x147   : > { %2609 = vmatmul.mubr.bf16.gmra.mrb[76].mxu1 %v8461_v37  ;;  %v2182_v40 = vor.u32 %v2181_v12, %v2178_v30  ;;  %v4087_v30 = vrot.slane %v4085_v13, 5  ;;  %v4073_v33 = vrot.slane %v4072_v45, 4  ;;  %v10628_v45 = vld [vmem:[%s13539_s2 + $0x2d8] sm:$0xff]  }
 0x148   : > { %2616 = vmatprep.mubr.bf16.mxu1 %v8464_v35 }
 0x149   : > { %v2183_v35 = vrot.slane %v2182_v40, 4  ;;  %v4117_v40 = vshll.u32 %v11794_v32, 16 }
 0x14a   : > { %3326 = vmatmul.mubr.bf16.gmra.mrb[72].mxu0 %v8555_v16  ;;  %v2755_v16 = vld [vmem:[#allocation2 + $0x150] sm:$0xee] }
 0x14b   : > { %3333 = vmatprep.mubr.bf16.mxu0 %v8558_v54  ;;  %v2912_v54 = vrot.slane %v11733_v56, 5  ;;  %v8501_v53 = vrot.slane %v2755_v16, 9  ;;  %v11765_v56 = vld [vmem:[#allocation2 + $0x20] sm:$0xff]  ;;  %v2188_v50 = vsel %vm11386_vm4, %v2183_v35, %v2187_v47  ;;  %v4101_v16 = vrot.slane %v4099_v11, 5 }
 0x14c   : > { %v4075_v49 = vshll.u32 %v11765_v56, 16  ;;  %v4079_v1 = vshrl.u32 %v11765_v56, 16  ;;  %v8470_v42 = vcombine.high %v2188_v50, %v2198_v51  ;;  %v8469_v46 = vcombine.low %v2188_v50, %v2198_v51  ;;  %v4022_v47 = vld [vmem:[#allocation2 + $0x40] sm:$0x11]  ;;  %v4025_v51 = vld [vmem:[#allocation2 + $0x58] sm:$0x11] }
 0x14d   : > { %v2914_v37 = vrot.slane %v2912_v54, 4  ;;  %v2913_v20 = vsel %vm11407_vm5, %v8501_v53, %v2912_v54  ;;  %v8616_v12 = vcombine.high %v11763_v29, %v11765_v56  ;;  %v4105_v54 = vrot.slane %v4103_v22, 4  ;;  %v10605_v35 = vld [vmem:[%s13539_s2 + $0x280] sm:$0xff]  }
 0x14e   : > { %v4077_v19 = vrot.slane %v4075_v49, 5  ;;  %v4081_v55 = vrot.slane %v4079_v1, 4  ;;  %v8615_v38 = vcombine.low %v11763_v29, %v11765_v56  ;;  %v11816_v29 = vld [vmem:[#allocation2 + $0x60] sm:$0xff]  ;;  %v11818_v56 = vld [vmem:[#allocation2 + $0x68] sm:$0xff]  ;;  %v4133_v50 = vshll.u32 %v4025_v51, 16 }
 0x14f   : > { %2617 = vmatmul.mubr.bf16.gmra.mrb[80].mxu1 %v8463_v59  ;;  %v2916_v0 = vsel %vm11407_vm5, %v2914_v37, %v2915_v52  ;;  %v2921_v59 = vrot.slane %v2919_v27, 4  ;;  %v4106_v43 = vor.u32 %v4105_v54, %v4101_v16  ;;  %v4151_v13 = vshrl.u32 %v11818_v56, 16 }
 0x150   : > { %2624 = vmatprep.mubr.bf16.mxu1 %v8466_v8  ;;  %v8563_v25 = vcombine.low %v2913_v20, %v2916_v0  ;;  %v4090_v8 = vshrl.u32 %v11780_v9, 16  ;;  %v4082_v10 = vor.u32 %v4081_v55, %v4077_v19  ;;  %v4078_v37 = vsel %vm11386_vm4, %v4073_v33, %v4077_v19  ;;  %v10629_v33 = vld [vmem:[%s13539_s2 + $0x298] sm:$0xff]  }
 0x151   : > { %v2923_v62 = vsel %vm11407_vm5, %v2921_v59, %v2922_v44  ;;  %v4107_v1 = vrot.slane %v4106_v43, 4  ;;  %v10620_v44 = vld [vmem:[%s13539_s2 + $0x2d0] sm:$0xff]   ;;  %v4138_v19 = vshrl.u32 %v11816_v29, 16  ;;  %v4141_v55 = vshll.u32 %v11816_v29, 16  ;;  %v10630_v43 = vld [vmem:[%s13539_s2 + $0x358] sm:$0xff]  }
 0x152   : > { %3334 = vmatmul.mubr.bf16.gmra.mrb[76].mxu0 %v8557_v2  ;;  %v8564_v2 = vcombine.high %v2913_v20, %v2916_v0  ;;  %v4092_v31 = vrot.slane %v4090_v8, 4  ;;  %v4083_v5 = vrot.slane %v4082_v10, 4  ;;  %v8617_v8 = vcombine.low %v11780_v9, %v11782_v58 }
 0x153   : > { %3341 = vmatprep.mubr.bf16.mxu0 %v8560_v63  ;;  %v8502_v63 = vrot.slane %v2758_v39, 9  ;;  %v4119_v39 = vrot.slane %v4117_v40, 5  ;;  %v8620_v10 = vcombine.high %v11794_v32, %v11796_v48  ;;  %v10623_v40 = vld [vmem:[%s13539_s2 + $0x310] sm:$0xff]   ;;  %v8622_v51 = vcombine.high %v11816_v29, %v11818_v56 }
 0x155   : > { %v2920_v14 = vsel %vm11407_vm5, %v8502_v63, %v2919_v27  ;;  %v10612_v27 = vld [vmem:[%s13539_s2 + $0x2c8] sm:$0xff]   ;;  %v10607_v63 = vld [vmem:[%s13539_s2 + $0x300] sm:$0xff]   ;;  %v4120_v28 = vor.u32 %v4119_v39, %v4116_v18 }
 0x156   : > { %v8566_v61 = vcombine.high %v2920_v14, %v2923_v62  ;;  %v8565_v53 = vcombine.low %v2920_v14, %v2923_v62  ;;  %v4147_v62 = vshll.u32 %v11818_v56, 16  ;;  %v10621_v14 = vld [vmem:[%s13539_s2 + $0x290] sm:$0xff]   ;;  %v4031_v39 = vld [vmem:[#allocation2 + $0x88] sm:$0x11] }
 0x157   : > { %2625 = vmatmul.mubr.bf16.gmra.mrb[84].mxu1 %v8465_v24  ;;  %v4109_v24 = vshll.u32 %v4022_v47, 16  ;;  %v4121_v11 = vrot.slane %v4120_v28, 4  ;;  %v4153_v47 = vrot.slane %v4151_v13, 4 }
 0x158   : > { %2632 = vmatprep.mubr.bf16.mxu1 %v8468_v41  ;;  %v4127_v41 = vshrl.u32 %v11796_v48, 16 }
 0x159   : > { %v4111_v20 = vrot.slane %v4109_v24, 5  ;;  %v10636_v24 = vld [vmem:[%s13539_s2 + $0x2e0] sm:$0xff]  }
 0x15a   : > { %3342 = vmatmul.mubr.bf16.gmra.mrb[80].mxu0 %v8559_v60  ;;  %v4095_v60 = vrot.slane %v4093_v6, 5  ;;  %v4129_v49 = vrot.slane %v4127_v41, 4  ;;  %v4135_v6 = vrot.slane %v4133_v50, 5  ;;  %v10638_v50 = vld [vmem:[%s13539_s2 + $0x360] sm:$0xff]  }
 0x15b   : > { %3349 = vmatprep.mubr.bf16.mxu0 %v8562_v23  ;;  %v4088_v23 = vsel %vm11386_vm4, %v4083_v5, %v4087_v30  ;;  %v11853_v30 = vld [vmem:[#allocation2 + $0x78] sm:$0xff] }
 0x15c   : > { %v4096_v52 = vor.u32 %v4095_v60, %v4092_v31  ;;  %v8696_v0 = vcombine.high %v4078_v37, %v4088_v23  ;;  %v4130_v15 = vor.u32 %v4129_v49, %v4125_v21  ;;  %v10622_v31 = vld [vmem:[%s13539_s2 + $0x350] sm:$0xff]   ;;  %v11860_v60 = vld [vmem:[#allocation2 + $0x80] sm:$0xff]  ;;  %v4162_v54 = vshrl.u32 %v11853_v30, 16 }
 0x15e   : > { %v4097_v34 = vrot.slane %v4096_v52, 4  ;;  %v4131_v22 = vrot.slane %v4130_v15, 4  ;;  %v4126_v52 = vsel %vm11386_vm4, %v4121_v11, %v4125_v21  ;;  %v11898_v21 = vld [vmem:[#allocation2 + $0x98] sm:$0xff] }
 0x15f   : > { %2633 = vmatmul.mubr.bf16.gmra.mrb[88].mxu1 %v8467_v3  ;;  %v4112_v3 = vsel %vm11386_vm4, %v4107_v1, %v4111_v20  ;;  %v4164_v20 = vrot.slane %v4162_v54, 4 }
 0x160   : > { %2640 = vmatprep.mubr.bf16.mxu1 %v8470_v42  ;;  %v8695_v42 = vcombine.low %v4078_v37, %v4088_v23  ;;  %v4102_v59 = vsel %vm11386_vm4, %v4097_v34, %v4101_v16  ;;  %v11867_v5 = vsel %vm11386_vm4, %v4131_v22, %v4135_v6  ;;  %v4165_v23 = vshll.u32 %v11853_v30, 16  ;;  %v10644_v34 = vld [vmem:[%s13539_s2 + $0x2e8] sm:$0xff]  }
 0x161   : > { %v8697_v4 = vcombine.low %v4102_v59, %v4112_v3  ;;  %v4175_v37 = vshrl.u32 %v11860_v60, 16  ;;  %v8699_v6 = vcombine.low %v4126_v52, %v11867_v5  ;;  %v10646_v22 = vld [vmem:[%s13539_s2 + $0x368] sm:$0xff]  }
 0x162   : > { %3350 = vmatmul.mubr.bf16.gmra.mrb[84].mxu0 %v8561_v36  ;;  %v8618_v36 = vcombine.high %v11780_v9, %v11782_v58  ;;  %v4140_v9 = vrot.slane %v4138_v19, 4  ;;  %v4143_v58 = vrot.slane %v4141_v55, 5  ;;  %v4167_v18 = vrot.slane %v4165_v23, 5  ;;  %v10652_v19 = vld [vmem:[%s13539_s2 + $0x2f0] sm:$0xff]  }
 0x163   : > { %3357 = vmatprep.mubr.bf16.mxu0 %v8564_v2  ;;  %v10613_v2 = vld [vmem:[%s13539_s2 + $0x288] sm:$0xff]  }
 0x164   : > { %v4144_v26 = vor.u32 %v4143_v58, %v4140_v9  ;;  %v4168_v15 = vor.u32 %v4167_v18, %v4164_v20  ;;  %v8621_v9 = vcombine.low %v11816_v29, %v11818_v56  ;;  %v8624_v58 = vcombine.high %v11853_v30, %v11860_v60  ;;  %v10647_v29 = vld [vmem:[%s13539_s2 + $0x328] sm:$0xff]   ;;  %v10667_v20 = vld [vmem:[%s13539_s2 + $0x3c0] sm:$0xff]  }
 0x166   : > { %v4145_v49 = vrot.slane %v4144_v26, 4 }
 0x167   : > { %2641 = vmatmul.mubr.bf16.gmra.mrb[92].mxu1 %v8469_v46  ;;  %v4028_v46 = vld [vmem:[#allocation2 + $0x70] sm:$0x11] }
 0x168   : > { %3824 = vmatprep.mubr.bf16.mxu1 %v8616_v12  ;;  %v11855_v12 = vrot.slane %v4147_v62, 5  ;;  %v4157_v16 = vshll.u32 %v4028_v46, 16  ;;  %v10653_v46 = vld [vmem:[%s13539_s2 + $0x2b0] sm:$0xff]  }
 0x16a   : > { %3358 = vmatmul.mubr.bf16.gmra.mrb[88].mxu0 %v8563_v25  ;;  %v8698_v25 = vcombine.high %v4102_v59, %v4112_v3  ;;  %v4154_v41 = vor.u32 %v4153_v47, %v11855_v12  ;;  %v4177_v3 = vrot.slane %v4175_v37, 4 }
 0x16b   : > { %3365 = vmatprep.mubr.bf16.mxu0 %v8566_v61  ;;  %v10615_v61 = vld [vmem:[%s13539_s2 + $0x308] sm:$0xff]  }
 0x16c   : > { %v4155_v1 = vrot.slane %v4154_v41, 4  ;;  %v11956_v41 = vld [vmem:[#allocation2 + $0xb0] sm:$0xff] }
 0x16f   : > { %3825 = vmatmul.mubr.bf16.vlgmr.msra.gmra.mrb[96].mxu1 %v8615_v38  ;;  %v8619_v38 = vcombine.low %v11794_v32, %v11796_v48  ;;  %v10631_v32 = vld [vmem:[%s13539_s2 + $0x318] sm:$0xff]  }
 0x170   : > { %3832 = vmatprep.mubr.bf16.mxu1 %v8618_v36  ;;  %9916 = vmatpush3.bf16.msra.mxu1 %v10605_v35  ;;  %v10637_v35 = vld [vmem:[%s13539_s2 + $0x2a0] sm:$0xff]   ;;  %v4159_v36 = vrot.slane %v4157_v16, 5 }
 0x171   : > { %9917 = vmatprep.subr.bf16.mxu1 %v10612_v27  ;;  %v11891_v27 = vld [vmem:[#allocation2 + $0x90] sm:$0xff] }
 0x172   : > { %3366 = vmatmul.mubr.bf16.gmra.mrb[92].mxu0 %v8565_v53  ;;  %v4171_v53 = vshll.u32 %v11860_v60, 16  ;;  %v11913_v28 = vsel %vm11386_vm4, %v4155_v1, %v4159_v36  ;;  %v4186_v62 = vshrl.u32 %v11891_v27, 16  ;;  %v4189_v13 = vshll.u32 %v11891_v27, 16 }
 0x173   : > { %4770 = vmatprep.mubr.bf16.mxu0 %v8696_v0  ;;  %v8700_v0 = vcombine.high %v4126_v52, %v11867_v5  ;;  %v10654_v52 = vld [vmem:[%s13539_s2 + $0x370] sm:$0xff]  }
 0x174   : > { %9918 = vmatpush3.bf16.msra.mxu1 %v10613_v2  ;;  %v4173_v2 = vrot.slane %v4171_v53, 5  ;;  %v4188_v5 = vrot.slane %v4186_v62, 4  ;;  %v4191_v16 = vrot.slane %v4189_v13, 5  ;;  %v10661_v53 = vld [vmem:[%s13539_s2 + $0x2b8] sm:$0xff]   ;;  %v8626_v62 = vcombine.high %v11891_v27, %v11898_v21 }
 0x175   : > { %9919 = vmatprep.subr.bf16.mxu1 %v10620_v44 }
 0x176   : > { %v4178_v11 = vor.u32 %v4177_v3, %v4173_v2 }
 0x177   : > { %3833 = vmatmul.mubr.bf16.gmra.mrb[100].mxu1 %v8617_v8  ;;  %v10639_v8 = vld [vmem:[%s13539_s2 + $0x320] sm:$0xff]  }
 0x178   : > { %3840 = vmatprep.mubr.bf16.mxu1 %v8620_v10  ;;  %9920 = vmatpush3.bf16.msra.mxu1 %v10621_v14  ;;  %v4199_v14 = vshrl.u32 %v11898_v21, 16 }
 0x179   : > { %9921 = vmatprep.subr.bf16.mxu1 %v10628_v45  ;;  %v4150_v45 = vsel %vm11386_vm4, %v4145_v49, %v11855_v12  ;;  %v4169_v12 = vrot.slane %v4168_v15, 4  ;;  %v10655_v49 = vld [vmem:[%s13539_s2 + $0x330] sm:$0xff]  }
 0x17a   : > { %4771 = vmatmul.mubr.bf16.vlgmr.msra.gmra.mrb[96].mxu0 %v8695_v42  ;;  %v10645_v42 = vld [vmem:[%s13539_s2 + $0x2a8] sm:$0xff]   ;;  %v4201_v23 = vrot.slane %v4199_v14, 4  ;;  %v8701_v26 = vcombine.low %v4150_v45, %v11913_v28 }
 0x17b   : > { %10028 = vmatpush3.bf16.msra.mxu0 %v10607_v63  ;;  %4778 = vmatprep.mubr.bf16.mxu0 %v8698_v25  ;;  %v4195_v25 = vshll.u32 %v11898_v21, 16 }
 0x17c   : > { %10029 = vmatprep.subr.bf16.mxu0 %v10614_v7  ;;  %9922 = vmatpush3.bf16.msra.mxu1 %v10629_v33  ;;  %v9419_v48 = vpop.f32.mrb[0].mxu1  ;;  %v4181_v7 = vshll.u32 %v4031_v39, 16  ;;  %v10660_v33 = vld [vmem:[%s13539_s2 + $0x2f8] sm:$0xff]  }
 0x17d   : > { %9923 = vmatprep.subr.bf16.mxu1 %v10636_v24  ;;  %v9420_v44 = vpop.f32.mrb[1].mxu1  ;;  %v11945_v54 = vrot.slane %v4195_v25, 5  ;;  %v4179_v24 = vrot.slane %v4178_v11, 4  ;;  %v4037_v25 = vld [vmem:[#allocation2 + $0xb8] sm:$0x11]  ;;  %v10669_v11 = vld [vmem:[%s13539_s2 + $0x440] sm:$0xff]  }
 0x17e   : > { %v11909_v63 = vadd.f32 %v9420_v44, %v9419_v48  ;;  %v9422_v59 = vpop.f32.mrb[2].mxu1  ;;  %v4183_v47 = vrot.slane %v4181_v7, 5  ;;  %v4223_v44 = vshrl.u32 %v11956_v41, 16  ;;  %v8623_v7 = vcombine.low %v11853_v30, %v11860_v60 }
 0x17f   : > { %10030 = vmatpush3.bf16.msra.mxu0 %v10615_v61  ;;  %3841 = vmatmul.mubr.bf16.gmra.mrb[104].mxu1 %v8619_v38  ;;  %v9423_v55 = vpop.f32.mrb[3].mxu1  ;;  %v8702_v61 = vcombine.high %v4150_v45, %v11913_v28  ;;  %v4202_v39 = vor.u32 %v4201_v23, %v11945_v54 }
 0x180   : > { %10031 = vmatprep.subr.bf16.mxu0 %v10622_v31  ;;  %3848 = vmatprep.mubr.bf16.mxu1 %v8622_v51  ;;  %v11929_v10 = vadd.f32 %v9423_v55, %v9422_v59  ;;  %v4034_v31 = vld [vmem:[#allocation2 + $0xa0] sm:$0x11]  ;;  %v11969_v38 = vsel %vm11386_vm4, %v4179_v24, %v4183_v47  ;;  %v4192_v51 = vor.u32 %v4191_v16, %v4188_v5  ;;  %v4225_v60 = vrot.slane %v4223_v44, 4 }
 0x181   : > { %9924 = vmatpush3.bf16.msra.mxu1 %v10637_v35  ;;  %v11965_v35 = vsel %vm11386_vm4, %v4169_v12, %v4173_v2  ;;  %v4205_v36 = vshll.u32 %v4034_v31, 16  ;;  %v11995_v55 = vld [vmem:[#allocation2 + $0xc0] sm:$0xff]  ;;  %v4203_v45 = vrot.slane %v4202_v39, 4  ;;  %v4229_v12 = vshll.u32 %v4037_v25, 16 }
 0x182   : > { %4779 = vmatmul.mubr.bf16.gmra.mrb[100].mxu0 %v8697_v4  ;;  %9925 = vmatprep.subr.bf16.mxu1 %v10644_v34  ;;  %v11950_v4 = vld [vmem:[#allocation2 + $0xa8] sm:$0xff]  ;;  %v8704_v59 = vcombine.high %v11965_v35, %v11969_v38  ;;  %v4193_v13 = vrot.slane %v4192_v51, 4  ;;  %v4234_v47 = vshrl.u32 %v11995_v55, 16  ;;  %v4237_v31 = vshll.u32 %v11995_v55, 16 }
 0x183   : > { %4786 = vmatprep.mubr.bf16.mxu0 %v8700_v0  ;;  %10032 = vmatpush3.bf16.msra.mxu0 %v10623_v40  ;;  %v4213_v48 = vshll.u32 %v11950_v4, 16  ;;  %v8703_v23 = vcombine.low %v11965_v35, %v11969_v38  ;;  %v8625_v38 = vcombine.low %v11891_v27, %v11898_v21  ;;  %v8628_v51 = vcombine.high %v11950_v4, %v11956_v41  ;;  %v12032_v27 = vld [vmem:[#allocation2 + $0xe0] sm:$0xff] }
 0x184   : > { %10033 = vmatprep.subr.bf16.mxu0 %v10630_v43 }
 0x185   : > { %9926 = vmatpush3.bf16.msra.mxu1 %v10645_v42  ;;  %v10662_v42 = vld [vmem:[%s13539_s2 + $0x378] sm:$0xff]  }
 0x186   : > { %9927 = vmatprep.subr.bf16.mxu1 %v10652_v19  ;;  %v4207_v19 = vrot.slane %v4205_v36, 5 }
 0x187   : > { %10034 = vmatpush3.bf16.msra.mxu0 %v10631_v32  ;;  %3849 = vmatmul.mubr.bf16.gmra.mrb[108].mxu1 %v8621_v9  ;;  %v9425_v0 = vpop.f32.mrb[4].mxu1  ;;  %v4210_v32 = vshrl.u32 %v11950_v4, 16 }
 0x188   : > { %10035 = vmatprep.subr.bf16.mxu0 %v10638_v50  ;;  %3856 = vmatprep.mubr.bf16.mxu1 %v8624_v58  ;;  %v9426_v34 = vpop.f32.mrb[5].mxu1  ;;  %v4219_v50 = vshll.u32 %v11956_v41, 16  ;;  %v4208_v58 = vsel %vm11386_vm4, %v4203_v45, %v4207_v19 }
 0x189   : > { %9928 = vmatpush3.bf16.msra.mxu1 %v10653_v46  ;;  %v11982_v2 = vadd.f32 %v9426_v34, %v9425_v0  ;;  %v9428_v3 = vpop.f32.mrb[6].mxu1  ;;  %v4212_v14 = vrot.slane %v4210_v32, 4  ;;  %v4239_v34 = vrot.slane %v4237_v31, 5  ;;  %v4040_v32 = vld [vmem:[#allocation2 + $0xd0] sm:$0x11] }
 0x18a   : > { %4787 = vmatmul.mubr.bf16.gmra.mrb[104].mxu0 %v8699_v6  ;;  %v9371_v56 = vpop.f32.mrb[0].mxu0  ;;  %9929 = vmatprep.subr.bf16.mxu1 %v10660_v33  ;;  %v9429_v28 = vpop.f32.mrb[7].mxu1  ;;  %v10663_v6 = vld [vmem:[%s13539_s2 + $0x338] sm:$0xff]   ;;  %v4221_v30 = vrot.slane %v4219_v50, 5  ;;  %v4253_v19 = vshll.u32 %v4040_v32, 16 }
 0x18b   : > { %4794 = vmatprep.mubr.bf16.mxu0 %v8702_v61  ;;  %10036 = vmatpush3.bf16.msra.mxu0 %v10639_v8  ;;  %v9372_v40 = vpop.f32.mrb[1].mxu0  ;;  %v11991_v15 = vadd.f32 %v9429_v28, %v9428_v3  ;;  %v4215_v8 = vrot.slane %v4213_v48, 5  ;;  %v12005_v61 = vld [vmem:[#allocation2 + $0xc8] sm:$0xff]  ;;  %v12030_v50 = vld [vmem:[#allocation2 + $0xd8] sm:$0xff] }
 0x18c   : > { %10037 = vmatprep.subr.bf16.mxu0 %v10646_v22  ;;  %v11961_v37 = vadd.f32 %v9372_v40, %v9371_v56  ;;  %v9374_v43 = vpop.f32.mrb[2].mxu0 }
 0x18d   : > { %v9375_v18 = vpop.f32.mrb[3].mxu0  ;;  %9930 = vmatpush3.bf16.msra.mxu1 %v10661_v53  ;;  %v4216_v56 = vor.u32 %v4215_v8, %v4212_v14  ;;  %v4243_v53 = vshll.u32 %v12005_v61, 16  ;;  %v4258_v8 = vshrl.u32 %v12030_v50, 16 }
 0x18e   : > { %v11980_v1 = vadd.f32 %v9375_v18, %v9374_v43  ;;  %10139 = vmatprep.subr.bf16.mxu1 %v10667_v20  ;;  %v4247_v43 = vshrl.u32 %v12005_v61, 16  ;;  %v4231_v20 = vrot.slane %v4229_v12, 5  ;;  %v4236_v18 = vrot.slane %v4234_v47, 4 }
 0x18f   : > { %10038 = vmatpush3.bf16.msra.mxu0 %v10647_v29  ;;  %3857 = vmatmul.mubr.bf16.gmra.mrb[112].mxu1 %v8623_v7  ;;  %v4198_v29 = vsel %vm11386_vm4, %v4193_v13, %v11945_v54  ;;  %v4217_v39 = vrot.slane %v4216_v56, 4  ;;  %v4260_v56 = vrot.slane %v4258_v8, 4  ;;  %v8629_v8 = vcombine.low %v11995_v55, %v12005_v61 }
 0x190   : > { %10039 = vmatprep.subr.bf16.mxu0 %v10654_v52  ;;  %3864 = vmatprep.mubr.bf16.mxu1 %v8626_v62  ;;  %v9431_v9 = vpop.f32.mrb[8].mxu1  ;;  %v8706_v36 = vcombine.high %v4198_v29, %v4208_v58  ;;  %v4249_v3 = vrot.slane %v4247_v43, 4  ;;  %v4240_v7 = vor.u32 %v4239_v34, %v4236_v18  ;;  %v12054_v43 = vld [vmem:[#allocation2 + $0xf0] sm:$0xff] }
 0x191   : > { %v9432_v16 = vpop.f32.mrb[9].mxu1  ;;  %v4222_v14 = vsel %vm11386_vm4, %v4217_v39, %v4221_v30 }
 0x192   : > { %4795 = vmatmul.mubr.bf16.gmra.mrb[108].mxu0 %v8701_v26  ;;  %v12018_v52 = vadd.f32 %v9432_v16, %v9431_v9  ;;  %v9434_v40 = vpop.f32.mrb[10].mxu1  ;;  %v4226_v26 = vor.u32 %v4225_v60, %v4221_v30  ;;  %v4271_v9 = vshrl.u32 %v12032_v27, 16  ;;  %v8627_v30 = vcombine.low %v11950_v4, %v11956_v41 }
 0x193   : > { %4802 = vmatprep.mubr.bf16.mxu0 %v8704_v59  ;;  %10040 = vmatpush3.bf16.msra.mxu0 %v10655_v49  ;;  %v9435_v35 = vpop.f32.mrb[11].mxu1  ;;  %v4245_v49 = vrot.slane %v4243_v53, 5  ;;  %v8705_v59 = vcombine.low %v4198_v29, %v4208_v58  ;;  %v4255_v16 = vrot.slane %v4253_v19, 5  ;;  %v4043_v29 = vld [vmem:[#allocation2 + $0xe8] sm:$0x11] }
 0x194   : > { %10041 = vmatprep.subr.bf16.mxu0 %v10662_v42  ;;  %v12026_v54 = vadd.f32 %v9435_v35, %v9434_v40  ;;  %v4227_v48 = vrot.slane %v4226_v26, 4  ;;  %v4273_v53 = vrot.slane %v4271_v9, 4  ;;  %v12056_v35 = vld [vmem:[#allocation2 + $0xf8] sm:$0xff]  ;;  %v4277_v34 = vshll.u32 %v4043_v29, 16 }
 0x195   : > { %v9377_v22 = vpop.f32.mrb[4].mxu0 }
 0x196   : > { %v9378_v46 = vpop.f32.mrb[5].mxu0  ;;  %v4232_v28 = vsel %vm11386_vm4, %v4227_v48, %v4231_v20 }
 0x197   : > { %v12011_v33 = vadd.f32 %v9378_v46, %v9377_v22  ;;  %v9380_v5 = vpop.f32.mrb[6].mxu0  ;;  %10042 = vmatpush3.bf16.msra.mxu0 %v10663_v6  ;;  %3865 = vmatmul.mubr.bf16.gmra.mrb[116].mxu1 %v8625_v38  ;;  %v4261_v6 = vshll.u32 %v12030_v50, 16  ;;  %v4250_v22 = vor.u32 %v4249_v3, %v4245_v49  ;;  %v4267_v46 = vshll.u32 %v12032_v27, 16 }
 0x198   : > { %v9381_v24 = vpop.f32.mrb[7].mxu0  ;;  %10251 = vmatprep.subr.bf16.mxu0 %v10669_v11  ;;  %3872 = vmatprep.mubr.bf16.mxu1 %v8628_v51  ;;  %v8708_v12 = vcombine.high %v4222_v14, %v4232_v28  ;;  %v8707_v38 = vcombine.low %v4222_v14, %v4232_v28  ;;  %v4282_v3 = vshrl.u32 %v12054_v43, 16 }
 0x199   : > { %v12022_v0 = vadd.f32 %v9381_v24, %v9380_v5  ;;  %v4241_v5 = vrot.slane %v4240_v7, 4  ;;  %v4263_v24 = vrot.slane %v4261_v6, 5  ;;  %v4251_v40 = vrot.slane %v4250_v22, 4  ;;  %v4046_v22 = vld [vmem:[#allocation2 + $0x100] sm:$0x11] }
 0x19a   : > { %4803 = vmatmul.mubr.bf16.gmra.mrb[112].mxu0 %v8703_v23  ;;  %v9437_v42 = vpop.f32.mrb[12].mxu1  ;;  %v8630_v23 = vcombine.high %v11995_v55, %v12005_v61  ;;  %v4269_v26 = vrot.slane %v4267_v46, 5  ;;  %v4295_v7 = vshrl.u32 %v12056_v35, 16  ;;  %v4279_v6 = vrot.slane %v4277_v34, 5 }
 0x19b   : > { %4810 = vmatprep.mubr.bf16.mxu0 %v8706_v36  ;;  %v9438_v25 = vpop.f32.mrb[13].mxu1  ;;  %v4246_v20 = vsel %vm11386_vm4, %v4241_v5, %v4245_v49  ;;  %v4256_v18 = vsel %vm11386_vm4, %v4251_v40, %v4255_v16  ;;  %v4264_v48 = vor.u32 %v4263_v24, %v4260_v56  ;;  %v4291_v49 = vshll.u32 %v12056_v35, 16 }
 0x19c   : > { %v12042_v60 = vadd.f32 %v9438_v25, %v9437_v42  ;;  %v9440_v11 = vpop.f32.mrb[14].mxu1  ;;  %v4274_v28 = vor.u32 %v4273_v53, %v4269_v26  ;;  %v4284_v46 = vrot.slane %v4282_v3, 4  ;;  %v4297_v5 = vrot.slane %v4295_v7, 4 }
 0x19d   : > { %v9383_v44 = vpop.f32.mrb[8].mxu0  ;;  %v9441_v47 = vpop.f32.mrb[15].mxu1  ;;  %v4301_v56 = vshll.u32 %v4046_v22, 16 }
 0x19e   : > { %v9384_v21 = vpop.f32.mrb[9].mxu0  ;;  %v12048_v31 = vadd.f32 %v9441_v47, %v9440_v11  ;;  %v4265_v11 = vrot.slane %v4264_v48, 4  ;;  %v4275_v47 = vrot.slane %v4274_v28, 4 }
 0x19f   : > { %v12036_v62 = vadd.f32 %v9384_v21, %v9383_v44  ;;  %v9386_v13 = vpop.f32.mrb[10].mxu0  ;;  %3873 = vmatmul.mubr.bf16.gmra.mrb[120].mxu1 %v8627_v30  ;;  %v4285_v44 = vshll.u32 %v12054_v43, 16  ;;  %v4293_v30 = vrot.slane %v4291_v49, 5 }
 0x1a0   : > { %v9387_v45 = vpop.f32.mrb[11].mxu0  ;;  %3880 = vmatprep.mubr.bf16.mxu1 %v8630_v23  ;;  %v12080_v23 = vld [vmem:[#allocation2 + $0x110] sm:$0xff]  ;;  %v4280_v29 = vsel %vm11386_vm4, %v4275_v47, %v4279_v6  ;;  %v4049_v6 = vld [vmem:[#allocation2 + $0x118] sm:$0x11] }
 0x1a1   : > { %v12046_v58 = vadd.f32 %v9387_v45, %v9386_v13  ;;  %v8710_v13 = vcombine.high %v4246_v20, %v4256_v18  ;;  %v8632_v45 = vcombine.high %v12030_v50, %v12032_v27  ;;  %v4287_v9 = vrot.slane %v4285_v44, 5 }
 0x1a2   : > { %4811 = vmatmul.mubr.bf16.gmra.mrb[116].mxu0 %v8705_v59  ;;  %v9443_v41 = vpop.f32.mrb[16].mxu1  ;;  %v4298_v3 = vor.u32 %v4297_v5, %v4293_v30  ;;  %v4315_v44 = vshll.u32 %v12080_v23, 16 }
 0x1a3   : > { %4818 = vmatprep.mubr.bf16.mxu0 %v8708_v12  ;;  %v9444_v32 = vpop.f32.mrb[17].mxu1  ;;  %v12078_v12 = vld [vmem:[#allocation2 + $0x108] sm:$0xff]  ;;  %v4288_v34 = vor.u32 %v4287_v9, %v4284_v46  ;;  %v12102_v46 = vld [vmem:[#allocation2 + $0x120] sm:$0xff] }
 0x1a4   : > { %v12066_v42 = vadd.f32 %v9444_v32, %v9443_v41  ;;  %v9446_v59 = vpop.f32.mrb[18].mxu1  ;;  %v4306_v24 = vshrl.u32 %v12078_v12, 16  ;;  %v4309_v40 = vshll.u32 %v12078_v12, 16  ;;  %v8709_v41 = vcombine.low %v4246_v20, %v4256_v18 }
 0x1a5   : > { %v9389_v36 = vpop.f32.mrb[12].mxu0  ;;  %v9447_v25 = vpop.f32.mrb[19].mxu1  ;;  %v8631_v20 = vcombine.low %v12030_v50, %v12032_v27  ;;  %v12104_v50 = vld [vmem:[#allocation2 + $0x128] sm:$0xff] }
 0x1a6   : > { %v9390_v4 = vpop.f32.mrb[13].mxu0  ;;  %v12072_v14 = vadd.f32 %v9447_v25, %v9446_v59  ;;  %v4308_v7 = vrot.slane %v4306_v24, 4  ;;  %v8634_v25 = vcombine.high %v12054_v43, %v12056_v35 }
 0x1a7   : > { %v12062_v51 = vadd.f32 %v9390_v4, %v9389_v36  ;;  %v9392_v39 = vpop.f32.mrb[14].mxu0  ;;  %3881 = vmatmul.mubr.bf16.gmra.mrb[124].mxu1 %v8629_v8  ;;  %v4289_v8 = vrot.slane %v4288_v34, 4 }
 0x1a8   : > { %v9393_v21 = vpop.f32.mrb[15].mxu0  ;;  %13623 = vst [vmem:[#allocation4_spill] sm:$0xff] %v12072_v14  ;;  %3888 = vmatprep.mubr.bf16.mxu1 %v8632_v45  ;;  %v4299_v45 = vrot.slane %v4298_v3, 4  ;;  %v4343_v3 = vshrl.u32 %v12104_v50, 16 }
 0x1a9   : > { %v12070_v19 = vadd.f32 %v9393_v21, %v9392_v39  ;;  %v4319_v21 = vshrl.u32 %v12080_v23, 16 }
 0x1aa   : > { %4819 = vmatmul.mubr.bf16.gmra.mrb[120].mxu0 %v8707_v38  ;;  %v9449_v61 = vpop.f32.mrb[20].mxu1  ;;  %v4270_v38 = vsel %vm11386_vm4, %v4265_v11, %v4269_v26  ;;  %v4303_v26 = vrot.slane %v4301_v56, 5  ;;  %v4317_v11 = vrot.slane %v4315_v44, 5 }
 0x1ab   : > { %4826 = vmatprep.mubr.bf16.mxu0 %v8710_v13  ;;  %v9450_v4 = vpop.f32.mrb[21].mxu1  ;;  %v8712_v28 = vcombine.high %v4270_v38, %v4280_v29  ;;  %v4311_v13 = vrot.slane %v4309_v40, 5  ;;  %v4321_v22 = vrot.slane %v4319_v21, 4  ;;  %v8711_v5 = vcombine.low %v4270_v38, %v4280_v29 }
 0x1ac   : > { %v12090_v32 = vadd.f32 %v9450_v4, %v9449_v61  ;;  %v9452_v48 = vpop.f32.mrb[22].mxu1  ;;  %v4325_v61 = vshll.u32 %v4049_v6, 16  ;;  %v4330_v4 = vshrl.u32 %v12102_v46, 16 }
 0x1ad   : > { %v9395_v16 = vpop.f32.mrb[16].mxu0  ;;  %v9453_v49 = vpop.f32.mrb[23].mxu1  ;;  %v4322_v38 = vor.u32 %v4321_v22, %v4317_v11  ;;  %v4345_v22 = vrot.slane %v4343_v3, 4 }
 0x1ae   : > { %v9396_v55 = vpop.f32.mrb[17].mxu0  ;;  %13624 = vst [vmem:[#allocation5_spill] sm:$0xff] %v12090_v32  ;;  %v12098_v18 = vadd.f32 %v9453_v49, %v9452_v48  ;;  %v4339_v48 = vshll.u32 %v12104_v50, 16 }
 0x1af   : > { %v12086_v53 = vadd.f32 %v9396_v55, %v9395_v16  ;;  %v9398_v36 = vpop.f32.mrb[18].mxu0  ;;  %3889 = vmatmul.mubr.bf16.gmra.mrb[128].mxu1 %v8631_v20  ;;  %v4304_v16 = vsel %vm11386_vm4, %v4299_v45, %v4303_v26  ;;  %v4312_v55 = vor.u32 %v4311_v13, %v4308_v7  ;;  %v4327_v26 = vrot.slane %v4325_v61, 5  ;;  %v4052_v13 = vld [vmem:[#allocation2 + $0x130] sm:$0x11] }
 0x1b0   : > { %v9399_v39 = vpop.f32.mrb[19].mxu0  ;;  %13625 = vst [vmem:[#allocation6_spill] sm:$0xff] %v12098_v18  ;;  %3896 = vmatprep.mubr.bf16.mxu1 %v8634_v25  ;;  %v8636_v7 = vcombine.high %v12078_v12, %v12080_v23  ;;  %v4332_v25 = vrot.slane %v4330_v4, 4  ;;  %v4323_v6 = vrot.slane %v4322_v38, 4  ;;  %v4341_v45 = vrot.slane %v4339_v48, 5 }
 0x1b1   : > { %v12094_v59 = vadd.f32 %v9399_v39, %v9398_v36  ;;  %v4294_v36 = vsel %vm11386_vm4, %v4289_v8, %v4293_v30  ;;  %v8633_v30 = vcombine.low %v12054_v43, %v12056_v35  ;;  %v4313_v20 = vrot.slane %v4312_v55, 4 }
 0x1b2   : > { %4827 = vmatmul.mubr.bf16.gmra.mrb[124].mxu0 %v8709_v41  ;;  %v9455_v47 = vpop.f32.mrb[24].mxu1  ;;  %v4333_v41 = vshll.u32 %v12102_v46, 16  ;;  %v8714_v21 = vcombine.high %v4294_v36, %v4304_v16  ;;  %v4328_v61 = vsel %vm11386_vm4, %v4323_v6, %v4327_v26 }
 0x1b3   : > { %4834 = vmatprep.mubr.bf16.mxu0 %v8712_v28  ;;  %v9456_v40 = vpop.f32.mrb[25].mxu1  ;;  %v4318_v55 = vsel %vm11386_vm4, %v4313_v20, %v4317_v11 }
 0x1b4   : > { %v12114_v39 = vadd.f32 %v9456_v40, %v9455_v47  ;;  %v9458_v29 = vpop.f32.mrb[26].mxu1  ;;  %v4335_v8 = vrot.slane %v4333_v41, 5  ;;  %v12128_v47 = vld [vmem:[#allocation2 + $0x140] sm:$0xff] }
 0x1b5   : > { %v9401_v9 = vpop.f32.mrb[20].mxu0  ;;  %v9459_v28 = vpop.f32.mrb[27].mxu1  ;;  %v4363_v11 = vshll.u32 %v12128_v47, 16 }
 0x1b6   : > { %v9402_v27 = vpop.f32.mrb[21].mxu0  ;;  %13626 = vst [vmem:[#allocation7_spill] sm:$0xff] %v12114_v39  ;;  %v12120_v49 = vadd.f32 %v9459_v28, %v9458_v29 }
 0x1b7   : > { %v12108_v56 = vadd.f32 %v9402_v27, %v9401_v9  ;;  %v9404_v24 = vpop.f32.mrb[22].mxu0  ;;  %3897 = vmatmul.mubr.bf16.gmra.mrb[132].mxu1 %v8633_v30  ;;  %v12126_v9 = vld [vmem:[#allocation2 + $0x138] sm:$0xff]  ;;  %v8716_v30 = vcombine.high %v4318_v55, %v4328_v61 }
 0x1b8   : > { %v9405_v34 = vpop.f32.mrb[23].mxu0  ;;  %13627 = vst [vmem:[#allocation8_spill] sm:$0xff] %v12120_v49  ;;  %3904 = vmatprep.mubr.bf16.mxu1 %v8636_v7  ;;  %v4354_v29 = vshrl.u32 %v12126_v9, 16  ;;  %v4357_v38 = vshll.u32 %v12126_v9, 16  ;;  %v8635_v7 = vcombine.low %v12078_v12, %v12080_v23 }
 0x1b9   : > { %v12118_v44 = vadd.f32 %v9405_v34, %v9404_v24  ;;  %v4349_v24 = vshll.u32 %v4052_v13, 16  ;;  %v4336_v34 = vor.u32 %v4335_v8, %v4332_v25  ;;  %v4055_v25 = vld [vmem:[#allocation2 + $0x148] sm:$0x11]  ;;  %v8638_v8 = vcombine.high %v12102_v46, %v12104_v50 }
 0x1ba   : > { %4835 = vmatmul.mubr.bf16.gmra.mrb[128].mxu0 %v8711_v5  ;;  %v9461_v35 = vpop.f32.mrb[28].mxu1  ;;  %v8713_v5 = vcombine.low %v4294_v36, %v4304_v16  ;;  %v4346_v36 = vor.u32 %v4345_v22, %v4341_v45  ;;  %v4356_v6 = vrot.slane %v4354_v29, 4  ;;  %v4359_v22 = vrot.slane %v4357_v38, 5 }
 0x1bb   : > { %4842 = vmatprep.mubr.bf16.mxu0 %v8714_v21  ;;  %v9462_v41 = vpop.f32.mrb[29].mxu1  ;;  %v4367_v21 = vshrl.u32 %v12128_v47, 16  ;;  %v4351_v13 = vrot.slane %v4349_v24, 5  ;;  %v4373_v12 = vshll.u32 %v4055_v25, 16 }
 0x1bc   : > { %v12138_v3 = vadd.f32 %v9462_v41, %v9461_v35  ;;  %v9464_v16 = vpop.f32.mrb[30].mxu1  ;;  %v4347_v35 = vrot.slane %v4346_v36, 4  ;;  %v12152_v41 = vld [vmem:[#allocation2 + $0x158] sm:$0xff] }
 0x1bd   : > { %v9407_v27 = vpop.f32.mrb[24].mxu0  ;;  %v9465_v20 = vpop.f32.mrb[31].mxu1 }
 0x1be   : > { %v9408_v43 = vpop.f32.mrb[25].mxu0  ;;  %13628 = vst [vmem:[#allocation9_spill] sm:$0xff] %v12138_v3  ;;  %v12144_v26 = vadd.f32 %v9465_v20, %v9464_v16  ;;  %v4352_v16 = vsel %vm11386_vm4, %v4347_v35, %v4351_v13  ;;  %v4391_v20 = vshrl.u32 %v12152_v41, 16 }
 0x1bf   : > { %v12134_v40 = vadd.f32 %v9408_v43, %v9407_v27  ;;  %v9410_v4 = vpop.f32.mrb[26].mxu0  ;;  %v12150_v27 = vld [vmem:[#allocation2 + $0x150] sm:$0xff]  ;;  %3905 = vmatmul.mubr.bf16.gmra.mrb[136].mxu1 %v8635_v7  ;;  %v4337_v43 = vrot.slane %v4336_v34, 4 }
 0x1c0   : > { %v9411_v48 = vpop.f32.mrb[27].mxu0  ;;  %13629 = vst [vmem:[#allocation10_spill] sm:$0xff] %v12144_v26  ;;  %3912 = vmatprep.mubr.bf16.mxu1 %v8638_v8  ;;  %v4378_v29 = vshrl.u32 %v12150_v27, 16  ;;  %v4381_v38 = vshll.u32 %v12150_v27, 16  ;;  %v8715_v8 = vcombine.low %v4318_v55, %v4328_v61 }
 0x1c1   : > { %v12142_v28 = vadd.f32 %v9411_v48, %v9410_v4  ;;  %v4365_v4 = vrot.slane %v4363_v11, 5  ;;  %v4360_v11 = vor.u32 %v4359_v22, %v4356_v6  ;;  %v4342_v13 = vsel %vm11386_vm4, %v4337_v43, %v4341_v45  ;;  %v4058_v22 = vld [vmem:[#allocation2 + $0x160] sm:$0x11] }
 0x1c2   : > { %4843 = vmatmul.mubr.bf16.gmra.mrb[132].mxu0 %v8713_v5  ;;  %v4369_v5 = vrot.slane %v4367_v21, 4  ;;  %v9483_v24 = vpop.f32.mrb[32].mxu1  ;;  %v4387_v21 = vshll.u32 %v12152_v41, 16  ;;  %v8718_v49 = vcombine.high %v4342_v13, %v4352_v16  ;;  %v4375_v6 = vrot.slane %v4373_v12, 5 }
 0x1c3   : > { %4850 = vmatprep.mubr.bf16.mxu0 %v8716_v30  ;;  %v9484_v36 = vpop.f32.mrb[33].mxu1  ;;  %v4383_v55 = vrot.slane %v4381_v38, 5  ;;  %v8640_v45 = vcombine.high %v12126_v9, %v12128_v47  ;;  %v4361_v61 = vrot.slane %v4360_v11, 4  ;;  %v4397_v12 = vshll.u32 %v4058_v22, 16 }
 0x1c4   : > { %v9485_v25 = vadd.f32 %v9484_v36, %v9483_v24  ;;  %v9486_v26 = vpop.f32.mrb[34].mxu1  ;;  %v4370_v35 = vor.u32 %v4369_v5, %v4365_v4  ;;  %v4380_v24 = vrot.slane %v4378_v29, 4  ;;  %v12171_v43 = vrot.slane %v4387_v21, 5 }
 0x1c5   : > { %v9413_v48 = vpop.f32.mrb[28].mxu0  ;;  %v4393_v5 = vrot.slane %v4391_v20, 4 }
 0x1c6   : > { %v9414_v23 = vpop.f32.mrb[29].mxu0  ;;  %v2649_v39 = vadd.f32 %v9485_v25, %v11961_v37  ;;  %v4384_v38 = vor.u32 %v4383_v55, %v4380_v24 }
 0x1c7   : > { %v12158_v30 = vadd.f32 %v9414_v23, %v9413_v48  ;;  %v9416_v34 = vpop.f32.mrb[30].mxu0  ;;  %v9487_v48 = vpop.f32.mrb[35].mxu1  ;;  %v8637_v23 = vcombine.low %v12102_v46, %v12104_v50  ;;  %v4371_v50 = vrot.slane %v4370_v35, 4  ;;  %v4399_v35 = vrot.slane %v4397_v12, 5 }
 0x1c8   : > { %v9417_v7 = vpop.f32.mrb[31].mxu0  ;;  %v9488_v18 = vadd.f32 %v9487_v48, %v9486_v26  ;;  %v12176_v26 = vld [vmem:[#allocation2 + $0x170] sm:$0xff] }
 0x1c9   : > { %v12164_v3 = vadd.f32 %v9417_v7, %v9416_v34  ;;  %v12173_v34 = vld [vmem:[#allocation2 + $0x168] sm:$0xff]  ;;  %3913 = vmatmul.mubr.bf16.gmra.mrb[140].mxu1 %v8637_v23  ;;  %v8717_v7 = vcombine.low %v4342_v13, %v4352_v16  ;;  %v4411_v23 = vshll.u32 %v12176_v26, 16  ;;  %v4061_v13 = vld [vmem:[#allocation2 + $0x178] sm:$0x11] }
 0x1ca   : > { %4851 = vmatmul.mubr.bf16.gmra.mrb[136].mxu0 %v8715_v8  ;;  %v2650_v46 = vadd.f32 %v9488_v18, %v11980_v1  ;;  %3920 = vmatprep.mubr.bf16.mxu1 %v8640_v45  ;;  %v4402_v36 = vshrl.u32 %v12173_v34, 16  ;;  %v9489_v20 = vpop.f32.mrb[36].mxu1  ;;  %v4366_v1 = vsel %vm11386_vm4, %v4361_v61, %v4365_v4  ;;  %v4394_v18 = vor.u32 %v4393_v5, %v12171_v43 }
 0x1cb   : > { %4858 = vmatprep.mubr.bf16.mxu0 %v8718_v49  ;;  %v12180_v49 = vsel %vm11386_vm4, %v4371_v50, %v4375_v6  ;;  %v9490_v8 = vpop.f32.mrb[37].mxu1  ;;  %v4405_v48 = vshll.u32 %v12173_v34, 16  ;;  %v4415_v6 = vshrl.u32 %v12176_v26, 16  ;;  %v8639_v61 = vcombine.low %v12126_v9, %v12128_v47 }
 0x1cc   : > { %v9491_v55 = vadd.f32 %v9490_v8, %v9489_v20  ;;  %v9492_v45 = vpop.f32.mrb[38].mxu1  ;;  %v8720_v16 = vcombine.high %v4366_v1, %v12180_v49  ;;  %v8642_v5 = vcombine.high %v12150_v27, %v12152_v41  ;;  %v4385_v50 = vrot.slane %v4384_v38, 4  ;;  %v12201_v20 = vld [vmem:[#allocation2 + $0x188] sm:$0xff] }
 0x1cd   : > { %v9595_v37 = vpop.f32.mrb[32].mxu0  ;;  %v9493_v4 = vpop.f32.mrb[39].mxu1  ;;  %v4404_v12 = vrot.slane %v4402_v36, 4  ;;  %v4417_v9 = vrot.slane %v4415_v6, 4  ;;  %v4421_v47 = vshll.u32 %v4061_v13, 16 }
 0x1ce   : > { %v9596_v29 = vpop.f32.mrb[33].mxu0 }
 0x1cf   : > { %v9597_v11 = vadd.f32 %v9596_v29, %v9595_v37  ;;  %v9598_v21 = vpop.f32.mrb[34].mxu0  ;;  %v9494_v29 = vadd.f32 %v9493_v4, %v9492_v45  ;;  %v8719_v45 = vcombine.low %v4366_v1, %v12180_v49 }
 0x1d0   : > { %v9599_v25 = vpop.f32.mrb[35].mxu0 }
 0x1d1   : > { %v12189_v22 = vadd.f32 %v9597_v11, %v2649_v39  ;;  %v9600_v24 = vadd.f32 %v9599_v25, %v9598_v21  ;;  %v2651_v39 = vadd.f32 %v9491_v55, %v12011_v33  ;;  %v4395_v11 = vrot.slane %v4394_v18, 4  ;;  %v12199_v21 = vld [vmem:[#allocation2 + $0x180] sm:$0xff]  ;;  %3921 = vmatmul.mubr.bf16.gmra.mrb[144].mxu1 %v8639_v61 }
 0x1d2   : > { %4859 = vmatmul.mubr.bf16.gmra.mrb[140].mxu0 %v8717_v7  ;;  %v4407_v7 = vrot.slane %v4405_v48, 5  ;;  %v4413_v25 = vrot.slane %v4411_v23, 5  ;;  %v2652_v8 = vadd.f32 %v9494_v29, %v12022_v0  ;;  %3928 = vmatprep.mubr.bf16.mxu1 %v8642_v5  ;;  %v4426_v36 = vshrl.u32 %v12199_v21, 16  ;;  %v9495_v6 = vpop.f32.mrb[40].mxu1 }
 0x1d3   : > { %13630 = vst [vmem:[#allocation11_spill] sm:$0xff] %v12189_v22  ;;  %v12196_v37 = vadd.f32 %v9600_v24, %v2650_v46  ;;  %4866 = vmatprep.mubr.bf16.mxu0 %v8720_v16  ;;  %v4400_v46 = vsel %vm11386_vm4, %v4395_v11, %v4399_v35  ;;  %v4429_v18 = vshll.u32 %v12199_v21, 16  ;;  %v4435_v24 = vshll.u32 %v12201_v20, 16  ;;  %v9496_v13 = vpop.f32.mrb[41].mxu1 }
 0x1d4   : > { %v4439_v55 = vshrl.u32 %v12201_v20, 16  ;;  %v8641_v0 = vcombine.low %v12150_v27, %v12152_v41  ;;  %v4390_v35 = vsel %vm11386_vm4, %v4385_v50, %v12171_v43  ;;  %v4408_v4 = vor.u32 %v4407_v7, %v4404_v12 }
 0x1d5   : > { %13631 = vst [vmem:[#allocation12_spill] sm:$0xff] %v12196_v37  ;;  %v9601_v38 = vpop.f32.mrb[36].mxu0  ;;  %v4418_v61 = vor.u32 %v4417_v9, %v4413_v25  ;;  %v4423_v5 = vrot.slane %v4421_v47, 5  ;;  %v8722_v37 = vcombine.high %v4390_v35, %v4400_v46  ;;  %v4428_v1 = vrot.slane %v4426_v36, 4  ;;  %v4064_v47 = vld [vmem:[#allocation2 + $0x190] sm:$0x11] }
 0x1d6   : > { %v9602_v33 = vpop.f32.mrb[37].mxu0  ;;  %v4431_v22 = vrot.slane %v4429_v18, 5  ;;  %v4437_v27 = vrot.slane %v4435_v24, 5  ;;  %v4441_v41 = vrot.slane %v4439_v55, 4  ;;  %v8644_v50 = vcombine.high %v12173_v34, %v12176_v26 }
 0x1d7   : > { %v9603_v48 = vadd.f32 %v9602_v33, %v9601_v38  ;;  %v9604_v23 = vpop.f32.mrb[38].mxu0  ;;  %v9497_v38 = vadd.f32 %v9496_v13, %v9495_v6  ;;  %v9498_v33 = vpop.f32.mrb[42].mxu1  ;;  %v4409_v12 = vrot.slane %v4408_v4, 4 }
 0x1d8   : > { %v9605_v16 = vpop.f32.mrb[39].mxu0  ;;  %v9499_v49 = vpop.f32.mrb[43].mxu1  ;;  %v4432_v18 = vor.u32 %v4431_v22, %v4428_v1  ;;  %v4442_v24 = vor.u32 %v4441_v41, %v4437_v27  ;;  %v4963_v41 = vld [vmem:[#allocation2 + $0x18] sm:$0xee] }
 0x1d9   : > { %v12216_v29 = vadd.f32 %v9603_v48, %v2651_v39  ;;  %v9606_v11 = vadd.f32 %v9605_v16, %v9604_v23  ;;  %v2653_v14 = vadd.f32 %v9497_v38, %v12036_v62  ;;  %v9500_v43 = vadd.f32 %v9499_v49, %v9498_v33  ;;  %3929 = vmatmul.mubr.bf16.gmra.mrb[148].mxu1 %v8641_v0  ;;  %v4964_v48 = vld [vmem:[#allocation2 + $0x20] sm:$0xff] }
 0x1da   : > { %4867 = vmatmul.mubr.bf16.gmra.mrb[144].mxu0 %v8719_v45  ;;  %v4419_v39 = vrot.slane %v4418_v61, 4  ;;  %3936 = vmatprep.mubr.bf16.mxu1 %v8644_v50  ;;  %v9501_v55 = vpop.f32.mrb[44].mxu1  ;;  %v8721_v45 = vcombine.low %v4390_v35, %v4400_v46  ;;  %v4414_v0 = vsel %vm11386_vm4, %v4409_v12, %v4413_v25  ;;  %v8643_v38 = vcombine.low %v12173_v34, %v12176_v26 }
 0x1db   : > { %v12218_v32 = vadd.f32 %v9606_v11, %v2652_v8  ;;  %4874 = vmatprep.mubr.bf16.mxu0 %v8722_v37  ;;  %v2654_v7 = vadd.f32 %v9500_v43, %v12046_v58  ;;  %v9502_v6 = vpop.f32.mrb[45].mxu1  ;;  %v4445_v58 = vshll.u32 %v4064_v47, 16  ;;  %v4433_v33 = vrot.slane %v4432_v18, 4 }
 0x1dc   : > { %v4424_v8 = vsel %vm11386_vm4, %v4419_v39, %v4423_v5  ;;  %v9503_v4 = vadd.f32 %v9502_v6, %v9501_v55  ;;  %v9504_v61 = vpop.f32.mrb[46].mxu1  ;;  %v4965_v5 = vld [vmem:[#allocation2 + $0x28] sm:$0x11]  ;;  %v4443_v49 = vrot.slane %v4442_v24, 4  ;;  %v5061_v1 = vrot.slane %v4964_v48, 5  ;;  %v12242_v24 = vld [vmem:[#allocation2 + $0x38] sm:$0xff] }
 0x1dd   : > { %v9607_v9 = vpop.f32.mrb[40].mxu0  ;;  %v8724_v11 = vcombine.high %v4414_v0, %v4424_v8  ;;  %v9505_v22 = vpop.f32.mrb[47].mxu1  ;;  %v8646_v35 = vcombine.high %v12199_v21, %v12201_v20  ;;  %v4447_v43 = vrot.slane %v4445_v58, 5  ;;  %v5064_v50 = vrot.slane %v4965_v5, 5  ;;  %v4968_v58 = vld [vmem:[#allocation2 + $0x40] sm:$0x11] }
 0x1de   : > { %v9608_v36 = vpop.f32.mrb[41].mxu0  ;;  %v2655_v25 = vadd.f32 %v9503_v4, %v12062_v51  ;;  %v4438_v26 = vsel %vm11386_vm4, %v4433_v33, %v4437_v27  ;;  %v8723_v55 = vcombine.low %v4414_v0, %v4424_v8  ;;  %v8645_v4 = vcombine.low %v12199_v21, %v12201_v20  ;;  %v12257_v21 = vld [vmem:[#allocation2 + $0x30] sm:$0xff] }
 0x1df   : > { %v9609_v62 = vadd.f32 %v9608_v36, %v9607_v9  ;;  %v9610_v37 = vpop.f32.mrb[42].mxu0  ;;  %v4448_v51 = vsel %vm11386_vm4, %v4443_v49, %v4447_v43  ;;  %v5063_v9 = vrot.slane %v5061_v1, 4  ;;  %v5068_v8 = vrot.slane %v12242_v24, 5 }
 0x1e0   : > { %v9611_v23 = vpop.f32.mrb[43].mxu0  ;;  %v5071_v33 = vrot.slane %v4968_v58, 5 }
 0x1e1   : > { %v12228_v16 = vadd.f32 %v9609_v62, %v2653_v14  ;;  %v9612_v13 = vadd.f32 %v9611_v23, %v9610_v37  ;;  %v9506_v14 = vadd.f32 %v9505_v22, %v9504_v61  ;;  %3937 = vmatmul.mubr.bf16.gmra.mrb[152].mxu1 %v8643_v38  ;;  %v4966_v38 = vld [vmem:[#allocation2 + $0x30] sm:$0xee] }
 0x1e2   : > { %4875 = vmatmul.mubr.bf16.gmra.mrb[148].mxu0 %v8721_v45  ;;  %3944 = vmatprep.mubr.bf16.mxu1 %v8646_v35  ;;  %v9507_v18 = vpop.f32.mrb[48].mxu1  ;;  %v8726_v45 = vcombine.high %v4438_v26, %v4448_v51  ;;  %v12259_v35 = vld [vmem:[#allocation2 + $0x50] sm:$0xff] }
 0x1e3   : > { %v12232_v46 = vadd.f32 %v9612_v13, %v2654_v7  ;;  %4882 = vmatprep.mubr.bf16.mxu0 %v8724_v11  ;;  %v2656_v12 = vadd.f32 %v9506_v14, %v12070_v19  ;;  %v8743_v7 = vrot.slane %v4963_v41, 9  ;;  %v9508_v37 = vpop.f32.mrb[49].mxu1  ;;  %v5065_v19 = vsel %vm11407_vm5, %v5063_v9, %v5064_v50  ;;  %v4971_v50 = vld [vmem:[#allocation2 + $0x58] sm:$0x11] }
 0x1e4   : > { %v9509_v27 = vadd.f32 %v9508_v37, %v9507_v18  ;;  %v9510_v6 = vpop.f32.mrb[50].mxu1  ;;  %v5070_v14 = vrot.slane %v5068_v8, 4  ;;  %v4969_v37 = vld [vmem:[#allocation2 + $0x48] sm:$0xee] }
 0x1e5   : > { %v9613_v39 = vpop.f32.mrb[44].mxu0  ;;  %v9511_v13 = vpop.f32.mrb[51].mxu1  ;;  %v5062_v61 = vsel %vm11407_vm5, %v8743_v7, %v5061_v1  ;;  %v8744_v1 = vrot.slane %v4966_v38, 9  ;;  %v8872_v7 = vcombine.high %v12257_v21, %v12242_v24 }
 0x1e6   : > { %v9614_v34 = vpop.f32.mrb[45].mxu0  ;;  %v2657_v11 = vadd.f32 %v9509_v27, %v12086_v53  ;;  %v9512_v5 = vadd.f32 %v9511_v13, %v9510_v6  ;;  %v8792_v22 = vcombine.high %v5062_v61, %v5065_v19  ;;  %v5078_v27 = vrot.slane %v4971_v50, 5  ;;  %v10674_v6 = vld [vmem:[%s13539_s2 + $0x3c8] sm:$0xff]  }
 0x1e7   : > { %v9615_v47 = vadd.f32 %v9614_v34, %v9613_v39  ;;  %v9616_v36 = vpop.f32.mrb[46].mxu0  ;;  %v8725_v34 = vcombine.low %v4438_v26, %v4448_v51  ;;  %v8791_v26 = vcombine.low %v5062_v61, %v5065_v19  ;;  %v8745_v19 = vrot.slane %v4969_v37, 9 }
 0x1e8   : > { %v9617_v62 = vpop.f32.mrb[47].mxu0  ;;  %v2658_v49 = vadd.f32 %v9512_v5, %v12094_v59  ;;  %v12265_v59 = vsel %vm11407_vm5, %v5070_v14, %v5071_v33  ;;  %v10682_v33 = vld [vmem:[%s13539_s2 + $0x3d0] sm:$0xff]   ;;  %v8871_v14 = vcombine.low %v12257_v21, %v12242_v24  ;;  %v4972_v24 = vld [vmem:[#allocation2 + $0x60] sm:$0xee] }
 0x1e9   : > { %v12246_v48 = vadd.f32 %v9615_v47, %v2655_v25  ;;  %v9618_v23 = vadd.f32 %v9617_v62, %v9616_v36  ;;  %3945 = vmatmul.mubr.bf16.gmra.mrb[156].mxu1 %v8645_v4  ;;  %v10668_v62 = vld [vmem:[%s13539_s2 + $0x380] sm:$0xff]  }
 0x1ea   : > { %4883 = vmatmul.mubr.bf16.gmra.mrb[152].mxu0 %v8723_v55  ;;  %5492 = vmatprep.mubr.bf16.mxu1 %v8792_v22  ;;  %v9513_v53 = vpop.f32.mrb[52].mxu1  ;;  %v5075_v55 = vrot.slane %v12259_v35, 5  ;;  %v10675_v22 = vld [vmem:[%s13539_s2 + $0x388] sm:$0xff]  }
 0x1eb   : > { %v12253_v0 = vadd.f32 %v9618_v23, %v2656_v12  ;;  %4890 = vmatprep.mubr.bf16.mxu0 %v8726_v45  ;;  %v9514_v39 = vpop.f32.mrb[53].mxu1  ;;  %v5069_v23 = vsel %vm11407_vm5, %v8744_v1, %v5068_v8  ;;  %v12283_v8 = vld [vmem:[#allocation2 + $0x48] sm:$0xff] }
 0x1ec   : > { %v9515_v36 = vadd.f32 %v9514_v39, %v9513_v53  ;;  %v9516_v18 = vpop.f32.mrb[54].mxu1  ;;  %v8794_v4 = vcombine.high %v5069_v23, %v12265_v59  ;;  %v5077_v5 = vrot.slane %v5075_v55, 4  ;;  %v8874_v53 = vcombine.high %v12283_v8, %v12259_v35  ;;  %v10676_v39 = vld [vmem:[%s13539_s2 + $0x448] sm:$0xff]  }
 0x1ed   : > { %v9619_v25 = vpop.f32.mrb[48].mxu0  ;;  %v9517_v51 = vpop.f32.mrb[55].mxu1  ;;  %v12306_v50 = vsel %vm11407_vm5, %v8745_v19, %v5075_v55  ;;  %v8793_v37 = vcombine.low %v5069_v23, %v12265_v59  ;;  %v10678_v59 = vld [vmem:[%s13539_s2 + $0x408] sm:$0xff]   ;;  %v8746_v23 = vrot.slane %v4972_v24, 9 }
 0x1ee   : > { %v9620_v20 = vpop.f32.mrb[49].mxu0  ;;  %v2659_v58 = vadd.f32 %v9515_v36, %v12108_v56  ;;  %v9518_v13 = vadd.f32 %v9517_v51, %v9516_v18  ;;  %v12288_v56 = vld [vmem:[#allocation2 + $0x68] sm:$0xff]  ;;  %v12298_v1 = vsel %vm11407_vm5, %v5077_v5, %v5078_v27  ;;  %v10683_v18 = vld [vmem:[%s13539_s2 + $0x390] sm:$0xff]  }
 0x1ef   : > { %v9621_v41 = vadd.f32 %v9620_v20, %v9619_v25  ;;  %v9622_v43 = vpop.f32.mrb[50].mxu0  ;;  %v10670_v20 = vld [vmem:[%s13539_s2 + $0x400] sm:$0xff]   ;;  %v5082_v21 = vrot.slane %v12288_v56, 5  ;;  %v8796_v55 = vcombine.high %v12306_v50, %v12298_v1 }
 0x1f0   : > { %v9623_v12 = vpop.f32.mrb[51].mxu0  ;;  %v2660_v61 = vadd.f32 %v9518_v13, %v12118_v44  ;;  %v10684_v13 = vld [vmem:[%s13539_s2 + $0x450] sm:$0xff]  }
 0x1f1   : > { %v12267_v9 = vadd.f32 %v9621_v41, %v2657_v11  ;;  %v9624_v47 = vadd.f32 %v9623_v12, %v9622_v43  ;;  %5493 = vmatmul.mubr.bf16.vlgmr.msra.gmra.mrb[160].mxu1 %v8791_v26  ;;  %v4974_v12 = vld [vmem:[#allocation2 + $0x70] sm:$0x11]  ;;  %v10690_v26 = vld [vmem:[%s13539_s2 + $0x3d8] sm:$0xff]  }
 0x1f2   : > { %4891 = vmatmul.mubr.bf16.gmra.mrb[156].mxu0 %v8725_v34  ;;  %5500 = vmatprep.mubr.bf16.mxu1 %v8794_v4  ;;  %v9519_v25 = vpop.f32.mrb[56].mxu1 }
 0x1f3   : > { %v12278_v45 = vadd.f32 %v9624_v47, %v2658_v49  ;;  %6071 = vmatprep.mubr.bf16.mxu0 %v8872_v7  ;;  %10140 = vmatpush3.bf16.msra.mxu1 %v10668_v62  ;;  %v9520_v43 = vpop.f32.mrb[57].mxu1 }
 0x1f4   : > { %10141 = vmatprep.subr.bf16.mxu1 %v10674_v6  ;;  %v9521_v47 = vadd.f32 %v9520_v43, %v9519_v25  ;;  %v9522_v36 = vpop.f32.mrb[58].mxu1  ;;  %v10686_v25 = vld [vmem:[%s13539_s2 + $0x410] sm:$0xff]  }
 0x1f5   : > { %v9625_v11 = vpop.f32.mrb[52].mxu0  ;;  %v9523_v62 = vpop.f32.mrb[59].mxu1 }
 0x1f6   : > { %v9626_v38 = vpop.f32.mrb[53].mxu0  ;;  %v2661_v27 = vadd.f32 %v9521_v47, %v12134_v40  ;;  %v9524_v6 = vadd.f32 %v9523_v62, %v9522_v36  ;;  %v12333_v40 = vld [vmem:[#allocation2 + $0x60] sm:$0xff]  ;;  %v8795_v62 = vcombine.low %v12306_v50, %v12298_v1  ;;  %v10694_v1 = vld [vmem:[%s13539_s2 + $0x418] sm:$0xff]  }
 0x1f7   : > { %v9627_v49 = vadd.f32 %v9626_v38, %v9625_v11  ;;  %v9628_v44 = vpop.f32.mrb[54].mxu0  ;;  %10142 = vmatpush3.bf16.msra.mxu1 %v10675_v22  ;;  %v10691_v11 = vld [vmem:[%s13539_s2 + $0x398] sm:$0xff]   ;;  %v12338_v22 = vld [vmem:[#allocation2 + $0x80] sm:$0xff]  ;;  %v8876_v43 = vcombine.high %v12333_v40, %v12288_v56 }
 0x1f8   : > { %v9629_v41 = vpop.f32.mrb[55].mxu0  ;;  %10143 = vmatprep.subr.bf16.mxu1 %v10682_v33  ;;  %v2662_v4 = vadd.f32 %v9524_v6, %v12142_v28  ;;  %v10698_v38 = vld [vmem:[%s13539_s2 + $0x3e0] sm:$0xff]  }
 0x1f9   : > { %v12311_v34 = vadd.f32 %v9627_v49, %v2659_v58  ;;  %v9630_v7 = vadd.f32 %v9629_v41, %v9628_v44  ;;  %v5085_v58 = vrot.slane %v4974_v12, 5  ;;  %5501 = vmatmul.mubr.bf16.gmra.mrb[164].mxu1 %v8793_v37  ;;  %v8873_v41 = vcombine.low %v12283_v8, %v12259_v35  ;;  %v4977_v12 = vld [vmem:[#allocation2 + $0x88] sm:$0x11]  ;;  %v10699_v8 = vld [vmem:[%s13539_s2 + $0x3a0] sm:$0xff]  }
 0x1fa   : > { %6072 = vmatmul.mubr.bf16.vlgmr.msra.gmra.mrb[160].mxu0 %v8871_v14  ;;  %5508 = vmatprep.mubr.bf16.mxu1 %v8796_v55  ;;  %v9525_v49 = vpop.f32.mrb[60].mxu1  ;;  %v5089_v35 = vrot.slane %v12338_v22, 5  ;;  %v10706_v55 = vld [vmem:[%s13539_s2 + $0x3e8] sm:$0xff]  }
 0x1fb   : > { %v12323_v51 = vadd.f32 %v9630_v7, %v2660_v61  ;;  %10252 = vmatpush3.bf16.msra.mxu0 %v10670_v20  ;;  %6079 = vmatprep.mubr.bf16.mxu0 %v8874_v53  ;;  %v5084_v61 = vrot.slane %v5082_v21, 4  ;;  %v9526_v14 = vpop.f32.mrb[61].mxu1  ;;  %v12356_v53 = vsel %vm11407_vm5, %v8746_v23, %v5082_v21 }
 0x1fc   : > { %10253 = vmatprep.subr.bf16.mxu0 %v10676_v39  ;;  %10144 = vmatpush3.bf16.msra.mxu1 %v10683_v18  ;;  %v10692_v39 = vld [vmem:[%s13539_s2 + $0x458] sm:$0xff]   ;;  %v9527_v36 = vadd.f32 %v9526_v14, %v9525_v49  ;;  %v9528_v24 = vpop.f32.mrb[62].mxu1  ;;  %v10702_v49 = vld [vmem:[%s13539_s2 + $0x420] sm:$0xff]   ;;  %v8875_v14 = vcombine.low %v12333_v40, %v12288_v56  ;;  %v10715_v40 = vld [vmem:[%s13539_s2 + $0x3b0] sm:$0xff]  }
 0x1fd   : > { %v9631_v19 = vpop.f32.mrb[56].mxu0  ;;  %10145 = vmatprep.subr.bf16.mxu1 %v10690_v26  ;;  %v12345_v44 = vsel %vm11407_vm5, %v5084_v61, %v5085_v58  ;;  %v4975_v18 = vld [vmem:[#allocation2 + $0x78] sm:$0xee]  ;;  %v9529_v21 = vpop.f32.mrb[63].mxu1  ;;  %v5092_v58 = vrot.slane %v4977_v12, 5 }
 0x1fe   : > { %v9632_v5 = vpop.f32.mrb[57].mxu0  ;;  %v8798_v37 = vcombine.high %v12356_v53, %v12345_v44  ;;  %v9530_v6 = vadd.f32 %v9529_v21, %v9528_v24  ;;  %v8747_v50 = vrot.slane %v4975_v18, 9  ;;  %v4980_v12 = vld [vmem:[#allocation2 + $0xa0] sm:$0x11] }
 0x1ff   : > { %v9633_v33 = vadd.f32 %v9632_v5, %v9631_v19  ;;  %v9634_v28 = vpop.f32.mrb[58].mxu0  ;;  %10254 = vmatpush3.bf16.msra.mxu0 %v10678_v59  ;;  %v10700_v59 = vld [vmem:[%s13539_s2 + $0x460] sm:$0xff]   ;;  %v10707_v19 = vld [vmem:[%s13539_s2 + $0x3a8] sm:$0xff]   ;;  %v10714_v5 = vld [vmem:[%s13539_s2 + $0x3f0] sm:$0xff]  }
 0x200   : > { %v9635_v20 = vpop.f32.mrb[59].mxu0  ;;  %10255 = vmatprep.subr.bf16.mxu0 %v10684_v13  ;;  %10146 = vmatpush3.bf16.msra.mxu1 %v10691_v11  ;;  %v2664_v23 = vadd.f32 %v9530_v6, %v12164_v3  ;;  %v12389_v11 = vld [vmem:[#allocation2 + $0x98] sm:$0xff] }
 0x201   : > { %v12361_v7 = vadd.f32 %v9633_v33, %v2661_v27  ;;  %v9636_v47 = vadd.f32 %v9635_v20, %v9634_v28  ;;  %10147 = vmatprep.subr.bf16.mxu1 %v10698_v38  ;;  %v2663_v27 = vadd.f32 %v9527_v36, %v12158_v30  ;;  %5509 = vmatmul.mubr.bf16.gmra.mrb[168].mxu1 %v8795_v62  ;;  %v12384_v30 = vld [vmem:[#allocation2 + $0x78] sm:$0xff]  ;;  %v5096_v56 = vrot.slane %v12389_v11, 5  ;;  %v4978_v62 = vld [vmem:[#allocation2 + $0x90] sm:$0xee] }
 0x202   : > { %6080 = vmatmul.mubr.bf16.gmra.mrb[164].mxu0 %v8873_v41  ;;  %5516 = vmatprep.mubr.bf16.mxu1 %v8798_v37  ;;  %v9531_v33 = vpop.f32.mrb[64].mxu1  ;;  %v8878_v41 = vcombine.high %v12384_v30, %v12338_v22  ;;  %v10722_v37 = vld [vmem:[%s13539_s2 + $0x3f8] sm:$0xff]  }
 0x203   : > { %v12374_v26 = vadd.f32 %v9636_v47, %v2662_v4  ;;  %6087 = vmatprep.mubr.bf16.mxu0 %v8876_v43  ;;  %10256 = vmatpush3.bf16.msra.mxu0 %v10686_v25  ;;  %v5091_v4 = vrot.slane %v5089_v35, 4  ;;  %v9532_v20 = vpop.f32.mrb[65].mxu1  ;;  %v12407_v43 = vsel %vm11407_vm5, %v8747_v50, %v5089_v35 }
 0x204   : > { %10257 = vmatprep.subr.bf16.mxu0 %v10692_v39  ;;  %10148 = vmatpush3.bf16.msra.mxu1 %v10699_v8  ;;  %v10708_v39 = vld [vmem:[%s13539_s2 + $0x468] sm:$0xff]   ;;  %v9533_v24 = vadd.f32 %v9532_v20, %v9531_v33  ;;  %v9534_v18 = vpop.f32.mrb[66].mxu1  ;;  %v8797_v8 = vcombine.low %v12356_v53, %v12345_v44  ;;  %v10716_v53 = vld [vmem:[%s13539_s2 + $0x470] sm:$0xff]  }
 0x205   : > { %v9637_v13 = vpop.f32.mrb[60].mxu0  ;;  %10149 = vmatprep.subr.bf16.mxu1 %v10706_v55  ;;  %v12396_v28 = vsel %vm11407_vm5, %v5091_v4, %v5092_v58  ;;  %v9535_v35 = vpop.f32.mrb[67].mxu1  ;;  %v5099_v58 = vrot.slane %v4980_v12, 5  ;;  %v10710_v44 = vld [vmem:[%s13539_s2 + $0x428] sm:$0xff]  }
 0x206   : > { %v9638_v61 = vpop.f32.mrb[61].mxu0  ;;  %v8800_v21 = vcombine.high %v12407_v43, %v12396_v28  ;;  %v9536_v6 = vadd.f32 %v9535_v35, %v9534_v18  ;;  %v4983_v18 = vld [vmem:[#allocation2 + $0xb8] sm:$0x11] }
 0x207   : > { %v9639_v38 = vadd.f32 %v9638_v61, %v9637_v13  ;;  %v9640_v3 = vpop.f32.mrb[62].mxu0  ;;  %10258 = vmatpush3.bf16.msra.mxu0 %v10694_v1  ;;  %v10723_v13 = vld [vmem:[%s13539_s2 + $0x3b8] sm:$0xff]  }
 0x208   : > { %v9641_v25 = vpop.f32.mrb[63].mxu0  ;;  %10259 = vmatprep.subr.bf16.mxu0 %v10700_v59  ;;  %10150 = vmatpush3.bf16.msra.mxu1 %v10707_v19  ;;  %v2666_v1 = vadd.f32 %v9536_v6, %v11929_v10  ;;  %v12435_v59 = vld [vmem:[#allocation2 + $0x90] sm:$0xff] }
 0x209   : > { %v12412_v47 = vadd.f32 %v9639_v38, %v2663_v27  ;;  %v9642_v36 = vadd.f32 %v9641_v25, %v9640_v3  ;;  %10151 = vmatprep.subr.bf16.mxu1 %v10714_v5  ;;  %v2665_v27 = vadd.f32 %v9533_v24, %v11909_v63  ;;  %5517 = vmatmul.mubr.bf16.gmra.mrb[172].mxu1 %v8797_v8  ;;  %v8748_v63 = vrot.slane %v4978_v62, 9  ;;  %v12444_v10 = vld [vmem:[#allocation2 + $0xb0] sm:$0xff] }
 0x20a   : > { %6088 = vmatmul.mubr.bf16.gmra.mrb[168].mxu0 %v8875_v14  ;;  %5524 = vmatprep.mubr.bf16.mxu1 %v8800_v21  ;;  %v9537_v5 = vpop.f32.mrb[68].mxu1  ;;  %v10718_v3 = vld [vmem:[%s13539_s2 + $0x430] sm:$0xff]   ;;  %v8877_v25 = vcombine.low %v12384_v30, %v12338_v22  ;;  %v8880_v20 = vcombine.high %v12435_v59, %v12389_v11  ;;  %v10724_v14 = vld [vmem:[%s13539_s2 + $0x478] sm:$0xff]   ;;  %v8799_v30 = vcombine.low %v12407_v43, %v12396_v28  ;;  %v5103_v35 = vrot.slane %v12444_v10, 5 }
 0x20b   : > { %v12425_v55 = vadd.f32 %v9642_v36, %v2664_v23  ;;  %6095 = vmatprep.mubr.bf16.mxu0 %v8878_v41  ;;  %10260 = vmatpush3.bf16.msra.mxu0 %v10702_v49  ;;  %v5098_v23 = vrot.slane %v5096_v56, 4  ;;  %v9538_v49 = vpop.f32.mrb[69].mxu1  ;;  %v5097_v24 = vsel %vm11407_vm5, %v8748_v63, %v5096_v56  ;;  %v10726_v56 = vld [vmem:[%s13539_s2 + $0x438] sm:$0xff]   ;;  %v12471_v63 = vld [vmem:[#allocation2 + $0xc8] sm:$0xff] }
 0x20c   : > { %10261 = vmatprep.subr.bf16.mxu0 %v10708_v39  ;;  %10152 = vmatpush3.bf16.msra.mxu1 %v10715_v40  ;;  %v9539_v39 = vadd.f32 %v9538_v49, %v9537_v5  ;;  %v9540_v36 = vpop.f32.mrb[70].mxu1  ;;  %v4986_v49 = vld [vmem:[#allocation2 + $0xd0] sm:$0x11] }
 0x20d   : > { %v9643_v50 = vpop.f32.mrb[64].mxu0  ;;  %10153 = vmatprep.subr.bf16.mxu1 %v10722_v37  ;;  %v12442_v38 = vsel %vm11407_vm5, %v5098_v23, %v5099_v58  ;;  %v9541_v22 = vpop.f32.mrb[71].mxu1  ;;  %v4981_v37 = vld [vmem:[#allocation2 + $0xa8] sm:$0xee] }
 0x20e   : > { %v9644_v4 = vpop.f32.mrb[65].mxu0  ;;  %v8802_v40 = vcombine.high %v5097_v24, %v12442_v38  ;;  %v2667_v21 = vadd.f32 %v9539_v39, %v11982_v2  ;;  %v9542_v62 = vadd.f32 %v9541_v22, %v9540_v36  ;;  %v5696_v58 = vld [vmem:[#allocation2 + $0xa8] sm:$0xff]  ;;  %v5113_v22 = vrot.slane %v4986_v49, 5 }
 0x20f   : > { %v9645_v19 = vadd.f32 %v9644_v4, %v9643_v50  ;;  %v9646_v61 = vpop.f32.mrb[66].mxu0  ;;  %10262 = vmatpush3.bf16.msra.mxu0 %v10710_v44  ;;  %v8749_v44 = vrot.slane %v4981_v37, 9  ;;  %v8879_v4 = vcombine.low %v12435_v59, %v12389_v11  ;;  %v5110_v11 = vrot.slane %v12471_v63, 5 }
 0x210   : > { %v9647_v33 = vpop.f32.mrb[67].mxu0  ;;  %10263 = vmatprep.subr.bf16.mxu0 %v10716_v53  ;;  %10154 = vmatpush3.bf16.msra.mxu1 %v10723_v13  ;;  %v2668_v28 = vadd.f32 %v9542_v62, %v11991_v15  ;;  %v5105_v53 = vrot.slane %v5103_v35, 4 }
 0x211   : > { %v12456_v41 = vadd.f32 %v9645_v19, %v2665_v27  ;;  %v9648_v12 = vadd.f32 %v9647_v33, %v9646_v61  ;;  %5525 = vmatmul.mubr.bf16.gmra.mrb[176].mxu1 %v8799_v30  ;;  %v5106_v27 = vrot.slane %v4983_v18, 5  ;;  %v8882_v33 = vcombine.high %v5696_v58, %v12444_v10  ;;  %v4984_v18 = vld [vmem:[#allocation2 + $0xc0] sm:$0xee] }
 0x212   : > { %6096 = vmatmul.mubr.bf16.gmra.mrb[172].mxu0 %v8877_v25  ;;  %5532 = vmatprep.mubr.bf16.mxu1 %v8802_v40  ;;  %v9543_v50 = vpop.f32.mrb[72].mxu1 }
 0x213   : > { %v12464_v8 = vadd.f32 %v9648_v12, %v2666_v1  ;;  %6103 = vmatprep.mubr.bf16.mxu0 %v8880_v20  ;;  %10264 = vmatpush3.bf16.msra.mxu0 %v10718_v3  ;;  %v9544_v13 = vpop.f32.mrb[73].mxu1  ;;  %v5107_v15 = vsel %vm11407_vm5, %v5105_v53, %v5106_v27  ;;  %v8801_v20 = vcombine.low %v5097_v24, %v12442_v38  ;;  %v5698_v24 = vld [vmem:[#allocation2 + $0xc0] sm:$0xff] }
 0x214   : > { %10265 = vmatprep.subr.bf16.mxu0 %v10724_v14  ;;  %v9545_v5 = vadd.f32 %v9544_v13, %v9543_v50  ;;  %v9546_v3 = vpop.f32.mrb[74].mxu1  ;;  %v5104_v14 = vsel %vm11407_vm5, %v8749_v44, %v5103_v35  ;;  %v5112_v35 = vrot.slane %v5110_v11, 4  ;;  %v12488_v27 = vld [vmem:[#allocation2 + $0xe0] sm:$0xff]  ;;  %v4989_v50 = vld [vmem:[#allocation2 + $0xe8] sm:$0x11] }
 0x215   : > { %v9649_v43 = vpop.f32.mrb[68].mxu0  ;;  %v9547_v25 = vpop.f32.mrb[75].mxu1  ;;  %v8804_v36 = vcombine.high %v5104_v14, %v5107_v15  ;;  %v8803_v13 = vcombine.low %v5104_v14, %v5107_v15  ;;  %v5120_v49 = vrot.slane %v4989_v50, 5  ;;  %v5700_v14 = vld [vmem:[#allocation2 + $0xd8] sm:$0xff] }
 0x216   : > { %v9650_v6 = vpop.f32.mrb[69].mxu0  ;;  %v2669_v12 = vadd.f32 %v9545_v5, %v12018_v52  ;;  %v9548_v39 = vadd.f32 %v9547_v25, %v9546_v3 }
 0x217   : > { %v9651_v2 = vadd.f32 %v9650_v6, %v9649_v43  ;;  %v9652_v1 = vpop.f32.mrb[70].mxu0  ;;  %10266 = vmatpush3.bf16.msra.mxu0 %v10726_v56  ;;  %v8881_v43 = vcombine.low %v5696_v58, %v12444_v10  ;;  %v5114_v6 = vsel %vm11407_vm5, %v5112_v35, %v5113_v22  ;;  %v12503_v22 = vld [vmem:[#allocation2 + $0xf8] sm:$0xff] }
 0x218   : > { %v9653_v23 = vpop.f32.mrb[71].mxu0  ;;  %v2670_v30 = vadd.f32 %v9548_v39, %v12026_v54 }
 0x219   : > { %v12477_v19 = vadd.f32 %v9651_v2, %v2667_v21  ;;  %v9654_v61 = vadd.f32 %v9653_v23, %v9652_v1  ;;  %5533 = vmatmul.mubr.bf16.gmra.mrb[180].mxu1 %v8801_v20  ;;  %v8750_v21 = vrot.slane %v4984_v18, 9  ;;  %v8884_v1 = vcombine.high %v5698_v24, %v12471_v63 }
 0x21a   : > { %6104 = vmatmul.mubr.bf16.gmra.mrb[176].mxu0 %v8879_v4  ;;  %5540 = vmatprep.mubr.bf16.mxu1 %v8804_v36  ;;  %v9549_v56 = vpop.f32.mrb[76].mxu1 }
 0x21b   : > { %v12484_v59 = vadd.f32 %v9654_v61, %v2668_v28  ;;  %6111 = vmatprep.mubr.bf16.mxu0 %v8882_v33  ;;  %v9550_v28 = vpop.f32.mrb[77].mxu1  ;;  %v5111_v4 = vsel %vm11407_vm5, %v8750_v21, %v5110_v11  ;;  %v5117_v61 = vrot.slane %v12488_v27, 5  ;;  %v4987_v33 = vld [vmem:[#allocation2 + $0xd8] sm:$0xee] }
 0x21c   : > { %v9551_v53 = vadd.f32 %v9550_v28, %v9549_v56  ;;  %v9552_v2 = vpop.f32.mrb[78].mxu1  ;;  %v8806_v3 = vcombine.high %v5111_v4, %v5114_v6  ;;  %v4992_v56 = vld [vmem:[#allocation2 + $0x100] sm:$0x11]  ;;  %v8805_v28 = vcombine.low %v5111_v4, %v5114_v6  ;;  %v5702_v4 = vld [vmem:[#allocation2 + $0xf0] sm:$0xff] }
 0x21d   : > { %v9655_v40 = vpop.f32.mrb[72].mxu0  ;;  %v9553_v23 = vpop.f32.mrb[79].mxu1  ;;  %v5119_v11 = vrot.slane %v5117_v61, 4  ;;  %v5127_v50 = vrot.slane %v4992_v56, 5 }
 0x21e   : > { %v9656_v38 = vpop.f32.mrb[73].mxu0  ;;  %v2671_v58 = vadd.f32 %v9551_v53, %v12042_v60  ;;  %v9554_v5 = vadd.f32 %v9553_v23, %v9552_v2  ;;  %v13632_v23 = vld [vmem:[#allocation4_spill] sm:$0xff] }
 0x21f   : > { %v9657_v62 = vadd.f32 %v9656_v38, %v9655_v40  ;;  %v9658_v37 = vpop.f32.mrb[74].mxu0  ;;  %v8883_v40 = vcombine.low %v5698_v24, %v12471_v63  ;;  %v5121_v38 = vsel %vm11407_vm5, %v5119_v11, %v5120_v49 }
 0x220   : > { %v9659_v52 = vpop.f32.mrb[75].mxu0  ;;  %v2672_v25 = vadd.f32 %v9554_v5, %v12048_v31 }
 0x221   : > { %v12493_v44 = vadd.f32 %v9657_v62, %v2669_v12  ;;  %v9660_v54 = vadd.f32 %v9659_v52, %v9658_v37  ;;  %5541 = vmatmul.mubr.bf16.gmra.mrb[184].mxu1 %v8803_v13  ;;  %v8751_v12 = vrot.slane %v4987_v33, 9  ;;  %v8886_v37 = vcombine.high %v5700_v14, %v12488_v27 }
 0x222   : > { %6112 = vmatmul.mubr.bf16.gmra.mrb[180].mxu0 %v8881_v43  ;;  %5548 = vmatprep.mubr.bf16.mxu1 %v8806_v3  ;;  %v9555_v18 = vpop.f32.mrb[80].mxu1 }
 0x223   : > { %v12499_v10 = vadd.f32 %v9660_v54, %v2670_v30  ;;  %6119 = vmatprep.mubr.bf16.mxu0 %v8884_v1  ;;  %v9556_v30 = vpop.f32.mrb[81].mxu1  ;;  %v5118_v43 = vsel %vm11407_vm5, %v8751_v12, %v5117_v61  ;;  %v5124_v54 = vrot.slane %v12503_v22, 5  ;;  %v4990_v1 = vld [vmem:[#allocation2 + $0xf0] sm:$0xee] }
 0x224   : > { %v9557_v35 = vadd.f32 %v9556_v30, %v9555_v18  ;;  %v9558_v62 = vpop.f32.mrb[82].mxu1  ;;  %v8808_v2 = vcombine.high %v5118_v43, %v5121_v38  ;;  %v8752_v5 = vrot.slane %v4990_v1, 9  ;;  %v4995_v30 = vld [vmem:[#allocation2 + $0x118] sm:$0x11] }
 0x225   : > { %v9661_v20 = vpop.f32.mrb[76].mxu0  ;;  %v9559_v52 = vpop.f32.mrb[83].mxu1  ;;  %v5126_v61 = vrot.slane %v5124_v54, 4 }
 0x226   : > { %v9662_v15 = vpop.f32.mrb[77].mxu0  ;;  %v2673_v24 = vadd.f32 %v9557_v35, %v12066_v42  ;;  %v9560_v53 = vadd.f32 %v9559_v52, %v9558_v62  ;;  %v5125_v35 = vsel %vm11407_vm5, %v8752_v5, %v5124_v54 }
 0x227   : > { %v9663_v39 = vadd.f32 %v9662_v15, %v9661_v20  ;;  %v9664_v36 = vpop.f32.mrb[78].mxu0  ;;  %v8885_v15 = vcombine.low %v5700_v14, %v12488_v27  ;;  %v5128_v12 = vsel %vm11407_vm5, %v5126_v61, %v5127_v50  ;;  %v13635_v14 = vld [vmem:[#allocation5_spill] sm:$0xff] }
 0x228   : > { %v9665_v60 = vpop.f32.mrb[79].mxu0  ;;  %v2674_v13 = vadd.f32 %v9560_v53, %v13632_v23  ;;  %v8810_v52 = vcombine.high %v5125_v35, %v5128_v12  ;;  %v13636_v53 = vld [vmem:[#allocation6_spill] sm:$0xff] }
 0x229   : > { %v12508_v21 = vadd.f32 %v9663_v39, %v2671_v58  ;;  %v9666_v31 = vadd.f32 %v9665_v60, %v9664_v36  ;;  %5549 = vmatmul.mubr.bf16.gmra.mrb[188].mxu1 %v8805_v28  ;;  %v8888_v60 = vcombine.high %v5702_v4, %v12503_v22  ;;  %v4993_v28 = vld [vmem:[#allocation2 + $0x108] sm:$0xee] }
 0x22a   : > { %6120 = vmatmul.mubr.bf16.gmra.mrb[184].mxu0 %v8883_v40  ;;  %5556 = vmatprep.mubr.bf16.mxu1 %v8808_v2  ;;  %v9561_v49 = vpop.f32.mrb[84].mxu1  ;;  %v8753_v50 = vrot.slane %v4993_v28, 9  ;;  %v13640_v28 = vld [vmem:[#allocation8_spill] sm:$0xff] }
 0x22b   : > { %v12514_v63 = vadd.f32 %v9666_v31, %v2672_v25  ;;  %6127 = vmatprep.mubr.bf16.mxu0 %v8886_v37  ;;  %v12518_v25 = vld [vmem:[#allocation2 + $0x110] sm:$0xff]  ;;  %v9562_v20 = vpop.f32.mrb[85].mxu1  ;;  %v8807_v31 = vcombine.low %v5118_v43, %v5121_v38  ;;  %v5704_v43 = vld [vmem:[#allocation2 + $0x108] sm:$0xff] }
 0x22c   : > { %v9563_v36 = vadd.f32 %v9562_v20, %v9561_v49  ;;  %v9564_v18 = vpop.f32.mrb[86].mxu1  ;;  %v5131_v62 = vrot.slane %v12518_v25, 5 }
 0x22d   : > { %v9667_v58 = vpop.f32.mrb[80].mxu0  ;;  %v9565_v40 = vpop.f32.mrb[87].mxu1 }
 0x22e   : > { %v9668_v6 = vpop.f32.mrb[81].mxu0  ;;  %v2675_v37 = vadd.f32 %v9563_v36, %v13635_v14  ;;  %v9566_v56 = vadd.f32 %v9565_v40, %v9564_v18  ;;  %v5133_v54 = vrot.slane %v5131_v62, 4  ;;  %v4998_v36 = vld [vmem:[#allocation2 + $0x130] sm:$0x11] }
 0x22f   : > { %v9669_v3 = vadd.f32 %v9668_v6, %v9667_v58  ;;  %v9670_v33 = vpop.f32.mrb[82].mxu0  ;;  %v12533_v6 = vld [vmem:[#allocation2 + $0x128] sm:$0xff] }
 0x230   : > { %v9671_v42 = vpop.f32.mrb[83].mxu0  ;;  %v2676_v2 = vadd.f32 %v9566_v56, %v13636_v53  ;;  %v5138_v40 = vrot.slane %v12533_v6, 5  ;;  %v4996_v56 = vld [vmem:[#allocation2 + $0x120] sm:$0xee] }
 0x231   : > { %v12523_v11 = vadd.f32 %v9669_v3, %v2673_v24  ;;  %v9672_v39 = vadd.f32 %v9671_v42, %v9670_v33  ;;  %5557 = vmatmul.mubr.bf16.gmra.mrb[192].mxu1 %v8807_v31  ;;  %v5134_v24 = vrot.slane %v4995_v30, 5  ;;  %v8887_v3 = vcombine.low %v5702_v4, %v12503_v22  ;;  %v13639_v4 = vld [vmem:[#allocation7_spill] sm:$0xff] }
 0x232   : > { %6128 = vmatmul.mubr.bf16.gmra.mrb[188].mxu0 %v8885_v15  ;;  %5564 = vmatprep.mubr.bf16.mxu1 %v8810_v52  ;;  %v5132_v30 = vsel %vm11407_vm5, %v8753_v50, %v5131_v62  ;;  %v5141_v52 = vrot.slane %v4998_v36, 5  ;;  %v5140_v62 = vrot.slane %v5138_v40, 4 }
 0x233   : > { %13633 = vst [vmem:[#allocation13_spill] sm:$0xff] %v12523_v11  ;;  %v12529_v27 = vadd.f32 %v9672_v39, %v2674_v13  ;;  %6135 = vmatprep.mubr.bf16.mxu0 %v8888_v60  ;;  %v9567_v13 = vpop.f32.mrb[88].mxu1  ;;  %v5135_v33 = vsel %vm11407_vm5, %v5133_v54, %v5134_v24  ;;  %v8890_v39 = vcombine.high %v5704_v43, %v12518_v25  ;;  %v12548_v54 = vld [vmem:[#allocation2 + $0x140] sm:$0xff] }
 0x234   : > { %v9568_v61 = vpop.f32.mrb[89].mxu1  ;;  %v8809_v60 = vcombine.low %v5125_v35, %v5128_v12  ;;  %v5706_v35 = vld [vmem:[#allocation2 + $0x120] sm:$0xff] }
 0x235   : > { %13634 = vst [vmem:[#allocation14_spill] sm:$0xff] %v12529_v27  ;;  %v9673_v1 = vpop.f32.mrb[84].mxu0  ;;  %v9569_v20 = vadd.f32 %v9568_v61, %v9567_v13  ;;  %v9570_v15 = vpop.f32.mrb[90].mxu1  ;;  %v8889_v13 = vcombine.low %v5704_v43, %v12518_v25  ;;  %v13643_v43 = vld [vmem:[#allocation9_spill] sm:$0xff] }
 0x236   : > { %v9674_v38 = vpop.f32.mrb[85].mxu0  ;;  %v9571_v18 = vpop.f32.mrb[91].mxu1 }
 0x237   : > { %v9675_v23 = vadd.f32 %v9674_v38, %v9673_v1  ;;  %v9676_v58 = vpop.f32.mrb[86].mxu0  ;;  %v2677_v31 = vadd.f32 %v9569_v20, %v13639_v4  ;;  %v9572_v14 = vadd.f32 %v9571_v18, %v9570_v15  ;;  %v8754_v1 = vrot.slane %v4996_v56, 9  ;;  %v4999_v56 = vld [vmem:[#allocation2 + $0x138] sm:$0xee] }
 0x238   : > { %v9677_v5 = vpop.f32.mrb[87].mxu0  ;;  %v8892_v15 = vcombine.high %v5706_v35, %v12533_v6  ;;  %v8811_v18 = vcombine.low %v5132_v30, %v5135_v33  ;;  %v5145_v4 = vrot.slane %v12548_v54, 5 }
 0x239   : > { %v12538_v49 = vadd.f32 %v9675_v23, %v2675_v37  ;;  %v9678_v42 = vadd.f32 %v9677_v5, %v9676_v58  ;;  %v8812_v37 = vcombine.high %v5132_v30, %v5135_v33  ;;  %5565 = vmatmul.mubr.bf16.gmra.mrb[196].mxu1 %v8809_v60  ;;  %v2678_v24 = vadd.f32 %v9572_v14, %v13640_v28  ;;  %v12565_v30 = vld [vmem:[#allocation2 + $0x138] sm:$0xff] }
 0x23a   : > { %6136 = vmatmul.mubr.bf16.gmra.mrb[192].mxu0 %v8887_v3  ;;  %v5142_v5 = vsel %vm11407_vm5, %v5140_v62, %v5141_v52  ;;  %v5139_v60 = vsel %vm11407_vm5, %v8754_v1, %v5138_v40  ;;  %v12562_v52 = vld [vmem:[#allocation2 + $0x158] sm:$0xff]  ;;  %v8755_v1 = vrot.slane %v4999_v56, 9  ;;  %v5004_v62 = vld [vmem:[#allocation2 + $0x160] sm:$0x11]  ;;  %v12579_v56 = vld [vmem:[#allocation2 + $0x150] sm:$0xff] }
 0x23b   : > { %13637 = vst [vmem:[#allocation15_spill] sm:$0xff] %v12538_v49  ;;  %v12544_v22 = vadd.f32 %v9678_v42, %v2676_v2  ;;  %6143 = vmatprep.mubr.bf16.mxu0 %v8890_v39  ;;  %5572 = vmatprep.mubr.bf16.mxu1 %v8812_v37  ;;  %v9573_v2 = vpop.f32.mrb[92].mxu1  ;;  %v5001_v39 = vld [vmem:[#allocation2 + $0x148] sm:$0x11]  ;;  %v8814_v37 = vcombine.high %v5139_v60, %v5142_v5 }
 0x23c   : > { %v9574_v58 = vpop.f32.mrb[93].mxu1  ;;  %v5148_v28 = vrot.slane %v5001_v39, 5  ;;  %v8813_v39 = vcombine.low %v5139_v60, %v5142_v5  ;;  %v5007_v5 = vld [vmem:[#allocation2 + $0x178] sm:$0x11] }
 0x23d   : > { %13638 = vst [vmem:[#allocation16_spill] sm:$0xff] %v12544_v22  ;;  %v9679_v53 = vpop.f32.mrb[88].mxu0  ;;  %v9575_v42 = vadd.f32 %v9574_v58, %v9573_v2  ;;  %v9576_v20 = vpop.f32.mrb[94].mxu1  ;;  %v5002_v58 = vld [vmem:[#allocation2 + $0x150] sm:$0xee] }
 0x23e   : > { %v9680_v12 = vpop.f32.mrb[89].mxu0  ;;  %v9577_v36 = vpop.f32.mrb[95].mxu1 }
 0x23f   : > { %v9681_v38 = vadd.f32 %v9680_v12, %v9679_v53  ;;  %v9682_v50 = vpop.f32.mrb[90].mxu0  ;;  %v2679_v14 = vadd.f32 %v9575_v42, %v13643_v43  ;;  %v13644_v53 = vld [vmem:[#allocation10_spill] sm:$0xff] }
 0x240   : > { %v9683_v23 = vpop.f32.mrb[91].mxu0 }
 0x241   : > { %v12553_v61 = vadd.f32 %v9681_v38, %v2677_v31  ;;  %v9684_v3 = vadd.f32 %v9683_v23, %v9682_v50  ;;  %v9578_v31 = vadd.f32 %v9577_v36, %v9576_v20  ;;  %5573 = vmatmul.mubr.bf16.gmra.mrb[200].mxu1 %v8811_v18  ;;  %v5152_v38 = vrot.slane %v12562_v52, 5 }
 0x242   : > { %6144 = vmatmul.mubr.bf16.gmra.mrb[196].mxu0 %v8889_v13  ;;  %5580 = vmatprep.mubr.bf16.mxu1 %v8814_v37  ;;  %v9707_v23 = vpop.f32.mrb[96].mxu1  ;;  %v12568_v13 = vld [vmem:[#allocation2 + $0x170] sm:$0xff]  ;;  %v8891_v20 = vcombine.low %v5706_v35, %v12533_v6  ;;  %v5146_v6 = vsel %vm11407_vm5, %v8755_v1, %v5145_v4  ;;  %v8756_v35 = vrot.slane %v5002_v58, 9 }
 0x243   : > { %13641 = vst [vmem:[#allocation17_spill] sm:$0xff] %v12553_v61  ;;  %v12559_v25 = vadd.f32 %v9684_v3, %v2678_v24  ;;  %6151 = vmatprep.mubr.bf16.mxu0 %v8892_v15  ;;  %v2680_v12 = vadd.f32 %v9578_v31, %v13644_v53  ;;  %v5147_v24 = vrot.slane %v5145_v4, 4  ;;  %v9708_v42 = vpop.f32.mrb[97].mxu1  ;;  %v8894_v15 = vcombine.high %v12565_v30, %v12548_v54  ;;  %v13648_v1 = vld [vmem:[#allocation12_spill] sm:$0xff] }
 0x244   : > { %v9709_v31 = vadd.f32 %v9708_v42, %v9707_v23  ;;  %v9710_v37 = vpop.f32.mrb[98].mxu1  ;;  %v5155_v53 = vrot.slane %v5004_v62, 5  ;;  %v5159_v60 = vrot.slane %v12568_v13, 5  ;;  %v12588_v23 = vld [vmem:[#allocation2 + $0x168] sm:$0xff]  ;;  %v8893_v4 = vcombine.low %v12565_v30, %v12548_v54 }
 0x245   : > { %13642 = vst [vmem:[#allocation18_spill] sm:$0xff] %v12559_v25  ;;  %v9685_v33 = vpop.f32.mrb[92].mxu0  ;;  %v12575_v36 = vsel %vm11407_vm5, %v5147_v24, %v5148_v28  ;;  %v12590_v62 = vld [vmem:[#allocation2 + $0x188] sm:$0xff] }
 0x246   : > { %v9686_v40 = vpop.f32.mrb[93].mxu0  ;;  %v5166_v30 = vrot.slane %v12590_v62, 5 }
 0x247   : > { %v9687_v50 = vadd.f32 %v9686_v40, %v9685_v33  ;;  %v9688_v2 = vpop.f32.mrb[94].mxu0  ;;  %v9711_v33 = vpop.f32.mrb[99].mxu1  ;;  %v5154_v40 = vrot.slane %v5152_v38, 4 }
 0x248   : > { %v9689_v3 = vpop.f32.mrb[95].mxu0 }
 0x249   : > { %v12577_v18 = vadd.f32 %v9687_v50, %v2679_v14  ;;  %v9690_v43 = vadd.f32 %v9689_v3, %v9688_v2  ;;  %v13647_v14 = vld [vmem:[#allocation11_spill] sm:$0xff]  ;;  %v9712_v50 = vadd.f32 %v9711_v33, %v9710_v37  ;;  %v8816_v2 = vcombine.high %v5146_v6, %v12575_v36  ;;  %v6264_v3 = vld [vmem:[#allocation2 + $0x30] sm:$0xff]  ;;  %5581 = vmatmul.mubr.bf16.gmra.mrb[204].mxu1 %v8813_v39 }
 0x24a   : > { %6152 = vmatmul.mubr.bf16.gmra.mrb[200].mxu0 %v8891_v20  ;;  %v3953_v24 = vadd.f32 %v9709_v31, %v13647_v14  ;;  %v12599_v20 = vsel %vm11407_vm5, %v5154_v40, %v5155_v53  ;;  %v5008_v31 = vld [vmem:[#allocation2 + $0x180] sm:$0xee]  ;;  %v6313_v33 = vshrl.u32 %v6264_v3, 16  ;;  %v12608_v53 = vsel %vm11407_vm5, %v8756_v35, %v5152_v38 }
 0x24b   : > { %13645 = vst [vmem:[#allocation4_spill] sm:$0xff] %v12577_v18  ;;  %v12584_v28 = vadd.f32 %v9690_v43, %v2680_v12  ;;  %6159 = vmatprep.mubr.bf16.mxu0 %v8894_v15  ;;  %v3954_v58 = vadd.f32 %v9712_v50, %v13648_v1  ;;  %5588 = vmatprep.mubr.bf16.mxu1 %v8816_v2  ;;  %v5005_v15 = vld [vmem:[#allocation2 + $0x168] sm:$0xee]  ;;  %v5162_v43 = vrot.slane %v5007_v5, 5  ;;  %v9713_v2 = vpop.f32.mrb[100].mxu1  ;;  %v5161_v40 = vrot.slane %v5159_v60, 4 }
 0x24c   : > { %v8896_v12 = vcombine.high %v12579_v56, %v12562_v52  ;;  %v12610_v5 = vld [vmem:[#allocation2 + $0x38] sm:$0xff]  ;;  %v6316_v1 = vshll.u32 %v6264_v3, 16  ;;  %v9714_v18 = vpop.f32.mrb[101].mxu1  ;;  %v8815_v39 = vcombine.low %v5146_v6, %v12575_v36  ;;  %v8818_v54 = vcombine.high %v12608_v53, %v12599_v20  ;;  %v12621_v35 = vld [vmem:[#allocation2 + $0x180] sm:$0xff]  ;;  %v5010_v3 = vld [vmem:[#allocation2 + $0x190] sm:$0x11] }
 0x24d   : > { %13646 = vst [vmem:[#allocation5_spill] sm:$0xff] %v12584_v28  ;;  %v9819_v42 = vpop.f32.mrb[96].mxu0  ;;  %v8757_v25 = vrot.slane %v5005_v15, 9  ;;  %v8758_v61 = vrot.slane %v5008_v31, 9  ;;  %v9715_v22 = vadd.f32 %v9714_v18, %v9713_v2  ;;  %v9716_v49 = vpop.f32.mrb[102].mxu1  ;;  %v12619_v38 = vsel %vm11407_vm5, %v5161_v40, %v5162_v43 }
 0x24e   : > { %v9820_v37 = vpop.f32.mrb[97].mxu0  ;;  %v9717_v27 = vpop.f32.mrb[103].mxu1  ;;  %v5168_v36 = vrot.slane %v5166_v30, 4  ;;  %v6315_v6 = vrot.slane %v6313_v33, 4  ;;  %v6322_v11 = vshll.u32 %v12610_v5, 16  ;;  %v6326_v15 = vshrl.u32 %v12610_v5, 16 }
 0x24f   : > { %v9821_v14 = vadd.f32 %v9820_v37, %v9819_v42  ;;  %v9822_v50 = vpop.f32.mrb[98].mxu0  ;;  %v3955_v18 = vadd.f32 %v9715_v22, %v12216_v29  ;;  %v6318_v31 = vrot.slane %v6316_v1, 5  ;;  %v8817_v43 = vcombine.low %v12608_v53, %v12599_v20  ;;  %v6267_v22 = vld [vmem:[#allocation2 + $0x48] sm:$0xff] }
 0x250   : > { %v9823_v28 = vpop.f32.mrb[99].mxu0  ;;  %v6324_v2 = vrot.slane %v6322_v11, 5  ;;  %v6328_v53 = vrot.slane %v6326_v15, 4  ;;  %v7308_v40 = vrot.slane %v12610_v5, 5 }
 0x251   : > { %v12615_v42 = vadd.f32 %v9821_v14, %v3953_v24  ;;  %v9824_v37 = vadd.f32 %v9823_v28, %v9822_v50  ;;  %v9718_v28 = vadd.f32 %v9717_v27, %v9716_v49  ;;  %5589 = vmatmul.mubr.bf16.gmra.mrb[208].mxu1 %v8815_v39  ;;  %v7210_v14 = vld [vmem:[#allocation2 + $0x30] sm:$0xee] }
 0x252   : > { %6160 = vmatmul.mubr.bf16.gmra.mrb[204].mxu0 %v8893_v4  ;;  %v12632_v4 = vsel %vm11407_vm5, %v8757_v25, %v5159_v60  ;;  %v12638_v50 = vld [vmem:[#allocation2 + $0x50] sm:$0xff]  ;;  %5596 = vmatprep.mubr.bf16.mxu1 %v8818_v54  ;;  %v5169_v25 = vrot.slane %v5010_v3, 5  ;;  %v6266_v60 = vld [vmem:[#allocation2 + $0x40] sm:$0x11]  ;;  %v9719_v54 = vpop.f32.mrb[104].mxu1  ;;  %v8999_v11 = vrot.slane %v7210_v14, 9 }
 0x253   : > { %13649 = vst [vmem:[#allocation6_spill] sm:$0xff] %v12615_v42  ;;  %v12625_v24 = vadd.f32 %v9824_v37, %v3954_v58  ;;  %6167 = vmatprep.mubr.bf16.mxu0 %v8896_v12  ;;  %v3956_v29 = vadd.f32 %v9718_v28, %v12218_v32  ;;  %v8820_v49 = vcombine.high %v12632_v4, %v12619_v38  ;;  %v7212_v12 = vld [vmem:[#allocation2 + $0x40] sm:$0x11]  ;;  %v9720_v33 = vpop.f32.mrb[105].mxu1  ;;  %v6332_v39 = vshll.u32 %v6266_v60, 16 }
 0x254   : > { %v12650_v37 = vsel %vm11407_vm5, %v8758_v61, %v5166_v30  ;;  %v12654_v3 = vsel %vm11407_vm5, %v5168_v36, %v5169_v25  ;;  %v6319_v28 = vor.u32 %v6318_v31, %v6315_v6  ;;  %v7311_v15 = vrot.slane %v7212_v12, 5  ;;  %v9722_v42 = vpop.f32.mrb[106].mxu1  ;;  %v6270_v30 = vld [vmem:[#allocation2 + $0x60] sm:$0xff] }
 0x255   : > { %13650 = vst [vmem:[#allocation7_spill] sm:$0xff] %v12625_v24  ;;  %v9825_v27 = vpop.f32.mrb[100].mxu0  ;;  %v6346_v5 = vshll.u32 %v12638_v50, 16  ;;  %v9721_v24 = vadd.f32 %v9720_v33, %v9719_v54  ;;  %v6350_v61 = vshrl.u32 %v12638_v50, 16  ;;  %v13651_v36 = vcombine.low %v12579_v56, %v12562_v52  ;;  %v9723_v6 = vpop.f32.mrb[107].mxu1 }
 0x256   : > { %v9826_v20 = vpop.f32.mrb[101].mxu0  ;;  %v6329_v31 = vor.u32 %v6328_v53, %v6324_v2  ;;  %v7310_v25 = vrot.slane %v7308_v40, 4  ;;  %v6337_v60 = vshrl.u32 %v6267_v22, 16  ;;  %v6340_v14 = vshll.u32 %v6267_v22, 16 }
 0x257   : > { %v9827_v32 = vadd.f32 %v9826_v20, %v9825_v27  ;;  %v9828_v1 = vpop.f32.mrb[102].mxu0  ;;  %v13653_v33 = vcombine.high %v12588_v23, %v12568_v13  ;;  %v8822_v52 = vcombine.high %v12650_v37, %v12654_v3  ;;  %v6361_v53 = vshrl.u32 %v6270_v30, 16 }
 0x258   : > { %v9829_v58 = vpop.f32.mrb[103].mxu0  ;;  %v12673_v56 = vsel %vm11407_vm5, %v7310_v25, %v7311_v15  ;;  %v6364_v22 = vshll.u32 %v6270_v30, 16  ;;  %v6339_v15 = vrot.slane %v6337_v60, 4  ;;  %v6330_v25 = vrot.slane %v6329_v31, 4 }
 0x259   : > { %v12657_v27 = vadd.f32 %v9827_v32, %v3955_v18  ;;  %v9830_v20 = vadd.f32 %v9829_v58, %v9828_v1  ;;  %v3957_v18 = vadd.f32 %v9721_v24, %v12228_v16  ;;  %v9724_v58 = vadd.f32 %v9723_v6, %v9722_v42  ;;  %5597 = vmatmul.mubr.bf16.gmra.mrb[212].mxu1 %v8817_v43  ;;  %v6269_v24 = vld [vmem:[#allocation2 + $0x58] sm:$0x11] }
 0x25a   : > { %6168 = vmatmul.mubr.bf16.gmra.mrb[208].mxu0 %v13651_v36  ;;  %v6320_v32 = vrot.slane %v6319_v28, 4  ;;  %5604 = vmatprep.mubr.bf16.mxu1 %v8820_v49  ;;  %v12678_v42 = vrot.slane %v6346_v5, 5  ;;  %v6352_v43 = vrot.slane %v6350_v61, 4  ;;  %v6334_v28 = vrot.slane %v6332_v39, 5  ;;  %v7213_v61 = vld [vmem:[#allocation2 + $0x48] sm:$0xee] }
 0x25b   : > { %v12663_v12 = vadd.f32 %v9830_v20, %v3956_v29  ;;  %6175 = vmatprep.mubr.bf16.mxu0 %v13653_v33  ;;  %v3958_v29 = vadd.f32 %v9724_v58, %v12232_v46  ;;  %v12682_v20 = vsel %vm11407_vm5, %v8999_v11, %v7308_v40  ;;  %v6342_v36 = vrot.slane %v6340_v14, 5  ;;  %v9725_v46 = vpop.f32.mrb[108].mxu1  ;;  %v12690_v33 = vld [vmem:[#allocation2 + $0x68] sm:$0xff] }
 0x25c   : > { %v12686_v49 = vsel %vm11386_vm4, %v6320_v32, %v6324_v2  ;;  %v9726_v58 = vpop.f32.mrb[109].mxu1  ;;  %v6356_v40 = vshll.u32 %v6269_v24, 16  ;;  %v7315_v11 = vrot.slane %v12638_v50, 5  ;;  %v6363_v60 = vrot.slane %v6361_v53, 4  ;;  %v7215_v32 = vld [vmem:[#allocation2 + $0x58] sm:$0x11] }
 0x25d   : > { %13652 = vst [vmem:[#allocation8_spill] sm:$0xff] %v12663_v12  ;;  %v9831_v1 = vpop.f32.mrb[104].mxu0  ;;  %v6366_v14 = vrot.slane %v6364_v22, 5  ;;  %v9727_v16 = vadd.f32 %v9726_v58, %v9725_v46  ;;  %v9728_v2 = vpop.f32.mrb[110].mxu1  ;;  %v6353_v31 = vor.u32 %v6352_v43, %v12678_v42  ;;  %v13654_v5 = vcombine.low %v12588_v23, %v12568_v13 }
 0x25e   : > { %v9832_v54 = vpop.f32.mrb[105].mxu0  ;;  %v9729_v12 = vpop.f32.mrb[111].mxu1  ;;  %v12701_v24 = vsel %vm11386_vm4, %v6330_v25, %v6334_v28  ;;  %v6343_v50 = vor.u32 %v6342_v36, %v6339_v15  ;;  %v6370_v53 = vshll.u32 %v12690_v33, 16  ;;  %v13656_v43 = vcombine.high %v12621_v35, %v12590_v62 }
 0x25f   : > { %v9833_v30 = vadd.f32 %v9832_v54, %v9831_v1  ;;  %v9834_v6 = vpop.f32.mrb[106].mxu0  ;;  %v9730_v13 = vadd.f32 %v9729_v12, %v9728_v2  ;;  %v9000_v23 = vrot.slane %v7213_v61, 9  ;;  %v13657_v28 = vcombine.low %v12632_v4, %v12619_v38  ;;  %v6272_v61 = vld [vmem:[#allocation2 + $0x70] sm:$0x11] }
 0x260   : > { %v9835_v39 = vpop.f32.mrb[107].mxu0  ;;  %v6358_v36 = vrot.slane %v6356_v40, 5  ;;  %v7318_v46 = vrot.slane %v7215_v32, 5  ;;  %v6354_v12 = vrot.slane %v6353_v31, 4  ;;  %v6372_v58 = vrot.slane %v6370_v53, 5 }
 0x261   : > { %v12693_v1 = vadd.f32 %v9833_v30, %v3957_v18  ;;  %v9836_v54 = vadd.f32 %v9835_v39, %v9834_v6  ;;  %v6374_v18 = vshrl.u32 %v12690_v33, 16  ;;  %v3959_v30 = vadd.f32 %v9727_v16, %v12246_v48  ;;  %v6273_v6 = vld [vmem:[#allocation2 + $0x78] sm:$0xff]  ;;  %5605 = vmatmul.mubr.bf16.gmra.mrb[216].mxu1 %v13657_v28 }
 0x262   : > { %6176 = vmatmul.mubr.bf16.gmra.mrb[212].mxu0 %v13654_v5  ;;  %v3960_v25 = vadd.f32 %v9730_v13, %v12253_v0  ;;  %5612 = vmatprep.mubr.bf16.mxu1 %v8822_v52  ;;  %v7317_v5 = vrot.slane %v7315_v11, 4  ;;  %v6385_v4 = vshrl.u32 %v6273_v6, 16  ;;  %v9731_v40 = vpop.f32.mrb[112].mxu1  ;;  %v6344_v0 = vrot.slane %v6343_v50, 4 }
 0x263   : > { %v12705_v22 = vadd.f32 %v9836_v54, %v3958_v29  ;;  %6183 = vmatprep.mubr.bf16.mxu0 %v13656_v43  ;;  %v6367_v29 = vor.u32 %v6366_v14, %v6363_v60  ;;  %v6376_v38 = vrot.slane %v6374_v18, 4  ;;  %v6388_v54 = vshll.u32 %v6273_v6, 16  ;;  %v12725_v14 = vld [vmem:[#allocation2 + $0x80] sm:$0xff]  ;;  %v9732_v32 = vpop.f32.mrb[113].mxu1 }
 0x264   : > { %v8952_v60 = vcombine.high %v12686_v49, %v12701_v24  ;;  %v12723_v52 = vsel %vm11407_vm5, %v9000_v23, %v7315_v11  ;;  %v12729_v53 = vsel %vm11386_vm4, %v6354_v12, %v6358_v36  ;;  %v12733_v18 = vsel %vm11407_vm5, %v7317_v5, %v7318_v46  ;;  %v9734_v11 = vpop.f32.mrb[114].mxu1  ;;  %v10727_v23 = vld [vmem:[#allocation2 + $0x19c] ss:$8 sps:$4 sm:$0xff]  }
 0x265   : > { %13655 = vst [vmem:[#allocation9_spill] sm:$0xff] %v12705_v22  ;;  %v9837_v48 = vpop.f32.mrb[108].mxu0  ;;  %v6368_v13 = vrot.slane %v6367_v29, 4  ;;  %v6380_v6 = vshll.u32 %v6272_v61, 16  ;;  %v13557_v16 = vrot.slane %v12690_v33, 5  ;;  %v13659_v15 = vcombine.low %v12621_v35, %v12590_v62  ;;  %v9735_v36 = vpop.f32.mrb[115].mxu1 }
 0x266   : > { %v9838_v39 = vpop.f32.mrb[109].mxu0  ;;  %v6377_v12 = vor.u32 %v6376_v38, %v6372_v58  ;;  %v6387_v22 = vrot.slane %v6385_v4, 4  ;;  %v6390_v46 = vrot.slane %v6388_v54, 5  ;;  %v6394_v29 = vshll.u32 %v12725_v14, 16 }
 0x267   : > { %v9839_v2 = vadd.f32 %v9838_v39, %v9837_v48  ;;  %v9840_v43 = vpop.f32.mrb[110].mxu0  ;;  %v9733_v48 = vadd.f32 %v9732_v32, %v9731_v40  ;;  %v7218_v39 = vld [vmem:[#allocation2 + $0x70] sm:$0x11]  ;;  %v9736_v61 = vadd.f32 %v9735_v36, %v9734_v11  ;;  %v13661_v62 = vcombine.low %v12650_v37, %v12654_v3  ;;  %v12783_v37 = vld [vmem:[#allocation2 + $0x98] sm:$0xff] }
 0x268   : > { %v9841_v31 = vpop.f32.mrb[111].mxu0  ;;  %v12754_v35 = vsel %vm11386_vm4, %v6344_v0, %v12678_v42  ;;  %v7219_v42 = vld [vmem:[#allocation2 + $0x78] sm:$0xee]  ;;  %v6276_v40 = vld [vmem:[#allocation2 + $0x90] sm:$0xff] }
 0x269   : > { %v12735_v28 = vadd.f32 %v9839_v2, %v3959_v30  ;;  %v9842_v50 = vadd.f32 %v9841_v31, %v9840_v43  ;;  %v3961_v30 = vadd.f32 %v9733_v48, %v12267_v9  ;;  %v12745_v2 = vld [vmem:[#allocation2 + $0x60] sm:$0xee]  ;;  %v6398_v43 = vshrl.u32 %v12725_v14, 16  ;;  %5613 = vmatmul.mubr.bf16.gmra.mrb[220].mxu1 %v13661_v62 }
 0x26a   : > { %6184 = vmatmul.mubr.bf16.gmra.mrb[216].mxu0 %v13659_v15  ;;  %v7325_v9 = vrot.slane %v7218_v39, 5  ;;  %v3962_v38 = vadd.f32 %v9736_v61, %v12278_v45  ;;  %7017 = vmatprep.mubr.bf16.mxu1 %v8952_v60  ;;  %v8954_v54 = vcombine.high %v12754_v35, %v12729_v53  ;;  %v6378_v31 = vrot.slane %v6377_v12, 4  ;;  %v9737_v11 = vpop.f32.mrb[116].mxu1  ;;  %v7221_v61 = vld [vmem:[#allocation2 + $0x88] sm:$0x11] }
 0x26b   : > { %13658 = vst [vmem:[#allocation10_spill] sm:$0xff] %v12735_v28  ;;  %v12742_v5 = vadd.f32 %v9842_v50, %v3960_v25  ;;  %6191 = vmatprep.mubr.bf16.mxu0 %v10727_v23  ;;  %v6382_v25 = vrot.slane %v6380_v6, 5  ;;  %v9001_v32 = vrot.slane %v12745_v2, 9  ;;  %v7324_v45 = vrot.slane %v13557_v16, 4  ;;  %v6275_v6 = vld [vmem:[#allocation2 + $0x88] sm:$0x11] }
 0x26c   : > { %v6391_v60 = vor.u32 %v6390_v46, %v6387_v22  ;;  %v12770_v23 = vsel %vm11386_vm4, %v6368_v13, %v6372_v58  ;;  %v6396_v39 = vrot.slane %v6394_v29, 5  ;;  %v6400_v36 = vrot.slane %v6398_v43, 4  ;;  %v9738_v3 = vpop.f32.mrb[117].mxu1  ;;  %v10729_v12 = vld [vmem:[#allocation2 + $0x198] ss:$8 sps:$4 sm:$0xff]  }
 0x26d   : > { %13660 = vst [vmem:[#allocation11_spill] sm:$0xff] %v12742_v5  ;;  %v9843_v4 = vpop.f32.mrb[112].mxu0  ;;  %v12774_v2 = vsel %vm11386_vm4, %v6378_v31, %v6382_v25  ;;  %v12778_v22 = vsel %vm11407_vm5, %v7324_v45, %v7325_v9  ;;  %v6409_v46 = vshrl.u32 %v6276_v40, 16  ;;  %v9739_v13 = vadd.f32 %v9738_v3, %v9737_v11  ;;  %v9740_v29 = vpop.f32.mrb[118].mxu1 }
 0x26e   : > { %v9844_v0 = vpop.f32.mrb[113].mxu0  ;;  %v7329_v43 = vrot.slane %v12725_v14, 5  ;;  %v9741_v15 = vpop.f32.mrb[119].mxu1  ;;  %v6392_v16 = vrot.slane %v6391_v60, 4  ;;  %v6404_v25 = vshll.u32 %v6275_v6, 16  ;;  %v9002_v31 = vrot.slane %v7219_v42, 9 }
 0x26f   : > { %v9845_v50 = vadd.f32 %v9844_v0, %v9843_v4  ;;  %v9846_v48 = vpop.f32.mrb[114].mxu0  ;;  %v6412_v4 = vshll.u32 %v6276_v40, 16  ;;  %v7332_v5 = vrot.slane %v7221_v61, 5  ;;  %v3963_v9 = vadd.f32 %v9739_v13, %v12311_v34  ;;  %v6278_v61 = vld [vmem:[#allocation2 + $0xa0] sm:$0x11]  ;;  %v12823_v13 = vld [vmem:[#allocation2 + $0xb0] sm:$0xff] }
 0x270   : > { %v9847_v62 = vpop.f32.mrb[115].mxu0  ;;  %v9742_v3 = vadd.f32 %v9741_v15, %v9740_v29  ;;  %v6401_v40 = vor.u32 %v6400_v36, %v6396_v39  ;;  %v13663_v14 = vcombine.low %v12686_v49, %v12701_v24  ;;  %v6411_v45 = vrot.slane %v6409_v46, 4 }
 0x271   : > { %v12780_v0 = vadd.f32 %v9845_v50, %v3961_v30  ;;  %v9848_v58 = vadd.f32 %v9847_v62, %v9846_v48  ;;  %v13662_v30 = vcombine.high %v12682_v20, %v12673_v56  ;;  %v6414_v50 = vrot.slane %v6412_v4, 5 }
 0x272   : > { %6192 = vmatmul.mubr.bf16.gmra.mrb[220].mxu0 %v10729_v12  ;;  %7018 = vmatmul.mubr.bf16.vlgmr.msra.gmra.mrb[224].mxu1 %v13663_v14  ;;  %v6418_v6 = vshll.u32 %v12783_v37, 16  ;;  %v6422_v42 = vshrl.u32 %v12783_v37, 16  ;;  %v8956_v34 = vcombine.high %v12770_v23, %v12774_v2  ;;  %v13664_v15 = vrot.slane %v12690_v33, 5  ;;  %v9743_v33 = vpop.f32.mrb[120].mxu1 }
 0x273   : > { %v12785_v28 = vadd.f32 %v9848_v58, %v3962_v38  ;;  %7739 = vmatprep.mubr.bf16.mxu0 %v13662_v30  ;;  %v3964_v38 = vadd.f32 %v9742_v3, %v12323_v51  ;;  %7025 = vmatprep.mubr.bf16.mxu1 %v8954_v54  ;;  %v7331_v49 = vrot.slane %v7329_v43, 4  ;;  %v6406_v51 = vrot.slane %v6404_v25, 5  ;;  %v6279_v58 = vld [vmem:[#allocation2 + $0xa8] sm:$0xff]  ;;  %v9744_v25 = vpop.f32.mrb[121].mxu1  ;;  %v7224_v54 = vld [vmem:[#allocation2 + $0xa0] sm:$0x11] }
 0x274   : > { %v12803_v48 = vsel %vm11407_vm5, %v9001_v32, %v13664_v15  ;;  %v12813_v32 = vsel %vm11386_vm4, %v6392_v16, %v6396_v39  ;;  %v12817_v46 = vsel %vm11407_vm5, %v9002_v31, %v7329_v43  ;;  %v6402_v30 = vrot.slane %v6401_v40, 4  ;;  %v7222_v31 = vld [vmem:[#allocation2 + $0x90] sm:$0xee] }
 0x275   : > { %v9849_v60 = vpop.f32.mrb[116].mxu0  ;;  %v12821_v4 = vsel %vm11407_vm5, %v7331_v49, %v7332_v5  ;;  %v6415_v3 = vor.u32 %v6414_v50, %v6411_v45  ;;  %v6420_v14 = vrot.slane %v6418_v6, 5  ;;  %v9745_v39 = vadd.f32 %v9744_v25, %v9743_v33 }
 0x276   : > { %v9850_v24 = vpop.f32.mrb[117].mxu0  ;;  %v6428_v43 = vshll.u32 %v6278_v61, 16  ;;  %v13665_v5 = vcombine.low %v12682_v20, %v12673_v56  ;;  %v6433_v36 = vshrl.u32 %v6279_v58, 16  ;;  %v6436_v11 = vshll.u32 %v6279_v58, 16 }
 0x277   : > { %v9851_v62 = vadd.f32 %v9850_v24, %v9849_v60  ;;  %v9852_v12 = vpop.f32.mrb[118].mxu0  ;;  %v6424_v60 = vrot.slane %v6422_v42, 4  ;;  %v9746_v24 = vpop.f32.mrb[122].mxu1  ;;  %v6442_v40 = vshll.u32 %v12823_v13, 16  ;;  %v6446_v45 = vshrl.u32 %v12823_v13, 16 }
 0x278   : > { %v9853_v29 = vpop.f32.mrb[119].mxu0  ;;  %v9747_v49 = vpop.f32.mrb[123].mxu1  ;;  %v13666_v6 = vcombine.high %v12723_v52, %v12733_v18  ;;  %v9054_v56 = vcombine.high %v12817_v46, %v12821_v4  ;;  %v13667_v20 = vcombine.low %v12754_v35, %v12729_v53  ;;  %v12845_v61 = vsel %vm11386_vm4, %v6402_v30, %v6406_v51 }
 0x279   : > { %v12825_v15 = vadd.f32 %v9851_v62, %v3963_v9  ;;  %v9854_v16 = vadd.f32 %v9853_v29, %v9852_v12  ;;  %v3965_v9 = vadd.f32 %v9745_v39, %v12361_v7  ;;  %v9748_v42 = vadd.f32 %v9747_v49, %v9746_v24 }
 0x27a   : > { %7740 = vmatmul.mubr.bf16.vlgmr.msra.gmra.mrb[224].mxu0 %v13665_v5  ;;  %7026 = vmatmul.mubr.bf16.gmra.mrb[228].mxu1 %v13667_v20  ;;  %v6425_v62 = vor.u32 %v6424_v60, %v6420_v14  ;;  %v7336_v7 = vrot.slane %v12783_v37, 5  ;;  %v6430_v58 = vrot.slane %v6428_v43, 5  ;;  %v9003_v29 = vrot.slane %v7222_v31, 9  ;;  %v7225_v20 = vld [vmem:[#allocation2 + $0xa8] sm:$0xee] }
 0x27b   : > { %v12832_v50 = vadd.f32 %v9854_v16, %v3964_v38  ;;  %7747 = vmatprep.mubr.bf16.mxu0 %v13666_v6  ;;  %v6416_v38 = vrot.slane %v6415_v3, 4  ;;  %v3966_v12 = vadd.f32 %v9748_v42, %v12374_v26  ;;  %7033 = vmatprep.mubr.bf16.mxu1 %v8956_v34  ;;  %v7339_v25 = vrot.slane %v7224_v54, 5  ;;  %v6281_v16 = vld [vmem:[#allocation2 + $0xb8] sm:$0x11]  ;;  %v9749_v3 = vpop.f32.mrb[124].mxu1 }
 0x27c   : > { %v6435_v24 = vrot.slane %v6433_v36, 4  ;;  %v6438_v53 = vrot.slane %v6436_v11, 5  ;;  %v12849_v35 = vrot.slane %v6442_v40, 5  ;;  %v6448_v5 = vrot.slane %v6446_v45, 4  ;;  %v9750_v60 = vpop.f32.mrb[125].mxu1 }
 0x27d   : > { %v9855_v33 = vpop.f32.mrb[120].mxu0  ;;  %v8958_v37 = vcombine.high %v12813_v32, %v12845_v61  ;;  %v8957_v26 = vcombine.low %v12813_v32, %v12845_v61  ;;  %v12859_v11 = vsel %vm11386_vm4, %v6416_v38, %v6420_v14  ;;  %v6426_v36 = vrot.slane %v6425_v62, 4  ;;  %v9752_v6 = vpop.f32.mrb[126].mxu1  ;;  %v7230_v61 = vld [vmem:[#allocation2 + $0xd0] sm:$0x11] }
 0x27e   : > { %v9856_v39 = vpop.f32.mrb[121].mxu0  ;;  %v7338_v43 = vrot.slane %v7336_v7, 4  ;;  %v6452_v31 = vshll.u32 %v6281_v16, 16  ;;  %v9751_v45 = vadd.f32 %v9750_v60, %v9749_v3  ;;  %v12865_v42 = vsel %vm11407_vm5, %v9003_v29, %v7336_v7  ;;  %v9753_v14 = vpop.f32.mrb[127].mxu1  ;;  %v7227_v7 = vld [vmem:[#allocation2 + $0xb8] sm:$0x11] }
 0x27f   : > { %v9857_v51 = vadd.f32 %v9856_v39, %v9855_v33  ;;  %v9858_v30 = vpop.f32.mrb[122].mxu0  ;;  %v6282_v33 = vld [vmem:[#allocation2 + $0xc0] sm:$0xff]  ;;  %v13668_v39 = vcombine.low %v12723_v52, %v12733_v18  ;;  %v12872_v38 = vsel %vm11386_vm4, %v6426_v36, %v6430_v58  ;;  %v6439_v62 = vor.u32 %v6438_v53, %v6435_v24 }
 0x280   : > { %v9859_v54 = vpop.f32.mrb[123].mxu0  ;;  %v6449_v16 = vor.u32 %v6448_v5, %v12849_v35  ;;  %v13669_v52 = vcombine.high %v12803_v48, %v12778_v22  ;;  %v9754_v18 = vadd.f32 %v9753_v14, %v9752_v6  ;;  %v7343_v58 = vrot.slane %v12823_v13, 5  ;;  %v6285_v13 = vld [vmem:[#allocation2 + $0xd8] sm:$0xff] }
 0x281   : > { %v12861_v49 = vadd.f32 %v9857_v51, %v3965_v9  ;;  %v9860_v40 = vadd.f32 %v9859_v54, %v9858_v30  ;;  %v12876_v9 = vsel %vm11407_vm5, %v7338_v43, %v7339_v25  ;;  %v3967_v51 = vadd.f32 %v9751_v45, %v12412_v47  ;;  %v12886_v30 = vld [vmem:[#allocation2 + $0xc8] sm:$0xff] }
 0x282   : > { %7748 = vmatmul.mubr.bf16.gmra.mrb[228].mxu0 %v13668_v39  ;;  %v13670_v25 = vcombine.low %v12770_v23, %v12774_v2  ;;  %v6454_v24 = vrot.slane %v6452_v31, 5  ;;  %v9004_v53 = vrot.slane %v7225_v20, 9  ;;  %v6457_v5 = vshrl.u32 %v6282_v33, 16  ;;  %v9755_v45 = vpop.f32.mrb[128].mxu1  ;;  %v6284_v39 = vld [vmem:[#allocation2 + $0xd0] sm:$0x11] }
 0x283   : > { %v12879_v29 = vadd.f32 %v9860_v40, %v3966_v12  ;;  %7755 = vmatprep.mubr.bf16.mxu0 %v13669_v52  ;;  %v6460_v12 = vshll.u32 %v6282_v33, 16  ;;  %v3968_v3 = vadd.f32 %v9754_v18, %v12425_v55  ;;  %v8960_v54 = vcombine.high %v12859_v11, %v12872_v38  ;;  %v12900_v40 = vld [vmem:[#allocation2 + $0xe0] sm:$0xff] }
 0x284   : > { %7034 = vmatmul.mubr.bf16.gmra.mrb[232].mxu1 %v13670_v25  ;;  %v7346_v60 = vrot.slane %v7227_v7, 5  ;;  %v6450_v2 = vrot.slane %v6449_v16, 4  ;;  %v6466_v43 = vshll.u32 %v12886_v30, 16  ;;  %v6470_v31 = vshrl.u32 %v12886_v30, 16  ;;  %v9756_v7 = vpop.f32.mrb[129].mxu1 }
 0x285   : > { %v9861_v47 = vpop.f32.mrb[124].mxu0  ;;  %7041 = vmatprep.mubr.bf16.mxu1 %v8958_v37  ;;  %v6440_v6 = vrot.slane %v6439_v62, 4  ;;  %v7345_v33 = vrot.slane %v7343_v58, 4  ;;  %v12910_v52 = vsel %vm11407_vm5, %v9004_v53, %v7343_v58  ;;  %v6459_v18 = vrot.slane %v6457_v5, 4  ;;  %v9758_v23 = vpop.f32.mrb[130].mxu1 }
 0x286   : > { %v9862_v36 = vpop.f32.mrb[125].mxu0  ;;  %v12906_v16 = vsel %vm11386_vm4, %v6450_v2, %v6454_v24  ;;  %v6462_v25 = vrot.slane %v6460_v12, 5  ;;  %v13672_v24 = vcombine.low %v12803_v48, %v12778_v22  ;;  %v9759_v2 = vpop.f32.mrb[131].mxu1  ;;  %v12921_v34 = vrot.slane %v6466_v43, 5 }
 0x287   : > { %v9863_v55 = vadd.f32 %v9862_v36, %v9861_v47  ;;  %v9864_v37 = vpop.f32.mrb[126].mxu0  ;;  %v9757_v36 = vadd.f32 %v9756_v7, %v9755_v45  ;;  %v12916_v20 = vsel %vm11407_vm5, %v7345_v33, %v7346_v60  ;;  %v6472_v58 = vrot.slane %v6470_v31, 4 }
 0x288   : > { %v9865_v14 = vpop.f32.mrb[127].mxu0  ;;  %v6476_v53 = vshll.u32 %v6284_v39, 16  ;;  %v9760_v60 = vadd.f32 %v9759_v2, %v9758_v23  ;;  %v6494_v22 = vshrl.u32 %v12900_v40, 16  ;;  %v12937_v48 = vsel %vm11386_vm4, %v6440_v6, %v12849_v35 }
 0x289   : > { %v12912_v47 = vadd.f32 %v9863_v55, %v3967_v51  ;;  %v9866_v62 = vadd.f32 %v9865_v14, %v9864_v37  ;;  %v6490_v51 = vshll.u32 %v12900_v40, 16  ;;  %v3969_v12 = vadd.f32 %v9757_v36, %v12456_v41  ;;  %v7228_v55 = vld [vmem:[#allocation2 + $0xc0] sm:$0xee] }
 0x28a   : > { %7756 = vmatmul.mubr.bf16.gmra.mrb[232].mxu0 %v13672_v24  ;;  %v6481_v43 = vshrl.u32 %v6285_v13, 16  ;;  %v6484_v41 = vshll.u32 %v6285_v13, 16  ;;  %v3970_v31 = vadd.f32 %v9760_v60, %v12464_v8  ;;  %v6473_v35 = vor.u32 %v6472_v58, %v12921_v34  ;;  %v9761_v39 = vpop.f32.mrb[132].mxu1 }
 0x28b   : > { %13671 = vst [vmem:[#allocation12_spill] sm:$0xff] %v12912_v47  ;;  %v12924_v5 = vadd.f32 %v9866_v62, %v3968_v3  ;;  %7763 = vmatprep.mubr.bf16.mxu0 %v9054_v56  ;;  %v6463_v3 = vor.u32 %v6462_v25, %v6459_v18  ;;  %v8962_v56 = vcombine.high %v12937_v48, %v12906_v16  ;;  %v9005_v45 = vrot.slane %v7228_v55, 9  ;;  %v6288_v25 = vld [vmem:[#allocation2 + $0xf0] sm:$0xff]  ;;  %v9762_v36 = vpop.f32.mrb[133].mxu1 }
 0x28c   : > { %7042 = vmatmul.mubr.bf16.gmra.mrb[236].mxu1 %v8957_v26  ;;  %v7350_v8 = vrot.slane %v12886_v30, 5  ;;  %v6478_v14 = vrot.slane %v6476_v53, 5  ;;  %v12950_v7 = vrot.slane %v6490_v51, 5  ;;  %v6496_v18 = vrot.slane %v6494_v22, 4  ;;  %v9764_v30 = vpop.f32.mrb[134].mxu1 }
 0x28d   : > { %13673 = vst [vmem:[#allocation19_spill] sm:$0xff] %v12924_v5  ;;  %v9867_v37 = vpop.f32.mrb[128].mxu0  ;;  %7049 = vmatprep.mubr.bf16.mxu1 %v8960_v54  ;;  %v6287_v54 = vld [vmem:[#allocation2 + $0xe8] sm:$0x11]  ;;  %v6464_v24 = vrot.slane %v6463_v3, 4  ;;  %v7353_v2 = vrot.slane %v7230_v61, 5  ;;  %v9763_v13 = vadd.f32 %v9762_v36, %v9761_v39  ;;  %v13674_v53 = vcombine.low %v12817_v46, %v12821_v4 }
 0x28e   : > { %v9868_v26 = vpop.f32.mrb[129].mxu0  ;;  %v6483_v58 = vrot.slane %v6481_v43, 4  ;;  %v6486_v60 = vrot.slane %v6484_v41, 5  ;;  %v6500_v23 = vshll.u32 %v6287_v54, 16  ;;  %v9765_v51 = vpop.f32.mrb[135].mxu1  ;;  %v6474_v22 = vrot.slane %v6473_v35, 4 }
 0x28f   : > { %v9869_v6 = vadd.f32 %v9868_v26, %v9867_v37  ;;  %v9870_v33 = vpop.f32.mrb[130].mxu0  ;;  %v7233_v37 = vld [vmem:[#allocation2 + $0xe8] sm:$0x11]  ;;  %v7352_v26 = vrot.slane %v7350_v8, 4  ;;  %v6505_v5 = vshrl.u32 %v6288_v25, 16  ;;  %v6508_v47 = vshll.u32 %v6288_v25, 16 }
 0x290   : > { %v9871_v62 = vpop.f32.mrb[131].mxu0  ;;  %v3971_v43 = vadd.f32 %v9763_v13, %v12477_v19  ;;  %v9766_v41 = vadd.f32 %v9765_v51, %v9764_v30  ;;  %v6497_v61 = vor.u32 %v6496_v18, %v12950_v7  ;;  %v12964_v54 = vld [vmem:[#allocation2 + $0xf8] sm:$0xff]  ;;  %v13676_v46 = vcombine.low %v12859_v11, %v12872_v38 }
 0x291   : > { %v12952_v32 = vadd.f32 %v9869_v6, %v3969_v12  ;;  %v9872_v55 = vadd.f32 %v9871_v62, %v9870_v33  ;;  %v13675_v12 = vcombine.high %v12865_v42, %v12876_v9  ;;  %v12971_v4 = vsel %vm11407_vm5, %v9005_v45, %v7350_v8  ;;  %v7231_v38 = vld [vmem:[#allocation2 + $0xd8] sm:$0xee] }
 0x292   : > { %7764 = vmatmul.mubr.bf16.gmra.mrb[236].mxu0 %v13674_v53  ;;  %v12975_v19 = vsel %vm11407_vm5, %v7352_v26, %v7353_v2  ;;  %v7357_v35 = vrot.slane %v12900_v40, 5  ;;  %v3972_v13 = vadd.f32 %v9766_v41, %v12484_v59  ;;  %v12981_v33 = vsel %vm11386_vm4, %v6474_v22, %v6478_v14  ;;  %v9767_v2 = vpop.f32.mrb[136].mxu1  ;;  %v6290_v14 = vld [vmem:[#allocation2 + $0x100] sm:$0x11] }
 0x293   : > { %v12957_v3 = vadd.f32 %v9872_v55, %v3970_v31  ;;  %7771 = vmatprep.mubr.bf16.mxu0 %v13675_v12  ;;  %v6487_v31 = vor.u32 %v6486_v60, %v6483_v58  ;;  %v6502_v11 = vrot.slane %v6500_v23, 5  ;;  %v7360_v39 = vrot.slane %v7233_v37, 5 }
 0x294   : > { %7050 = vmatmul.mubr.bf16.gmra.mrb[240].mxu1 %v13676_v46  ;;  %v6507_v8 = vrot.slane %v6505_v5, 4  ;;  %v6510_v18 = vrot.slane %v6508_v47, 5  ;;  %v6514_v25 = vshll.u32 %v12964_v54, 16  ;;  %v6518_v62 = vshrl.u32 %v12964_v54, 16  ;;  %v9768_v5 = vpop.f32.mrb[137].mxu1 }
 0x295   : > { %v9873_v6 = vpop.f32.mrb[132].mxu0  ;;  %7057 = vmatprep.mubr.bf16.mxu1 %v8962_v56  ;;  %v12988_v59 = vsel %vm11386_vm4, %v6464_v24, %v12921_v34  ;;  %v9060_v56 = vcombine.high %v12971_v4, %v12975_v19  ;;  %v6498_v23 = vrot.slane %v6497_v61, 4  ;;  %v6488_v60 = vrot.slane %v6487_v31, 4  ;;  %v9770_v22 = vpop.f32.mrb[138].mxu1  ;;  %v6291_v24 = vld [vmem:[#allocation2 + $0x108] sm:$0xff] }
 0x296   : > { %v9874_v45 = vpop.f32.mrb[133].mxu0  ;;  %v8964_v47 = vcombine.high %v12988_v59, %v12981_v33  ;;  %v9006_v55 = vrot.slane %v7231_v38, 9  ;;  %v7359_v30 = vrot.slane %v7357_v35, 4  ;;  %v9769_v51 = vadd.f32 %v9768_v5, %v9767_v2  ;;  %v9771_v12 = vpop.f32.mrb[139].mxu1 }
 0x297   : > { %v9875_v36 = vadd.f32 %v9874_v45, %v9873_v6  ;;  %v9876_v40 = vpop.f32.mrb[134].mxu0  ;;  %v12998_v34 = vsel %vm11386_vm4, %v6498_v23, %v6502_v11  ;;  %v13677_v26 = vcombine.low %v12865_v42, %v12876_v9  ;;  %v6511_v61 = vor.u32 %v6510_v18, %v6507_v8 }
 0x298   : > { %v9877_v58 = vpop.f32.mrb[135].mxu0  ;;  %v13005_v41 = vsel %vm11407_vm5, %v7359_v30, %v7360_v39  ;;  %v6520_v46 = vrot.slane %v6518_v62, 4  ;;  %v3973_v6 = vadd.f32 %v9769_v51, %v12493_v44  ;;  %v13678_v11 = vcombine.high %v12910_v52, %v12916_v20  ;;  %v13034_v62 = vld [vmem:[#allocation2 + $0x110] sm:$0xff] }
 0x299   : > { %v12994_v37 = vadd.f32 %v9875_v36, %v3971_v43  ;;  %v9878_v53 = vadd.f32 %v9877_v58, %v9876_v40  ;;  %v6516_v43 = vrot.slane %v6514_v25, 5  ;;  %v9772_v38 = vadd.f32 %v9771_v12, %v9770_v22 }
 0x29a   : > { %7772 = vmatmul.mubr.bf16.gmra.mrb[240].mxu0 %v13677_v26  ;;  %v6524_v45 = vshll.u32 %v6290_v14, 16  ;;  %v13679_v42 = vcombine.low %v12937_v48, %v12906_v16  ;;  %v13019_v9 = vsel %vm11386_vm4, %v6488_v60, %v12950_v7  ;;  %v6529_v39 = vshrl.u32 %v6291_v24, 16  ;;  %v13032_v7 = vld [vmem:[#allocation2 + $0x100] sm:$0x11] }
 0x29b   : > { %v13007_v31 = vadd.f32 %v9878_v53, %v3972_v13  ;;  %7779 = vmatprep.mubr.bf16.mxu0 %v13678_v11  ;;  %v9059_v13 = vcombine.low %v12971_v4, %v12975_v19  ;;  %v6532_v44 = vshll.u32 %v6291_v24, 16  ;;  %v3974_v8 = vadd.f32 %v9772_v38, %v12499_v10 }
 0x29c   : > { %7058 = vmatmul.mubr.bf16.gmra.mrb[244].mxu1 %v13679_v42  ;;  %v8963_v25 = vcombine.low %v12988_v59, %v12981_v33  ;;  %v8966_v16 = vcombine.high %v13019_v9, %v12998_v34  ;;  %v13030_v48 = vsel %vm11407_vm5, %v9006_v55, %v7357_v35  ;;  %v8965_v40 = vcombine.low %v13019_v9, %v12998_v34  ;;  %v9773_v14 = vpop.f32.mrb[140].mxu1 }
 0x29d   : > { %v9879_v18 = vpop.f32.mrb[136].mxu0  ;;  %7065 = vmatprep.mubr.bf16.mxu1 %v8964_v47  ;;  %v9062_v10 = vcombine.high %v13030_v48, %v13005_v41  ;;  %v6512_v2 = vrot.slane %v6511_v61, 4  ;;  %v6521_v33 = vor.u32 %v6520_v46, %v6516_v43  ;;  %v6526_v58 = vrot.slane %v6524_v45, 5  ;;  %v6294_v47 = vld [vmem:[#allocation2 + $0x120] sm:$0xff]  ;;  %v9774_v55 = vpop.f32.mrb[141].mxu1 }
 0x29e   : > { %v9880_v36 = vpop.f32.mrb[137].mxu0  ;;  %v13558_v5 = vrot.slane %v12964_v54, 5  ;;  %v7367_v30 = vrot.slane %v13032_v7, 5  ;;  %v6531_v53 = vrot.slane %v6529_v39, 4  ;;  %v6534_v51 = vrot.slane %v6532_v44, 5  ;;  %v9776_v61 = vpop.f32.mrb[142].mxu1 }
 0x29f   : > { %v9881_v59 = vadd.f32 %v9880_v36, %v9879_v18  ;;  %v9882_v23 = vpop.f32.mrb[138].mxu0  ;;  %v6538_v22 = vshll.u32 %v13034_v62, 16  ;;  %v9775_v12 = vadd.f32 %v9774_v55, %v9773_v14  ;;  %v6293_v46 = vld [vmem:[#allocation2 + $0x118] sm:$0x11]  ;;  %v6542_v11 = vshrl.u32 %v13034_v62, 16  ;;  %v9777_v45 = vpop.f32.mrb[143].mxu1 }
 0x2a0   : > { %v9883_v60 = vpop.f32.mrb[139].mxu0  ;;  %v13680_v38 = vcombine.low %v12910_v52, %v12916_v20  ;;  %v13053_v42 = vsel %vm11386_vm4, %v6512_v2, %v6516_v43  ;;  %v6522_v39 = vrot.slane %v6521_v33, 4  ;;  %v7239_v44 = vld [vmem:[#allocation2 + $0x118] sm:$0x11]  ;;  %v6553_v18 = vshrl.u32 %v6294_v47, 16  ;;  %v13063_v52 = vld [vmem:[#allocation2 + $0x128] sm:$0xff] }
 0x2a1   : > { %v13045_v24 = vadd.f32 %v9881_v59, %v3973_v6  ;;  %v9884_v26 = vadd.f32 %v9883_v60, %v9882_v23  ;;  %v6556_v6 = vshll.u32 %v6294_v47, 16  ;;  %v3975_v36 = vadd.f32 %v9775_v12, %v12508_v21  ;;  %v7234_v2 = vld [vmem:[#allocation2 + $0xf0] sm:$0xee]  ;;  %v7237_v60 = vld [vmem:[#allocation2 + $0x108] sm:$0xee] }
 0x2a2   : > { %7780 = vmatmul.mubr.bf16.gmra.mrb[244].mxu0 %v13680_v38  ;;  %v9778_v59 = vadd.f32 %v9777_v45, %v9776_v61  ;;  %v7366_v20 = vrot.slane %v13558_v5, 4  ;;  %v13067_v43 = vsel %vm11386_vm4, %v6522_v39, %v6526_v58  ;;  %v6548_v33 = vshll.u32 %v6293_v46, 16  ;;  %v6297_v5 = vld [vmem:[#allocation2 + $0x138] sm:$0xff] }
 0x2a3   : > { %v13055_v7 = vadd.f32 %v9884_v26, %v3974_v8  ;;  %7787 = vmatprep.mubr.bf16.mxu0 %v9060_v56  ;;  %v6535_v8 = vor.u32 %v6534_v51, %v6531_v53  ;;  %v7371_v21 = vrot.slane %v13034_v62, 5  ;;  %v6540_v56 = vrot.slane %v6538_v22, 5  ;;  %v6296_v22 = vld [vmem:[#allocation2 + $0x130] sm:$0x11] }
 0x2a4   : > { %7066 = vmatmul.mubr.bf16.gmra.mrb[248].mxu1 %v8963_v25  ;;  %v3976_v23 = vadd.f32 %v9778_v59, %v12514_v63  ;;  %v6544_v47 = vrot.slane %v6542_v11, 4  ;;  %v7374_v55 = vrot.slane %v7239_v44, 5  ;;  %v6555_v12 = vrot.slane %v6553_v18, 4  ;;  %v9779_v51 = vpop.f32.mrb[144].mxu1 }
 0x2a5   : > { %v9885_v14 = vpop.f32.mrb[140].mxu0  ;;  %7073 = vmatprep.mubr.bf16.mxu1 %v8966_v16  ;;  %v6558_v25 = vrot.slane %v6556_v6, 5  ;;  %v6562_v61 = vshll.u32 %v13063_v52, 16  ;;  %v6566_v58 = vshrl.u32 %v13063_v52, 16  ;;  %v8968_v62 = vcombine.high %v13053_v42, %v13067_v43  ;;  %v9780_v11 = vpop.f32.mrb[145].mxu1 }
 0x2a6   : > { %v9886_v26 = vpop.f32.mrb[141].mxu0  ;;  %v9007_v63 = vrot.slane %v7234_v2, 9  ;;  %v13077_v16 = vsel %vm11407_vm5, %v7366_v20, %v7367_v30  ;;  %v6536_v45 = vrot.slane %v6535_v8, 4  ;;  %v6550_v39 = vrot.slane %v6548_v33, 5 }
 0x2a7   : > { %v9887_v38 = vadd.f32 %v9886_v26, %v9885_v14  ;;  %v9888_v53 = vpop.f32.mrb[142].mxu0  ;;  %v9008_v44 = vrot.slane %v7237_v60, 9  ;;  %v7373_v18 = vrot.slane %v7371_v21, 4  ;;  %v9781_v14 = vadd.f32 %v9780_v11, %v9779_v51  ;;  %v9782_v26 = vpop.f32.mrb[146].mxu1  ;;  %v13681_v60 = vld [vmem:[#allocation13_spill] sm:$0xff] }
 0x2a8   : > { %v9889_v46 = vpop.f32.mrb[143].mxu0  ;;  %v6545_v35 = vor.u32 %v6544_v47, %v6540_v56  ;;  %v9783_v30 = vpop.f32.mrb[147].mxu1  ;;  %v6559_v2 = vor.u32 %v6558_v25, %v6555_v12  ;;  %v13088_v8 = vrot.slane %v6562_v61, 5  ;;  %v6568_v33 = vrot.slane %v6566_v58, 4  ;;  %v13683_v25 = vld [vmem:[#allocation14_spill] sm:$0xff] }
 0x2a9   : > { %v13079_v6 = vadd.f32 %v9887_v38, %v3975_v36  ;;  %v9890_v59 = vadd.f32 %v9889_v46, %v9888_v53  ;;  %v13086_v20 = vsel %vm11407_vm5, %v7373_v18, %v7374_v55  ;;  %v3977_v38 = vadd.f32 %v9781_v14, %v13681_v60  ;;  %v7242_v11 = vld [vmem:[#allocation2 + $0x130] sm:$0x11] }
 0x2aa   : > { %7788 = vmatmul.mubr.bf16.gmra.mrb[248].mxu0 %v9059_v13  ;;  %v9784_v47 = vadd.f32 %v9783_v30, %v9782_v26  ;;  %v6572_v4 = vshll.u32 %v6296_v22, 16  ;;  %v8967_v19 = vcombine.low %v13053_v42, %v13067_v43  ;;  %v13682_v13 = vrot.slane %v12964_v54, 5 }
 0x2ab   : > { %v13090_v36 = vadd.f32 %v9890_v59, %v3976_v23  ;;  %7795 = vmatprep.mubr.bf16.mxu0 %v9062_v10  ;;  %v6577_v55 = vshrl.u32 %v6297_v5, 16  ;;  %v6580_v12 = vshll.u32 %v6297_v5, 16  ;;  %v6546_v34 = vrot.slane %v6545_v35, 4  ;;  %v7240_v35 = vld [vmem:[#allocation2 + $0x120] sm:$0xee] }
 0x2ac   : > { %7074 = vmatmul.mubr.bf16.gmra.mrb[252].mxu1 %v8965_v40  ;;  %v13105_v23 = vsel %vm11407_vm5, %v9007_v63, %v13682_v13  ;;  %v3978_v61 = vadd.f32 %v9784_v47, %v13683_v25  ;;  %v13112_v9 = vsel %vm11407_vm5, %v9008_v44, %v7371_v21  ;;  %v13114_v40 = vld [vmem:[#allocation2 + $0x140] sm:$0xff]  ;;  %v13120_v5 = vsel %vm11386_vm4, %v6536_v45, %v6540_v56  ;;  %v9785_v21 = vpop.f32.mrb[148].mxu1 }
 0x2ad   : > { %v9891_v10 = vpop.f32.mrb[144].mxu0  ;;  %7081 = vmatprep.mubr.bf16.mxu1 %v8968_v62  ;;  %v9063_v58 = vcombine.low %v13105_v23, %v13077_v16  ;;  %v9064_v42 = vcombine.high %v13105_v23, %v13077_v16  ;;  %v6569_v53 = vor.u32 %v6568_v33, %v13088_v8  ;;  %v13127_v63 = vsel %vm11386_vm4, %v6546_v34, %v6550_v39  ;;  %v9786_v18 = vpop.f32.mrb[149].mxu1 }
 0x2ae   : > { %v9892_v54 = vpop.f32.mrb[145].mxu0  ;;  %v6560_v22 = vrot.slane %v6559_v2, 4  ;;  %v6574_v46 = vrot.slane %v6572_v4, 5  ;;  %v6579_v56 = vrot.slane %v6577_v55, 4  ;;  %v6582_v45 = vrot.slane %v6580_v12, 5  ;;  %v9788_v60 = vpop.f32.mrb[150].mxu1 }
 0x2af   : > { %v9893_v51 = vadd.f32 %v9892_v54, %v9891_v10  ;;  %v9894_v62 = vpop.f32.mrb[146].mxu0  ;;  %v6586_v59 = vshll.u32 %v13114_v40, 16  ;;  %v6590_v14 = vshrl.u32 %v13114_v40, 16  ;;  %v9787_v33 = vadd.f32 %v9786_v18, %v9785_v21  ;;  %v9789_v2 = vpop.f32.mrb[151].mxu1  ;;  %v13685_v10 = vld [vmem:[#allocation15_spill] sm:$0xff] }
 0x2b0   : > { %v9895_v44 = vpop.f32.mrb[147].mxu0  ;;  %v7378_v47 = vrot.slane %v13063_v52, 5  ;;  %v13684_v39 = vcombine.low %v13030_v48, %v13005_v41  ;;  %v8969_v4 = vcombine.low %v13120_v5, %v13127_v63  ;;  %v8970_v13 = vcombine.high %v13120_v5, %v13127_v63  ;;  %v13144_v41 = vld [vmem:[#allocation2 + $0x158] sm:$0xff] }
 0x2b1   : > { %v13131_v26 = vadd.f32 %v9893_v51, %v3977_v38  ;;  %v9896_v30 = vadd.f32 %v9895_v44, %v9894_v62  ;;  %v6570_v55 = vrot.slane %v6569_v53, 4  ;;  %v9009_v12 = vrot.slane %v7240_v35, 9  ;;  %v6299_v38 = vld [vmem:[#allocation2 + $0x148] sm:$0x11]  ;;  %v6300_v51 = vld [vmem:[#allocation2 + $0x150] sm:$0xff] }
 0x2b2   : > { %7796 = vmatmul.mubr.bf16.gmra.mrb[252].mxu0 %v13684_v39  ;;  %v3979_v34 = vadd.f32 %v9787_v33, %v13685_v10  ;;  %v9790_v52 = vadd.f32 %v9789_v2, %v9788_v60  ;;  %v7381_v54 = vrot.slane %v7242_v11, 5  ;;  %v6583_v62 = vor.u32 %v6582_v45, %v6579_v56  ;;  %v13686_v35 = vld [vmem:[#allocation16_spill] sm:$0xff]  ;;  %v7243_v44 = vld [vmem:[#allocation2 + $0x138] sm:$0xee] }
 0x2b3   : > { %v13141_v25 = vadd.f32 %v9896_v30, %v3978_v61  ;;  %7803 = vmatprep.mubr.bf16.mxu0 %v9064_v42  ;;  %v13148_v48 = vsel %vm11386_vm4, %v6570_v55, %v6574_v46  ;;  %v6588_v5 = vrot.slane %v6586_v59, 5  ;;  %v6592_v53 = vrot.slane %v6590_v14, 4 }
 0x2b4   : > { %7082 = vmatmul.mubr.bf16.gmra.mrb[0].mxu1 %v8967_v19  ;;  %v3980_v21 = vadd.f32 %v9790_v52, %v13686_v35  ;;  %v13154_v42 = vsel %vm11386_vm4, %v6560_v22, %v13088_v8  ;;  %v7380_v63 = vrot.slane %v7378_v47, 4  ;;  %v6596_v11 = vshll.u32 %v6299_v38, 16  ;;  %v9791_v30 = vpop.f32.mrb[152].mxu1  ;;  %v6302_v22 = vld [vmem:[#allocation2 + $0x160] sm:$0x11] }
 0x2b5   : > { %v9897_v61 = vpop.f32.mrb[148].mxu0  ;;  %7089 = vmatprep.mubr.bf16.mxu1 %v8970_v13  ;;  %v13158_v46 = vsel %vm11407_vm5, %v9009_v12, %v7378_v47  ;;  %v6601_v18 = vshrl.u32 %v6300_v51, 16  ;;  %v6604_v56 = vshll.u32 %v6300_v51, 16  ;;  %v6610_v45 = vshll.u32 %v13144_v41, 16  ;;  %v9792_v47 = vpop.f32.mrb[153].mxu1 }
 0x2b6   : > { %v9898_v19 = vpop.f32.mrb[149].mxu0  ;;  %v8972_v33 = vcombine.high %v13154_v42, %v13148_v48  ;;  %v13165_v8 = vsel %vm11407_vm5, %v7380_v63, %v7381_v54  ;;  %v6614_v60 = vshrl.u32 %v13144_v41, 16  ;;  %v6584_v2 = vrot.slane %v6583_v62, 4  ;;  %v9794_v51 = vpop.f32.mrb[154].mxu1 }
 0x2b7   : > { %v9899_v59 = vadd.f32 %v9898_v19, %v9897_v61  ;;  %v9900_v14 = vpop.f32.mrb[150].mxu0  ;;  %v6593_v13 = vor.u32 %v6592_v53, %v6588_v5  ;;  %v9010_v55 = vrot.slane %v7243_v44, 9  ;;  %v7385_v12 = vrot.slane %v13114_v40, 5  ;;  %v7245_v61 = vld [vmem:[#allocation2 + $0x148] sm:$0x11]  ;;  %v9795_v54 = vpop.f32.mrb[155].mxu1 }
 0x2b8   : > { %v9901_v39 = vpop.f32.mrb[151].mxu0  ;;  %v9793_v52 = vadd.f32 %v9792_v47, %v9791_v30  ;;  %v6598_v35 = vrot.slane %v6596_v11, 5  ;;  %v6603_v63 = vrot.slane %v6601_v18, 4  ;;  %v6606_v19 = vrot.slane %v6604_v56, 5  ;;  %v13689_v40 = vld [vmem:[#allocation17_spill] sm:$0xff] }
 0x2b9   : > { %v13169_v38 = vadd.f32 %v9899_v59, %v3979_v34  ;;  %v9902_v10 = vadd.f32 %v9901_v39, %v9900_v14  ;;  %v13174_v43 = vrot.slane %v6610_v45, 5  ;;  %v6620_v62 = vshll.u32 %v6302_v22, 16  ;;  %v6303_v22 = vld [vmem:[#allocation2 + $0x168] sm:$0xff] }
 0x2ba   : > { %7804 = vmatmul.mubr.bf16.gmra.mrb[0].mxu0 %v9063_v58  ;;  %v3981_v34 = vadd.f32 %v9793_v52, %v13689_v40  ;;  %v13690_v44 = vcombine.high %v13112_v9, %v13086_v20  ;;  %v9796_v11 = vadd.f32 %v9795_v54, %v9794_v51  ;;  %v6616_v59 = vrot.slane %v6614_v60, 4  ;;  %v13191_v60 = vld [vmem:[#allocation2 + $0x170] sm:$0xff] }
 0x2bb   : > { %13687 = vst [vmem:[#allocation13_spill] sm:$0xff] %v13169_v38  ;;  %v13176_v53 = vadd.f32 %v9902_v10, %v3980_v21  ;;  %v9065_v16 = vcombine.low %v13112_v9, %v13086_v20  ;;  %v8971_v23 = vcombine.low %v13154_v42, %v13148_v48  ;;  %v13691_v21 = vld [vmem:[#allocation18_spill] sm:$0xff]  ;;  %v9068_v45 = vcombine.high %v13158_v46, %v13165_v8 }
 0x2bc   : > { %7811 = vmatprep.mubr.bf16.mxu0 %v13690_v44  ;;  %7090 = vmatmul.mubr.bf16.gmra.mrb[4].mxu1 %v8969_v4  ;;  %v3982_v18 = vadd.f32 %v9796_v11, %v13691_v21  ;;  %v6594_v14 = vrot.slane %v6593_v13, 4  ;;  %v7388_v30 = vrot.slane %v7245_v61, 5  ;;  %v13195_v9 = vsel %vm11386_vm4, %v6584_v2, %v6588_v5  ;;  %v9797_v47 = vpop.f32.mrb[156].mxu1  ;;  %v7248_v44 = vld [vmem:[#allocation2 + $0x160] sm:$0x11] }
 0x2bd   : > { %13688 = vst [vmem:[#allocation14_spill] sm:$0xff] %v13176_v53  ;;  %v9903_v56 = vpop.f32.mrb[152].mxu0  ;;  %7097 = vmatprep.mubr.bf16.mxu1 %v8972_v33  ;;  %v13199_v4 = vsel %vm11407_vm5, %v9010_v55, %v7385_v12  ;;  %v7387_v48 = vrot.slane %v7385_v12, 4  ;;  %v6607_v42 = vor.u32 %v6606_v19, %v6603_v63  ;;  %v6617_v10 = vor.u32 %v6616_v59, %v13174_v43  ;;  %v9798_v61 = vpop.f32.mrb[157].mxu1 }
 0x2be   : > { %v9904_v20 = vpop.f32.mrb[153].mxu0  ;;  %v13203_v13 = vsel %vm11386_vm4, %v6594_v14, %v6598_v35  ;;  %v6622_v52 = vrot.slane %v6620_v62, 5  ;;  %v13559_v5 = vrot.slane %v13144_v41, 5  ;;  %v6625_v2 = vshrl.u32 %v6303_v22, 16  ;;  %v9800_v40 = vpop.f32.mrb[158].mxu1  ;;  %v13694_v14 = vld [vmem:[#allocation4_spill] sm:$0xff] }
 0x2bf   : > { %v9905_v33 = vadd.f32 %v9904_v20, %v9903_v56  ;;  %v9906_v39 = vpop.f32.mrb[154].mxu0  ;;  %v6628_v54 = vshll.u32 %v6303_v22, 16  ;;  %v6634_v55 = vshll.u32 %v13191_v60, 16  ;;  %v9799_v19 = vadd.f32 %v9798_v61, %v9797_v47  ;;  %v9801_v11 = vpop.f32.mrb[159].mxu1  ;;  %v13222_v47 = vld [vmem:[#allocation2 + $0x188] sm:$0xff] }
 0x2c0   : > { %v9907_v51 = vpop.f32.mrb[155].mxu0  ;;  %v6638_v35 = vshrl.u32 %v13191_v60, 16  ;;  %v8973_v62 = vcombine.low %v13195_v9, %v13203_v13  ;;  %v8974_v59 = vcombine.high %v13195_v9, %v13203_v13  ;;  %v13217_v21 = vsel %vm11407_vm5, %v7387_v48, %v7388_v30  ;;  %v13695_v48 = vld [vmem:[#allocation5_spill] sm:$0xff] }
 0x2c1   : > { %v13208_v12 = vadd.f32 %v9905_v33, %v3981_v34  ;;  %v9908_v63 = vadd.f32 %v9907_v51, %v9906_v39  ;;  %v6608_v34 = vrot.slane %v6607_v42, 4  ;;  %v3983_v22 = vadd.f32 %v9799_v19, %v13694_v14  ;;  %v6306_v39 = vld [vmem:[#allocation2 + $0x180] sm:$0xff] }
 0x2c2   : > { %7812 = vmatmul.mubr.bf16.gmra.mrb[4].mxu0 %v9065_v16  ;;  %v9802_v20 = vadd.f32 %v9801_v11, %v9800_v40  ;;  %v6618_v33 = vrot.slane %v6617_v10, 4  ;;  %v6305_v16 = vld [vmem:[#allocation2 + $0x178] sm:$0x11]  ;;  %v7394_v9 = vrot.slane %v13559_v5, 4  ;;  %v7395_v13 = vrot.slane %v7248_v44, 5 }
 0x2c3   : > { %13692 = vst [vmem:[#allocation15_spill] sm:$0xff] %v13208_v12  ;;  %v13219_v56 = vadd.f32 %v9908_v63, %v3982_v18  ;;  %7819 = vmatprep.mubr.bf16.mxu0 %v9068_v45  ;;  %v6627_v51 = vrot.slane %v6625_v2, 4  ;;  %v6630_v30 = vrot.slane %v6628_v54, 5  ;;  %v7246_v10 = vld [vmem:[#allocation2 + $0x150] sm:$0xee]  ;;  %v13231_v61 = vrot.slane %v6634_v55, 5 }
 0x2c4   : > { %7098 = vmatmul.mubr.bf16.gmra.mrb[8].mxu1 %v8971_v23  ;;  %v3984_v42 = vadd.f32 %v9802_v20, %v13695_v48  ;;  %v13229_v45 = vsel %vm11386_vm4, %v6618_v33, %v6622_v52  ;;  %v6640_v63 = vrot.slane %v6638_v35, 4  ;;  %v6644_v23 = vshll.u32 %v6305_v16, 16  ;;  %v9931_v14 = vpop.f32.mrb[160].mxu1 }
 0x2c5   : > { %13693 = vst [vmem:[#allocation16_spill] sm:$0xff] %v13219_v56  ;;  %v9909_v18 = vpop.f32.mrb[156].mxu0  ;;  %7105 = vmatprep.mubr.bf16.mxu1 %v8974_v59  ;;  %v6649_v40 = vshrl.u32 %v6306_v39, 16  ;;  %v6652_v11 = vshll.u32 %v6306_v39, 16  ;;  %v6658_v44 = vshll.u32 %v13222_v47, 16  ;;  %v9070_v59 = vcombine.high %v13199_v4, %v13217_v21  ;;  %v9932_v20 = vpop.f32.mrb[161].mxu1 }
 0x2c6   : > { %v9910_v19 = vpop.f32.mrb[157].mxu0  ;;  %v13239_v52 = vsel %vm11386_vm4, %v6608_v34, %v13174_v43  ;;  %v6662_v55 = vshrl.u32 %v13222_v47, 16  ;;  %v9011_v16 = vrot.slane %v7246_v10, 9  ;;  %v13246_v39 = vsel %vm11407_vm5, %v7394_v9, %v7395_v13  ;;  %v9934_v58 = vpop.f32.mrb[162].mxu1  ;;  %v13697_v13 = vld [vmem:[#allocation6_spill] sm:$0xff] }
 0x2c7   : > { %v9911_v2 = vadd.f32 %v9910_v19, %v9909_v18  ;;  %v9912_v54 = vpop.f32.mrb[158].mxu0  ;;  %v8976_v33 = vcombine.high %v13239_v52, %v13229_v45  ;;  %v6631_v48 = vor.u32 %v6630_v30, %v6627_v51  ;;  %v9933_v5 = vadd.f32 %v9932_v20, %v9931_v14  ;;  %v9935_v56 = vpop.f32.mrb[163].mxu1  ;;  %v13259_v30 = vld [vmem:[#allocation2 + $0x168] sm:$0xee] }
 0x2c8   : > { %v9913_v35 = vpop.f32.mrb[159].mxu0  ;;  %v6641_v43 = vor.u32 %v6640_v63, %v13231_v61  ;;  %v13696_v34 = vcombine.low %v13158_v46, %v13165_v8  ;;  %v6646_v12 = vrot.slane %v6644_v23, 5  ;;  %v6651_v53 = vrot.slane %v6649_v40, 4  ;;  %v7251_v23 = vld [vmem:[#allocation2 + $0x178] sm:$0x11] }
 0x2c9   : > { %v13248_v18 = vadd.f32 %v9911_v2, %v3983_v22  ;;  %v9914_v19 = vadd.f32 %v9913_v35, %v9912_v54  ;;  %v6654_v10 = vrot.slane %v6652_v11, 5  ;;  %v13254_v38 = vrot.slane %v6658_v44, 5  ;;  %v6309_v44 = vld [vmem:[#allocation2 + $0x198] sm:$0xff]  ;;  %v13272_v54 = vld [vmem:[#allocation2 + $0x1a0] sm:$0xff] }
 0x2ca   : > { %7820 = vmatmul.mubr.bf16.gmra.mrb[8].mxu0 %v13696_v34  ;;  %v5621_v22 = vadd.f32 %v9933_v5, %v13697_v13  ;;  %v9936_v51 = vadd.f32 %v9935_v56, %v9934_v58  ;;  %v6664_v2 = vrot.slane %v6662_v55, 4  ;;  %v9069_v63 = vcombine.low %v13199_v4, %v13217_v21 }
 0x2cb   : > { %v13256_v9 = vadd.f32 %v9914_v19, %v3984_v42  ;;  %7827 = vmatprep.mubr.bf16.mxu0 %v9070_v59  ;;  %v13698_v46 = vrot.slane %v13144_v41, 5  ;;  %v13699_v42 = vld [vmem:[#allocation7_spill] sm:$0xff]  ;;  %v6632_v5 = vrot.slane %v6631_v48, 4  ;;  %v6642_v56 = vrot.slane %v6641_v43, 4 }
 0x2cc   : > { %7106 = vmatmul.mubr.bf16.gmra.mrb[12].mxu1 %v8973_v62  ;;  %v5622_v40 = vadd.f32 %v9936_v51, %v13699_v42  ;;  %v8975_v41 = vcombine.low %v13239_v52, %v13229_v45  ;;  %v9012_v62 = vrot.slane %v13259_v30, 9  ;;  %v7399_v21 = vrot.slane %v13191_v60, 5  ;;  %v9937_v35 = vpop.f32.mrb[164].mxu1 }
 0x2cd   : > { %v13267_v8 = vsel %vm11407_vm5, %v9011_v16, %v13698_v46  ;;  %v10043_v11 = vpop.f32.mrb[160].mxu0  ;;  %7113 = vmatprep.mubr.bf16.mxu1 %v8976_v33  ;;  %v6655_v14 = vor.u32 %v6654_v10, %v6651_v53  ;;  %v13280_v20 = vsel %vm11386_vm4, %v6642_v56, %v6646_v12  ;;  %v7402_v33 = vrot.slane %v7251_v23, 5  ;;  %v6308_v16 = vld [vmem:[#allocation2 + $0x190] sm:$0x11]  ;;  %v9938_v43 = vpop.f32.mrb[165].mxu1 }
 0x2ce   : > { %v9072_v58 = vcombine.high %v13267_v8, %v13246_v39  ;;  %v10044_v4 = vpop.f32.mrb[161].mxu0  ;;  %v6665_v48 = vor.u32 %v6664_v2, %v13254_v38  ;;  %v6673_v34 = vshrl.u32 %v6309_v44, 16  ;;  %v6676_v45 = vshll.u32 %v6309_v44, 16  ;;  %v9940_v51 = vpop.f32.mrb[166].mxu1 }
 0x2cf   : > { %v10045_v59 = vadd.f32 %v10044_v4, %v10043_v11  ;;  %v10046_v55 = vpop.f32.mrb[162].mxu0  ;;  %v6682_v52 = vshll.u32 %v13272_v54, 16  ;;  %v6686_v60 = vshrl.u32 %v13272_v54, 16  ;;  %v9939_v13 = vadd.f32 %v9938_v43, %v9937_v35  ;;  %v9941_v30 = vpop.f32.mrb[167].mxu1 }
 0x2d0   : > { %v10047_v19 = vpop.f32.mrb[163].mxu0  ;;  %v6637_v12 = vsel %vm11386_vm4, %v6632_v5, %v13231_v61  ;;  %v7401_v46 = vrot.slane %v7399_v21, 4  ;;  %v6656_v23 = vrot.slane %v6655_v14, 4  ;;  %v6668_v42 = vshll.u32 %v6308_v16, 16  ;;  %v13700_v61 = vld [vmem:[#allocation8_spill] sm:$0xff] }
 0x2d1   : > { %v13285_v53 = vadd.f32 %v10045_v59, %v5621_v22  ;;  %v10048_v10 = vadd.f32 %v10047_v19, %v10046_v55  ;;  %v8978_v2 = vcombine.high %v6637_v12, %v13280_v20  ;;  %v5623_v56 = vadd.f32 %v9939_v13, %v12657_v27 }
 0x2d2   : > { %7828 = vmatmul.mubr.bf16.gmra.mrb[12].mxu0 %v9069_v63  ;;  %v9942_v22 = vadd.f32 %v9941_v30, %v9940_v51  ;;  %v6666_v44 = vrot.slane %v6665_v48, 4  ;;  %v6675_v4 = vrot.slane %v6673_v34, 4  ;;  %v6678_v59 = vrot.slane %v6676_v45, 5  ;;  %v6311_v34 = vld [vmem:[#allocation2 + $0x1a8] sm:$0x11] }
 0x2d3   : > { %v13291_v11 = vadd.f32 %v10048_v10, %v5622_v40  ;;  %7835 = vmatprep.mubr.bf16.mxu0 %v9072_v58  ;;  %v6684_v55 = vrot.slane %v6682_v52, 5  ;;  %v6688_v35 = vrot.slane %v6686_v60, 4  ;;  %v7403_v14 = vsel %vm11407_vm5, %v7401_v46, %v7402_v33 }
 0x2d4   : > { %7114 = vmatmul.mubr.bf16.gmra.mrb[16].mxu1 %v8975_v41  ;;  %v5624_v63 = vadd.f32 %v9942_v22, %v13700_v61  ;;  %v6670_v40 = vrot.slane %v6668_v42, 5  ;;  %v7406_v16 = vrot.slane %v13222_v47, 5  ;;  %v9071_v27 = vcombine.low %v13267_v8, %v13246_v39  ;;  %v9943_v48 = vpop.f32.mrb[168].mxu1 }
 0x2d5   : > { %v10049_v5 = vpop.f32.mrb[164].mxu0  ;;  %7121 = vmatprep.mubr.bf16.mxu1 %v8978_v2  ;;  %v7400_v43 = vsel %vm11407_vm5, %v9012_v62, %v7399_v21  ;;  %v9944_v52 = vpop.f32.mrb[169].mxu1  ;;  %v6661_v60 = vsel %vm11386_vm4, %v6656_v23, %v13254_v38  ;;  %v6679_v47 = vor.u32 %v6678_v59, %v6675_v4  ;;  %v6689_v10 = vor.u32 %v6688_v35, %v6684_v55  ;;  %v7252_v2 = vld [vmem:[#allocation2 + $0x180] sm:$0xee]  ;;  %v7254_v62 = vld [vmem:[#allocation2 + $0x190] sm:$0x11] }
 0x2d6   : > { %v10050_v19 = vpop.f32.mrb[165].mxu0  ;;  %v6671_v33 = vsel %vm11386_vm4, %v6666_v44, %v6670_v40  ;;  %v9945_v8 = vadd.f32 %v9944_v52, %v9943_v48  ;;  %v9946_v51 = vpop.f32.mrb[170].mxu1  ;;  %v9074_v30 = vcombine.high %v7400_v43, %v7403_v14  ;;  %v8977_v21 = vcombine.low %v6637_v12, %v13280_v20 }
 0x2d7   : > { %v10051_v58 = vadd.f32 %v10050_v19, %v10049_v5  ;;  %v10052_v41 = vpop.f32.mrb[166].mxu0  ;;  %v9947_v46 = vpop.f32.mrb[171].mxu1  ;;  %v7408_v42 = vrot.slane %v7406_v16, 4  ;;  %v6692_v22 = vshll.u32 %v6311_v34, 16  ;;  %v9013_v4 = vrot.slane %v7252_v2, 9  ;;  %v13701_v5 = vld [vmem:[#allocation9_spill] sm:$0xff] }
 0x2d8   : > { %v10053_v45 = vpop.f32.mrb[167].mxu0  ;;  %v5625_v23 = vadd.f32 %v9945_v8, %v12693_v1  ;;  %v9948_v44 = vadd.f32 %v9947_v46, %v9946_v51  ;;  %v7409_v59 = vrot.slane %v7254_v62, 5  ;;  %v6680_v35 = vrot.slane %v6679_v47, 4  ;;  %v7255_v2 = vld [vmem:[#allocation2 + $0x198] sm:$0xee] }
 0x2d9   : > { %v13307_v13 = vadd.f32 %v10051_v58, %v5623_v56  ;;  %v10054_v39 = vadd.f32 %v10053_v45, %v10052_v41  ;;  %v8980_v56 = vcombine.high %v6661_v60, %v6671_v33  ;;  %v6690_v61 = vrot.slane %v6689_v10, 4  ;;  %v7257_v62 = vld [vmem:[#allocation2 + $0x1a8] sm:$0x11] }
 0x2da   : > { %7836 = vmatmul.mubr.bf16.gmra.mrb[16].mxu0 %v9071_v27  ;;  %v5626_v19 = vadd.f32 %v9948_v44, %v13701_v5  ;;  %v7410_v12 = vsel %vm11407_vm5, %v7408_v42, %v7409_v59  ;;  %v7413_v27 = vrot.slane %v13272_v54, 5  ;;  %v9073_v48 = vcombine.low %v7400_v43, %v7403_v14  ;;  %v13703_v44 = vld [vmem:[#allocation11_spill] sm:$0xff] }
 0x2db   : > { %v13310_v38 = vadd.f32 %v10054_v39, %v5624_v63  ;;  %7843 = vmatprep.mubr.bf16.mxu0 %v9074_v30  ;;  %v6694_v63 = vrot.slane %v6692_v22, 5  ;;  %v7407_v52 = vsel %vm11407_vm5, %v9013_v4, %v7406_v16  ;;  %v6685_v47 = vsel %vm11386_vm4, %v6680_v35, %v6684_v55  ;;  %v13702_v16 = vld [vmem:[#allocation10_spill] sm:$0xff] }
 0x2dc   : > { %7122 = vmatmul.mubr.bf16.gmra.mrb[20].mxu1 %v8977_v21  ;;  %v9949_v41 = vpop.f32.mrb[172].mxu1  ;;  %v9076_v30 = vcombine.high %v7407_v52, %v7410_v12  ;;  %v8979_v14 = vcombine.low %v6661_v60, %v6671_v33  ;;  %v7415_v21 = vrot.slane %v7413_v27, 4  ;;  %v9014_v22 = vrot.slane %v7255_v2, 9 }
 0x2dd   : > { %v10055_v40 = vpop.f32.mrb[168].mxu0  ;;  %7129 = vmatprep.mubr.bf16.mxu1 %v8980_v56  ;;  %v9950_v45 = vpop.f32.mrb[173].mxu1  ;;  %v6695_v10 = vsel %vm11386_vm4, %v6690_v61, %v6694_v63  ;;  %v9075_v5 = vcombine.low %v7407_v52, %v7410_v12 }
 0x2de   : > { %v10056_v20 = vpop.f32.mrb[169].mxu0  ;;  %v9951_v51 = vadd.f32 %v9950_v45, %v9949_v41  ;;  %v9952_v54 = vpop.f32.mrb[174].mxu1  ;;  %v8982_v17 = vcombine.high %v6685_v47, %v6695_v10 }
 0x2df   : > { %v10057_v1 = vadd.f32 %v10056_v20, %v10055_v40  ;;  %v10058_v58 = vpop.f32.mrb[170].mxu0  ;;  %v9953_v43 = vpop.f32.mrb[175].mxu1  ;;  %v7414_v20 = vsel %vm11407_vm5, %v9014_v22, %v7413_v27 }
 0x2e0   : > { %v10059_v34 = vpop.f32.mrb[171].mxu0  ;;  %v5627_v42 = vadd.f32 %v9951_v51, %v13702_v16  ;;  %v9954_v55 = vadd.f32 %v9953_v43, %v9952_v54 }
 0x2e1   : > { %v13323_v39 = vadd.f32 %v10057_v1, %v5625_v23  ;;  %v10060_v8 = vadd.f32 %v10059_v34, %v10058_v58  ;;  %v7416_v23 = vrot.slane %v7257_v62, 5  ;;  %v8981_v34 = vcombine.low %v6685_v47, %v6695_v10 }
 0x2e2   : > { %7844 = vmatmul.mubr.bf16.gmra.mrb[20].mxu0 %v9073_v48  ;;  %v5628_v56 = vadd.f32 %v9954_v55, %v13703_v44 }
 0x2e3   : > { %v13325_v46 = vadd.f32 %v10060_v8, %v5626_v19  ;;  %7851 = vmatprep.mubr.bf16.mxu0 %v9076_v30  ;;  %v7417_v60 = vsel %vm11407_vm5, %v7415_v21, %v7416_v23 }
 0x2e4   : > { %7130 = vmatmul.mubr.bf16.gmra.mrb[24].mxu1 %v8979_v14  ;;  %v9955_v61 = vpop.f32.mrb[176].mxu1  ;;  %v9078_v48 = vcombine.high %v7414_v20, %v7417_v60  ;;  %v9077_v62 = vcombine.low %v7414_v20, %v7417_v60 }
 0x2e5   : > { %v10061_v4 = vpop.f32.mrb[172].mxu0  ;;  %7137 = vmatprep.mubr.bf16.mxu1 %v8982_v17  ;;  %v9956_v40 = vpop.f32.mrb[177].mxu1 }
 0x2e6   : > { %v10062_v59 = vpop.f32.mrb[173].mxu0  ;;  %v9957_v58 = vadd.f32 %v9956_v40, %v9955_v61  ;;  %v9958_v41 = vpop.f32.mrb[178].mxu1 }
 0x2e7   : > { %v10063_v33 = vadd.f32 %v10062_v59, %v10061_v4  ;;  %v10064_v35 = vpop.f32.mrb[174].mxu0  ;;  %v9959_v45 = vpop.f32.mrb[179].mxu1 }
 0x2e8   : > { %v10065_v19 = vpop.f32.mrb[175].mxu0  ;;  %v5629_v51 = vadd.f32 %v9957_v58, %v12780_v0  ;;  %v9960_v12 = vadd.f32 %v9959_v45, %v9958_v41 }
 0x2e9   : > { %v13333_v63 = vadd.f32 %v10063_v33, %v5627_v42  ;;  %v10066_v1 = vadd.f32 %v10065_v19, %v10064_v35 }
 0x2ea   : > { %7852 = vmatmul.mubr.bf16.gmra.mrb[24].mxu0 %v9075_v5  ;;  %v5630_v52 = vadd.f32 %v9960_v12, %v12785_v28 }
 0x2eb   : > { %v13335_v8 = vadd.f32 %v10066_v1, %v5628_v56  ;;  %7859 = vmatprep.mubr.bf16.mxu0 %v9078_v48 }
 0x2ec   : > { %7138 = vmatmul.mubr.bf16.gmra.mrb[28].mxu1 %v8981_v34  ;;  %v9961_v2 = vpop.f32.mrb[180].mxu1 }
 0x2ed   : > { %v10067_v57 = vpop.f32.mrb[176].mxu0  ;;  %v9962_v43 = vpop.f32.mrb[181].mxu1 }
 0x2ee   : > { %v10068_v27 = vpop.f32.mrb[177].mxu0  ;;  %v9963_v21 = vadd.f32 %v9962_v43, %v9961_v2  ;;  %v9964_v16 = vpop.f32.mrb[182].mxu1  ;;  %v13704_v2 = vld [vmem:[#allocation12_spill] sm:$0xff] }
 0x2ef   : > { %v10069_v54 = vadd.f32 %v10068_v27, %v10067_v57  ;;  %v10070_v30 = vpop.f32.mrb[178].mxu0  ;;  %v9965_v0 = vpop.f32.mrb[183].mxu1 }
 0x2f0   : > { %v10071_v14 = vpop.f32.mrb[179].mxu0  ;;  %v5631_v55 = vadd.f32 %v9963_v21, %v12825_v15  ;;  %v9966_v28 = vadd.f32 %v9965_v0, %v9964_v16 }
 0x2f1   : > { %v13339_v47 = vadd.f32 %v10069_v54, %v5629_v51  ;;  %v10072_v10 = vadd.f32 %v10071_v14, %v10070_v30  ;;  %v13705_v14 = vld [vmem:[#allocation19_spill] sm:$0xff] }
 0x2f2   : > { %7860 = vmatmul.mubr.bf16.gmra.mrb[28].mxu0 %v9077_v62  ;;  %v5632_v17 = vadd.f32 %v9966_v28, %v12832_v50 }
 0x2f3   : > { %v13341_v42 = vadd.f32 %v10072_v10, %v5630_v52 }
 0x2f4   : > { %v9967_v4 = vpop.f32.mrb[184].mxu1 }
 0x2f5   : > { %v10073_v22 = vpop.f32.mrb[180].mxu0  ;;  %v9968_v60 = vpop.f32.mrb[185].mxu1 }
 0x2f6   : > { %v10074_v23 = vpop.f32.mrb[181].mxu0  ;;  %v9969_v61 = vadd.f32 %v9968_v60, %v9967_v4  ;;  %v9970_v5 = vpop.f32.mrb[186].mxu1 }
 0x2f7   : > { %v10075_v44 = vadd.f32 %v10074_v23, %v10073_v22  ;;  %v10076_v56 = vpop.f32.mrb[182].mxu0  ;;  %v9971_v19 = vpop.f32.mrb[187].mxu1 }
 0x2f8   : > { %v10077_v59 = vpop.f32.mrb[183].mxu0  ;;  %v5633_v15 = vadd.f32 %v9969_v61, %v12861_v49  ;;  %v9972_v20 = vadd.f32 %v9971_v19, %v9970_v5 }
 0x2f9   : > { %v13345_v33 = vadd.f32 %v10075_v44, %v5631_v55  ;;  %v10078_v35 = vadd.f32 %v10077_v59, %v10076_v56 }
 0x2fa   : > { %v5634_v50 = vadd.f32 %v9972_v20, %v12879_v29 }
 0x2fb   : > { %v13347_v40 = vadd.f32 %v10078_v35, %v5632_v17 }
 0x2fc   : > { %v9973_v34 = vpop.f32.mrb[188].mxu1 }
 0x2fd   : > { %v10079_v1 = vpop.f32.mrb[184].mxu0  ;;  %v9974_v51 = vpop.f32.mrb[189].mxu1 }
 0x2fe   : > { %v10080_v58 = vpop.f32.mrb[185].mxu0  ;;  %v9975_v57 = vadd.f32 %v9974_v51, %v9973_v34  ;;  %v9976_v27 = vpop.f32.mrb[190].mxu1 }
 0x2ff   : > { %v10081_v41 = vadd.f32 %v10080_v58, %v10079_v1  ;;  %v10082_v48 = vpop.f32.mrb[186].mxu0  ;;  %v9977_v54 = vpop.f32.mrb[191].mxu1 }
 0x300   : > { %v10083_v45 = vpop.f32.mrb[187].mxu0  ;;  %v5635_v49 = vadd.f32 %v9975_v57, %v13704_v2  ;;  %v9978_v62 = vadd.f32 %v9977_v54, %v9976_v27 }
 0x301   : > { %v13351_v12 = vadd.f32 %v10081_v41, %v5633_v15  ;;  %v10084_v52 = vadd.f32 %v10083_v45, %v10082_v48 }
 0x302   : > { %v5636_v29 = vadd.f32 %v9978_v62, %v13705_v14 }
 0x303   : > { %v13353_v30 = vadd.f32 %v10084_v52, %v5634_v50 }
 0x304   : > { %v9979_v0 = vpop.f32.mrb[192].mxu1 }
 0x305   : > { %v10085_v43 = vpop.f32.mrb[188].mxu0  ;;  %v9980_v28 = vpop.f32.mrb[193].mxu1 }
 0x306   : > { %v10086_v10 = vpop.f32.mrb[189].mxu0  ;;  %v9981_v23 = vadd.f32 %v9980_v28, %v9979_v0  ;;  %v9982_v44 = vpop.f32.mrb[194].mxu1 }
 0x307   : > { %v10087_v21 = vadd.f32 %v10086_v10, %v10085_v43  ;;  %v10088_v16 = vpop.f32.mrb[190].mxu0  ;;  %v9983_v56 = vpop.f32.mrb[195].mxu1 }
 0x308   : > { %v10089_v55 = vpop.f32.mrb[191].mxu0  ;;  %v5637_v59 = vadd.f32 %v9981_v23, %v12952_v32  ;;  %v9984_v60 = vadd.f32 %v9983_v56, %v9982_v44 }
 0x309   : > { %v13357_v17 = vadd.f32 %v10087_v21, %v5635_v49  ;;  %v10090_v22 = vadd.f32 %v10089_v55, %v10088_v16 }
 0x30a   : > { %v5638_v35 = vadd.f32 %v9984_v60, %v12957_v3 }
 0x30b   : > { %v13359_v4 = vadd.f32 %v10090_v22, %v5636_v29 }
 0x30c   : > { %v9985_v20 = vpop.f32.mrb[196].mxu1 }
 0x30d   : > { %v10091_v61 = vpop.f32.mrb[192].mxu0  ;;  %v9986_v1 = vpop.f32.mrb[197].mxu1 }
 0x30e   : > { %v10092_v5 = vpop.f32.mrb[193].mxu0  ;;  %v9987_v48 = vadd.f32 %v9986_v1, %v9985_v20  ;;  %v9988_v34 = vpop.f32.mrb[198].mxu1 }
 0x30f   : > { %v10093_v19 = vadd.f32 %v10092_v5, %v10091_v61  ;;  %v10094_v15 = vpop.f32.mrb[194].mxu0  ;;  %v9989_v45 = vpop.f32.mrb[199].mxu1 }
 0x310   : > { %v10095_v50 = vpop.f32.mrb[195].mxu0  ;;  %v5639_v32 = vadd.f32 %v9987_v48, %v12994_v37  ;;  %v9990_v52 = vadd.f32 %v9989_v45, %v9988_v34 }
 0x311   : > { %v13363_v58 = vadd.f32 %v10093_v19, %v5637_v59  ;;  %v10096_v41 = vadd.f32 %v10095_v50, %v10094_v15 }
 0x312   : > { %v5640_v3 = vadd.f32 %v9990_v52, %v13007_v31 }
 0x313   : > { %v13365_v51 = vadd.f32 %v10096_v41, %v5638_v35 }
 0x314   : > { %v9991_v49 = vpop.f32.mrb[200].mxu1 }
 0x315   : > { %v10097_v57 = vpop.f32.mrb[196].mxu0  ;;  %v9992_v14 = vpop.f32.mrb[201].mxu1 }
 0x316   : > { %v10098_v27 = vpop.f32.mrb[197].mxu0  ;;  %v9993_v10 = vadd.f32 %v9992_v14, %v9991_v49  ;;  %v9994_v21 = vpop.f32.mrb[202].mxu1 }
 0x317   : > { %v10099_v54 = vadd.f32 %v10098_v27, %v10097_v57  ;;  %v10100_v2 = vpop.f32.mrb[198].mxu0  ;;  %v9995_v16 = vpop.f32.mrb[203].mxu1 }
 0x318   : > { %v10101_v62 = vpop.f32.mrb[199].mxu0  ;;  %v5641_v37 = vadd.f32 %v9993_v10, %v13045_v24  ;;  %v9996_v55 = vadd.f32 %v9995_v16, %v9994_v21 }
 0x319   : > { %v13369_v29 = vadd.f32 %v10099_v54, %v5639_v32  ;;  %v10102_v43 = vadd.f32 %v10101_v62, %v10100_v2 }
 0x31a   : > { %v5642_v31 = vadd.f32 %v9996_v55, %v13055_v7 }
 0x31b   : > { %v13371_v0 = vadd.f32 %v10102_v43, %v5640_v3 }
 0x31c   : > { %v9997_v56 = vpop.f32.mrb[204].mxu1 }
 0x31d   : > { %v10103_v28 = vpop.f32.mrb[200].mxu0  ;;  %v9998_v60 = vpop.f32.mrb[205].mxu1 }
 0x31e   : > { %v10104_v22 = vpop.f32.mrb[201].mxu0  ;;  %v9999_v5 = vadd.f32 %v9998_v60, %v9997_v56  ;;  %v10000_v19 = vpop.f32.mrb[206].mxu1 }
 0x31f   : > { %v10105_v23 = vadd.f32 %v10104_v22, %v10103_v28  ;;  %v10106_v44 = vpop.f32.mrb[202].mxu0  ;;  %v10001_v15 = vpop.f32.mrb[207].mxu1 }
 0x320   : > { %v10107_v59 = vpop.f32.mrb[203].mxu0  ;;  %v5643_v24 = vadd.f32 %v9999_v5, %v13079_v6  ;;  %v10002_v50 = vadd.f32 %v10001_v15, %v10000_v19 }
 0x321   : > { %v13375_v35 = vadd.f32 %v10105_v23, %v5641_v37  ;;  %v10108_v61 = vadd.f32 %v10107_v59, %v10106_v44  ;;  %v13706_v59 = vld [vmem:[#allocation13_spill] sm:$0xff] }
 0x322   : > { %v5644_v7 = vadd.f32 %v10002_v50, %v13090_v36 }
 0x323   : > { %v13377_v20 = vadd.f32 %v10108_v61, %v5642_v31  ;;  %v13707_v61 = vld [vmem:[#allocation14_spill] sm:$0xff] }
 0x324   : > { %v10003_v45 = vpop.f32.mrb[208].mxu1 }
 0x325   : > { %v10109_v1 = vpop.f32.mrb[204].mxu0  ;;  %v10004_v52 = vpop.f32.mrb[209].mxu1 }
 0x326   : > { %v10110_v41 = vpop.f32.mrb[205].mxu0  ;;  %v10005_v27 = vadd.f32 %v10004_v52, %v10003_v45  ;;  %v10006_v54 = vpop.f32.mrb[210].mxu1 }
 0x327   : > { %v10111_v48 = vadd.f32 %v10110_v41, %v10109_v1  ;;  %v10112_v34 = vpop.f32.mrb[206].mxu0  ;;  %v10007_v2 = vpop.f32.mrb[211].mxu1 }
 0x328   : > { %v10113_v32 = vpop.f32.mrb[207].mxu0  ;;  %v5645_v6 = vadd.f32 %v10005_v27, %v13131_v26  ;;  %v10008_v62 = vadd.f32 %v10007_v2, %v10006_v54  ;;  %v13709_v2 = vld [vmem:[#allocation16_spill] sm:$0xff] }
 0x329   : > { %v13381_v3 = vadd.f32 %v10111_v48, %v5643_v24  ;;  %v10114_v57 = vadd.f32 %v10113_v32, %v10112_v34 }
 0x32a   : > { %v5646_v36 = vadd.f32 %v10008_v62, %v13141_v25 }
 0x32b   : > { %v13383_v49 = vadd.f32 %v10114_v57, %v5644_v7  ;;  %v13708_v57 = vld [vmem:[#allocation15_spill] sm:$0xff] }
 0x32c   : > { %v10009_v16 = vpop.f32.mrb[212].mxu1 }
 0x32d   : > { %v10115_v14 = vpop.f32.mrb[208].mxu0  ;;  %v10010_v55 = vpop.f32.mrb[213].mxu1 }
 0x32e   : > { %v10116_v43 = vpop.f32.mrb[209].mxu0  ;;  %v10011_v22 = vadd.f32 %v10010_v55, %v10009_v16  ;;  %v10012_v23 = vpop.f32.mrb[214].mxu1 }
 0x32f   : > { %v10117_v10 = vadd.f32 %v10116_v43, %v10115_v14  ;;  %v10118_v21 = vpop.f32.mrb[210].mxu0  ;;  %v10013_v44 = vpop.f32.mrb[215].mxu1 }
 0x330   : > { %v10119_v37 = vpop.f32.mrb[211].mxu0  ;;  %v5647_v26 = vadd.f32 %v10011_v22, %v13706_v59  ;;  %v10014_v60 = vadd.f32 %v10013_v44, %v10012_v23 }
 0x331   : > { %v13387_v31 = vadd.f32 %v10117_v10, %v5645_v6  ;;  %v10120_v28 = vadd.f32 %v10119_v37, %v10118_v21 }
 0x332   : > { %v5648_v25 = vadd.f32 %v10014_v60, %v13707_v61  ;;  %v7965_v60 = vlaneseq }
 0x333   : > { %v13389_v56 = vadd.f32 %v10120_v28, %v5646_v36 }
 0x334   : > { %v10015_v50 = vpop.f32.mrb[216].mxu1 }
 0x335   : > { %v10121_v5 = vpop.f32.mrb[212].mxu0  ;;  %v10016_v1 = vpop.f32.mrb[217].mxu1 }
 0x336   : > { %v10122_v19 = vpop.f32.mrb[213].mxu0  ;;  %v10017_v34 = vadd.f32 %v10016_v1, %v10015_v50  ;;  %v10018_v45 = vpop.f32.mrb[218].mxu1  ;;  %v7966_v50 = vshrl.u32 %v7965_v60, 7 }
 0x337   : > { %v10123_v15 = vadd.f32 %v10122_v19, %v10121_v5  ;;  %v10124_v24 = vpop.f32.mrb[214].mxu0  ;;  %v10019_v32 = vpop.f32.mrb[219].mxu1 }
 0x338   : > { %v10125_v7 = vpop.f32.mrb[215].mxu0  ;;  %v5649_v27 = vadd.f32 %v10017_v34, %v13708_v57  ;;  %v10020_v54 = vadd.f32 %v10019_v32, %v10018_v45 }
 0x339   : > { %v13393_v41 = vadd.f32 %v10123_v15, %v5647_v26  ;;  %v10126_v48 = vadd.f32 %v10125_v7, %v10124_v24 }
 0x33a   : > { %v5650_v6 = vadd.f32 %v10020_v54, %v13709_v2  ;;  %v7932_v2 = vld [vmem:[%s13540_s3] sm:$0x3] }
 0x33b   : > { %v13395_v52 = vadd.f32 %v10126_v48, %v5648_v25 }
 0x33c   : > { %v10021_v10 = vpop.f32.mrb[220].mxu1 }
 0x33d   : > { %v10127_v62 = vpop.f32.mrb[216].mxu0  ;;  %v10022_v16 = vpop.f32.mrb[221].mxu1 }
 0x33e   : > { %v10128_v36 = vpop.f32.mrb[217].mxu0  ;;  %v10023_v28 = vadd.f32 %v10022_v16, %v10021_v10  ;;  %v10024_v22 = vpop.f32.mrb[222].mxu1 }
 0x33f   : > { %v10129_v14 = vadd.f32 %v10128_v36, %v10127_v62  ;;  %v10130_v43 = vpop.f32.mrb[218].mxu0  ;;  %v10025_v23 = vpop.f32.mrb[223].mxu1  ;;  %v8003_v36 = vsub.s32 1, %v7966_v50 }
 0x340   : > { %v10131_v21 = vpop.f32.mrb[219].mxu0  ;;  %v5651_v59 = vadd.f32 %v10023_v28, %v13248_v18  ;;  %v10026_v26 = vadd.f32 %v10025_v23, %v10024_v22 }
 0x341   : > { %v13399_v37 = vadd.f32 %v10129_v14, %v5649_v27  ;;  %v10132_v55 = vadd.f32 %v10131_v21, %v10130_v43  ;;  %v13416_v22 = vrot.slane %v7932_v2, %v8003_v36 }
 0x342   : > { %v5652_v61 = vadd.f32 %v10026_v26, %v13256_v9  ;;  %v7967_v9 = vsub.s32 0, %v7966_v50 }
 0x343   : > { %v13401_v44 = vadd.f32 %v10132_v55, %v5650_v6 }
 0x344   : > { %v13414_v10 = vrot.slane %v7932_v2, %v7967_v9 }
 0x345   : > { %v10133_v25 = vpop.f32.mrb[220].mxu0  ;;  %v10155_v24 = vpop.f32.mrb[224].mxu1 }
 0x346   : > { %v10134_v5 = vpop.f32.mrb[221].mxu0  ;;  %v10156_v1 = vpop.f32.mrb[225].mxu1 }
 0x347   : > { %v10135_v19 = vadd.f32 %v10134_v5, %v10133_v25  ;;  %v10136_v15 = vpop.f32.mrb[222].mxu0  ;;  %v10157_v45 = vadd.f32 %v10156_v1, %v10155_v24  ;;  %v10158_v32 = vpop.f32.mrb[226].mxu1 }
 0x348   : > { %v10137_v7 = vpop.f32.mrb[223].mxu0  ;;  %v10159_v57 = vpop.f32.mrb[227].mxu1 }
 0x349   : > { %v13405_v48 = vadd.f32 %v10135_v19, %v5651_v59  ;;  %v10138_v34 = vadd.f32 %v10137_v7, %v10136_v15  ;;  %v7146_v18 = vadd.f32 %v10157_v45, %v13285_v53  ;;  %v10160_v54 = vadd.f32 %v10159_v57, %v10158_v32 }
 0x34b   : > { %v13407_v27 = vadd.f32 %v10138_v34, %v5652_v61  ;;  %v7147_v6 = vadd.f32 %v10160_v54, %v13291_v11 }
 0x34d   : > { %v10267_v62 = vpop.f32.mrb[224].mxu0  ;;  %v10161_v16 = vpop.f32.mrb[228].mxu1 }
 0x34e   : > { %v10268_v14 = vpop.f32.mrb[225].mxu0  ;;  %v10162_v28 = vpop.f32.mrb[229].mxu1 }
 0x34f   : > { %v10269_v43 = vadd.f32 %v10268_v14, %v10267_v62  ;;  %v10270_v21 = vpop.f32.mrb[226].mxu0  ;;  %v10163_v59 = vadd.f32 %v10162_v28, %v10161_v16  ;;  %v10164_v26 = vpop.f32.mrb[230].mxu1 }
 0x350   : > { %v10271_v55 = vpop.f32.mrb[227].mxu0  ;;  %v10165_v60 = vpop.f32.mrb[231].mxu1 }
 0x351   : > { %v7868_v53 = vadd.f32 %v10269_v43, %v7146_v18  ;;  %v10272_v23 = vadd.f32 %v10271_v55, %v10270_v21  ;;  %v7148_v25 = vadd.f32 %v10163_v59, %v13307_v13  ;;  %v10166_v5 = vadd.f32 %v10165_v60, %v10164_v26 }
 0x353   : > { %v7969_v11 = vmul.f32 %v13414_v10, %v7868_v53  ;;  %v7869_v61 = vadd.f32 %v10272_v23, %v7147_v6  ;;  %v7149_v24 = vadd.f32 %v10166_v5, %v13310_v38 }
 0x355   : > { %v8005_v19 = vadd.f32 %v13416_v22, %v7969_v11  ;;  %v7970_v15 = vmul.f32 %v13414_v10, %v7869_v61  ;;  %v10273_v50 = vpop.f32.mrb[228].mxu0 }
 0x356   : > { %v10274_v7 = vpop.f32.mrb[229].mxu0 }
 0x357   : > { %v8006_v1 = vadd.f32 %v13416_v22, %v7970_v15  ;;  %v10275_v34 = vadd.f32 %v10274_v7, %v10273_v50  ;;  %v10276_v45 = vpop.f32.mrb[230].mxu0  ;;  %v10167_v32 = vpop.f32.mrb[232].mxu1  ;;  %v8037_v57 = vmax.f32 %v8005_v19, 0.0 }
 0x358   : > { %v10277_v18 = vpop.f32.mrb[231].mxu0  ;;  %v10168_v54 = vpop.f32.mrb[233].mxu1 }
 0x359   : > { %v8038_v9 = vmax.f32 %v8006_v1, 0.0  ;;  %v7870_v13 = vadd.f32 %v10275_v34, %v7148_v25  ;;  %v10278_v2 = vadd.f32 %v10277_v18, %v10276_v45  ;;  %v10169_v6 = vadd.f32 %v10168_v54, %v10167_v32  ;;  %v10170_v62 = vpop.f32.mrb[234].mxu1 }
 0x35a   : > { %v10171_v38 = vpop.f32.mrb[235].mxu1 }
 0x35b   : > { %v9255_v36 = vpack.c.bf16 %v8038_v9, %v8037_v57  ;;  %v7971_v14 = vmul.f32 %v13414_v10, %v7870_v13  ;;  %v7871_v43 = vadd.f32 %v10278_v2, %v7149_v24  ;;  %v7150_v21 = vadd.f32 %v10169_v6, %v13323_v39 }
 0x35c   : > { %v10172_v16 = vadd.f32 %v10171_v38, %v10170_v62 }
 0x35d   : > { %9256 = vst [vmem:[%s13428_s29] sm:$0xff] %v9255_v36   ;;  %v8007_v55 = vadd.f32 %v13416_v22, %v7971_v14  ;;  %v7972_v28 = vmul.f32 %v13414_v10, %v7871_v43  ;;  %v10279_v53 = vpop.f32.mrb[232].mxu0 }
 0x35e   : > { %v7151_v23 = vadd.f32 %v10172_v16, %v13325_v46  ;;  %v10280_v59 = vpop.f32.mrb[233].mxu0 }
 0x35f   : > { %v8008_v26 = vadd.f32 %v13416_v22, %v7972_v28  ;;  %v10281_v60 = vadd.f32 %v10280_v59, %v10279_v53  ;;  %v10282_v11 = vpop.f32.mrb[234].mxu0  ;;  %v10173_v61 = vpop.f32.mrb[236].mxu1  ;;  %v8039_v25 = vmax.f32 %v8007_v55, 0.0 }
 0x360   : > { %v10283_v5 = vpop.f32.mrb[235].mxu0  ;;  %v10174_v19 = vpop.f32.mrb[237].mxu1 }
 0x361   : > { %v8040_v39 = vmax.f32 %v8008_v26, 0.0  ;;  %v7872_v15 = vadd.f32 %v10281_v60, %v7150_v21  ;;  %v10284_v24 = vadd.f32 %v10283_v5, %v10282_v11  ;;  %v10175_v50 = vadd.f32 %v10174_v19, %v10173_v61  ;;  %v10176_v7 = vpop.f32.mrb[238].mxu1 }
 0x362   : > { %v10177_v1 = vpop.f32.mrb[239].mxu1 }
 0x363   : > { %v9260_v34 = vpack.c.bf16 %v8040_v39, %v8039_v25  ;;  %v7973_v45 = vmul.f32 %v13414_v10, %v7872_v15  ;;  %v7873_v46 = vadd.f32 %v10284_v24, %v7151_v23  ;;  %v7152_v32 = vadd.f32 %v10175_v50, %v13333_v63 }
 0x364   : > { %v10178_v57 = vadd.f32 %v10177_v1, %v10176_v7 }
 0x365   : > { %9340 = vst [vmem:[%s13428_s29 + $0x8] sm:$0xff] %v9260_v34   ;;  %v8009_v18 = vadd.f32 %v13416_v22, %v7973_v45  ;;  %v7974_v54 = vmul.f32 %v13414_v10, %v7873_v46  ;;  %v10285_v9 = vpop.f32.mrb[236].mxu0 }
 0x366   : > { %v7153_v13 = vadd.f32 %v10178_v57, %v13335_v8  ;;  %v10286_v2 = vpop.f32.mrb[237].mxu0 }
 0x367   : > { %v8010_v6 = vadd.f32 %v13416_v22, %v7974_v54  ;;  %v10287_v62 = vadd.f32 %v10286_v2, %v10285_v9  ;;  %v10288_v38 = vpop.f32.mrb[238].mxu0  ;;  %v10179_v36 = vpop.f32.mrb[240].mxu1  ;;  %v8041_v14 = vmax.f32 %v8009_v18, 0.0 }
 0x368   : > { %v10289_v43 = vpop.f32.mrb[239].mxu0  ;;  %v10180_v21 = vpop.f32.mrb[241].mxu1 }
 0x369   : > { %v8042_v63 = vmax.f32 %v8010_v6, 0.0  ;;  %v7874_v16 = vadd.f32 %v10287_v62, %v7152_v32  ;;  %v10290_v55 = vadd.f32 %v10289_v43, %v10288_v38  ;;  %v10181_v28 = vadd.f32 %v10180_v21, %v10179_v36  ;;  %v10182_v53 = vpop.f32.mrb[242].mxu1 }
 0x36a   : > { %v10183_v23 = vpop.f32.mrb[243].mxu1 }
 0x36b   : > { %v9265_v59 = vpack.c.bf16 %v8042_v63, %v8041_v14  ;;  %v7975_v26 = vmul.f32 %v13414_v10, %v7874_v16  ;;  %v7875_v8 = vadd.f32 %v10290_v55, %v7153_v13  ;;  %v7154_v60 = vadd.f32 %v10181_v28, %v13339_v47 }
 0x36c   : > { %v10184_v11 = vadd.f32 %v10183_v23, %v10182_v53 }
 0x36d   : > { %9341 = vst [vmem:[%s13428_s29 + $0x10] sm:$0xff] %v9265_v59   ;;  %v8011_v61 = vadd.f32 %v13416_v22, %v7975_v26  ;;  %v7976_v25 = vmul.f32 %v13414_v10, %v7875_v8  ;;  %v10291_v5 = vpop.f32.mrb[240].mxu0 }
 0x36e   : > { %v7155_v19 = vadd.f32 %v10184_v11, %v13341_v42  ;;  %v10292_v39 = vpop.f32.mrb[241].mxu0 }
 0x36f   : > { %v8012_v15 = vadd.f32 %v13416_v22, %v7976_v25  ;;  %v10293_v24 = vadd.f32 %v10292_v39, %v10291_v5  ;;  %v10294_v50 = vpop.f32.mrb[242].mxu0  ;;  %v10185_v7 = vpop.f32.mrb[244].mxu1  ;;  %v8043_v1 = vmax.f32 %v8011_v61, 0.0 }
 0x370   : > { %v10295_v34 = vpop.f32.mrb[243].mxu0  ;;  %v10186_v45 = vpop.f32.mrb[245].mxu1 }
 0x371   : > { %v8044_v47 = vmax.f32 %v8012_v15, 0.0  ;;  %v7876_v46 = vadd.f32 %v10293_v24, %v7154_v60  ;;  %v10296_v32 = vadd.f32 %v10295_v34, %v10294_v50  ;;  %v10187_v57 = vadd.f32 %v10186_v45, %v10185_v7  ;;  %v10188_v18 = vpop.f32.mrb[246].mxu1 }
 0x372   : > { %v10189_v54 = vpop.f32.mrb[247].mxu1 }
 0x373   : > { %v9270_v9 = vpack.c.bf16 %v8044_v47, %v8043_v1  ;;  %v7977_v13 = vmul.f32 %v13414_v10, %v7876_v46  ;;  %v7877_v42 = vadd.f32 %v10296_v32, %v7155_v19  ;;  %v7156_v2 = vadd.f32 %v10187_v57, %v13345_v33 }
 0x374   : > { %v10190_v6 = vadd.f32 %v10189_v54, %v10188_v18 }
 0x375   : > { %9342 = vst [vmem:[%s13428_s29 + $0x18] sm:$0xff] %v9270_v9   ;;  %v8013_v62 = vadd.f32 %v13416_v22, %v7977_v13  ;;  %v7978_v38 = vmul.f32 %v13414_v10, %v7877_v42  ;;  %v10297_v36 = vpop.f32.mrb[244].mxu0 }
 0x376   : > { %v7157_v14 = vadd.f32 %v10190_v6, %v13347_v40  ;;  %v10298_v43 = vpop.f32.mrb[245].mxu0 }
 0x377   : > { %v8014_v21 = vadd.f32 %v13416_v22, %v7978_v38  ;;  %v10299_v63 = vadd.f32 %v10298_v43, %v10297_v36  ;;  %v10300_v16 = vpop.f32.mrb[246].mxu0  ;;  %v10191_v55 = vpop.f32.mrb[248].mxu1  ;;  %v8045_v28 = vmax.f32 %v8013_v62, 0.0 }
 0x378   : > { %v10301_v53 = vpop.f32.mrb[247].mxu0  ;;  %v10192_v23 = vpop.f32.mrb[249].mxu1 }
 0x379   : > { %v8046_v33 = vmax.f32 %v8014_v21, 0.0  ;;  %v7878_v59 = vadd.f32 %v10299_v63, %v7156_v2  ;;  %v10302_v26 = vadd.f32 %v10301_v53, %v10300_v16  ;;  %v10193_v8 = vadd.f32 %v10192_v23, %v10191_v55  ;;  %v10194_v60 = vpop.f32.mrb[250].mxu1 }
 0x37a   : > { %v10195_v11 = vpop.f32.mrb[251].mxu1 }
 0x37b   : > { %v9275_v61 = vpack.c.bf16 %v8046_v33, %v8045_v28  ;;  %v7979_v25 = vmul.f32 %v13414_v10, %v7878_v59  ;;  %v7879_v40 = vadd.f32 %v10302_v26, %v7157_v14  ;;  %v7158_v5 = vadd.f32 %v10193_v8, %v13351_v12 }
 0x37c   : > { %v10196_v19 = vadd.f32 %v10195_v11, %v10194_v60 }
 0x37d   : > { %9343 = vst [vmem:[%s13428_s29 + $0x20] sm:$0xff] %v9275_v61   ;;  %v8015_v39 = vadd.f32 %v13416_v22, %v7979_v25  ;;  %v7980_v15 = vmul.f32 %v13414_v10, %v7879_v40  ;;  %v10303_v24 = vpop.f32.mrb[248].mxu0 }
 0x37e   : > { %v7159_v50 = vadd.f32 %v10196_v19, %v13353_v30  ;;  %v10304_v7 = vpop.f32.mrb[249].mxu0 }
 0x37f   : > { %v8016_v1 = vadd.f32 %v13416_v22, %v7980_v15  ;;  %v10305_v34 = vadd.f32 %v10304_v7, %v10303_v24  ;;  %v10306_v45 = vpop.f32.mrb[250].mxu0  ;;  %v10197_v47 = vpop.f32.mrb[252].mxu1  ;;  %v8047_v46 = vmax.f32 %v8015_v39, 0.0 }
 0x380   : > { %v10307_v32 = vpop.f32.mrb[251].mxu0  ;;  %v10198_v57 = vpop.f32.mrb[253].mxu1 }
 0x381   : > { %v8048_v12 = vmax.f32 %v8016_v1, 0.0  ;;  %v7880_v18 = vadd.f32 %v10305_v34, %v7158_v5  ;;  %v10308_v54 = vadd.f32 %v10307_v32, %v10306_v45  ;;  %v10199_v9 = vadd.f32 %v10198_v57, %v10197_v47  ;;  %v10200_v13 = vpop.f32.mrb[254].mxu1 }
 0x382   : > { %v10201_v42 = vpop.f32.mrb[255].mxu1 }
 0x383   : > { %v9280_v2 = vpack.c.bf16 %v8048_v12, %v8047_v46  ;;  %v7981_v6 = vmul.f32 %v13414_v10, %v7880_v18  ;;  %v7881_v30 = vadd.f32 %v10308_v54, %v7159_v50  ;;  %v7160_v62 = vadd.f32 %v10199_v9, %v13357_v17 }
 0x384   : > { %v10202_v38 = vadd.f32 %v10201_v42, %v10200_v13 }
 0x385   : > { %9344 = vst [vmem:[%s13428_s29 + $0x28] sm:$0xff] %v9280_v2   ;;  %v8017_v36 = vadd.f32 %v13416_v22, %v7981_v6  ;;  %v7982_v14 = vmul.f32 %v13414_v10, %v7881_v30  ;;  %v10309_v43 = vpop.f32.mrb[252].mxu0 }
 0x386   : > { %v7161_v21 = vadd.f32 %v10202_v38, %v13359_v4  ;;  %v10310_v63 = vpop.f32.mrb[253].mxu0 }
 0x387   : > { %v8018_v16 = vadd.f32 %v13416_v22, %v7982_v14  ;;  %v10311_v55 = vadd.f32 %v10310_v63, %v10309_v43  ;;  %v10312_v28 = vpop.f32.mrb[254].mxu0  ;;  %v10203_v53 = vpop.f32.mrb[0].mxu1  ;;  %v8049_v23 = vmax.f32 %v8017_v36, 0.0 }
 0x388   : > { %v10313_v33 = vpop.f32.mrb[255].mxu0  ;;  %v10204_v59 = vpop.f32.mrb[1].mxu1 }
 0x389   : > { %v8050_v17 = vmax.f32 %v8018_v16, 0.0  ;;  %v7882_v26 = vadd.f32 %v10311_v55, %v7160_v62  ;;  %v10314_v8 = vadd.f32 %v10313_v33, %v10312_v28  ;;  %v10205_v60 = vadd.f32 %v10204_v59, %v10203_v53  ;;  %v10206_v11 = vpop.f32.mrb[2].mxu1 }
 0x38a   : > { %v10207_v61 = vpop.f32.mrb[3].mxu1 }
 0x38b   : > { %v9285_v25 = vpack.c.bf16 %v8050_v17, %v8049_v23  ;;  %v7983_v40 = vmul.f32 %v13414_v10, %v7882_v26  ;;  %v7883_v4 = vadd.f32 %v10314_v8, %v7161_v21  ;;  %v7162_v5 = vadd.f32 %v10205_v60, %v13363_v58 }
 0x38c   : > { %v10208_v19 = vadd.f32 %v10207_v61, %v10206_v11 }
 0x38d   : > { %9345 = vst [vmem:[%s13428_s29 + $0x30] sm:$0xff] %v9285_v25   ;;  %v8019_v39 = vadd.f32 %v13416_v22, %v7983_v40  ;;  %v7984_v15 = vmul.f32 %v13414_v10, %v7883_v4  ;;  %v10315_v24 = vpop.f32.mrb[0].mxu0 }
 0x38e   : > { %v7163_v50 = vadd.f32 %v10208_v19, %v13365_v51  ;;  %v10316_v7 = vpop.f32.mrb[1].mxu0 }
 0x38f   : > { %v8020_v1 = vadd.f32 %v13416_v22, %v7984_v15  ;;  %v10317_v34 = vadd.f32 %v10316_v7, %v10315_v24  ;;  %v10318_v45 = vpop.f32.mrb[2].mxu0  ;;  %v10209_v47 = vpop.f32.mrb[4].mxu1  ;;  %v8051_v46 = vmax.f32 %v8019_v39, 0.0 }
 0x390   : > { %v10319_v32 = vpop.f32.mrb[3].mxu0  ;;  %v10210_v57 = vpop.f32.mrb[5].mxu1 }
 0x391   : > { %v8052_v58 = vmax.f32 %v8020_v1, 0.0  ;;  %v7884_v12 = vadd.f32 %v10317_v34, %v7162_v5  ;;  %v10320_v18 = vadd.f32 %v10319_v32, %v10318_v45  ;;  %v10211_v54 = vadd.f32 %v10210_v57, %v10209_v47  ;;  %v10212_v9 = vpop.f32.mrb[6].mxu1 }
 0x392   : > { %v10213_v13 = vpop.f32.mrb[7].mxu1 }
 0x393   : > { %v9290_v42 = vpack.c.bf16 %v8052_v58, %v8051_v46  ;;  %v7985_v2 = vmul.f32 %v13414_v10, %v7884_v12  ;;  %v7885_v51 = vadd.f32 %v10320_v18, %v7163_v50  ;;  %v7164_v6 = vadd.f32 %v10211_v54, %v13369_v29 }
 0x394   : > { %v10214_v30 = vadd.f32 %v10213_v13, %v10212_v9 }
 0x395   : > { %9346 = vst [vmem:[%s13428_s29 + $0x38] sm:$0xff] %v9290_v42   ;;  %v8021_v62 = vadd.f32 %v13416_v22, %v7985_v2  ;;  %v7986_v38 = vmul.f32 %v13414_v10, %v7885_v51  ;;  %v10321_v36 = vpop.f32.mrb[4].mxu0 }
 0x396   : > { %v7165_v14 = vadd.f32 %v10214_v30, %v13371_v0  ;;  %v10322_v43 = vpop.f32.mrb[5].mxu0 }
 0x397   : > { %v8022_v21 = vadd.f32 %v13416_v22, %v7986_v38  ;;  %v10323_v63 = vadd.f32 %v10322_v43, %v10321_v36  ;;  %v10324_v16 = vpop.f32.mrb[6].mxu0  ;;  %v10215_v55 = vpop.f32.mrb[8].mxu1  ;;  %v8053_v28 = vmax.f32 %v8021_v62, 0.0 }
 0x398   : > { %v10325_v53 = vpop.f32.mrb[7].mxu0  ;;  %v10216_v23 = vpop.f32.mrb[9].mxu1 }
 0x399   : > { %v8054_v29 = vmax.f32 %v8022_v21, 0.0  ;;  %v7886_v33 = vadd.f32 %v10323_v63, %v7164_v6  ;;  %v10326_v59 = vadd.f32 %v10325_v53, %v10324_v16  ;;  %v10217_v17 = vadd.f32 %v10216_v23, %v10215_v55  ;;  %v10218_v26 = vpop.f32.mrb[10].mxu1 }
 0x39a   : > { %v10219_v8 = vpop.f32.mrb[11].mxu1 }
 0x39b   : > { %v9295_v60 = vpack.c.bf16 %v8054_v29, %v8053_v28  ;;  %v7987_v11 = vmul.f32 %v13414_v10, %v7886_v33  ;;  %v7887_v0 = vadd.f32 %v10326_v59, %v7165_v14  ;;  %v7166_v61 = vadd.f32 %v10217_v17, %v13375_v35 }
 0x39c   : > { %v10220_v25 = vadd.f32 %v10219_v8, %v10218_v26 }
 0x39d   : > { %9347 = vst [vmem:[%s13428_s29 + $0x40] sm:$0xff] %v9295_v60   ;;  %v8023_v40 = vadd.f32 %v13416_v22, %v7987_v11  ;;  %v7988_v4 = vmul.f32 %v13414_v10, %v7887_v0  ;;  %v10327_v5 = vpop.f32.mrb[8].mxu0 }
 0x39e   : > { %v7167_v19 = vadd.f32 %v10220_v25, %v13377_v20  ;;  %v10328_v39 = vpop.f32.mrb[9].mxu0 }
 0x39f   : > { %v8024_v15 = vadd.f32 %v13416_v22, %v7988_v4  ;;  %v10329_v24 = vadd.f32 %v10328_v39, %v10327_v5  ;;  %v10330_v50 = vpop.f32.mrb[10].mxu0  ;;  %v10221_v7 = vpop.f32.mrb[12].mxu1  ;;  %v8055_v1 = vmax.f32 %v8023_v40, 0.0 }
 0x3a0   : > { %v10331_v34 = vpop.f32.mrb[11].mxu0  ;;  %v10222_v45 = vpop.f32.mrb[13].mxu1 }
 0x3a1   : > { %v8056_v35 = vmax.f32 %v8024_v15, 0.0  ;;  %v7888_v47 = vadd.f32 %v10329_v24, %v7166_v61  ;;  %v10332_v46 = vadd.f32 %v10331_v34, %v10330_v50  ;;  %v10223_v32 = vadd.f32 %v10222_v45, %v10221_v7  ;;  %v10224_v57 = vpop.f32.mrb[14].mxu1 }
 0x3a2   : > { %v10225_v58 = vpop.f32.mrb[15].mxu1 }
 0x3a3   : > { %v9300_v12 = vpack.c.bf16 %v8056_v35, %v8055_v1  ;;  %v7989_v18 = vmul.f32 %v13414_v10, %v7888_v47  ;;  %v7889_v20 = vadd.f32 %v10332_v46, %v7167_v19  ;;  %v7168_v54 = vadd.f32 %v10223_v32, %v13381_v3 }
 0x3a4   : > { %v10226_v9 = vadd.f32 %v10225_v58, %v10224_v57 }
 0x3a5   : > { %9348 = vst [vmem:[%s13428_s29 + $0x48] sm:$0xff] %v9300_v12   ;;  %v8025_v13 = vadd.f32 %v13416_v22, %v7989_v18  ;;  %v7990_v42 = vmul.f32 %v13414_v10, %v7889_v20  ;;  %v10333_v2 = vpop.f32.mrb[12].mxu0 }
 0x3a6   : > { %v7169_v51 = vadd.f32 %v10226_v9, %v13383_v49  ;;  %v10334_v6 = vpop.f32.mrb[13].mxu0 }
 0x3a7   : > { %v8026_v30 = vadd.f32 %v13416_v22, %v7990_v42  ;;  %v10335_v62 = vadd.f32 %v10334_v6, %v10333_v2  ;;  %v10336_v38 = vpop.f32.mrb[14].mxu0  ;;  %v10227_v36 = vpop.f32.mrb[16].mxu1  ;;  %v8057_v14 = vmax.f32 %v8025_v13, 0.0 }
 0x3a8   : > { %v10337_v43 = vpop.f32.mrb[15].mxu0  ;;  %v10228_v21 = vpop.f32.mrb[17].mxu1 }
 0x3a9   : > { %v8058_v3 = vmax.f32 %v8026_v30, 0.0  ;;  %v7890_v63 = vadd.f32 %v10335_v62, %v7168_v54  ;;  %v10338_v16 = vadd.f32 %v10337_v43, %v10336_v38  ;;  %v10229_v55 = vadd.f32 %v10228_v21, %v10227_v36  ;;  %v10230_v28 = vpop.f32.mrb[18].mxu1 }
 0x3aa   : > { %v10231_v53 = vpop.f32.mrb[19].mxu1 }
 0x3ab   : > { %v9305_v23 = vpack.c.bf16 %v8058_v3, %v8057_v14  ;;  %v7991_v29 = vmul.f32 %v13414_v10, %v7890_v63  ;;  %v7891_v49 = vadd.f32 %v10338_v16, %v7169_v51  ;;  %v7170_v33 = vadd.f32 %v10229_v55, %v13387_v31 }
 0x3ac   : > { %v10232_v59 = vadd.f32 %v10231_v53, %v10230_v28 }
 0x3ad   : > { %9349 = vst [vmem:[%s13428_s29 + $0x50] sm:$0xff] %v9305_v23   ;;  %v8027_v17 = vadd.f32 %v13416_v22, %v7991_v29  ;;  %v7992_v26 = vmul.f32 %v13414_v10, %v7891_v49  ;;  %v10339_v8 = vpop.f32.mrb[16].mxu0 }
 0x3ae   : > { %v7171_v60 = vadd.f32 %v10232_v59, %v13389_v56  ;;  %v10340_v11 = vpop.f32.mrb[17].mxu0 }
 0x3af   : > { %v8028_v0 = vadd.f32 %v13416_v22, %v7992_v26  ;;  %v10341_v61 = vadd.f32 %v10340_v11, %v10339_v8  ;;  %v10342_v25 = vpop.f32.mrb[18].mxu0  ;;  %v10233_v40 = vpop.f32.mrb[20].mxu1  ;;  %v8059_v4 = vmax.f32 %v8027_v17, 0.0 }
 0x3b0   : > { %v10343_v5 = vpop.f32.mrb[19].mxu0  ;;  %v10234_v19 = vpop.f32.mrb[21].mxu1 }
 0x3b1   : > { %v8060_v31 = vmax.f32 %v8028_v0, 0.0  ;;  %v7892_v39 = vadd.f32 %v10341_v61, %v7170_v33  ;;  %v10344_v15 = vadd.f32 %v10343_v5, %v10342_v25  ;;  %v10235_v24 = vadd.f32 %v10234_v19, %v10233_v40  ;;  %v10236_v50 = vpop.f32.mrb[22].mxu1 }
 0x3b2   : > { %v10237_v7 = vpop.f32.mrb[23].mxu1 }
 0x3b3   : > { %v9310_v1 = vpack.c.bf16 %v8060_v31, %v8059_v4  ;;  %v7993_v34 = vmul.f32 %v13414_v10, %v7892_v39  ;;  %v7893_v56 = vadd.f32 %v10344_v15, %v7171_v60  ;;  %v7172_v45 = vadd.f32 %v10235_v24, %v13393_v41 }
 0x3b4   : > { %v10238_v35 = vadd.f32 %v10237_v7, %v10236_v50 }
 0x3b5   : > { %9350 = vst [vmem:[%s13428_s29 + $0x58] sm:$0xff] %v9310_v1   ;;  %v8029_v47 = vadd.f32 %v13416_v22, %v7993_v34  ;;  %v7994_v46 = vmul.f32 %v13414_v10, %v7893_v56  ;;  %v10345_v32 = vpop.f32.mrb[20].mxu0 }
 0x3b6   : > { %v7173_v57 = vadd.f32 %v10238_v35, %v13395_v52  ;;  %v10346_v58 = vpop.f32.mrb[21].mxu0 }
 0x3b7   : > { %v8030_v12 = vadd.f32 %v13416_v22, %v7994_v46  ;;  %v10347_v18 = vadd.f32 %v10346_v58, %v10345_v32  ;;  %v10348_v20 = vpop.f32.mrb[22].mxu0  ;;  %v10239_v54 = vpop.f32.mrb[24].mxu1  ;;  %v8061_v9 = vmax.f32 %v8029_v47, 0.0 }
 0x3b8   : > { %v10349_v13 = vpop.f32.mrb[23].mxu0  ;;  %v10240_v42 = vpop.f32.mrb[25].mxu1 }
 0x3b9   : > { %v8062_v41 = vmax.f32 %v8030_v12, 0.0  ;;  %v7894_v2 = vadd.f32 %v10347_v18, %v7172_v45  ;;  %v10350_v51 = vadd.f32 %v10349_v13, %v10348_v20  ;;  %v10241_v6 = vadd.f32 %v10240_v42, %v10239_v54  ;;  %v10242_v30 = vpop.f32.mrb[26].mxu1 }
 0x3ba   : > { %v10243_v62 = vpop.f32.mrb[27].mxu1 }
 0x3bb   : > { %v9315_v38 = vpack.c.bf16 %v8062_v41, %v8061_v9  ;;  %v7995_v36 = vmul.f32 %v13414_v10, %v7894_v2  ;;  %v7895_v52 = vadd.f32 %v10350_v51, %v7173_v57  ;;  %v7174_v14 = vadd.f32 %v10241_v6, %v13399_v37 }
 0x3bc   : > { %v10244_v43 = vadd.f32 %v10243_v62, %v10242_v30 }
 0x3bd   : > { %9351 = vst [vmem:[%s13428_s29 + $0x60] sm:$0xff] %v9315_v38   ;;  %v8031_v21 = vadd.f32 %v13416_v22, %v7995_v36  ;;  %v7996_v3 = vmul.f32 %v13414_v10, %v7895_v52  ;;  %v10351_v63 = vpop.f32.mrb[24].mxu0 }
 0x3be   : > { %v7175_v16 = vadd.f32 %v10244_v43, %v13401_v44  ;;  %v10352_v55 = vpop.f32.mrb[25].mxu0 }
 0x3bf   : > { %v8032_v28 = vadd.f32 %v13416_v22, %v7996_v3  ;;  %v10353_v53 = vadd.f32 %v10352_v55, %v10351_v63  ;;  %v10354_v23 = vpop.f32.mrb[26].mxu0  ;;  %v10245_v29 = vpop.f32.mrb[28].mxu1  ;;  %v8063_v49 = vmax.f32 %v8031_v21, 0.0 }
 0x3c0   : > { %v10355_v33 = vpop.f32.mrb[27].mxu0  ;;  %v10246_v59 = vpop.f32.mrb[29].mxu1 }
 0x3c1   : > { %v8064_v37 = vmax.f32 %v8032_v28, 0.0  ;;  %v7896_v17 = vadd.f32 %v10353_v53, %v7174_v14  ;;  %v10356_v26 = vadd.f32 %v10355_v33, %v10354_v23  ;;  %v10247_v8 = vadd.f32 %v10246_v59, %v10245_v29  ;;  %v10248_v60 = vpop.f32.mrb[30].mxu1 }
 0x3c2   : > { %v10249_v11 = vpop.f32.mrb[31].mxu1 }
 0x3c3   : > { %v9320_v0 = vpack.c.bf16 %v8064_v37, %v8063_v49  ;;  %v7997_v61 = vmul.f32 %v13414_v10, %v7896_v17  ;;  %v7897_v44 = vadd.f32 %v10356_v26, %v7175_v16  ;;  %v7176_v25 = vadd.f32 %v10247_v8, %v13405_v48 }
 0x3c4   : > { %v10250_v40 = vadd.f32 %v10249_v11, %v10248_v60 }
 0x3c5   : > { %9352 = vst [vmem:[%s13428_s29 + $0x68] sm:$0xff] %v9320_v0   ;;  %v8033_v4 = vadd.f32 %v13416_v22, %v7997_v61  ;;  %v7998_v5 = vmul.f32 %v13414_v10, %v7897_v44  ;;  %v10357_v19 = vpop.f32.mrb[28].mxu0 }
 0x3c6   : > { %v7177_v31 = vadd.f32 %v10250_v40, %v13407_v27  ;;  %v10358_v39 = vpop.f32.mrb[29].mxu0 }
 0x3c7   : > { %v8034_v15 = vadd.f32 %v13416_v22, %v7998_v5  ;;  %v10359_v24 = vadd.f32 %v10358_v39, %v10357_v19  ;;  %v10360_v50 = vpop.f32.mrb[30].mxu0  ;;  %v8065_v1 = vmax.f32 %v8033_v4, 0.0 }
 0x3c8   : > { %v10361_v7 = vpop.f32.mrb[31].mxu0 }
 0x3c9   : > { %v8066_v34 = vmax.f32 %v8034_v15, 0.0  ;;  %v7898_v48 = vadd.f32 %v10359_v24, %v7176_v25  ;;  %v10362_v56 = vadd.f32 %v10361_v7, %v10360_v50 }
 0x3cb   : > { %v9325_v45 = vpack.c.bf16 %v8066_v34, %v8065_v1  ;;  %v7999_v35 = vmul.f32 %v13414_v10, %v7898_v48  ;;  %v7899_v47 = vadd.f32 %v10362_v56, %v7177_v31 }
 0x3cd   : > { %9353 = vst [vmem:[%s13428_s29 + $0x70] sm:$0xff] %v9325_v45   ;;  %v8035_v46 = vadd.f32 %v13416_v22, %v7999_v35  ;;  %v8000_v27 = vmul.f32 %v13414_v10, %v7899_v47 }
 0x3cf   : > { %v8036_v32 = vadd.f32 %v13416_v22, %v8000_v27  ;;  %v8067_v57 = vmax.f32 %v8035_v46, 0.0 }
 0x3d1   : > { %v8068_v58 = vmax.f32 %v8036_v32, 0.0 }
 0x3d3   : > { %v9330_v12 = vpack.c.bf16 %v8068_v58, %v8067_v57 }
 0x3d5   : > { %9354 = vst [vmem:[%s13428_s29 + $0x78] sm:$0xff] %v9330_v12  }
 0x3d6 PF: > { %s14_s15 = sadd.s32 1, %s10736_s15  }
 0x3d7   : > { %p11_p4 = scmp.ge.s32.totalorder %s14_s15, 4  }
 0x3d9   :  { %13 = sbr.rel (!%p11_p4) target bundleno = 1 (0x1), region = 79 }

</bundles_post_ra>
